<compile_context>
chip_gen: v6e
topology: v6e:2x2x1
jax: 0.10.0
libtpu: 0.0.40
codegen_flags: <defaults>
</compile_context>

<pallas_src>
import jax
import jax.numpy as jnp
from jax import lax
import numpy as np
from jax.experimental import pallas as pl
from jax.experimental.pallas import tpu as pltpu


LANE = 128  # TPU lane width; channel dims are zero-padded to a multiple of
            # this so vector ops / matmuls / stores are lane-dense.


def _round_up(x, m):
    return (x + m - 1) // m * m


# ----------------------------- Pallas kernel ------------------------------ #
def _double_conv_kernel(xp_ref, w1_ref, s1_ref, b1_ref, w2_ref, s2_ref, b2_ref,
                        o_ref, y1_ref):
    """Fused DoubleConv (eval mode) for one batch element.

       xp_ref : (1, H+2, W+2, Cp_in)  bf16, spatially zero-padded input
       w1_ref : (9, Cp_in,  Cp_out)   bf16, tap-major conv1 weights
       w2_ref : (9, Cp_out, Cp_out)   bf16, tap-major conv2 weights
       s*/b*  : (1, Cp_out)           f32,  folded BN scale / bias
       o_ref  : (1, H, W, Cp_out)     f32 output
       y1_ref : (H+2, W+2, Cp_out)    f32 VMEM scratch (conv1 result + halo)
    """
    _, Hp, Wp, cin = xp_ref.shape
    _, H, W, cout = o_ref.shape

    # ---- conv1: 9 shifted-window matmuls (bf16 x bf16 -> f32 on MXU) ----
    acc = jnp.zeros((H * W, cout), jnp.float32)
    for ky in range(3):
        for kx in range(3):
            patch = xp_ref[0, ky:ky + H, kx:kx + W, :].reshape(H * W, cin)
            acc = acc + jnp.dot(patch, w1_ref[ky * 3 + kx],
                                preferred_element_type=jnp.float32)
    y1 = jnp.maximum(acc * s1_ref[...] + b1_ref[...], 0.0)   # folded BN + ReLU

    # Stage the intermediate in VMEM with a zero halo so conv2 reads
    # 'SAME'-padded data directly (no HBM write/read between the convs).
    y1_ref[...] = jnp.zeros_like(y1_ref)
    y1_ref[1:H + 1, 1:W + 1, :] = y1.reshape(H, W, cout)

    # ---- conv2 + BN + ReLU ----
    acc2 = jnp.zeros((H * W, cout), jnp.float32)
    for ky in range(3):
        for kx in range(3):
            patch = (y1_ref[ky:ky + H, kx:kx + W, :]
                     .astype(jnp.bfloat16).reshape(H * W, cout))
            acc2 = acc2 + jnp.dot(patch, w2_ref[ky * 3 + kx],
                                  preferred_element_type=jnp.float32)
    y2 = jnp.maximum(acc2 * s2_ref[...] + b2_ref[...], 0.0)
    o_ref[...] = y2.reshape(1, H, W, cout).astype(o_ref.dtype)


def double_conv_pallas(xp, w1, s1, b1, w2, s2, b2):
    """xp: (N, H+2, W+2, Cp_in) bf16; weights tap-major bf16; scale/bias f32."""
    N, Hp, Wp, Cp_in = xp.shape
    H, W = Hp - 2, Wp - 2
    Cp_out = w1.shape[-1]
    return pl.pallas_call(
        _double_conv_kernel,
        out_shape=jax.ShapeDtypeStruct((N, H, W, Cp_out), jnp.float32),
        grid_spec=pltpu.PrefetchScalarGridSpec(
            num_scalar_prefetch=0,
            grid=(N,),   # N=2 -> two balanced parallel steps (both v7x TCs)
            in_specs=[
                pl.BlockSpec((1, Hp, Wp, Cp_in), lambda n: (n, 0, 0, 0)),
                pl.BlockSpec((9, Cp_in, Cp_out), lambda n: (0, 0, 0)),
                pl.BlockSpec((1, Cp_out), lambda n: (0, 0)),
                pl.BlockSpec((1, Cp_out), lambda n: (0, 0)),
                pl.BlockSpec((9, Cp_out, Cp_out), lambda n: (0, 0, 0)),
                pl.BlockSpec((1, Cp_out), lambda n: (0, 0)),
                pl.BlockSpec((1, Cp_out), lambda n: (0, 0)),
            ],
            out_specs=pl.BlockSpec((1, H, W, Cp_out), lambda n: (n, 0, 0, 0)),
            scratch_shapes=[pltpu.VMEM((Hp, Wp, Cp_out), jnp.float32)],
        ),
        compiler_params=pltpu.CompilerParams(
            dimension_semantics=("parallel",)),
        # TODO(synk): at realistic UNet sizes add spatial row tiling
        # (grid=(N, H//tH) with a 2-row halo) so per-step VMEM stays within the
        # 16/32 MiB scoped defaults and v7x's 64 MiB physical VMEM.
    )(xp, w1, s1, b1, w2, s2, b2)


# ------------------------------- JAX glue ---------------------------------- #
def _interp_matrix(n_in, n_out):
    """Dense 1-D bilinear interpolation matrix, align_corners=True (static)."""
    if n_in == 1:
        return np.ones((n_out, 1), np.float32)
    src = np.arange(n_out, dtype=np.float64) * (n_in - 1) / (n_out - 1)
    i0 = np.clip(np.floor(src).astype(np.int64), 0, n_in - 1)
    i1 = np.clip(i0 + 1, 0, n_in - 1)
    frac = (src - i0).astype(np.float32)
    m = np.zeros((n_out, n_in), np.float32)
    m[np.arange(n_out), i0] += 1.0 - frac
    m[np.arange(n_out), i1] += frac
    return m


def upsample_bilinear_2x_nhwc(x):
    """NHWC bilinear 2x upsample, align_corners=True (PyTorch semantics).

    Gather-free: expressed as two small dense interpolation matmuls so the
    XLA prologue stays on the MXU/VPU instead of emitting TPU gathers.
    """
    N, H, W, C = x.shape
    my = jnp.asarray(_interp_matrix(H, 2 * H))     # (2H, H)
    mx = jnp.asarray(_interp_matrix(W, 2 * W))     # (2W, W)
    y = jnp.einsum('ph,nhwc->npwc', my, x)         # upsample along H
    return jnp.einsum('qw,npwc->npqc', mx, y)      # upsample along W


def _prep_conv_weight(w, cin_pad, cout_pad):
    """OIHW (Cout, Cin, 3, 3) -> tap-major (9, cin_pad, cout_pad) bf16."""
    cout, cin = w.shape[0], w.shape[1]
    w9 = jnp.transpose(w, (2, 3, 1, 0)).reshape(9, cin, cout)
    w9 = jnp.pad(w9, ((0, 0), (0, cin_pad - cin), (0, cout_pad - cout)))
    return w9.astype(jnp.bfloat16)


def _fold_bn(conv_bias, gamma, beta, mean, var, cpad, eps=1e-5):
    """Fold conv bias + eval-mode BN into per-channel scale/bias (lane-padded)."""
    s = gamma / jnp.sqrt(var + eps)
    t = (conv_bias - mean) * s + beta
    s = jnp.pad(s, (0, cpad - s.shape[0]))   # padded channels: 0*x + 0 = 0
    t = jnp.pad(t, (0, cpad - t.shape[0]))
    return s.reshape(1, -1), t.reshape(1, -1)


def up_forward_pallas(params, x1, x2):
    """x1, x2: NCHW (module-facing).  Internally channels-last + bf16."""
    x1h = jnp.transpose(x1, (0, 2, 3, 1))
    x2h = jnp.transpose(x2, (0, 2, 3, 1))
    # TODO(synk): fold the fixed-weight 2x align_corners upsample into the
    # kernel and keep the surrounding network channels-last so these boundary
    # transposes disappear entirely.
    x1u = upsample_bilinear_2x_nhwc(x1h)
    dY = x2h.shape[1] - x1u.shape[1]
    dX = x2h.shape[2] - x1u.shape[2]
    x1p = jnp.pad(x1u, ((0, 0), (dY // 2, dY - dY // 2),
                        (dX // 2, dX - dX // 2), (0, 0)))

    N, H, W, C2 = x2h.shape
    C1 = x1p.shape[-1]
    Cin = C1 + C2
    Cout = params["w1"].shape[0]
    Cp_in = _round_up(Cin, LANE)
    Cp_out = _round_up(Cout, LANE)

    # Fused concat + spatial halo + lane pad, emitted directly in bf16: this is
    # exactly the tensor the kernel consumes (single XLA copy, no relayouts).
    xcat = jnp.concatenate([x2h, x1p], axis=-1).astype(jnp.bfloat16)
    xp = jnp.pad(xcat, ((0, 0), (1, 1), (1, 1), (0, Cp_in - Cin)))

    w1 = _prep_conv_weight(params["w1"], Cp_in, Cp_out)
    w2 = _prep_conv_weight(params["w2"], Cp_out, Cp_out)
    s1, t1 = _fold_bn(params["b1"], params["g1"], params["be1"],
                      params["m1"], params["v1"], Cp_out)
    s2, t2 = _fold_bn(params["b2"], params["g2"], params["be2"],
                      params["m2"], params["v2"], Cp_out)

    y = double_conv_pallas(xp, w1, s1, t1, w2, s2, t2)
    # Dropout(drop_path_rate) is identity in eval mode (no-op).
    y = y[..., :Cout]                         # drop lane padding
    return jnp.transpose(y, (0, 3, 1, 2))     # back to module-facing NCHW


def up_forward_ref(params, x1, x2):
    """Pure-JAX reference with matching numerics (bf16 matmuls, f32 accum)."""
    x1h = jnp.transpose(x1, (0, 2, 3, 1))
    x2h = jnp.transpose(x2, (0, 2, 3, 1))
    x1u = upsample_bilinear_2x_nhwc(x1h)
    dY = x2h.shape[1] - x1u.shape[1]
    dX = x2h.shape[2] - x1u.shape[2]
    x1p = jnp.pad(x1u, ((0, 0), (dY // 2, dY - dY // 2),
                        (dX // 2, dX - dX // 2), (0, 0)))
    x = jnp.concatenate([x2h, x1p], axis=-1)

    def block(x, w, b, g, be, m, v):
        wh = jnp.transpose(w, (2, 3, 1, 0)).astype(jnp.bfloat16)   # HWIO
        y = lax.conv_general_dilated(
            x.astype(jnp.bfloat16), wh, (1, 1), 'SAME',
            dimension_numbers=('NHWC', 'HWIO', 'NHWC'),
            preferred_element_type=jnp.float32)
        s = g / jnp.sqrt(v + 1e-5)
        t = (b - m) * s + be
        return jnp.maximum(y * s + t, 0.0)

    y = block(x, params["w1"], params["b1"], params["g1"], params["be1"],
              params["m1"], params["v1"])
    y = block(y, params["w2"], params["b2"], params["g2"], params["be2"],
              params["m2"], params["v2"])
    return jnp.transpose(y, (0, 3, 1, 2))


def make_up_params(key, in_channels, out_channels):
    ks = jax.random.split(key, 12)
    p = {}
    p["w1"] = 0.1 * jax.random.normal(ks[0], (out_channels, in_channels, 3, 3), jnp.float32)
    p["b1"] = 0.1 * jax.random.normal(ks[1], (out_channels,), jnp.float32)
    p["g1"] = 1.0 + 0.1 * jax.random.normal(ks[2], (out_channels,), jnp.float32)
    p["be1"] = 0.1 * jax.random.normal(ks[3], (out_channels,), jnp.float32)
    p["m1"] = 0.1 * jax.random.normal(ks[4], (out_channels,), jnp.float32)
    p["v1"] = jax.random.uniform(ks[5], (out_channels,), jnp.float32, 0.5, 1.5)
    p["w2"] = 0.1 * jax.random.normal(ks[6], (out_channels, out_channels, 3, 3), jnp.float32)
    p["b2"] = 0.1 * jax.random.normal(ks[7], (out_channels,), jnp.float32)
    p["g2"] = 1.0 + 0.1 * jax.random.normal(ks[8], (out_channels,), jnp.float32)
    p["be2"] = 0.1 * jax.random.normal(ks[9], (out_channels,), jnp.float32)
    p["m2"] = 0.1 * jax.random.normal(ks[10], (out_channels,), jnp.float32)
    p["v2"] = jax.random.uniform(ks[11], (out_channels,), jnp.float32, 0.5, 1.5)
    return p


if __name__ == "__main__":
    key = jax.random.PRNGKey(0)
    k1, k2, kp = jax.random.split(key, 3)

    # Up(in_channels=8, out_channels=4, bilinear=True), eval mode.
    # x1: low-res feature map (N, 4, 8, 8); x2: skip connection (N, 4, 16, 16)
    x1 = jax.random.normal(k1, (2, 4, 8, 8), jnp.float32)
    x2 = jax.random.normal(k2, (2, 4, 16, 16), jnp.float32)
    params = make_up_params(kp, in_channels=8, out_channels=4)

    out = jax.block_until_ready(jax.jit(up_forward_pallas)(params, x1, x2))
    ref = jax.block_until_ready(jax.jit(up_forward_ref)(params, x1, x2))

    assert out.shape == (2, 4, 16, 16), out.shape
    np.testing.assert_allclose(np.asarray(out), np.asarray(ref),
                               rtol=1e-2, atol=1e-2)
    print("KERNEL_OK")
</pallas_src>

<mosaic_0001>
module attributes {stable_mosaic.version = 11 : i64} {
  func.func @_double_conv_kernel(%arg0: i32, %arg1: memref<1x18x18x128xbf16, #tpu.memory_space<vmem>>, %arg2: memref<9x128x128xbf16, #tpu.memory_space<vmem>>, %arg3: memref<1x128xf32, #tpu.memory_space<vmem>>, %arg4: memref<1x128xf32, #tpu.memory_space<vmem>>, %arg5: memref<9x128x128xbf16, #tpu.memory_space<vmem>>, %arg6: memref<1x128xf32, #tpu.memory_space<vmem>>, %arg7: memref<1x128xf32, #tpu.memory_space<vmem>>, %arg8: memref<1x16x16x128xf32, #tpu.memory_space<vmem>>, %arg9: memref<18x18x128xf32, #tpu.memory_space<vmem>>) attributes {dimension_semantics = [#tpu.dimension_semantics<parallel>], iteration_bounds = array<i64: 2>, scalar_prefetch = 0 : i64, scratch_operands = 1 : i64, tpu.core_type = #tpu.core_type<tc>, window_params = [{transform_indices = @transform_0, window_bounds = array<i64: 1, 18, 18, 128>}, {pipeline_mode = #tpu.pipeline_mode<synchronous>, transform_indices = @transform_1, window_bounds = array<i64: 9, 128, 128>}, {pipeline_mode = #tpu.pipeline_mode<synchronous>, transform_indices = @transform_2, window_bounds = array<i64: 1, 128>}, {pipeline_mode = #tpu.pipeline_mode<synchronous>, transform_indices = @transform_3, window_bounds = array<i64: 1, 128>}, {pipeline_mode = #tpu.pipeline_mode<synchronous>, transform_indices = @transform_4, window_bounds = array<i64: 9, 128, 128>}, {pipeline_mode = #tpu.pipeline_mode<synchronous>, transform_indices = @transform_5, window_bounds = array<i64: 1, 128>}, {pipeline_mode = #tpu.pipeline_mode<synchronous>, transform_indices = @transform_6, window_bounds = array<i64: 1, 128>}, {transform_indices = @transform_7, window_bounds = array<i64: 1, 16, 16, 128>}]} {
    %cst = arith.constant 0.000000e+00 : f32
    %0 = vector.broadcast %cst : f32 to vector<256x128xf32>
    %c0 = arith.constant 0 : index
    %c0_0 = arith.constant 0 : index
    %c0_1 = arith.constant 0 : index
    %c0_2 = arith.constant 0 : index
    %1 = vector.load %arg1[%c0, %c0_0, %c0_1, %c0_2] : memref<1x18x18x128xbf16, #tpu.memory_space<vmem>>, vector<1x16x16x128xbf16>
    %2 = vector.shape_cast %1 : vector<1x16x16x128xbf16> to vector<16x16x128xbf16>
    %3 = vector.shape_cast %2 : vector<16x16x128xbf16> to vector<256x128xbf16>
    %c0_3 = arith.constant 0 : index
    %c0_4 = arith.constant 0 : index
    %c0_5 = arith.constant 0 : index
    %4 = vector.load %arg2[%c0_3, %c0_4, %c0_5] : memref<9x128x128xbf16, #tpu.memory_space<vmem>>, vector<1x128x128xbf16>
    %5 = vector.shape_cast %4 : vector<1x128x128xbf16> to vector<128x128xbf16>
    %cst_6 = arith.constant dense<0.000000e+00> : vector<256x128xf32>
    %6 = tpu.matmul %3, %5, %cst_6 {dimension_numbers = #tpu.dot_dimension_numbers<[1], [0], [0], [1], [0, 0, 1, 1], [], []>} : vector<256x128xbf16>, vector<128x128xbf16>, vector<256x128xf32> -> vector<256x128xf32>
    %7 = arith.addf %0, %6 : vector<256x128xf32>
    %c0_7 = arith.constant 0 : index
    %c0_8 = arith.constant 0 : index
    %c1 = arith.constant 1 : index
    %c0_9 = arith.constant 0 : index
    %8 = vector.load %arg1[%c0_7, %c0_8, %c1, %c0_9] : memref<1x18x18x128xbf16, #tpu.memory_space<vmem>>, vector<1x16x16x128xbf16>
    %9 = vector.shape_cast %8 : vector<1x16x16x128xbf16> to vector<16x16x128xbf16>
    %10 = vector.shape_cast %9 : vector<16x16x128xbf16> to vector<256x128xbf16>
    %c1_10 = arith.constant 1 : index
    %c0_11 = arith.constant 0 : index
    %c0_12 = arith.constant 0 : index
    %11 = vector.load %arg2[%c1_10, %c0_11, %c0_12] : memref<9x128x128xbf16, #tpu.memory_space<vmem>>, vector<1x128x128xbf16>
    %12 = vector.shape_cast %11 : vector<1x128x128xbf16> to vector<128x128xbf16>
    %cst_13 = arith.constant dense<0.000000e+00> : vector<256x128xf32>
    %13 = tpu.matmul %10, %12, %cst_13 {dimension_numbers = #tpu.dot_dimension_numbers<[1], [0], [0], [1], [0, 0, 1, 1], [], []>} : vector<256x128xbf16>, vector<128x128xbf16>, vector<256x128xf32> -> vector<256x128xf32>
    %14 = arith.addf %7, %13 : vector<256x128xf32>
    %c0_14 = arith.constant 0 : index
    %c0_15 = arith.constant 0 : index
    %c2 = arith.constant 2 : index
    %c0_16 = arith.constant 0 : index
    %15 = vector.load %arg1[%c0_14, %c0_15, %c2, %c0_16] : memref<1x18x18x128xbf16, #tpu.memory_space<vmem>>, vector<1x16x16x128xbf16>
    %16 = vector.shape_cast %15 : vector<1x16x16x128xbf16> to vector<16x16x128xbf16>
    %17 = vector.shape_cast %16 : vector<16x16x128xbf16> to vector<256x128xbf16>
    %c2_17 = arith.constant 2 : index
    %c0_18 = arith.constant 0 : index
    %c0_19 = arith.constant 0 : index
    %18 = vector.load %arg2[%c2_17, %c0_18, %c0_19] : memref<9x128x128xbf16, #tpu.memory_space<vmem>>, vector<1x128x128xbf16>
    %19 = vector.shape_cast %18 : vector<1x128x128xbf16> to vector<128x128xbf16>
    %cst_20 = arith.constant dense<0.000000e+00> : vector<256x128xf32>
    %20 = tpu.matmul %17, %19, %cst_20 {dimension_numbers = #tpu.dot_dimension_numbers<[1], [0], [0], [1], [0, 0, 1, 1], [], []>} : vector<256x128xbf16>, vector<128x128xbf16>, vector<256x128xf32> -> vector<256x128xf32>
    %21 = arith.addf %14, %20 : vector<256x128xf32>
    %c0_21 = arith.constant 0 : index
    %c1_22 = arith.constant 1 : index
    %c0_23 = arith.constant 0 : index
    %c0_24 = arith.constant 0 : index
    %22 = vector.load %arg1[%c0_21, %c1_22, %c0_23, %c0_24] : memref<1x18x18x128xbf16, #tpu.memory_space<vmem>>, vector<1x16x16x128xbf16>
    %23 = vector.shape_cast %22 : vector<1x16x16x128xbf16> to vector<16x16x128xbf16>
    %24 = vector.shape_cast %23 : vector<16x16x128xbf16> to vector<256x128xbf16>
    %c3 = arith.constant 3 : index
    %c0_25 = arith.constant 0 : index
    %c0_26 = arith.constant 0 : index
    %25 = vector.load %arg2[%c3, %c0_25, %c0_26] : memref<9x128x128xbf16, #tpu.memory_space<vmem>>, vector<1x128x128xbf16>
    %26 = vector.shape_cast %25 : vector<1x128x128xbf16> to vector<128x128xbf16>
    %cst_27 = arith.constant dense<0.000000e+00> : vector<256x128xf32>
    %27 = tpu.matmul %24, %26, %cst_27 {dimension_numbers = #tpu.dot_dimension_numbers<[1], [0], [0], [1], [0, 0, 1, 1], [], []>} : vector<256x128xbf16>, vector<128x128xbf16>, vector<256x128xf32> -> vector<256x128xf32>
    %28 = arith.addf %21, %27 : vector<256x128xf32>
    %c0_28 = arith.constant 0 : index
    %c1_29 = arith.constant 1 : index
    %c1_30 = arith.constant 1 : index
    %c0_31 = arith.constant 0 : index
    %29 = vector.load %arg1[%c0_28, %c1_29, %c1_30, %c0_31] : memref<1x18x18x128xbf16, #tpu.memory_space<vmem>>, vector<1x16x16x128xbf16>
    %30 = vector.shape_cast %29 : vector<1x16x16x128xbf16> to vector<16x16x128xbf16>
    %31 = vector.shape_cast %30 : vector<16x16x128xbf16> to vector<256x128xbf16>
    %c4 = arith.constant 4 : index
    %c0_32 = arith.constant 0 : index
    %c0_33 = arith.constant 0 : index
    %32 = vector.load %arg2[%c4, %c0_32, %c0_33] : memref<9x128x128xbf16, #tpu.memory_space<vmem>>, vector<1x128x128xbf16>
    %33 = vector.shape_cast %32 : vector<1x128x128xbf16> to vector<128x128xbf16>
    %cst_34 = arith.constant dense<0.000000e+00> : vector<256x128xf32>
    %34 = tpu.matmul %31, %33, %cst_34 {dimension_numbers = #tpu.dot_dimension_numbers<[1], [0], [0], [1], [0, 0, 1, 1], [], []>} : vector<256x128xbf16>, vector<128x128xbf16>, vector<256x128xf32> -> vector<256x128xf32>
    %35 = arith.addf %28, %34 : vector<256x128xf32>
    %c0_35 = arith.constant 0 : index
    %c1_36 = arith.constant 1 : index
    %c2_37 = arith.constant 2 : index
    %c0_38 = arith.constant 0 : index
    %36 = vector.load %arg1[%c0_35, %c1_36, %c2_37, %c0_38] : memref<1x18x18x128xbf16, #tpu.memory_space<vmem>>, vector<1x16x16x128xbf16>
    %37 = vector.shape_cast %36 : vector<1x16x16x128xbf16> to vector<16x16x128xbf16>
    %38 = vector.shape_cast %37 : vector<16x16x128xbf16> to vector<256x128xbf16>
    %c5 = arith.constant 5 : index
    %c0_39 = arith.constant 0 : index
    %c0_40 = arith.constant 0 : index
    %39 = vector.load %arg2[%c5, %c0_39, %c0_40] : memref<9x128x128xbf16, #tpu.memory_space<vmem>>, vector<1x128x128xbf16>
    %40 = vector.shape_cast %39 : vector<1x128x128xbf16> to vector<128x128xbf16>
    %cst_41 = arith.constant dense<0.000000e+00> : vector<256x128xf32>
    %41 = tpu.matmul %38, %40, %cst_41 {dimension_numbers = #tpu.dot_dimension_numbers<[1], [0], [0], [1], [0, 0, 1, 1], [], []>} : vector<256x128xbf16>, vector<128x128xbf16>, vector<256x128xf32> -> vector<256x128xf32>
    %42 = arith.addf %35, %41 : vector<256x128xf32>
    %c0_42 = arith.constant 0 : index
    %c2_43 = arith.constant 2 : index
    %c0_44 = arith.constant 0 : index
    %c0_45 = arith.constant 0 : index
    %43 = vector.load %arg1[%c0_42, %c2_43, %c0_44, %c0_45] : memref<1x18x18x128xbf16, #tpu.memory_space<vmem>>, vector<1x16x16x128xbf16>
    %44 = vector.shape_cast %43 : vector<1x16x16x128xbf16> to vector<16x16x128xbf16>
    %45 = vector.shape_cast %44 : vector<16x16x128xbf16> to vector<256x128xbf16>
    %c6 = arith.constant 6 : index
    %c0_46 = arith.constant 0 : index
    %c0_47 = arith.constant 0 : index
    %46 = vector.load %arg2[%c6, %c0_46, %c0_47] : memref<9x128x128xbf16, #tpu.memory_space<vmem>>, vector<1x128x128xbf16>
    %47 = vector.shape_cast %46 : vector<1x128x128xbf16> to vector<128x128xbf16>
    %cst_48 = arith.constant dense<0.000000e+00> : vector<256x128xf32>
    %48 = tpu.matmul %45, %47, %cst_48 {dimension_numbers = #tpu.dot_dimension_numbers<[1], [0], [0], [1], [0, 0, 1, 1], [], []>} : vector<256x128xbf16>, vector<128x128xbf16>, vector<256x128xf32> -> vector<256x128xf32>
    %49 = arith.addf %42, %48 : vector<256x128xf32>
    %c0_49 = arith.constant 0 : index
    %c2_50 = arith.constant 2 : index
    %c1_51 = arith.constant 1 : index
    %c0_52 = arith.constant 0 : index
    %50 = vector.load %arg1[%c0_49, %c2_50, %c1_51, %c0_52] : memref<1x18x18x128xbf16, #tpu.memory_space<vmem>>, vector<1x16x16x128xbf16>
    %51 = vector.shape_cast %50 : vector<1x16x16x128xbf16> to vector<16x16x128xbf16>
    %52 = vector.shape_cast %51 : vector<16x16x128xbf16> to vector<256x128xbf16>
    %c7 = arith.constant 7 : index
    %c0_53 = arith.constant 0 : index
    %c0_54 = arith.constant 0 : index
    %53 = vector.load %arg2[%c7, %c0_53, %c0_54] : memref<9x128x128xbf16, #tpu.memory_space<vmem>>, vector<1x128x128xbf16>
    %54 = vector.shape_cast %53 : vector<1x128x128xbf16> to vector<128x128xbf16>
    %cst_55 = arith.constant dense<0.000000e+00> : vector<256x128xf32>
    %55 = tpu.matmul %52, %54, %cst_55 {dimension_numbers = #tpu.dot_dimension_numbers<[1], [0], [0], [1], [0, 0, 1, 1], [], []>} : vector<256x128xbf16>, vector<128x128xbf16>, vector<256x128xf32> -> vector<256x128xf32>
    %56 = arith.addf %49, %55 : vector<256x128xf32>
    %c0_56 = arith.constant 0 : index
    %c2_57 = arith.constant 2 : index
    %c2_58 = arith.constant 2 : index
    %c0_59 = arith.constant 0 : index
    %57 = vector.load %arg1[%c0_56, %c2_57, %c2_58, %c0_59] : memref<1x18x18x128xbf16, #tpu.memory_space<vmem>>, vector<1x16x16x128xbf16>
    %58 = vector.shape_cast %57 : vector<1x16x16x128xbf16> to vector<16x16x128xbf16>
    %59 = vector.shape_cast %58 : vector<16x16x128xbf16> to vector<256x128xbf16>
    %c8 = arith.constant 8 : index
    %c0_60 = arith.constant 0 : index
    %c0_61 = arith.constant 0 : index
    %60 = vector.load %arg2[%c8, %c0_60, %c0_61] : memref<9x128x128xbf16, #tpu.memory_space<vmem>>, vector<1x128x128xbf16>
    %61 = vector.shape_cast %60 : vector<1x128x128xbf16> to vector<128x128xbf16>
    %cst_62 = arith.constant dense<0.000000e+00> : vector<256x128xf32>
    %62 = tpu.matmul %59, %61, %cst_62 {dimension_numbers = #tpu.dot_dimension_numbers<[1], [0], [0], [1], [0, 0, 1, 1], [], []>} : vector<256x128xbf16>, vector<128x128xbf16>, vector<256x128xf32> -> vector<256x128xf32>
    %63 = arith.addf %56, %62 : vector<256x128xf32>
    %c0_63 = arith.constant 0 : index
    %c0_64 = arith.constant 0 : index
    %64 = vector.load %arg3[%c0_63, %c0_64] : memref<1x128xf32, #tpu.memory_space<vmem>>, vector<1x128xf32>
    %65 = vector.broadcast %64 : vector<1x128xf32> to vector<256x128xf32>
    %66 = arith.mulf %63, %65 : vector<256x128xf32>
    %c0_65 = arith.constant 0 : index
    %c0_66 = arith.constant 0 : index
    %67 = vector.load %arg4[%c0_65, %c0_66] : memref<1x128xf32, #tpu.memory_space<vmem>>, vector<1x128xf32>
    %68 = vector.broadcast %67 : vector<1x128xf32> to vector<256x128xf32>
    %69 = arith.addf %66, %68 : vector<256x128xf32>
    %cst_67 = arith.constant 0.000000e+00 : f32
    %70 = vector.broadcast %cst_67 : f32 to vector<256x128xf32>
    %71 = arith.maximumf %69, %70 : vector<256x128xf32>
    %cst_68 = arith.constant 0.000000e+00 : f32
    %72 = vector.broadcast %cst_68 : f32 to vector<18x18x128xf32>
    %c0_69 = arith.constant 0 : index
    %c0_70 = arith.constant 0 : index
    %c0_71 = arith.constant 0 : index
    %73 = vector.load %arg9[%c0_69, %c0_70, %c0_71] : memref<18x18x128xf32, #tpu.memory_space<vmem>>, vector<18x18x128xf32>
    tpu.vector_store %arg9[%c0_69, %c0_70, %c0_71], %72 {strides = array<i32>} : memref<18x18x128xf32, #tpu.memory_space<vmem>>, vector<18x18x128xf32>,
    %74 = vector.shape_cast %71 : vector<256x128xf32> to vector<16x16x128xf32>
    %c1_72 = arith.constant 1 : index
    %c1_73 = arith.constant 1 : index
    %c0_74 = arith.constant 0 : index
    %75 = vector.load %arg9[%c1_72, %c1_73, %c0_74] : memref<18x18x128xf32, #tpu.memory_space<vmem>>, vector<16x16x128xf32>
    tpu.vector_store %arg9[%c1_72, %c1_73, %c0_74], %74 {strides = array<i32>} : memref<18x18x128xf32, #tpu.memory_space<vmem>>, vector<16x16x128xf32>,
    %cst_75 = arith.constant 0.000000e+00 : f32
    %76 = vector.broadcast %cst_75 : f32 to vector<256x128xf32>
    %c0_76 = arith.constant 0 : index
    %c0_77 = arith.constant 0 : index
    %c0_78 = arith.constant 0 : index
    %77 = vector.load %arg9[%c0_76, %c0_77, %c0_78] : memref<18x18x128xf32, #tpu.memory_space<vmem>>, vector<16x16x128xf32>
    %78 = arith.truncf %77 : vector<16x16x128xf32> to vector<16x16x128xbf16>
    %79 = vector.shape_cast %78 : vector<16x16x128xbf16> to vector<256x128xbf16>
    %c0_79 = arith.constant 0 : index
    %c0_80 = arith.constant 0 : index
    %c0_81 = arith.constant 0 : index
    %80 = vector.load %arg5[%c0_79, %c0_80, %c0_81] : memref<9x128x128xbf16, #tpu.memory_space<vmem>>, vector<1x128x128xbf16>
    %81 = vector.shape_cast %80 : vector<1x128x128xbf16> to vector<128x128xbf16>
    %cst_82 = arith.constant dense<0.000000e+00> : vector<256x128xf32>
    %82 = tpu.matmul %79, %81, %cst_82 {dimension_numbers = #tpu.dot_dimension_numbers<[1], [0], [0], [1], [0, 0, 1, 1], [], []>} : vector<256x128xbf16>, vector<128x128xbf16>, vector<256x128xf32> -> vector<256x128xf32>
    %83 = arith.addf %76, %82 : vector<256x128xf32>
    %c0_83 = arith.constant 0 : index
    %c1_84 = arith.constant 1 : index
    %c0_85 = arith.constant 0 : index
    %84 = vector.load %arg9[%c0_83, %c1_84, %c0_85] : memref<18x18x128xf32, #tpu.memory_space<vmem>>, vector<16x16x128xf32>
    %85 = arith.truncf %84 : vector<16x16x128xf32> to vector<16x16x128xbf16>
    %86 = vector.shape_cast %85 : vector<16x16x128xbf16> to vector<256x128xbf16>
    %c1_86 = arith.constant 1 : index
    %c0_87 = arith.constant 0 : index
    %c0_88 = arith.constant 0 : index
    %87 = vector.load %arg5[%c1_86, %c0_87, %c0_88] : memref<9x128x128xbf16, #tpu.memory_space<vmem>>, vector<1x128x128xbf16>
    %88 = vector.shape_cast %87 : vector<1x128x128xbf16> to vector<128x128xbf16>
    %cst_89 = arith.constant dense<0.000000e+00> : vector<256x128xf32>
    %89 = tpu.matmul %86, %88, %cst_89 {dimension_numbers = #tpu.dot_dimension_numbers<[1], [0], [0], [1], [0, 0, 1, 1], [], []>} : vector<256x128xbf16>, vector<128x128xbf16>, vector<256x128xf32> -> vector<256x128xf32>
    %90 = arith.addf %83, %89 : vector<256x128xf32>
    %c0_90 = arith.constant 0 : index
    %c2_91 = arith.constant 2 : index
    %c0_92 = arith.constant 0 : index
    %91 = vector.load %arg9[%c0_90, %c2_91, %c0_92] : memref<18x18x128xf32, #tpu.memory_space<vmem>>, vector<16x16x128xf32>
    %92 = arith.truncf %91 : vector<16x16x128xf32> to vector<16x16x128xbf16>
    %93 = vector.shape_cast %92 : vector<16x16x128xbf16> to vector<256x128xbf16>
    %c2_93 = arith.constant 2 : index
    %c0_94 = arith.constant 0 : index
    %c0_95 = arith.constant 0 : index
    %94 = vector.load %arg5[%c2_93, %c0_94, %c0_95] : memref<9x128x128xbf16, #tpu.memory_space<vmem>>, vector<1x128x128xbf16>
    %95 = vector.shape_cast %94 : vector<1x128x128xbf16> to vector<128x128xbf16>
    %cst_96 = arith.constant dense<0.000000e+00> : vector<256x128xf32>
    %96 = tpu.matmul %93, %95, %cst_96 {dimension_numbers = #tpu.dot_dimension_numbers<[1], [0], [0], [1], [0, 0, 1, 1], [], []>} : vector<256x128xbf16>, vector<128x128xbf16>, vector<256x128xf32> -> vector<256x128xf32>
    %97 = arith.addf %90, %96 : vector<256x128xf32>
    %c1_97 = arith.constant 1 : index
    %c0_98 = arith.constant 0 : index
    %c0_99 = arith.constant 0 : index
    %98 = vector.load %arg9[%c1_97, %c0_98, %c0_99] : memref<18x18x128xf32, #tpu.memory_space<vmem>>, vector<16x16x128xf32>
    %99 = arith.truncf %98 : vector<16x16x128xf32> to vector<16x16x128xbf16>
    %100 = vector.shape_cast %99 : vector<16x16x128xbf16> to vector<256x128xbf16>
    %c3_100 = arith.constant 3 : index
    %c0_101 = arith.constant 0 : index
    %c0_102 = arith.constant 0 : index
    %101 = vector.load %arg5[%c3_100, %c0_101, %c0_102] : memref<9x128x128xbf16, #tpu.memory_space<vmem>>, vector<1x128x128xbf16>
    %102 = vector.shape_cast %101 : vector<1x128x128xbf16> to vector<128x128xbf16>
    %cst_103 = arith.constant dense<0.000000e+00> : vector<256x128xf32>
    %103 = tpu.matmul %100, %102, %cst_103 {dimension_numbers = #tpu.dot_dimension_numbers<[1], [0], [0], [1], [0, 0, 1, 1], [], []>} : vector<256x128xbf16>, vector<128x128xbf16>, vector<256x128xf32> -> vector<256x128xf32>
    %104 = arith.addf %97, %103 : vector<256x128xf32>
    %c1_104 = arith.constant 1 : index
    %c1_105 = arith.constant 1 : index
    %c0_106 = arith.constant 0 : index
    %105 = vector.load %arg9[%c1_104, %c1_105, %c0_106] : memref<18x18x128xf32, #tpu.memory_space<vmem>>, vector<16x16x128xf32>
    %106 = arith.truncf %105 : vector<16x16x128xf32> to vector<16x16x128xbf16>
    %107 = vector.shape_cast %106 : vector<16x16x128xbf16> to vector<256x128xbf16>
    %c4_107 = arith.constant 4 : index
    %c0_108 = arith.constant 0 : index
    %c0_109 = arith.constant 0 : index
    %108 = vector.load %arg5[%c4_107, %c0_108, %c0_109] : memref<9x128x128xbf16, #tpu.memory_space<vmem>>, vector<1x128x128xbf16>
    %109 = vector.shape_cast %108 : vector<1x128x128xbf16> to vector<128x128xbf16>
    %cst_110 = arith.constant dense<0.000000e+00> : vector<256x128xf32>
    %110 = tpu.matmul %107, %109, %cst_110 {dimension_numbers = #tpu.dot_dimension_numbers<[1], [0], [0], [1], [0, 0, 1, 1], [], []>} : vector<256x128xbf16>, vector<128x128xbf16>, vector<256x128xf32> -> vector<256x128xf32>
    %111 = arith.addf %104, %110 : vector<256x128xf32>
    %c1_111 = arith.constant 1 : index
    %c2_112 = arith.constant 2 : index
    %c0_113 = arith.constant 0 : index
    %112 = vector.load %arg9[%c1_111, %c2_112, %c0_113] : memref<18x18x128xf32, #tpu.memory_space<vmem>>, vector<16x16x128xf32>
    %113 = arith.truncf %112 : vector<16x16x128xf32> to vector<16x16x128xbf16>
    %114 = vector.shape_cast %113 : vector<16x16x128xbf16> to vector<256x128xbf16>
    %c5_114 = arith.constant 5 : index
    %c0_115 = arith.constant 0 : index
    %c0_116 = arith.constant 0 : index
    %115 = vector.load %arg5[%c5_114, %c0_115, %c0_116] : memref<9x128x128xbf16, #tpu.memory_space<vmem>>, vector<1x128x128xbf16>
    %116 = vector.shape_cast %115 : vector<1x128x128xbf16> to vector<128x128xbf16>
    %cst_117 = arith.constant dense<0.000000e+00> : vector<256x128xf32>
    %117 = tpu.matmul %114, %116, %cst_117 {dimension_numbers = #tpu.dot_dimension_numbers<[1], [0], [0], [1], [0, 0, 1, 1], [], []>} : vector<256x128xbf16>, vector<128x128xbf16>, vector<256x128xf32> -> vector<256x128xf32>
    %118 = arith.addf %111, %117 : vector<256x128xf32>
    %c2_118 = arith.constant 2 : index
    %c0_119 = arith.constant 0 : index
    %c0_120 = arith.constant 0 : index
    %119 = vector.load %arg9[%c2_118, %c0_119, %c0_120] : memref<18x18x128xf32, #tpu.memory_space<vmem>>, vector<16x16x128xf32>
    %120 = arith.truncf %119 : vector<16x16x128xf32> to vector<16x16x128xbf16>
    %121 = vector.shape_cast %120 : vector<16x16x128xbf16> to vector<256x128xbf16>
    %c6_121 = arith.constant 6 : index
    %c0_122 = arith.constant 0 : index
    %c0_123 = arith.constant 0 : index
    %122 = vector.load %arg5[%c6_121, %c0_122, %c0_123] : memref<9x128x128xbf16, #tpu.memory_space<vmem>>, vector<1x128x128xbf16>
    %123 = vector.shape_cast %122 : vector<1x128x128xbf16> to vector<128x128xbf16>
    %cst_124 = arith.constant dense<0.000000e+00> : vector<256x128xf32>
    %124 = tpu.matmul %121, %123, %cst_124 {dimension_numbers = #tpu.dot_dimension_numbers<[1], [0], [0], [1], [0, 0, 1, 1], [], []>} : vector<256x128xbf16>, vector<128x128xbf16>, vector<256x128xf32> -> vector<256x128xf32>
    %125 = arith.addf %118, %124 : vector<256x128xf32>
    %c2_125 = arith.constant 2 : index
    %c1_126 = arith.constant 1 : index
    %c0_127 = arith.constant 0 : index
    %126 = vector.load %arg9[%c2_125, %c1_126, %c0_127] : memref<18x18x128xf32, #tpu.memory_space<vmem>>, vector<16x16x128xf32>
    %127 = arith.truncf %126 : vector<16x16x128xf32> to vector<16x16x128xbf16>
    %128 = vector.shape_cast %127 : vector<16x16x128xbf16> to vector<256x128xbf16>
    %c7_128 = arith.constant 7 : index
    %c0_129 = arith.constant 0 : index
    %c0_130 = arith.constant 0 : index
    %129 = vector.load %arg5[%c7_128, %c0_129, %c0_130] : memref<9x128x128xbf16, #tpu.memory_space<vmem>>, vector<1x128x128xbf16>
    %130 = vector.shape_cast %129 : vector<1x128x128xbf16> to vector<128x128xbf16>
    %cst_131 = arith.constant dense<0.000000e+00> : vector<256x128xf32>
    %131 = tpu.matmul %128, %130, %cst_131 {dimension_numbers = #tpu.dot_dimension_numbers<[1], [0], [0], [1], [0, 0, 1, 1], [], []>} : vector<256x128xbf16>, vector<128x128xbf16>, vector<256x128xf32> -> vector<256x128xf32>
    %132 = arith.addf %125, %131 : vector<256x128xf32>
    %c2_132 = arith.constant 2 : index
    %c2_133 = arith.constant 2 : index
    %c0_134 = arith.constant 0 : index
    %133 = vector.load %arg9[%c2_132, %c2_133, %c0_134] : memref<18x18x128xf32, #tpu.memory_space<vmem>>, vector<16x16x128xf32>
    %134 = arith.truncf %133 : vector<16x16x128xf32> to vector<16x16x128xbf16>
    %135 = vector.shape_cast %134 : vector<16x16x128xbf16> to vector<256x128xbf16>
    %c8_135 = arith.constant 8 : index
    %c0_136 = arith.constant 0 : index
    %c0_137 = arith.constant 0 : index
    %136 = vector.load %arg5[%c8_135, %c0_136, %c0_137] : memref<9x128x128xbf16, #tpu.memory_space<vmem>>, vector<1x128x128xbf16>
    %137 = vector.shape_cast %136 : vector<1x128x128xbf16> to vector<128x128xbf16>
    %cst_138 = arith.constant dense<0.000000e+00> : vector<256x128xf32>
    %138 = tpu.matmul %135, %137, %cst_138 {dimension_numbers = #tpu.dot_dimension_numbers<[1], [0], [0], [1], [0, 0, 1, 1], [], []>} : vector<256x128xbf16>, vector<128x128xbf16>, vector<256x128xf32> -> vector<256x128xf32>
    %139 = arith.addf %132, %138 : vector<256x128xf32>
    %c0_139 = arith.constant 0 : index
    %c0_140 = arith.constant 0 : index
    %140 = vector.load %arg6[%c0_139, %c0_140] : memref<1x128xf32, #tpu.memory_space<vmem>>, vector<1x128xf32>
    %141 = vector.broadcast %140 : vector<1x128xf32> to vector<256x128xf32>
    %142 = arith.mulf %139, %141 : vector<256x128xf32>
    %c0_141 = arith.constant 0 : index
    %c0_142 = arith.constant 0 : index
    %143 = vector.load %arg7[%c0_141, %c0_142] : memref<1x128xf32, #tpu.memory_space<vmem>>, vector<1x128xf32>
    %144 = vector.broadcast %143 : vector<1x128xf32> to vector<256x128xf32>
    %145 = arith.addf %142, %144 : vector<256x128xf32>
    %cst_143 = arith.constant 0.000000e+00 : f32
    %146 = vector.broadcast %cst_143 : f32 to vector<256x128xf32>
    %147 = arith.maximumf %145, %146 : vector<256x128xf32>
    %148 = vector.shape_cast %147 : vector<256x128xf32> to vector<1x16x16x128xf32>
    %c0_144 = arith.constant 0 : index
    %c0_145 = arith.constant 0 : index
    %c0_146 = arith.constant 0 : index
    %c0_147 = arith.constant 0 : index
    %149 = vector.load %arg8[%c0_144, %c0_145, %c0_146, %c0_147] : memref<1x16x16x128xf32, #tpu.memory_space<vmem>>, vector<1x16x16x128xf32>
    tpu.vector_store %arg8[%c0_144, %c0_145, %c0_146, %c0_147], %148 {strides = array<i32>} : memref<1x16x16x128xf32, #tpu.memory_space<vmem>>, vector<1x16x16x128xf32>,
    return
  }
  func.func @transform_0(%arg0: i32) -> (i32, i32, i32, i32) {
    %c0_i32 = arith.constant 0 : i32
    %c0_i32_0 = arith.constant 0 : i32
    %c0_i32_1 = arith.constant 0 : i32
    %c0_i32_2 = arith.constant 0 : i32
    return %arg0, %c0_i32, %c0_i32_0, %c0_i32_1 : i32, i32, i32, i32
  }
  func.func @transform_1(%arg0: i32) -> (i32, i32, i32) {
    %c0_i32 = arith.constant 0 : i32
    %c0_i32_0 = arith.constant 0 : i32
    %c0_i32_1 = arith.constant 0 : i32
    %c0_i32_2 = arith.constant 0 : i32
    return %c0_i32, %c0_i32_0, %c0_i32_1 : i32, i32, i32
  }
  func.func @transform_2(%arg0: i32) -> (i32, i32) {
    %c0_i32 = arith.constant 0 : i32
    %c0_i32_0 = arith.constant 0 : i32
    %c0_i32_1 = arith.constant 0 : i32
    return %c0_i32, %c0_i32_0 : i32, i32
  }
  func.func @transform_3(%arg0: i32) -> (i32, i32) {
    %c0_i32 = arith.constant 0 : i32
    %c0_i32_0 = arith.constant 0 : i32
    %c0_i32_1 = arith.constant 0 : i32
    return %c0_i32, %c0_i32_0 : i32, i32
  }
  func.func @transform_4(%arg0: i32) -> (i32, i32, i32) {
    %c0_i32 = arith.constant 0 : i32
    %c0_i32_0 = arith.constant 0 : i32
    %c0_i32_1 = arith.constant 0 : i32
    %c0_i32_2 = arith.constant 0 : i32
    return %c0_i32, %c0_i32_0, %c0_i32_1 : i32, i32, i32
  }
  func.func @transform_5(%arg0: i32) -> (i32, i32) {
    %c0_i32 = arith.constant 0 : i32
    %c0_i32_0 = arith.constant 0 : i32
    %c0_i32_1 = arith.constant 0 : i32
    return %c0_i32, %c0_i32_0 : i32, i32
  }
  func.func @transform_6(%arg0: i32) -> (i32, i32) {
    %c0_i32 = arith.constant 0 : i32
    %c0_i32_0 = arith.constant 0 : i32
    %c0_i32_1 = arith.constant 0 : i32
    return %c0_i32, %c0_i32_0 : i32, i32
  }
  func.func @transform_7(%arg0: i32) -> (i32, i32, i32, i32) {
    %c0_i32 = arith.constant 0 : i32
    %c0_i32_0 = arith.constant 0 : i32
    %c0_i32_1 = arith.constant 0 : i32
    %c0_i32_2 = arith.constant 0 : i32
    return %arg0, %c0_i32, %c0_i32_0, %c0_i32_1 : i32, i32, i32, i32
  }
}

</mosaic_0001>

<bundles_post_ra>
// kernel: up_forward_pallas.1
= control target key start
LH: loop header
LB: loop body
LE: loop exit
PB: predicated region body
PF: predicated region fallthrough
CT: control target
= control target key end

     0   :  { %s10528_s24 = smov 0   ;;  %s13996_s0 = inlined_call_operand.vmem [shape: bf16[2,18,18,128], index: 0, kind: input, shape index: {}]   ;;  %s13997_s1 = inlined_call_operand.vmem [shape: bf16[9,128,128], index: 1, kind: input, shape index: {}]   ;;  %s13998_s2 = inlined_call_operand.vmem [shape: f32[1,128], index: 2, kind: input, shape index: {}]   ;;  %s13999_s3 = inlined_call_operand.vmem [shape: f32[1,128], index: 3, kind: input, shape index: {}]   ;;  %s14000_s4 = inlined_call_operand.vmem [shape: bf16[9,128,128], index: 4, kind: input, shape index: {}]   ;;  %s14001_s5 = inlined_call_operand.vmem [shape: f32[1,128], index: 5, kind: input, shape index: {}]   ;;  %s14002_s6 = inlined_call_operand.vmem [shape: f32[1,128], index: 6, kind: input, shape index: {}]   ;;  %s14003_s7 = inlined_call_operand.vmem [shape: f32[2,16,16,128], index: 7, kind: output, shape index: {}]  }
   0x1 LB: > { %s8173_s25 = sadd.s32 4294967295, %s10484_s24   ;;  %p8177_p0 = scmp.ge.s32.totalorder %s10484_s24, 1  ;;  %s10484_s24 = sphi %s10528_s24, %s17_s24  }
   0x2   : > { %p237_p1 = scmp.lt.s32.totalorder %s10484_s24, 3 }
   0x4   : > { %p238_p2 = pnand %p8177_p0, %p237_p1 }
   0x6   : > { %241 = sbr.rel (%p238_p2) target bundleno = 1047 (0x417), region = 48 }
   0xb   : > { %v10278_v0 = vld [vmem:[%s13997_s1 + $0x78] sm:$0xff]   ;;  %p269_p3 = scmp.lt.s32.totalorder %s8173_s25, 1  ;;  %v10280_v2 = vld [vmem:[%s13997_s1 + $0x70] sm:$0xff]   ;;  %v10282_v4 = vld [vmem:[%s13997_s1 + $0x68] sm:$0xff]   ;;  %vm344_vm0 = vsmask.f32 3328 }
   0xc   : > { %v10279_v1 = vld [vmem:[%s13997_s1 + $0x38] sm:$0xff]   ;;  %9404 = vmatprep.subr.bf16.mxu0 %v10278_v0  ;;  %v10281_v3 = vld [vmem:[%s13997_s1 + $0x30] sm:$0xff]   ;;  %v10283_v5 = vld [vmem:[%s13997_s1 + $0x28] sm:$0xff]   ;;  %vm345_vm1 = vsmask.f32 7440  ;;  %vm1374_vm3 = vcmask 1042432  }
   0xd   : > { %9452 = vmatprep.subr.bf16.mxu1 %v10279_v1  ;;  %9405 = vmatpush3.bf16.msra.mxu0 %v10278_v0  ;;  %s14348_s25 = smov (!%p269_p3, %s8173_s25), 1  ;;  %v10284_v6 = vld [vmem:[%s13997_s1 + $0x60] sm:$0xff]   ;;  %v10286_v8 = vld [vmem:[%s13997_s1 + $0x58] sm:$0xff]   ;;  %v10288_v10 = vld [vmem:[%s13997_s1 + $0x50] sm:$0xff]   ;;  %vm1375_vm4 = vcmask 1046532  }
   0xe   : > { %9453 = vmatpush3.bf16.msra.mxu1 %v10279_v1  ;;  %9406 = vmatprep.subr.bf16.mxu0 %v10280_v2  ;;  %v10285_v7 = vld [vmem:[%s13997_s1 + $0x20] sm:$0xff]   ;;  %s10268_s19 = smul.u32 216, %s14348_s25  ;;  %v10287_v9 = vld [vmem:[%s13997_s1 + $0x18] sm:$0xff]   ;;  %v10289_v11 = vld [vmem:[%s13997_s1 + $0x10] sm:$0xff]   ;;  %s8971_s15 = sshll.u32 %s14348_s25, 8 }
   0xf   : > { %9454 = vmatprep.subr.bf16.mxu1 %v10281_v3  ;;  %v10290_v17 = vld [vmem:[%s13997_s1 + $0x48] sm:$0xff]   ;;  %vm10613_vm2 = vmor %vm344_vm0, %vm345_vm1  ;;  %v10292_v48 = vld [vmem:[%s13997_s1 + $0x40] sm:$0xff]   ;;  %s13783_s16 = scalar_lea.vmem %s14003_s7, %s8971_s15 }
  0x10   : > { %s10572_s28 = scalar_lea.vmem %s13996_s0, %s10268_s19  ;;  %v10291_v32 = vld [vmem:[%s13997_s1 + $0x8] sm:$0xff]   ;;  %v10293_v53 = vld [vmem:[%s13997_s1] sm:$0xff]   ;;  %vm10965_vm5 = vmor %vm1374_vm3, %vm1375_vm4 }
  0x11   : > { %9407 = vmatpush3.bf16.msra.mxu0 %v10280_v2  ;;  %v280_v12 = vld [vmem:[%s10572_s28] sm:$0xf]  ;;  %v10582_v13 = vld [vmem:[%s10572_s28 + $0x4] sm:$0xf]  ;;  %v10585_v14 = vld [vmem:[%s10572_s28 + $0x8] sm:$0x1] }
  0x12   : > { %9455 = vmatpush3.bf16.msra.mxu1 %v10281_v3  ;;  %9408 = vmatprep.subr.bf16.mxu0 %v10282_v4  ;;  %v348_v15 = vshrl.u32 %v280_v12, 16  ;;  %v351_v16 = vshll.u32 %v280_v12, 16  ;;  %v357_v18 = vshll.u32 %v10582_v13, 16  ;;  %v361_v19 = vshrl.u32 %v10582_v13, 16  ;;  %v10595_v22 = vld [vmem:[%s10572_s28 + $0xc] sm:$0xf] }
  0x13   : > { %9456 = vmatprep.subr.bf16.mxu1 %v10283_v5  ;;  %v367_v20 = vshll.u32 %v10585_v14, 16  ;;  %v1382_v21 = vrot.slane %v10585_v14, 5  ;;  %v8221_v25 = vcombine.low %v280_v12, %v10582_v13  ;;  %v10599_v26 = vld [vmem:[%s10572_s28 + $0x10] sm:$0xf]  ;;  %v10602_v27 = vld [vmem:[%s10572_s28 + $0x14] sm:$0x1] }
  0x14   : > { %v350_v23 = vrot.slane %v348_v15, 4  ;;  %v353_v24 = vrot.slane %v351_v16, 5  ;;  %v359_v28 = vrot.slane %v357_v18, 5  ;;  %v363_v29 = vrot.slane %v361_v19, 4  ;;  %v10620_v42 = vld [vmem:[%s10572_s28 + $0x18] sm:$0xf] }
  0x15   : > { %9409 = vmatpush3.bf16.msra.mxu0 %v10282_v4  ;;  %v369_v30 = vrot.slane %v367_v20, 5  ;;  %v372_v31 = vshrl.u32 %v10595_v22, 16  ;;  %9468 = vmatprep.mubr.bf16.mxu1 %v8221_v25  ;;  %v375_v34 = vshll.u32 %v10595_v22, 16  ;;  %v381_v35 = vshll.u32 %v10599_v26, 16  ;;  %v10623_v47 = vld [vmem:[%s10572_s28 + $0x1c] sm:$0xf] }
  0x16   : > { %9457 = vmatpush3.bf16.msra.mxu1 %v10283_v5  ;;  %9410 = vmatprep.subr.bf16.mxu0 %v10284_v6  ;;  %v354_v33 = vor.u32 %v353_v24, %v350_v23  ;;  %v385_v36 = vshrl.u32 %v10599_v26, 16  ;;  %v364_v38 = vor.u32 %v363_v29, %v359_v28  ;;  %v391_v40 = vshll.u32 %v10602_v27, 16  ;;  %v10637_v57 = vld [vmem:[%s10572_s28 + $0x20] sm:$0x1]  ;;  %v10641_v59 = vld [vmem:[%s10572_s28 + $0x24] sm:$0xf] }
  0x17   : > { %9458 = vmatprep.subr.bf16.mxu1 %v10285_v7  ;;  %v374_v39 = vrot.slane %v372_v31, 4  ;;  %v1389_v41 = vrot.slane %v10602_v27, 5  ;;  %v377_v44 = vrot.slane %v375_v34, 5  ;;  %v383_v45 = vrot.slane %v381_v35, 5  ;;  %v10648_v0 = vld [vmem:[%s10572_s28 + $0x28] sm:$0xf] }
  0x18   : > { %v355_v43 = vrot.slane %v354_v33, 4  ;;  %v387_v46 = vrot.slane %v385_v36, 4  ;;  %v365_v49 = vrot.slane %v364_v38, 4  ;;  %v393_v50 = vrot.slane %v391_v40, 5  ;;  %v10296_v5 = vld [vmem:[%s13997_s1 + $0xb8] sm:$0xff]   ;;  %v10299_v36 = vld [vmem:[%s13997_s1 + $0xb0] sm:$0xff]  }
  0x19   : > { %9411 = vmatpush3.bf16.msra.mxu0 %v10284_v6  ;;  %v8222_v51 = vcombine.low %v10595_v22, %v10599_v26  ;;  %v396_v52 = vshrl.u32 %v10620_v42, 16  ;;  %v378_v55 = vor.u32 %v377_v44, %v374_v39  ;;  %v399_v58 = vshll.u32 %v10620_v42, 16  ;;  %v10661_v15 = vld [vmem:[%s10572_s28 + $0x2c] sm:$0x1]  ;;  %v10669_v24 = vld [vmem:[%s10572_s28 + $0x30] sm:$0xf] }
  0x1a   : > { %9459 = vmatpush3.bf16.msra.mxu1 %v10285_v7  ;;  %9412 = vmatprep.subr.bf16.mxu0 %v10286_v8  ;;  %v360_v54 = vsel %vm10613_vm2, %v355_v43, %v359_v28  ;;  %v388_v56 = vor.u32 %v387_v46, %v383_v45  ;;  %v370_v60 = vsel %vm10613_vm2, %v365_v49, %v369_v30  ;;  %v405_v62 = vshll.u32 %v10623_v47, 16  ;;  %v10674_v31 = vld [vmem:[%s10572_s28 + $0x34] sm:$0xf]  ;;  %v10683_v38 = vld [vmem:[%s10572_s28 + $0x38] sm:$0x1] }
  0x1b   : > { %9460 = vmatprep.subr.bf16.mxu1 %v10287_v9  ;;  %v398_v61 = vrot.slane %v396_v52, 4  ;;  %v409_v63 = vshrl.u32 %v10623_v47, 16  ;;  %v8197_v1 = vcombine.low %v360_v54, %v370_v60  ;;  %v379_v2 = vrot.slane %v378_v55, 4  ;;  %v10310_v44 = vld [vmem:[%s13997_s1 + $0xf0] sm:$0xff]  }
  0x1c   : > { %v389_v3 = vrot.slane %v388_v56, 4  ;;  %v401_v4 = vrot.slane %v399_v58, 5  ;;  %v407_v6 = vrot.slane %v405_v62, 5  ;;  %v420_v16 = vshrl.u32 %v10641_v59, 16  ;;  %v10302_v56 = vld [vmem:[%s13997_s1 + $0xa8] sm:$0xff]  }
  0x1d   : > { %9413 = vmatpush3.bf16.msra.mxu0 %v10286_v8  ;;  %v411_v7 = vrot.slane %v409_v63, 4  ;;  %v415_v8 = vshll.u32 %v10637_v57, 16  ;;  %9420 = vmatprep.mubr.bf16.mxu0 %v8197_v1  ;;  %v423_v23 = vshll.u32 %v10641_v59, 16  ;;  %v429_v29 = vshll.u32 %v10648_v0, 16 }
  0x1e   : > { %9461 = vmatpush3.bf16.msra.mxu1 %v10287_v9  ;;  %9414 = vmatprep.subr.bf16.mxu0 %v10288_v10  ;;  %v8223_v9 = vcombine.low %v10620_v42, %v10623_v47  ;;  %v402_v12 = vor.u32 %v401_v4, %v398_v61  ;;  %v422_v28 = vrot.slane %v420_v16, 4  ;;  %v433_v30 = vshrl.u32 %v10648_v0, 16  ;;  %v10314_v4 = vld [vmem:[%s13997_s1 + $0xe8] sm:$0xff]  }
  0x1f   : > { %9462 = vmatprep.subr.bf16.mxu1 %v10289_v11  ;;  %v412_v19 = vor.u32 %v411_v7, %v407_v6  ;;  %v417_v20 = vrot.slane %v415_v8, 5  ;;  %v425_v33 = vrot.slane %v423_v23, 5  ;;  %v439_v34 = vshll.u32 %v10661_v15, 16  ;;  %v10729_v23 = vld [vmem:[%s10572_s28 + $0x4c] sm:$0xf] }
  0x20   : > { %v403_v25 = vrot.slane %v402_v12, 4  ;;  %v8224_v35 = vcombine.low %v10641_v59, %v10648_v0  ;;  %v431_v40 = vrot.slane %v429_v29, 5  ;;  %v435_v42 = vrot.slane %v433_v30, 4 }
  0x21   : > { %9415 = vmatpush3.bf16.msra.mxu0 %v10288_v10  ;;  %v384_v10 = vsel %vm10613_vm2, %v379_v2, %v383_v45  ;;  %v444_v43 = vshrl.u32 %v10669_v24, 16  ;;  %v426_v46 = vor.u32 %v425_v33, %v422_v28  ;;  %v447_v49 = vshll.u32 %v10669_v24, 16  ;;  %v10712_v2 = vld [vmem:[%s10572_s28 + $0x44] sm:$0x1] }
  0x22   : > { %9463 = vmatpush3.bf16.msra.mxu1 %v10289_v11  ;;  %9416 = vmatprep.subr.bf16.mxu0 %v10290_v17  ;;  %v394_v11 = vsel %vm10613_vm2, %v389_v3, %v393_v50  ;;  %v408_v39 = vsel %vm10613_vm2, %v403_v25, %v407_v6  ;;  %v10695_v50 = vld [vmem:[%s10572_s28 + $0x3c] sm:$0xf]  ;;  %v453_v55 = vshll.u32 %v10674_v31, 16  ;;  %v457_v61 = vshrl.u32 %v10674_v31, 16 }
  0x23   : > { %9464 = vmatprep.subr.bf16.mxu1 %v10291_v32  ;;  %v8198_v18 = vcombine.low %v384_v10, %v394_v11  ;;  %v446_v54 = vrot.slane %v444_v43, 4  ;;  %v427_v58 = vrot.slane %v426_v46, 4  ;;  %v449_v60 = vrot.slane %v447_v49, 5  ;;  %v10752_v46 = vld [vmem:[%s10572_s28 + $0x54] sm:$0xf] }
  0x24   : > { %v463_v22 = vshll.u32 %v10683_v38, 16  ;;  %v455_v63 = vrot.slane %v453_v55, 5  ;;  %v8225_v1 = vcombine.low %v10669_v24, %v10674_v31  ;;  %v468_v3 = vshrl.u32 %v10695_v50, 16  ;;  %v10305_v24 = vld [vmem:[%s13997_s1 + $0xa0] sm:$0xff]  }
  0x25   : > { %9417 = vmatpush3.bf16.msra.mxu0 %v10290_v17  ;;  %v10309_v17 = vld [vmem:[%s13997_s1 + $0xf8] sm:$0xff]   ;;  %v450_v6 = vor.u32 %v449_v60, %v446_v54  ;;  %v459_v7 = vrot.slane %v457_v61, 4  ;;  %v471_v12 = vshll.u32 %v10695_v50, 16  ;;  %v487_v29 = vshll.u32 %v10712_v2, 16 }
  0x26   : > { %9465 = vmatpush3.bf16.msra.mxu1 %v10291_v32  ;;  %9418 = vmatprep.subr.bf16.mxu0 %v10292_v48  ;;  %v413_v32 = vrot.slane %v412_v19, 4  ;;  %v465_v8 = vrot.slane %v463_v22, 5  ;;  %v470_v11 = vrot.slane %v468_v3, 4  ;;  %v1400_v27 = vrot.slane %v10648_v0, 5  ;;  %v10330_v0 = vld [vmem:[%s10572_s28 + $0x24] sm:$0xff]  }
  0x27   : > { %9466 = vmatprep.subr.bf16.mxu1 %v10293_v53  ;;  %v460_v19 = vor.u32 %v459_v7, %v455_v63  ;;  %v473_v25 = vrot.slane %v471_v12, 5  ;;  %v489_v43 = vrot.slane %v487_v29, 5  ;;  %v10320_v29 = vld [vmem:[%s13997_s1 + $0xd0] sm:$0xff]  }
  0x28   : > { %v418_v45 = vsel %vm10613_vm2, %v413_v32, %v417_v20 }
  0x29   : > { %9419 = vmatpush3.bf16.msra.mxu0 %v10292_v48  ;;  %v441_v48 = vrot.slane %v439_v34, 5  ;;  %v8199_v52 = vcombine.low %v408_v39, %v418_v45  ;;  %v461_v33 = vrot.slane %v460_v19, 4  ;;  %v501_v45 = vshll.u32 %v10729_v23, 16  ;;  %v10313_v19 = vld [vmem:[%s13997_s1 + $0x90] sm:$0xff]  }
  0x2a   : > { %9467 = vmatpush3.bf16.msra.mxu1 %v10293_v53  ;;  %9500 = vmatprep.subr.bf16.mxu0 %v10296_v5  ;;  %v436_v53 = vor.u32 %v435_v42, %v431_v40  ;;  %v474_v42 = vor.u32 %v473_v25, %v470_v11 }
  0x2b   : > { %9548 = vmatprep.subr.bf16.mxu1 %v10309_v17  ;;  %v466_v49 = vsel %vm10613_vm2, %v461_v33, %v465_v8 }
  0x2c   : > { %9421 = vmatmul.mubr.bf16.vlgmr.msra.gmra.mxu0 %v8198_v18  ;;  %v437_v62 = vrot.slane %v436_v53, 4  ;;  %v451_v18 = vrot.slane %v450_v6, 4  ;;  %v475_v54 = vrot.slane %v474_v42, 4  ;;  %v10802_v42 = vld [vmem:[%s10572_s28 + $0x6c] sm:$0xf] }
  0x2d   : > { %9469 = vmatmul.mubr.bf16.vlgmr.msra.gmra.mxu1 %v8222_v51  ;;  %9501 = vmatpush3.bf16.msra.mxu0 %v10296_v5  ;;  %v10707_v51 = vld [vmem:[%s10572_s28 + $0x40] sm:$0xf]  ;;  %v432_v5 = vsel %vm10613_vm2, %v427_v58, %v431_v40  ;;  %v10764_v58 = vld [vmem:[%s10572_s28 + $0x5c] sm:$0x1] }
  0x2e   : > { %9472 = vmatprep.mubr.bf16.mxu1 %v8223_v9  ;;  %9502 = vmatprep.subr.bf16.mxu0 %v10299_v36  ;;  %v10721_v9 = vld [vmem:[%s10572_s28 + $0x48] sm:$0xf]  ;;  %v442_v10 = vsel %vm10613_vm2, %v437_v62, %v441_v48  ;;  %v477_v16 = vshll.u32 %v10707_v51, 16  ;;  %v481_v20 = vshrl.u32 %v10707_v51, 16  ;;  %v8226_v30 = vcombine.low %v10695_v50, %v10707_v51  ;;  %v10315_v40 = vld [vmem:[%s13997_s1 + $0xe0] sm:$0xff]   ;;  %v10308_v48 = vld [vmem:[%s13997_s1 + $0x98] sm:$0xff]  }
  0x2f   : > { %9424 = vmatprep.mubr.bf16.mxu0 %v8199_v52  ;;  %9549 = vmatpush3.bf16.msra.mxu1 %v10309_v17  ;;  %v8200_v17 = vcombine.low %v432_v5, %v442_v10  ;;  %v456_v32 = vsel %vm10613_vm2, %v451_v18, %v455_v63  ;;  %v492_v39 = vshrl.u32 %v10721_v9, 16  ;;  %v505_v50 = vshrl.u32 %v10729_v23, 16  ;;  %v10761_v52 = vld [vmem:[%s10572_s28 + $0x58] sm:$0xf]  ;;  %v10780_v10 = vld [vmem:[%s10572_s28 + $0x60] sm:$0xf] }
  0x30   : > { %9550 = vmatprep.subr.bf16.mxu1 %v10310_v44  ;;  %v479_v28 = vrot.slane %v477_v16, 5  ;;  %v483_v34 = vrot.slane %v481_v20, 4  ;;  %v8201_v53 = vcombine.low %v456_v32, %v466_v49  ;;  %v8227_v62 = vcombine.low %v10721_v9, %v10729_v23  ;;  %v10319_v63 = vld [vmem:[%s13997_s1 + $0xd8] sm:$0xff]   ;;  %v10783_v18 = vld [vmem:[%s10572_s28 + $0x64] sm:$0xf] }
  0x31   : > { %9503 = vmatpush3.bf16.msra.mxu0 %v10299_v36  ;;  %v10740_v36 = vld [vmem:[%s10572_s28 + $0x50] sm:$0x1]  ;;  %v507_v61 = vrot.slane %v505_v50, 4  ;;  %v519_v5 = vshll.u32 %v10752_v46, 16  ;;  %v529_v25 = vshrl.u32 %v10761_v52, 16  ;;  %v549_v50 = vshll.u32 %v10783_v18, 16 }
  0x32   : > { %9504 = vmatprep.subr.bf16.mxu0 %v10302_v56  ;;  %v484_v59 = vor.u32 %v483_v34, %v479_v28  ;;  %v511_v22 = vshll.u32 %v10740_v36, 16  ;;  %v8228_v34 = vcombine.low %v10752_v46, %v10761_v52  ;;  %v10808_v49 = vld [vmem:[%s10572_s28 + $0x70] sm:$0xf] }
  0x33   : > { %9551 = vmatpush3.bf16.msra.mxu1 %v10310_v44  ;;  %v495_v44 = vshll.u32 %v10721_v9, 16  ;;  %v525_v9 = vshll.u32 %v10761_v52, 16 }
  0x34   : > { %9425 = vmatmul.mubr.bf16.gmra.mxu0 %v8200_v17  ;;  %9552 = vmatprep.subr.bf16.mxu1 %v10314_v4  ;;  %v485_v60 = vrot.slane %v484_v59, 4  ;;  %v513_v8 = vrot.slane %v511_v22, 5  ;;  %v521_v17 = vrot.slane %v519_v5, 5 }
  0x35   : > { %9473 = vmatmul.mubr.bf16.gmra.mxu1 %v8224_v35  ;;  %9505 = vmatpush3.bf16.msra.mxu0 %v10302_v56  ;;  %v494_v35 = vrot.slane %v492_v39, 4  ;;  %v497_v55 = vrot.slane %v495_v44, 5  ;;  %v503_v56 = vrot.slane %v501_v45, 5  ;;  %v10798_v39 = vld [vmem:[%s10572_s28 + $0x68] sm:$0x1]  ;;  %v531_v44 = vrot.slane %v529_v25, 4 }
  0x36   : > { %9476 = vmatprep.mubr.bf16.mxu1 %v8225_v1  ;;  %9506 = vmatprep.subr.bf16.mxu0 %v10305_v24  ;;  %v480_v1 = vsel %vm10613_vm2, %v475_v54, %v479_v28  ;;  %v490_v6 = vsel %vm10613_vm2, %v485_v60, %v489_v43  ;;  %v535_v28 = vshll.u32 %v10764_v58, 16  ;;  %v543_v45 = vshll.u32 %v10780_v10, 16  ;;  %v10318_v54 = vld [vmem:[%s13997_s1 + $0x88] sm:$0xff]  }
  0x37   : > { %9553 = vmatpush3.bf16.msra.mxu1 %v10314_v4  ;;  %9428 = vmatprep.mubr.bf16.mxu0 %v8201_v53  ;;  %v498_v3 = vor.u32 %v497_v55, %v494_v35  ;;  %v516_v4 = vshrl.u32 %v10752_v46, 16  ;;  %v508_v7 = vor.u32 %v507_v61, %v503_v56  ;;  %v8202_v11 = vcombine.low %v480_v1, %v490_v6  ;;  %v10812_v53 = vld [vmem:[%s10572_s28 + $0x74] sm:$0x1] }
  0x38   : > { %9554 = vmatprep.subr.bf16.mxu1 %v10315_v40  ;;  %v553_v60 = vshrl.u32 %v10783_v18, 16  ;;  %v559_v61 = vshll.u32 %v10798_v39, 16  ;;  %v8229_v1 = vcombine.low %v10780_v10, %v10783_v18 }
  0x39   : > { %9507 = vmatpush3.bf16.msra.mxu0 %v10305_v24  ;;  %v499_v12 = vrot.slane %v498_v3, 4  ;;  %v518_v16 = vrot.slane %v516_v4, 4  ;;  %v509_v20 = vrot.slane %v508_v7, 4  ;;  %v527_v24 = vrot.slane %v525_v9, 5  ;;  %v10323_v7 = vld [vmem:[%s13997_s1 + $0x80] sm:$0xff]  }
  0x3a   : > { %9508 = vmatprep.subr.bf16.mxu0 %v10308_v48  ;;  %v555_v5 = vrot.slane %v553_v60, 4  ;;  %v561_v6 = vrot.slane %v559_v61, 5  ;;  %v567_v9 = vshll.u32 %v10802_v42, 16  ;;  %v10864_v61 = vld [vmem:[%s10572_s28 + $0x88] sm:$0xf] }
  0x3b   : > { %9555 = vmatpush3.bf16.msra.mxu1 %v10315_v40  ;;  %v504_v32 = vsel %vm10613_vm2, %v499_v12, %v503_v56  ;;  %v522_v33 = vor.u32 %v521_v17, %v518_v16  ;;  %v540_v40 = vshrl.u32 %v10780_v10, 16  ;;  %v514_v43 = vsel %vm10613_vm2, %v509_v20, %v513_v8  ;;  %v300_v20 = vld [vmem:[%s10572_s28 + $0x78] sm:$0xf] }
  0x3c   : > { %9556 = vmatprep.subr.bf16.mxu1 %v10319_v63  ;;  %9429 = vmatmul.mubr.bf16.gmra.mxu0 %v8202_v11  ;;  %v8203_v59 = vcombine.low %v504_v32, %v514_v43  ;;  %v532_v55 = vor.u32 %v531_v44, %v527_v24  ;;  %v545_v56 = vrot.slane %v543_v45, 5  ;;  %v573_v11 = vshll.u32 %v10808_v49, 16  ;;  %v10853_v45 = vld [vmem:[%s13997_s1 + $0x138] sm:$0xff]  }
  0x3d   : > { %9477 = vmatmul.mubr.bf16.gmra.mxu1 %v8226_v30  ;;  %v537_v30 = vrot.slane %v535_v28, 5  ;;  %9509 = vmatpush3.bf16.msra.mxu0 %v10308_v48  ;;  %v523_v35 = vrot.slane %v522_v33, 4  ;;  %v542_v46 = vrot.slane %v540_v40, 4  ;;  %v10324_v48 = vld [vmem:[%s13997_s1 + $0xc8] sm:$0xff]   ;;  %v577_v10 = vshrl.u32 %v10808_v49, 16 }
  0x3e   : > { %9480 = vmatprep.mubr.bf16.mxu1 %v8227_v62  ;;  %9510 = vmatprep.subr.bf16.mxu0 %v10313_v19  ;;  %v551_v62 = vrot.slane %v549_v50, 5  ;;  %v533_v3 = vrot.slane %v532_v55, 4  ;;  %v569_v28 = vrot.slane %v567_v9, 5  ;;  %v575_v32 = vrot.slane %v573_v11, 5  ;;  %v10841_v40 = vld [vmem:[%s10572_s28 + $0x80] sm:$0x1] }
  0x3f   : > { %9557 = vmatpush3.bf16.msra.mxu1 %v10319_v63  ;;  %9432 = vmatprep.mubr.bf16.mxu0 %v8203_v59  ;;  %v528_v22 = vsel %vm10613_vm2, %v523_v35, %v527_v24  ;;  %v564_v63 = vshrl.u32 %v10802_v42, 16  ;;  %v546_v4 = vor.u32 %v545_v56, %v542_v46  ;;  %v10838_v24 = vld [vmem:[%s10572_s28 + $0x7c] sm:$0xf]  ;;  %v579_v33 = vrot.slane %v577_v10, 4  ;;  %v10856_v55 = vld [vmem:[%s10572_s28 + $0x84] sm:$0xf] }
  0x40   : > { %9558 = vmatprep.subr.bf16.mxu1 %v10320_v29  ;;  %v538_v12 = vsel %vm10613_vm2, %v533_v3, %v537_v30  ;;  %v556_v17 = vor.u32 %v555_v5, %v551_v62  ;;  %v588_v46 = vshrl.u32 %v300_v20, 16  ;;  %v591_v50 = vshll.u32 %v300_v20, 16 }
  0x41   : > { %9511 = vmatpush3.bf16.msra.mxu0 %v10313_v19  ;;  %v566_v8 = vrot.slane %v564_v63, 4  ;;  %v547_v16 = vrot.slane %v546_v4, 4  ;;  %v583_v19 = vshll.u32 %v10812_v53, 16  ;;  %v8204_v25 = vcombine.low %v528_v22, %v538_v12  ;;  %v10867_v22 = vld [vmem:[%s10572_s28 + $0x8c] sm:$0x1] }
  0x42   : > { %9512 = vmatprep.subr.bf16.mxu0 %v10318_v54  ;;  %v557_v44 = vrot.slane %v556_v17, 4  ;;  %v580_v35 = vor.u32 %v579_v33, %v575_v32  ;;  %v597_v60 = vshll.u32 %v10838_v24, 16  ;;  %v590_v3 = vrot.slane %v588_v46, 4  ;;  %v10882_v33 = vld [vmem:[%s10572_s28 + $0x94] sm:$0xf] }
  0x43   : > { %9559 = vmatpush3.bf16.msra.mxu1 %v10320_v29  ;;  %v10325_v29 = vld [vmem:[%s13997_s1 + $0xc0] sm:$0xff]   ;;  %v552_v43 = vsel %vm10613_vm2, %v547_v16, %v551_v62  ;;  %v585_v30 = vrot.slane %v583_v19, 5  ;;  %v570_v59 = vor.u32 %v569_v28, %v566_v8  ;;  %v593_v4 = vrot.slane %v591_v50, 5  ;;  %v304_v19 = vld [vmem:[%s10572_s28 + $0x90] sm:$0xf] }
  0x44   : > { %9560 = vmatprep.subr.bf16.mxu1 %v10324_v48  ;;  %9433 = vmatmul.mubr.bf16.gmra.mxu0 %v8204_v25  ;;  %v562_v56 = vsel %vm10613_vm2, %v557_v44, %v561_v6  ;;  %v581_v63 = vrot.slane %v580_v35, 4  ;;  %v599_v5 = vrot.slane %v597_v60, 5  ;;  %v612_v10 = vshrl.u32 %v10856_v55, 16 }
  0x45   : > { %9481 = vmatmul.mubr.bf16.gmra.mxu1 %v8228_v34  ;;  %v8230_v34 = vcombine.low %v10802_v42, %v10808_v49  ;;  %9513 = vmatpush3.bf16.msra.mxu0 %v10318_v54  ;;  %v601_v42 = vshrl.u32 %v10838_v24, 16  ;;  %v607_v54 = vshll.u32 %v10841_v40, 16  ;;  %v8205_v62 = vcombine.low %v552_v43, %v562_v56  ;;  %v10890_v56 = vld [vmem:[%s10572_s28 + $0x9c] sm:$0xf] }
  0x46   : > { %9484 = vmatprep.mubr.bf16.mxu1 %v8229_v1  ;;  %9514 = vmatprep.subr.bf16.mxu0 %v10323_v7  ;;  %v571_v1 = vrot.slane %v570_v59, 4  ;;  %v586_v11 = vsel %vm10613_vm2, %v581_v63, %v585_v30  ;;  %v594_v16 = vor.u32 %v593_v4, %v590_v3  ;;  %v614_v25 = vrot.slane %v612_v10, 4 }
  0x47   : > { %9561 = vmatpush3.bf16.msra.mxu1 %v10324_v48  ;;  %v603_v6 = vrot.slane %v601_v42, 4  ;;  %v609_v8 = vrot.slane %v607_v54, 5  ;;  %9436 = vmatprep.mubr.bf16.mxu0 %v8205_v62  ;;  %v8231_v48 = vcombine.low %v300_v20, %v10838_v24  ;;  %v621_v28 = vshll.u32 %v10864_v61, 16 }
  0x48   : > { %9562 = vmatprep.subr.bf16.mxu1 %v10325_v29  ;;  %v576_v9 = vsel %vm10613_vm2, %v571_v1, %v575_v32  ;;  %v625_v32 = vshrl.u32 %v10864_v61, 16  ;;  %v631_v20 = vshll.u32 %v10867_v22, 16  ;;  %v595_v43 = vrot.slane %v594_v16, 4  ;;  %v10897_v1 = vld [vmem:[%s10572_s28 + $0xa0] sm:$0xf] }
  0x49   : > { %9515 = vmatpush3.bf16.msra.mxu0 %v10323_v7  ;;  %v8206_v12 = vcombine.low %v576_v9, %v586_v11  ;;  %v604_v17 = vor.u32 %v603_v6, %v599_v5  ;;  %v615_v7 = vshll.u32 %v10856_v55, 16  ;;  %v8232_v59 = vcombine.low %v10856_v55, %v10864_v61 }
  0x4a   : > { %9596 = vmatprep.subr.bf16.mxu0 %v10853_v45  ;;  %v627_v35 = vrot.slane %v625_v32, 4  ;;  %v633_v46 = vrot.slane %v631_v20, 5  ;;  %v636_v50 = vshrl.u32 %v304_v19, 16  ;;  %v600_v60 = vsel %vm10613_vm2, %v595_v43, %v599_v5  ;;  %v10903_v5 = vld [vmem:[%s10572_s28 + $0xa4] sm:$0x1] }
  0x4b   : > { %9563 = vmatpush3.bf16.msra.mxu1 %v10325_v29  ;;  %v605_v44 = vrot.slane %v604_v17, 4  ;;  %v617_v30 = vrot.slane %v615_v7, 5  ;;  %v10887_v29 = vld [vmem:[%s10572_s28 + $0x98] sm:$0x1]  ;;  %v639_v62 = vshll.u32 %v304_v19, 16  ;;  %v645_v4 = vshll.u32 %v10882_v33, 16 }
  0x4c   : > { %9437 = vmatmul.mubr.bf16.gmra.mxu0 %v8206_v12  ;;  %v638_v3 = vrot.slane %v636_v50, 4  ;;  %v649_v11 = vshrl.u32 %v10882_v33, 16  ;;  %v8233_v12 = vcombine.low %v304_v19, %v10882_v33  ;;  %v660_v16 = vshrl.u32 %v10890_v56, 16  ;;  %v308_v32 = vld [vmem:[%s10572_s28 + $0xa8] sm:$0xf] }
  0x4d   : > { %9485 = vmatmul.mubr.bf16.gmra.mxu1 %v8230_v34  ;;  %v623_v34 = vrot.slane %v621_v28, 5  ;;  %v610_v42 = vsel %vm10613_vm2, %v605_v44, %v609_v8  ;;  %v618_v54 = vor.u32 %v617_v30, %v614_v25  ;;  %v641_v9 = vrot.slane %v639_v62, 5  ;;  %v10915_v19 = vld [vmem:[%s10572_s28 + $0xac] sm:$0xf] }
  0x4e   : > { %9488 = vmatprep.mubr.bf16.mxu1 %v8231_v48  ;;  %v8207_v55 = vcombine.low %v600_v60, %v610_v42  ;;  %v655_v48 = vshll.u32 %v10887_v29, 16  ;;  %v647_v10 = vrot.slane %v645_v4, 5  ;;  %v651_v25 = vrot.slane %v649_v11, 4 }
  0x4f   : > { %v628_v63 = vor.u32 %v627_v35, %v623_v34  ;;  %v619_v6 = vrot.slane %v618_v54, 4  ;;  %v642_v7 = vor.u32 %v641_v9, %v638_v3  ;;  %v662_v43 = vrot.slane %v660_v16, 4  ;;  %v10933_v9 = vld [vmem:[%s10572_s28 + $0xb4] sm:$0xf] }
  0x50   : > { %9440 = vmatprep.mubr.bf16.mxu0 %v8207_v55  ;;  %v657_v28 = vrot.slane %v655_v48, 5  ;;  %v663_v44 = vshll.u32 %v10890_v56, 16  ;;  %v669_v30 = vshll.u32 %v10897_v1, 16  ;;  %v652_v60 = vor.u32 %v651_v25, %v647_v10  ;;  %v10927_v55 = vld [vmem:[%s10572_s28 + $0xb0] sm:$0x1] }
  0x51   : > { %v629_v8 = vrot.slane %v628_v63, 4  ;;  %v624_v17 = vsel %vm10613_vm2, %v619_v6, %v623_v34  ;;  %v10920_v34 = vld [vmem:[%s13997_s1 + $0x178] sm:$0xff]   ;;  %v643_v50 = vrot.slane %v642_v7, 4  ;;  %v679_v54 = vshll.u32 %v10903_v5, 16 }
  0x52   : > { %v671_v42 = vrot.slane %v669_v30, 5  ;;  %v8234_v62 = vcombine.low %v10890_v56, %v10897_v1  ;;  %9644 = vmatprep.subr.bf16.mxu1 %v10920_v34  ;;  %v653_v3 = vrot.slane %v652_v60, 4  ;;  %v684_v6 = vshrl.u32 %v308_v32, 16 }
  0x53   : > { %v634_v20 = vsel %vm10613_vm2, %v629_v8, %v633_v46  ;;  %v665_v46 = vrot.slane %v663_v44, 5  ;;  %v648_v63 = vsel %vm10613_vm2, %v643_v50, %v647_v10  ;;  %v681_v48 = vrot.slane %v679_v54, 5  ;;  %v10940_v10 = vld [vmem:[%s10572_s28 + $0xb8] sm:$0xf] }
  0x54   : > { %v8208_v35 = vcombine.low %v624_v17, %v634_v20  ;;  %v687_v8 = vshll.u32 %v308_v32, 16  ;;  %v693_v56 = vshll.u32 %v10915_v19, 16  ;;  %v686_v17 = vrot.slane %v684_v6, 4 }
  0x55   : > { %9489 = vmatmul.mubr.bf16.gmra.mxu1 %v8232_v59  ;;  %v673_v59 = vshrl.u32 %v10897_v1, 16  ;;  %v666_v11 = vor.u32 %v665_v46, %v662_v43  ;;  %v697_v7 = vshrl.u32 %v10915_v19, 16  ;;  %v703_v60 = vshll.u32 %v10927_v55, 16 }
  0x56   : > { %9492 = vmatprep.mubr.bf16.mxu1 %v8233_v12  ;;  %9441 = vmatmul.mubr.bf16.gmra.mxu0 %v8208_v35  ;;  %v658_v12 = vsel %vm10613_vm2, %v653_v3, %v657_v28  ;;  %v689_v44 = vrot.slane %v687_v8, 5  ;;  %v695_v30 = vrot.slane %v693_v56, 5  ;;  %v10943_v35 = vld [vmem:[%s10572_s28 + $0xbc] sm:$0x1]  ;;  %v1326_v28 = vld [vmem:[%s10572_s28] sm:$0xe] }
  0x57   : > { %v675_v4 = vrot.slane %v673_v59, 4  ;;  %v8209_v25 = vcombine.low %v648_v63, %v658_v12  ;;  %v667_v20 = vrot.slane %v666_v11, 4  ;;  %v699_v50 = vrot.slane %v697_v7, 4  ;;  %v1327_v8 = vld [vmem:[%s10572_s28 + $0xc] sm:$0xe] }
  0x58   : > { %v8235_v59 = vcombine.low %v308_v32, %v10915_v19  ;;  %v690_v54 = vor.u32 %v689_v44, %v686_v17  ;;  %v708_v63 = vshrl.u32 %v10933_v9, 16  ;;  %v711_v3 = vshll.u32 %v10933_v9, 16 }
  0x59   : > { %v676_v16 = vor.u32 %v675_v4, %v671_v42  ;;  %9444 = vmatprep.mubr.bf16.mxu0 %v8209_v25  ;;  %v672_v46 = vsel %vm10613_vm2, %v667_v20, %v671_v42  ;;  %v700_v6 = vor.u32 %v699_v50, %v695_v30  ;;  %v705_v11 = vrot.slane %v703_v60, 5  ;;  %v1328_v20 = vld [vmem:[%s10572_s28 + $0x18] sm:$0xe] }
  0x5a   : > { %v717_v32 = vshll.u32 %v10940_v10, 16  ;;  %v691_v12 = vrot.slane %v690_v54, 4  ;;  %v710_v42 = vrot.slane %v708_v63, 4  ;;  %v721_v7 = vshrl.u32 %v10940_v10, 16 }
  0x5b   : > { %v677_v43 = vrot.slane %v676_v16, 4  ;;  %v701_v16 = vrot.slane %v700_v6, 4  ;;  %v727_v25 = vshll.u32 %v10943_v35, 16  ;;  %v8245_v60 = vrot.slane %v1326_v28, 9 }
  0x5c   : > { %v719_v17 = vrot.slane %v717_v32, 5  ;;  %v723_v54 = vrot.slane %v721_v7, 4  ;;  %v1386_v32 = vrot.slane %v10599_v26, 5  ;;  %v1393_v26 = vrot.slane %v10623_v47, 5  ;;  %v10328_v47 = vld [vmem:[%s10572_s28 + $0x18] sm:$0xff]  }
  0x5d   : > { %9493 = vmatmul.mubr.bf16.gmra.mxu1 %v8234_v62  ;;  %v682_v4 = vsel %vm10613_vm2, %v677_v43, %v681_v48  ;;  %v713_v62 = vrot.slane %v711_v3, 5  ;;  %v696_v48 = vsel %vm10613_vm2, %v691_v12, %v695_v30  ;;  %v8236_v43 = vcombine.low %v10933_v9, %v10940_v10  ;;  %v10327_v30 = vld [vmem:[%s10572_s28 + $0xc] sm:$0xff]  }
  0x5e   : > { %9496 = vmatprep.mubr.bf16.mxu1 %v8235_v59  ;;  %v8210_v56 = vcombine.low %v672_v46, %v682_v4  ;;  %v1329_v59 = vld [vmem:[%s10572_s28 + $0x24] sm:$0xe]  ;;  %v706_v46 = vsel %vm10613_vm2, %v701_v16, %v705_v11  ;;  %v729_v63 = vrot.slane %v727_v25, 5  ;;  %v1379_v3 = vrot.slane %v10582_v13, 5 }
  0x5f   : > { %v714_v44 = vor.u32 %v713_v62, %v710_v42  ;;  %v8211_v4 = vcombine.low %v696_v48, %v706_v46  ;;  %v8246_v9 = vrot.slane %v1327_v8, 9  ;;  %v8247_v42 = vrot.slane %v1328_v20, 9  ;;  %v1330_v62 = vld [vmem:[%s10572_s28 + $0x30] sm:$0xe]  ;;  %v1331_v20 = vld [vmem:[%s10572_s28 + $0x3c] sm:$0xe] }
  0x60   : > { %9445 = vmatmul.mubr.bf16.gmra.mxu0 %v8210_v56  ;;  %v724_v56 = vor.u32 %v723_v54, %v719_v17  ;;  %v1380_v28 = vsel %vm10965_vm5, %v8245_v60, %v1379_v3  ;;  %v1381_v12 = vrot.slane %v1379_v3, 4  ;;  %v1388_v8 = vrot.slane %v1386_v32, 4 }
  0x61   : > { %v715_v6 = vrot.slane %v714_v44, 4  ;;  %9448 = vmatprep.mubr.bf16.mxu0 %v8211_v4  ;;  %v10981_v13 = vsel %vm10965_vm5, %v8246_v9, %v1386_v32  ;;  %v1396_v25 = vrot.slane %v10637_v57, 5  ;;  %v11000_v14 = vsel %vm10965_vm5, %v8247_v42, %v1393_v26 }
  0x62   : > { %v725_v16 = vrot.slane %v724_v56, 4  ;;  %v1383_v7 = vsel %vm10965_vm5, %v1381_v12, %v1382_v21  ;;  %v10995_v44 = vsel %vm10965_vm5, %v1388_v8, %v1389_v41  ;;  %v1395_v21 = vrot.slane %v1393_v26, 4  ;;  %v10342_v12 = vld [vmem:[%s13997_s1 + $0x170] sm:$0xff]  }
  0x63   : > { %v720_v11 = vsel %vm10613_vm2, %v715_v6, %v719_v17  ;;  %v8248_v17 = vrot.slane %v1329_v59, 9  ;;  %v8277_v48 = vcombine.low %v1380_v28, %v1383_v7  ;;  %v8278_v60 = vcombine.low %v10981_v13, %v10995_v44  ;;  %v1333_v6 = vld [vmem:[%s10572_s28 + $0x54] sm:$0xe]  ;;  %v1334_v28 = vld [vmem:[%s10572_s28 + $0x60] sm:$0xe] }
  0x64   : > { %v730_v57 = vsel %vm10613_vm2, %v725_v16, %v729_v63  ;;  %v1403_v41 = vrot.slane %v10661_v15, 5  ;;  %v11011_v46 = vsel %vm10965_vm5, %v1395_v21, %v1396_v25  ;;  %v8249_v54 = vrot.slane %v1330_v62, 9  ;;  %v1335_v16 = vld [vmem:[%s10572_s28 + $0x6c] sm:$0xe] }
  0x65   : > { %9497 = vmatmul.mubr.bf16.gmra.mxu1 %v8236_v43  ;;  %v1332_v43 = vld [vmem:[%s10572_s28 + $0x48] sm:$0xe]  ;;  %v8212_v59 = vcombine.low %v720_v11, %v730_v57  ;;  %v1407_v3 = vrot.slane %v10674_v31, 5  ;;  %v11018_v63 = vsel %vm10965_vm5, %v8248_v17, %v1400_v27  ;;  %v1402_v4 = vrot.slane %v1400_v27, 4  ;;  %v10329_v17 = vld [vmem:[%s13997_s1 + $0x130] sm:$0xff]  }
  0x66   : > { %9564 = vmatprep.mubr.bf16.mxu1 %v10327_v30  ;;  %v8279_v30 = vcombine.low %v11000_v14, %v11011_v46  ;;  %v1410_v15 = vrot.slane %v10683_v38, 5  ;;  %v8250_v31 = vrot.slane %v1331_v20, 9  ;;  %v1414_v56 = vrot.slane %v10707_v51, 5  ;;  %v10331_v20 = vld [vmem:[%s10572_s28 + $0x30] sm:$0xff]   ;;  %v10333_v46 = vld [vmem:[%s10572_s28 + $0x3c] sm:$0xff]  }
  0x67   : > { %v11025_v9 = vsel %vm10965_vm5, %v8249_v54, %v1407_v3  ;;  %v1409_v32 = vrot.slane %v1407_v3, 4  ;;  %v11034_v38 = vsel %vm10965_vm5, %v1402_v4, %v1403_v41  ;;  %v1417_v42 = vrot.slane %v10712_v2, 5 }
  0x68   : > { %9449 = vmatmul.mubr.bf16.gmra.mxu0 %v8212_v59  ;;  %v8251_v11 = vrot.slane %v1332_v43, 9  ;;  %v1421_v13 = vrot.slane %v10729_v23, 5  ;;  %v8280_v51 = vcombine.low %v11018_v63, %v11034_v38  ;;  %v11046_v26 = vsel %vm10965_vm5, %v8250_v31, %v1414_v56  ;;  %v1336_v59 = vld [vmem:[%s10572_s28 + $0x78] sm:$0xe]  ;;  %v10347_v31 = vld [vmem:[%s13997_s1 + $0x160] sm:$0xff]  }
  0x69   : > { %9516 = vmatprep.mubr.bf16.mxu0 %v8277_v48  ;;  %v11042_v8 = vsel %vm10965_vm5, %v1409_v32, %v1410_v15  ;;  %v1416_v62 = vrot.slane %v1414_v56, 4  ;;  %v1424_v25 = vrot.slane %v10740_v36, 5  ;;  %v8252_v44 = vrot.slane %v1333_v6, 9  ;;  %v10346_v36 = vld [vmem:[%s13997_s1 + $0x168] sm:$0xff]  }
  0x6a   : > { %v8281_v2 = vcombine.low %v11025_v9, %v11042_v8  ;;  %v11053_v23 = vsel %vm10965_vm5, %v8251_v11, %v1421_v13  ;;  %v1423_v7 = vrot.slane %v1421_v13, 4  ;;  %v1431_v14 = vrot.slane %v10764_v58, 5 }
  0x6b   : > { %v11063_v48 = vsel %vm10965_vm5, %v1416_v62, %v1417_v42  ;;  %v8253_v43 = vrot.slane %v1334_v28, 9  ;;  %v1435_v57 = vrot.slane %v10783_v18, 5  ;;  %v1438_v41 = vrot.slane %v10798_v39, 5 }
  0x6c   : > { %v11074_v21 = vsel %vm10965_vm5, %v1423_v7, %v1424_v25  ;;  %v8254_v4 = vrot.slane %v1335_v16, 9  ;;  %v1442_v18 = vrot.slane %v10808_v49, 5  ;;  %v1445_v6 = vrot.slane %v10812_v53, 5  ;;  %v10332_v49 = vld [vmem:[%s13997_s1 + $0x128] sm:$0xff]   ;;  %v10351_v16 = vld [vmem:[%s13997_s1 + $0x158] sm:$0xff]  }
  0x6d   : > { %9565 = vmatmul.mubr.bf16.vlgmr.msra.gmra.mxu1 %v10328_v47  ;;  %v1428_v47 = vrot.slane %v10761_v52, 5  ;;  %v8283_v52 = vcombine.low %v11053_v23, %v11074_v21  ;;  %v11088_v54 = vsel %vm10965_vm5, %v8253_v43, %v1435_v57  ;;  %v1437_v3 = vrot.slane %v1435_v57, 4  ;;  %v10334_v7 = vld [vmem:[%s10572_s28 + $0x48] sm:$0xff]   ;;  %v8376_v21 = vld [vmem:[%s10572_s28 + $0x18] sm:$0xf] }
  0x6e   : > { %9568 = vmatprep.mubr.bf16.mxu1 %v10330_v0  ;;  %9645 = vmatpush3.bf16.msra.mxu1 %v10920_v34  ;;  %v8282_v34 = vcombine.low %v11046_v26, %v11063_v48  ;;  %v1337_v0 = vld [vmem:[%s10572_s28 + $0x84] sm:$0xe]  ;;  %v8255_v39 = vrot.slane %v1336_v59, 9  ;;  %v1449_v32 = vrot.slane %v10838_v24, 5  ;;  %v11113_v24 = vsel %vm10965_vm5, %v8254_v4, %v1442_v18  ;;  %v10352_v59 = vld [vmem:[%s13997_s1 + $0x150] sm:$0xff]  }
  0x6f   : > { %9646 = vmatprep.subr.bf16.mxu1 %v10342_v12  ;;  %v11081_v58 = vsel %vm10965_vm5, %v8252_v44, %v1428_v47  ;;  %v1430_v27 = vrot.slane %v1428_v47, 4  ;;  %v11109_v53 = vsel %vm10965_vm5, %v1437_v3, %v1438_v41  ;;  %v1444_v56 = vrot.slane %v1442_v18, 4  ;;  %v11241_v48 = vld [vmem:[%s10572_s28 + $0x14] sm:$0x1] }
  0x70   : > { %9517 = vmatmul.mubr.bf16.vlgmr.msra.gmra.mxu0 %v8278_v60  ;;  %v1451_v28 = vrot.slane %v1449_v32, 4  ;;  %v8256_v11 = vrot.slane %v1337_v0, 9  ;;  %v1456_v13 = vrot.slane %v10864_v61, 5  ;;  %v1459_v62 = vrot.slane %v10867_v22, 5  ;;  %v10336_v61 = vld [vmem:[%s10572_s28 + $0x54] sm:$0xff]  }
  0x71   : > { %v11094_v15 = vsel %vm10965_vm5, %v1430_v27, %v1431_v14  ;;  %9597 = vmatpush3.bf16.msra.mxu0 %v10853_v45  ;;  %9520 = vmatprep.mubr.bf16.mxu0 %v8279_v30  ;;  %v8285_v45 = vcombine.low %v11088_v54, %v11109_v53  ;;  %v11119_v30 = vsel %vm10965_vm5, %v8255_v39, %v1449_v32  ;;  %v1338_v14 = vld [vmem:[%s10572_s28 + $0x90] sm:$0xe]  ;;  %v1466_v57 = vrot.slane %v10887_v29, 5  ;;  %v1339_v27 = vld [vmem:[%s10572_s28 + $0x9c] sm:$0xe]  ;;  %v10337_v32 = vld [vmem:[%s10572_s28 + $0x60] sm:$0xff]  }
  0x72   : > { %9647 = vmatpush3.bf16.msra.mxu1 %v10342_v12  ;;  %v8284_v60 = vcombine.low %v11081_v58, %v11094_v15  ;;  %9598 = vmatprep.subr.bf16.mxu0 %v10329_v17  ;;  %v1452_v12 = vrot.slane %v10841_v40, 5  ;;  %v11124_v42 = vsel %vm10965_vm5, %v1444_v56, %v1445_v6  ;;  %v10335_v40 = vld [vmem:[%s13997_s1 + $0x120] sm:$0xff]   ;;  %v11146_v44 = vsel %vm10965_vm5, %v8256_v11, %v1456_v13  ;;  %v10338_v29 = vld [vmem:[%s13997_s1 + $0x118] sm:$0xff]   ;;  %v1341_v39 = vld [vmem:[%s10572_s28 + $0xb4] sm:$0xe] }
  0x73   : > { %9648 = vmatprep.subr.bf16.mxu1 %v10346_v36  ;;  %v8286_v25 = vcombine.low %v11113_v24, %v11124_v42  ;;  %v1458_v47 = vrot.slane %v1456_v13, 4  ;;  %v8257_v43 = vrot.slane %v1338_v14, 9  ;;  %v1470_v41 = vrot.slane %v10897_v1, 5  ;;  %v10339_v11 = vld [vmem:[%s10572_s28 + $0x6c] sm:$0xff]   ;;  %v11286_v53 = vld [vmem:[%s13997_s1 + $0x1b8] sm:$0xff]  }
  0x74   : > { %v1477_v18 = vrot.slane %v10915_v19, 5  ;;  %v1480_v6 = vrot.slane %v10927_v55, 5  ;;  %v8260_v56 = vrot.slane %v1341_v39, 9  ;;  %v2266_v23 = vshll.u32 %v11241_v48, 16 }
  0x75   : > { %9569 = vmatmul.mubr.bf16.gmra.mxu1 %v10331_v20  ;;  %v11139_v20 = vsel %vm10965_vm5, %v1451_v28, %v1452_v12  ;;  %9599 = vmatpush3.bf16.msra.mxu0 %v10329_v17  ;;  %v1473_v17 = vrot.slane %v10903_v5, 5  ;;  %v1472_v4 = vrot.slane %v1470_v41, 4  ;;  %v1484_v28 = vrot.slane %v10940_v10, 5 }
  0x76   : > { %9572 = vmatprep.mubr.bf16.mxu1 %v10333_v46  ;;  %9649 = vmatpush3.bf16.msra.mxu1 %v10346_v36  ;;  %v8287_v22 = vcombine.low %v11119_v30, %v11139_v20  ;;  %v1463_v36 = vrot.slane %v10882_v33, 5  ;;  %v11159_v46 = vsel %vm10965_vm5, %v1458_v47, %v1459_v62  ;;  %v8258_v33 = vrot.slane %v1339_v27, 9  ;;  %v10348_v47 = vld [vmem:[%s13997_s1 + $0x108] sm:$0xff]  }
  0x77   : > { %9650 = vmatprep.subr.bf16.mxu1 %v10347_v31  ;;  %9600 = vmatprep.subr.bf16.mxu0 %v10332_v49  ;;  %v8288_v1 = vcombine.low %v11146_v44, %v11159_v46  ;;  %v11189_v9 = vsel %vm10965_vm5, %v1472_v4, %v1473_v17  ;;  %v1479_v0 = vrot.slane %v1477_v18, 4  ;;  %v1487_v12 = vrot.slane %v10943_v35, 5  ;;  %v10357_v35 = vld [vmem:[%s13997_s1 + $0x140] sm:$0xff]  }
  0x78   : > { %v1465_v3 = vrot.slane %v1463_v36, 4  ;;  %9521 = vmatmul.mubr.bf16.gmra.mxu0 %v8280_v51  ;;  %v11171_v5 = vsel %vm10965_vm5, %v8257_v43, %v1463_v36  ;;  %v11183_v38 = vsel %vm10965_vm5, %v8258_v33, %v1470_v41  ;;  %v10356_v51 = vld [vmem:[%s13997_s1 + $0x148] sm:$0xff]   ;;  %v11216_v62 = vsel %vm10965_vm5, %v8260_v56, %v1484_v28  ;;  %v11249_v17 = vld [vmem:[%s10572_s28 + $0x20] sm:$0x1] }
  0x79   : > { %9524 = vmatprep.mubr.bf16.mxu0 %v8281_v2  ;;  %9601 = vmatpush3.bf16.msra.mxu0 %v10332_v49  ;;  %v8290_v8 = vcombine.low %v11183_v38, %v11189_v9  ;;  %v1340_v2 = vld [vmem:[%s10572_s28 + $0xa8] sm:$0xe]  ;;  %v11208_v55 = vsel %vm10965_vm5, %v1479_v0, %v1480_v6  ;;  %v1486_v10 = vrot.slane %v1484_v28, 4  ;;  %v2274_v4 = vshll.u32 %v8376_v21, 16 }
  0x7a   : > { %9651 = vmatpush3.bf16.msra.mxu1 %v10347_v31  ;;  %v11179_v63 = vsel %vm10965_vm5, %v1465_v3, %v1466_v57  ;;  %9602 = vmatprep.subr.bf16.mxu0 %v10335_v40  ;;  %v10343_v31 = vld [vmem:[%s13997_s1 + $0x110] sm:$0xff]   ;;  %v8259_v49 = vrot.slane %v1340_v2, 9  ;;  %v10340_v3 = vld [vmem:[%s10572_s28 + $0x78] sm:$0xff]   ;;  %v10344_v2 = vld [vmem:[%s10572_s28 + $0x84] sm:$0xff]   ;;  %v2290_v39 = vshll.u32 %v11249_v17, 16 }
  0x7b   : > { %9652 = vmatprep.subr.bf16.mxu1 %v10351_v16  ;;  %v8289_v19 = vcombine.low %v11171_v5, %v11179_v63  ;;  %v2276_v28 = vrot.slane %v2274_v4, 5 }
  0x7c   : > { %v11212_v13 = vsel %vm10965_vm5, %v8259_v49, %v1477_v18  ;;  %v10353_v49 = vld [vmem:[%s13997_s1 + $0x100] sm:$0xff]  }
  0x7d   : > { %9573 = vmatmul.mubr.bf16.gmra.mxu1 %v10334_v7  ;;  %9603 = vmatpush3.bf16.msra.mxu0 %v10335_v40  ;;  %v11228_v7 = vsel %vm10965_vm5, %v1486_v10, %v1487_v12  ;;  %v8373_v40 = vld [vmem:[%s10572_s28 + $0xc] sm:$0xf] }
  0x7e   : > { %9576 = vmatprep.mubr.bf16.mxu1 %v10336_v61  ;;  %9653 = vmatpush3.bf16.msra.mxu1 %v10351_v16  ;;  %v8291_v16 = vcombine.low %v11212_v13, %v11208_v55  ;;  %v8374_v61 = vld [vmem:[%s10572_s28 + $0x10] sm:$0xf]  ;;  %v8292_v26 = vcombine.low %v11216_v62, %v11228_v7  ;;  %v2250_v14 = vshll.u32 %v8373_v40, 16  ;;  %v8461_v12 = vld [vmem:[%s10572_s28 + $0xc] sm:$0xe] }
  0x7f   : > { %9654 = vmatprep.subr.bf16.mxu1 %v10352_v59  ;;  %9604 = vmatprep.subr.bf16.mxu0 %v10338_v29  ;;  %v2256_v36 = vshll.u32 %v8374_v61, 16  ;;  %v2260_v43 = vshrl.u32 %v8374_v61, 16  ;;  %v8394_v13 = vld [vmem:[%s10572_s28 + $0x60] sm:$0xf] }
  0x80   : > { %9525 = vmatmul.mubr.bf16.gmra.mxu0 %v8282_v34  ;;  %v2247_v34 = vshrl.u32 %v8373_v40, 16  ;;  %v2252_v27 = vrot.slane %v2250_v14, 5  ;;  %v8477_v14 = vrot.slane %v8461_v12, 9 }
  0x81   : > { %9528 = vmatprep.mubr.bf16.mxu0 %v8283_v52  ;;  %9605 = vmatpush3.bf16.msra.mxu0 %v10338_v29  ;;  %v11246_v52 = vld [vmem:[%s10572_s28 + $0x1c] sm:$0xf]  ;;  %v2258_v41 = vrot.slane %v2256_v36, 5  ;;  %v2262_v33 = vrot.slane %v2260_v43, 4  ;;  %v2268_v29 = vrot.slane %v2266_v23, 5 }
  0x82   : > { %9655 = vmatpush3.bf16.msra.mxu1 %v10352_v59  ;;  %9606 = vmatprep.subr.bf16.mxu0 %v10343_v31  ;;  %v2249_v57 = vrot.slane %v2247_v34, 4  ;;  %v2271_v59 = vshrl.u32 %v8376_v21, 16  ;;  %v2280_v18 = vshll.u32 %v11246_v52, 16  ;;  %v2292_v34 = vrot.slane %v2290_v39, 5  ;;  %v8462_v36 = vld [vmem:[%s10572_s28 + $0x18] sm:$0xe] }
  0x83   : > { %9656 = vmatprep.subr.bf16.mxu1 %v10356_v51  ;;  %v2263_v56 = vor.u32 %v2262_v33, %v2258_v41  ;;  %v8478_v15 = vrot.slane %v8462_v36, 9  ;;  %v3028_v33 = vrot.slane %v11249_v17, 5 }
  0x84   : > { %v2253_v0 = vor.u32 %v2252_v27, %v2249_v57  ;;  %v2273_v6 = vrot.slane %v2271_v59, 4  ;;  %v3021_v57 = vrot.slane %v11241_v48, 5  ;;  %v11294_v27 = vld [vmem:[%s10572_s28 + $0x28] sm:$0xf] }
  0x85   : > { %9577 = vmatmul.mubr.bf16.gmra.mxu1 %v10337_v32  ;;  %9607 = vmatpush3.bf16.msra.mxu0 %v10343_v31  ;;  %v11259_v32 = vld [vmem:[%s13997_s1 + $0x1f8] sm:$0xff]   ;;  %v2282_v31 = vrot.slane %v2280_v18, 5  ;;  %v2264_v43 = vrot.slane %v2263_v56, 4  ;;  %v2304_v17 = vshll.u32 %v11294_v27, 16  ;;  %v2308_v39 = vshrl.u32 %v11294_v27, 16 }
  0x86   : > { %9580 = vmatprep.mubr.bf16.mxu1 %v10339_v11  ;;  %9657 = vmatpush3.bf16.msra.mxu1 %v10356_v51  ;;  %v2284_v51 = vshrl.u32 %v11246_v52, 16  ;;  %v3018_v11 = vrot.slane %v8374_v61, 5  ;;  %v2254_v10 = vrot.slane %v2253_v0, 4  ;;  %v2277_v23 = vor.u32 %v2276_v28, %v2273_v6  ;;  %v8382_v0 = vld [vmem:[%s10572_s28 + $0x30] sm:$0xf] }
  0x87   : > { %9658 = vmatprep.subr.bf16.mxu1 %v10357_v35  ;;  %9608 = vmatprep.subr.bf16.mxu0 %v10348_v47  ;;  %v2269_v48 = vsel %vm10613_vm2, %v2264_v43, %v2268_v29  ;;  %v11302_v29 = vld [vmem:[%s10572_s28 + $0x2c] sm:$0x1]  ;;  %v8383_v56 = vld [vmem:[%s10572_s28 + $0x34] sm:$0xf]  ;;  %v2306_v36 = vrot.slane %v2304_v17, 5  ;;  %v2310_v43 = vrot.slane %v2308_v39, 4 }
  0x88   : > { %v2286_v40 = vrot.slane %v2284_v51, 4  ;;  %9529 = vmatmul.mubr.bf16.gmra.mxu0 %v8284_v60  ;;  %v3020_v21 = vrot.slane %v3018_v11, 4  ;;  %v11278_v58 = vsel %vm10965_vm5, %v8477_v14, %v3018_v11  ;;  %v8379_v60 = vld [vmem:[%s10572_s28 + $0x24] sm:$0xf]  ;;  %v2278_v54 = vrot.slane %v2277_v23, 4  ;;  %v10345_v28 = vld [vmem:[%s10572_s28 + $0x90] sm:$0xff]  }
  0x89   : > { %9532 = vmatprep.mubr.bf16.mxu0 %v8285_v45  ;;  %9609 = vmatpush3.bf16.msra.mxu0 %v10348_v47  ;;  %v3025_v47 = vrot.slane %v11246_v52, 5  ;;  %v2298_v51 = vshll.u32 %v8379_v60, 16  ;;  %v2314_v11 = vshll.u32 %v11302_v29, 16  ;;  %v8463_v23 = vld [vmem:[%s10572_s28 + $0x24] sm:$0xe]  ;;  %v3032_v20 = vrot.slane %v11294_v27, 5 }
  0x8a   : > { %9659 = vmatpush3.bf16.msra.mxu1 %v10357_v35  ;;  %v2259_v35 = vsel %vm10613_vm2, %v2254_v10, %v2258_v41  ;;  %v2287_v61 = vor.u32 %v2286_v40, %v2282_v31  ;;  %9610 = vmatprep.subr.bf16.mxu0 %v10353_v49  ;;  %v11290_v45 = vsel %vm10965_vm5, %v3020_v21, %v3021_v57  ;;  %v8384_v10 = vld [vmem:[%s10572_s28 + $0x38] sm:$0x1]  ;;  %v10349_v40 = vld [vmem:[%s10572_s28 + $0x9c] sm:$0xff]   ;;  %v2319_v57 = vshrl.u32 %v8382_v0, 16 }
  0x8b   : > { %9740 = vmatprep.subr.bf16.mxu1 %v11259_v32  ;;  %v11296_v41 = vcombine.low %v2259_v35, %v2269_v48  ;;  %v2283_v4 = vsel %vm10613_vm2, %v2278_v54, %v2282_v31  ;;  %v11308_v52 = vsel %vm10965_vm5, %v8478_v15, %v3025_v47  ;;  %v3027_v18 = vrot.slane %v3025_v47, 4  ;;  %v8464_v47 = vld [vmem:[%s10572_s28 + $0x30] sm:$0xe] }
  0x8c   : > { %v2288_v59 = vrot.slane %v2287_v61, 4  ;;  %v2300_v14 = vrot.slane %v2298_v51, 5  ;;  %v2316_v21 = vrot.slane %v2314_v11, 5  ;;  %v2322_v35 = vshll.u32 %v8382_v0, 16 }
  0x8d   : > { %9581 = vmatmul.mubr.bf16.gmra.mxu1 %v10340_v3  ;;  %v8509_v3 = vcombine.low %v11278_v58, %v11290_v45  ;;  %9611 = vmatpush3.bf16.msra.mxu0 %v10353_v49  ;;  %v11322_v12 = vsel %vm10965_vm5, %v3027_v18, %v3028_v33  ;;  %v2328_v61 = vshll.u32 %v8383_v56, 16  ;;  %v2332_v48 = vshrl.u32 %v8383_v56, 16 }
  0x8e   : > { %9584 = vmatprep.mubr.bf16.mxu1 %v10344_v2  ;;  %v2295_v2 = vshrl.u32 %v8379_v60, 16  ;;  %v2293_v6 = vsel %vm10613_vm2, %v2288_v59, %v2292_v34  ;;  %9692 = vmatprep.subr.bf16.mxu0 %v11286_v53  ;;  %v8510_v34 = vcombine.low %v11308_v52, %v11322_v12  ;;  %v2311_v60 = vor.u32 %v2310_v43, %v2306_v36  ;;  %v8397_v52 = vld [vmem:[%s10572_s28 + $0x6c] sm:$0xf] }
  0x8f   : > { %v11317_v31 = vcombine.low %v2283_v4, %v2293_v6  ;;  %v2338_v54 = vshll.u32 %v8384_v10, 16  ;;  %v2321_v59 = vrot.slane %v2319_v57, 4  ;;  %v2324_v33 = vrot.slane %v2322_v35, 5  ;;  %v11358_v57 = vld [vmem:[%s10572_s28 + $0x44] sm:$0x1] }
  0x90   : > { %v2297_v49 = vrot.slane %v2295_v2, 4  ;;  %9533 = vmatmul.mubr.bf16.gmra.mxu0 %v8286_v25  ;;  %v2330_v4 = vrot.slane %v2328_v61, 5  ;;  %v8479_v24 = vrot.slane %v8463_v23, 9  ;;  %v2312_v25 = vrot.slane %v2311_v60, 4 }
  0x91   : > { %9536 = vmatprep.mubr.bf16.mxu0 %v8287_v22  ;;  %v2334_v18 = vrot.slane %v2332_v48, 4  ;;  %v2340_v2 = vrot.slane %v2338_v54, 5  ;;  %v2325_v30 = vor.u32 %v2324_v33, %v2321_v59  ;;  %v3035_v22 = vrot.slane %v11302_v29, 5  ;;  %v8388_v48 = vld [vmem:[%s10572_s28 + $0x48] sm:$0xf] }
  0x92   : > { %v2301_v15 = vor.u32 %v2300_v14, %v2297_v49  ;;  %v8480_v0 = vrot.slane %v8464_v47, 9  ;;  %v2317_v51 = vsel %vm10613_vm2, %v2312_v25, %v2316_v21  ;;  %v3039_v39 = vrot.slane %v8383_v56, 5  ;;  %v10350_v49 = vld [vmem:[%s10572_s28 + $0xa8] sm:$0xff]   ;;  %v8386_v14 = vld [vmem:[%s10572_s28 + $0x40] sm:$0xf] }
  0x93   : > { %v2335_v17 = vor.u32 %v2334_v18, %v2330_v4  ;;  %v11349_v27 = vsel %vm10965_vm5, %v8479_v24, %v3032_v20  ;;  %v3034_v29 = vrot.slane %v3032_v20, 4  ;;  %v3042_v21 = vrot.slane %v8384_v10, 5  ;;  %v11371_v54 = vld [vmem:[%s10572_s28 + $0x4c] sm:$0xf]  ;;  %v11389_v59 = vld [vmem:[%s10572_s28 + $0x50] sm:$0x1] }
  0x94   : > { %v2302_v42 = vrot.slane %v2301_v15, 4  ;;  %v11355_v23 = vsel %vm10965_vm5, %v8480_v0, %v3039_v39  ;;  %v3041_v56 = vrot.slane %v3039_v39, 4  ;;  %v2352_v10 = vshll.u32 %v8386_v14, 16  ;;  %v8465_v20 = vld [vmem:[%s10572_s28 + $0x3c] sm:$0xe] }
  0x95   : > { %9585 = vmatmul.mubr.bf16.gmra.mxu1 %v10345_v28  ;;  %v8385_v28 = vld [vmem:[%s10572_s28 + $0x3c] sm:$0xf]  ;;  %v2336_v43 = vrot.slane %v2335_v17, 4  ;;  %v11367_v61 = vsel %vm10965_vm5, %v3034_v29, %v3035_v22  ;;  %v2362_v24 = vshll.u32 %v11358_v57, 16  ;;  %v2370_v18 = vshll.u32 %v8388_v48, 16  ;;  %v10355_v22 = vld [vmem:[%s10572_s28 + $0xc0] sm:$0xff]  }
  0x96   : > { %9588 = vmatprep.mubr.bf16.mxu1 %v10349_v40  ;;  %v2307_v6 = vsel %vm10613_vm2, %v2302_v42, %v2306_v36  ;;  %v2326_v40 = vrot.slane %v2325_v30, 4  ;;  %v10354_v36 = vld [vmem:[%s10572_s28 + $0xb4] sm:$0xff]   ;;  %v2343_v15 = vshrl.u32 %v8385_v28, 16  ;;  %v2346_v60 = vshll.u32 %v8385_v28, 16  ;;  %v8466_v29 = vld [vmem:[%s10572_s28 + $0x48] sm:$0xe] }
  0x97   : > { %v11345_v11 = vcombine.low %v2307_v6, %v2317_v51  ;;  %v2341_v44 = vsel %vm10613_vm2, %v2336_v43, %v2340_v2  ;;  %v8511_v46 = vcombine.low %v11349_v27, %v11367_v61  ;;  %v2354_v33 = vrot.slane %v2352_v10, 5  ;;  %v10366_v27 = vld [vmem:[%s13997_s1 + $0x1e8] sm:$0xff]   ;;  %v10359_v61 = vld [vmem:[%s13997_s1 + $0x1b0] sm:$0xff]  }
  0x98   : > { %9537 = vmatmul.mubr.bf16.gmra.mxu0 %v8288_v1  ;;  %v2331_v35 = vsel %vm10613_vm2, %v2326_v40, %v2330_v4  ;;  %v11382_v1 = vsel %vm10965_vm5, %v3041_v56, %v3042_v21  ;;  %v2345_v63 = vrot.slane %v2343_v15, 4  ;;  %v2356_v4 = vshrl.u32 %v8386_v14, 16 }
  0x99   : > { %9540 = vmatprep.mubr.bf16.mxu0 %v8289_v19  ;;  %v11384_v47 = vcombine.low %v2331_v35, %v2341_v44  ;;  %v8512_v5 = vcombine.low %v11355_v23, %v11382_v1  ;;  %v2348_v19 = vrot.slane %v2346_v60, 5  ;;  %v2367_v42 = vshrl.u32 %v8388_v48, 16  ;;  %v8391_v44 = vld [vmem:[%s10572_s28 + $0x54] sm:$0xf] }
  0x9a   : > { %v2376_v2 = vshll.u32 %v11371_v54, 16  ;;  %v2380_v30 = vshrl.u32 %v11371_v54, 16  ;;  %v2358_v0 = vrot.slane %v2356_v4, 4  ;;  %v2364_v6 = vrot.slane %v2362_v24, 5 }
  0x9b   : > { %v2349_v25 = vor.u32 %v2348_v19, %v2345_v63  ;;  %v2369_v51 = vrot.slane %v2367_v42, 4  ;;  %v2386_v17 = vshll.u32 %v11389_v59, 16  ;;  %v2372_v28 = vrot.slane %v2370_v18, 5  ;;  %v11416_v63 = vld [vmem:[%s10572_s28 + $0x5c] sm:$0x1] }
  0x9c   : > { %v2382_v40 = vrot.slane %v2380_v30, 4  ;;  %v8481_v56 = vrot.slane %v8465_v20, 9  ;;  %v3046_v21 = vrot.slane %v8386_v14, 5  ;;  %v3049_v48 = vrot.slane %v11358_v57, 5 }
  0x9d   : > { %9589 = vmatmul.mubr.bf16.gmra.mxu1 %v10350_v49  ;;  %v2350_v39 = vrot.slane %v2349_v25, 4  ;;  %v2378_v49 = vrot.slane %v2376_v2, 5  ;;  %v2388_v43 = vrot.slane %v2386_v17, 5  ;;  %v2373_v15 = vor.u32 %v2372_v28, %v2369_v51  ;;  %v11431_v25 = vld [vmem:[%s10572_s28 + $0x64] sm:$0xf] }
  0x9e   : > { %9592 = vmatprep.mubr.bf16.mxu1 %v10354_v36  ;;  %v2359_v36 = vor.u32 %v2358_v0, %v2354_v33  ;;  %v11410_v14 = vsel %vm10965_vm5, %v8481_v56, %v3046_v21  ;;  %v3048_v38 = vrot.slane %v3046_v21, 4  ;;  %v8482_v9 = vrot.slane %v8466_v29, 9  ;;  %v11455_v17 = vld [vmem:[%s10572_s28 + $0x68] sm:$0x1]  ;;  %v8467_v21 = vld [vmem:[%s10572_s28 + $0x54] sm:$0xe] }
  0x9f   : > { %v2355_v35 = vsel %vm10613_vm2, %v2350_v39, %v2354_v33  ;;  %v2383_v60 = vor.u32 %v2382_v40, %v2378_v49  ;;  %v2374_v19 = vrot.slane %v2373_v15, 4  ;;  %v3053_v33 = vrot.slane %v11371_v54, 5  ;;  %v10364_v40 = vld [vmem:[%s13997_s1 + $0x1f0] sm:$0xff]  }
  0xa0   : > { %9541 = vmatmul.mubr.bf16.gmra.mxu0 %v8290_v8  ;;  %v2360_v10 = vrot.slane %v2359_v36, 4  ;;  %v11413_v8 = vld [vmem:[%s10572_s28 + $0x58] sm:$0xf]  ;;  %v3056_v55 = vrot.slane %v11389_v59, 5  ;;  %v11428_v4 = vsel %vm10965_vm5, %v3048_v38, %v3049_v48  ;;  %v2391_v24 = vshrl.u32 %v8391_v44, 16 }
  0xa1   : > { %9544 = vmatprep.mubr.bf16.mxu0 %v8291_v16  ;;  %v2384_v57 = vrot.slane %v2383_v60, 4  ;;  %v2394_v42 = vshll.u32 %v8391_v44, 16  ;;  %v2379_v59 = vsel %vm10613_vm2, %v2374_v19, %v2378_v49  ;;  %v8513_v45 = vcombine.low %v11410_v14, %v11428_v4  ;;  %v10369_v14 = vld [vmem:[%s13997_s1 + $0x1d8] sm:$0xff]   ;;  %v10361_v4 = vld [vmem:[%s13997_s1 + $0x1a0] sm:$0xff]  }
  0xa2   : > { %v2365_v16 = vsel %vm10613_vm2, %v2360_v10, %v2364_v6  ;;  %v11445_v18 = vsel %vm10965_vm5, %v8482_v9, %v3053_v33  ;;  %v3055_v2 = vrot.slane %v3053_v33, 4  ;;  %v2393_v30 = vrot.slane %v2391_v24, 4 }
  0xa3   : > { %v11433_v54 = vcombine.low %v2355_v35, %v2365_v16  ;;  %v2389_v58 = vsel %vm10613_vm2, %v2384_v57, %v2388_v43  ;;  %v2396_v20 = vrot.slane %v2394_v42, 5  ;;  %v2404_v0 = vshrl.u32 %v11413_v8, 16  ;;  %v8468_v35 = vld [vmem:[%s10572_s28 + $0x60] sm:$0xe] }
  0xa4   : > { %v2410_v6 = vshll.u32 %v11416_v63, 16  ;;  %v11452_v51 = vsel %vm10965_vm5, %v3055_v2, %v3056_v55  ;;  %v2415_v39 = vshrl.u32 %v8394_v13, 16  ;;  %v2418_v28 = vshll.u32 %v8394_v13, 16  ;;  %v11484_v55 = vld [vmem:[%s10572_s28 + $0x70] sm:$0xf] }
  0xa5   : > { %9593 = vmatmul.mubr.bf16.gmra.mxu1 %v10355_v22  ;;  %v2400_v22 = vshll.u32 %v11413_v8, 16  ;;  %v2424_v49 = vshll.u32 %v11431_v25, 16  ;;  %v8514_v29 = vcombine.low %v11445_v18, %v11452_v51  ;;  %v2397_v36 = vor.u32 %v2396_v20, %v2393_v30  ;;  %v11497_v13 = vld [vmem:[%s10572_s28 + $0x74] sm:$0x1] }
  0xa6   : > { %9660 = vmatprep.mubr.bf16.mxu1 %v8509_v3  ;;  %v11441_v3 = vcombine.low %v2379_v59, %v2389_v58  ;;  %v2406_v56 = vrot.slane %v2404_v0, 4  ;;  %v2412_v15 = vrot.slane %v2410_v6, 5  ;;  %v2417_v60 = vrot.slane %v2415_v39, 4 }
  0xa7   : > { %v2402_v43 = vrot.slane %v2400_v22, 5  ;;  %v2420_v48 = vrot.slane %v2418_v28, 5  ;;  %v2426_v44 = vrot.slane %v2424_v49, 5  ;;  %v2398_v62 = vrot.slane %v2397_v36, 4  ;;  %v8400_v22 = vld [vmem:[%s10572_s28 + $0x78] sm:$0xf] }
  0xa8   : > { %9545 = vmatmul.mubr.bf16.gmra.mxu0 %v8292_v26  ;;  %v2428_v26 = vshrl.u32 %v11431_v25, 16  ;;  %v2434_v10 = vshll.u32 %v11455_v17, 16  ;;  %v8483_v38 = vrot.slane %v8467_v21, 9  ;;  %v3060_v9 = vrot.slane %v11413_v8, 5  ;;  %v11543_v21 = vld [vmem:[%s10572_s28 + $0x80] sm:$0x1] }
  0xa9   : > { %9612 = vmatprep.mubr.bf16.mxu0 %v11296_v41  ;;  %v2407_v7 = vor.u32 %v2406_v56, %v2402_v43  ;;  %v2421_v41 = vor.u32 %v2420_v48, %v2417_v60  ;;  %v3063_v19 = vrot.slane %v11416_v63, 5  ;;  %v2403_v12 = vsel %vm10613_vm2, %v2398_v62, %v2402_v43  ;;  %v11530_v43 = vld [vmem:[%s10572_s28 + $0x7c] sm:$0xf] }
  0xaa   : > { %v2430_v57 = vrot.slane %v2428_v26, 4  ;;  %v2436_v33 = vrot.slane %v2434_v10, 5  ;;  %v3062_v8 = vrot.slane %v3060_v9, 4  ;;  %v8484_v63 = vrot.slane %v8468_v35, 9 }
  0xab   : > { %v3067_v42 = vrot.slane %v11431_v25, 5  ;;  %v3070_v59 = vrot.slane %v11455_v17, 5  ;;  %v2439_v20 = vshrl.u32 %v8397_v52, 16  ;;  %v10360_v25 = vld [vmem:[%s13997_s1 + $0x1a8] sm:$0xff]   ;;  %v2442_v49 = vshll.u32 %v8397_v52, 16 }
  0xac   : > { %v2431_v24 = vor.u32 %v2430_v57, %v2426_v44  ;;  %v11509_v30 = vsel %vm10965_vm5, %v3062_v8, %v3063_v19  ;;  %v2452_v36 = vshrl.u32 %v11484_v55, 16  ;;  %v2463_v35 = vshrl.u32 %v8400_v22, 16  ;;  %v10370_v57 = vld [vmem:[%s13997_s1 + $0x1d0] sm:$0xff]  }
  0xad   : > { %9661 = vmatmul.mubr.bf16.vlgmr.msra.gmra.mxu1 %v8510_v34  ;;  %v2408_v34 = vrot.slane %v2407_v7, 4  ;;  %v11520_v17 = vsel %vm10965_vm5, %v8484_v63, %v3067_v42  ;;  %v3069_v39 = vrot.slane %v3067_v42, 4  ;;  %v2441_v28 = vrot.slane %v2439_v20, 4 }
  0xae   : > { %9664 = vmatprep.mubr.bf16.mxu1 %v8511_v46  ;;  %9741 = vmatpush3.bf16.msra.mxu1 %v11259_v32  ;;  %v2422_v46 = vrot.slane %v2421_v41, 4  ;;  %v11494_v32 = vsel %vm10965_vm5, %v8483_v38, %v3060_v9  ;;  %v2432_v0 = vrot.slane %v2431_v24, 4  ;;  %v2444_v1 = vrot.slane %v2442_v49, 5  ;;  %v8470_v38 = vld [vmem:[%s10572_s28 + $0x78] sm:$0xe] }
  0xaf   : > { %9742 = vmatprep.subr.bf16.mxu1 %v10364_v40  ;;  %v2413_v16 = vsel %vm10613_vm2, %v2408_v34, %v2412_v15  ;;  %v8515_v6 = vcombine.low %v11494_v32, %v11509_v30  ;;  %v8469_v15 = vld [vmem:[%s10572_s28 + $0x6c] sm:$0xe]  ;;  %v2454_v48 = vrot.slane %v2452_v36, 4  ;;  %v2465_v62 = vrot.slane %v2463_v35, 4  ;;  %v8403_v34 = vld [vmem:[%s10572_s28 + $0x84] sm:$0xf] }
  0xb0   : > { %v11503_v58 = vcombine.low %v2403_v12, %v2413_v16  ;;  %v2427_v2 = vsel %vm10613_vm2, %v2422_v46, %v2426_v44  ;;  %9613 = vmatmul.mubr.bf16.vlgmr.msra.gmra.mxu0 %v11317_v31  ;;  %v10367_v31 = vld [vmem:[%s13997_s1 + $0x1e0] sm:$0xff]   ;;  %v2437_v56 = vsel %vm10613_vm2, %v2432_v0, %v2436_v33  ;;  %v2466_v7 = vshll.u32 %v8400_v22, 16  ;;  %v11598_v0 = vld [vmem:[%s10572_s28 + $0x8c] sm:$0x1] }
  0xb1   : > { %9693 = vmatpush3.bf16.msra.mxu0 %v11286_v53  ;;  %9616 = vmatprep.mubr.bf16.mxu0 %v11345_v11  ;;  %v11539_v53 = vsel %vm10965_vm5, %v3069_v39, %v3070_v59  ;;  %v2458_v11 = vshll.u32 %v11497_v13, 16  ;;  %v11549_v60 = vcombine.low %v2427_v2, %v2437_v56  ;;  %v2472_v26 = vshll.u32 %v11530_v43, 16 }
  0xb2   : > { %9743 = vmatpush3.bf16.msra.mxu1 %v10364_v40  ;;  %v2448_v40 = vshll.u32 %v11484_v55, 16  ;;  %9694 = vmatprep.subr.bf16.mxu0 %v10359_v61  ;;  %v8516_v23 = vcombine.low %v11520_v17, %v11539_v53  ;;  %v2476_v10 = vshrl.u32 %v11530_v43, 16  ;;  %v2482_v41 = vshll.u32 %v11543_v21, 16 }
  0xb3   : > { %9744 = vmatprep.subr.bf16.mxu1 %v10366_v27  ;;  %v2460_v44 = vrot.slane %v2458_v11, 5  ;;  %v2468_v19 = vrot.slane %v2466_v7, 5  ;;  %v8485_v52 = vrot.slane %v8469_v15, 9  ;;  %v3074_v12 = vrot.slane %v11484_v55, 5 }
  0xb4   : > { %v2484_v46 = vrot.slane %v2482_v41, 5  ;;  %v3077_v59 = vrot.slane %v11497_v13, 5  ;;  %v3081_v22 = vrot.slane %v11530_v43, 5  ;;  %v3084_v13 = vrot.slane %v11543_v21, 5  ;;  %v10365_v21 = vld [vmem:[%s13997_s1 + $0x190] sm:$0xff]  }
  0xb5   : > { %9665 = vmatmul.mubr.bf16.gmra.mxu1 %v8512_v5  ;;  %v2450_v5 = vrot.slane %v2448_v40, 5  ;;  %9695 = vmatpush3.bf16.msra.mxu0 %v10359_v61  ;;  %v2478_v61 = vrot.slane %v2476_v10, 4  ;;  %v2469_v63 = vor.u32 %v2468_v19, %v2465_v62  ;;  %v11571_v16 = vsel %vm10965_vm5, %v8485_v52, %v3074_v12  ;;  %v10372_v40 = vld [vmem:[%s13997_s1 + $0x1c8] sm:$0xff]  }
  0xb6   : > { %9668 = vmatprep.mubr.bf16.mxu1 %v8513_v45  ;;  %9745 = vmatpush3.bf16.msra.mxu1 %v10366_v27  ;;  %v2445_v45 = vor.u32 %v2444_v1, %v2441_v28  ;;  %v2474_v27 = vrot.slane %v2472_v26, 5  ;;  %v3076_v55 = vrot.slane %v3074_v12, 4  ;;  %v2487_v39 = vshrl.u32 %v8403_v34, 16  ;;  %v10373_v26 = vld [vmem:[%s13997_s1 + $0x1c0] sm:$0xff]  }
  0xb7   : > { %9746 = vmatprep.subr.bf16.mxu1 %v10367_v31  ;;  %9696 = vmatprep.subr.bf16.mxu0 %v10360_v25  ;;  %v2455_v9 = vor.u32 %v2454_v48, %v2450_v5  ;;  %v2470_v20 = vrot.slane %v2469_v63, 4  ;;  %v3083_v30 = vrot.slane %v3081_v22, 4  ;;  %v2490_v56 = vshll.u32 %v8403_v34, 16  ;;  %v11629_v48 = vld [vmem:[%s10572_s28 + $0x98] sm:$0x1] }
  0xb8   : > { %v2446_v33 = vrot.slane %v2445_v45, 4  ;;  %9617 = vmatmul.mubr.bf16.gmra.mxu0 %v11384_v47  ;;  %v2479_v42 = vor.u32 %v2478_v61, %v2474_v27  ;;  %v8486_v47 = vrot.slane %v8470_v38, 9  ;;  %v2489_v43 = vrot.slane %v2487_v39, 4  ;;  %v8472_v45 = vld [vmem:[%s10572_s28 + $0x90] sm:$0xe] }
  0xb9   : > { %v2456_v8 = vrot.slane %v2455_v9, 4  ;;  %9620 = vmatprep.mubr.bf16.mxu0 %v11433_v54  ;;  %9697 = vmatpush3.bf16.msra.mxu0 %v10360_v25  ;;  %v10362_v54 = vld [vmem:[%s13997_s1 + $0x198] sm:$0xff]   ;;  %v11588_v25 = vld [vmem:[%s10572_s28 + $0x88] sm:$0xf]  ;;  %v2475_v28 = vsel %vm10613_vm2, %v2470_v20, %v2474_v27  ;;  %v11624_v15 = vsel %vm10965_vm5, %v3083_v30, %v3084_v13  ;;  %v2492_v7 = vrot.slane %v2490_v56, 5 }
  0xba   : > { %9747 = vmatpush3.bf16.msra.mxu1 %v10367_v31  ;;  %v2451_v24 = vsel %vm10613_vm2, %v2446_v33, %v2450_v5  ;;  %9698 = vmatprep.subr.bf16.mxu0 %v10361_v4  ;;  %v2480_v51 = vrot.slane %v2479_v42, 4  ;;  %v8406_v31 = vld [vmem:[%s10572_s28 + $0x90] sm:$0xf]  ;;  %v11606_v32 = vsel %vm10965_vm5, %v8486_v47, %v3081_v22  ;;  %v2496_v11 = vshll.u32 %v11588_v25, 16  ;;  %v8409_v61 = vld [vmem:[%s10572_s28 + $0x9c] sm:$0xf] }
  0xbb   : > { %9748 = vmatprep.subr.bf16.mxu1 %v10369_v14  ;;  %v2461_v2 = vsel %vm10613_vm2, %v2456_v8, %v2460_v44  ;;  %v2500_v1 = vshrl.u32 %v11588_v25, 16  ;;  %v2506_v5 = vshll.u32 %v11598_v0, 16  ;;  %v8471_v44 = vld [vmem:[%s10572_s28 + $0x84] sm:$0xe]  ;;  %v8518_v62 = vcombine.low %v11606_v32, %v11624_v15  ;;  %v11669_v39 = vld [vmem:[%s10572_s28 + $0xa4] sm:$0x1] }
  0xbc   : > { %v11593_v18 = vcombine.low %v2451_v24, %v2461_v2  ;;  %v2485_v36 = vsel %vm10613_vm2, %v2480_v51, %v2484_v46  ;;  %v2514_v38 = vshll.u32 %v8406_v31, 16  ;;  %v2493_v19 = vor.u32 %v2492_v7, %v2489_v43  ;;  %v11653_v24 = vld [vmem:[%s10572_s28 + $0xa0] sm:$0xf]  ;;  %v8473_v7 = vld [vmem:[%s10572_s28 + $0x9c] sm:$0xe] }
  0xbd   : > { %9669 = vmatmul.mubr.bf16.gmra.mxu1 %v8514_v29  ;;  %v3078_v29 = vsel %vm10965_vm5, %v3076_v55, %v3077_v59  ;;  %9699 = vmatpush3.bf16.msra.mxu0 %v10361_v4  ;;  %v11620_v35 = vcombine.low %v2475_v28, %v2485_v36  ;;  %v2511_v4 = vshrl.u32 %v8406_v31, 16  ;;  %v2502_v10 = vrot.slane %v2500_v1, 4  ;;  %v8474_v15 = vld [vmem:[%s10572_s28 + $0xa8] sm:$0xe] }
  0xbe   : > { %9672 = vmatprep.mubr.bf16.mxu1 %v8515_v6  ;;  %9749 = vmatpush3.bf16.msra.mxu1 %v10369_v14  ;;  %v8517_v49 = vcombine.low %v11571_v16, %v3078_v29  ;;  %v11609_v6 = vld [vmem:[%s10572_s28 + $0x94] sm:$0xf]  ;;  %v2498_v14 = vrot.slane %v2496_v11, 5  ;;  %v2508_v41 = vrot.slane %v2506_v5, 5  ;;  %v2530_v34 = vshll.u32 %v11629_v48, 16 }
  0xbf   : > { %9750 = vmatprep.subr.bf16.mxu1 %v10370_v57  ;;  %9700 = vmatprep.subr.bf16.mxu0 %v10362_v54  ;;  %v2520_v9 = vshll.u32 %v11609_v6, 16  ;;  %v2513_v52 = vrot.slane %v2511_v4, 4  ;;  %v2524_v12 = vshrl.u32 %v11609_v6, 16  ;;  %v8487_v27 = vrot.slane %v8471_v44, 9  ;;  %v11682_v11 = vld [vmem:[%s10572_s28 + $0xac] sm:$0xf] }
  0xc0   : > { %9621 = vmatmul.mubr.bf16.gmra.mxu0 %v11441_v3  ;;  %v2503_v3 = vor.u32 %v2502_v10, %v2498_v14  ;;  %v2494_v46 = vrot.slane %v2493_v19, 4  ;;  %v2532_v63 = vrot.slane %v2530_v34, 5  ;;  %v3088_v16 = vrot.slane %v11588_v25, 5  ;;  %v10371_v25 = vld [vmem:[%s13997_s1 + $0x180] sm:$0xff]   ;;  %v11699_v44 = vld [vmem:[%s10572_s28 + $0xb0] sm:$0x1] }
  0xc1   : > { %9624 = vmatprep.mubr.bf16.mxu0 %v11503_v58  ;;  %9701 = vmatpush3.bf16.msra.mxu0 %v10362_v54  ;;  %v2522_v33 = vrot.slane %v2520_v9, 5  ;;  %v10368_v58 = vld [vmem:[%s13997_s1 + $0x188] sm:$0xff]   ;;  %v2526_v8 = vrot.slane %v2524_v12, 4  ;;  %v8488_v55 = vrot.slane %v8472_v45, 9  ;;  %v3095_v22 = vrot.slane %v11609_v6, 5 }
  0xc2   : > { %9751 = vmatpush3.bf16.msra.mxu1 %v10370_v57  ;;  %v2516_v57 = vrot.slane %v2514_v38, 5  ;;  %9702 = vmatprep.subr.bf16.mxu0 %v10365_v21  ;;  %v2504_v17 = vrot.slane %v2503_v3, 4  ;;  %v2499_v42 = vsel %vm10613_vm2, %v2494_v46, %v2498_v14  ;;  %v3089_v47 = vsel %vm10965_vm5, %v8487_v27, %v3088_v16 }
  0xc3   : > { %9752 = vmatprep.subr.bf16.mxu1 %v10372_v40  ;;  %v2527_v59 = vor.u32 %v2526_v8, %v2522_v33  ;;  %v3090_v2 = vrot.slane %v3088_v16, 4  ;;  %v3098_v13 = vrot.slane %v11629_v48, 5  ;;  %v2535_v31 = vshrl.u32 %v8409_v61, 16 }
  0xc4   : > { %v2517_v53 = vor.u32 %v2516_v57, %v2513_v52  ;;  %v2509_v20 = vsel %vm10613_vm2, %v2504_v17, %v2508_v41  ;;  %v3096_v30 = vsel %vm10965_vm5, %v8488_v55, %v3095_v22  ;;  %v3097_v6 = vrot.slane %v3095_v22, 4 }
  0xc5   : > { %9673 = vmatmul.mubr.bf16.gmra.mxu1 %v8516_v23  ;;  %v3091_v23 = vrot.slane %v11598_v0, 5  ;;  %9703 = vmatpush3.bf16.msra.mxu0 %v10365_v21  ;;  %v8447_v51 = vcombine.low %v2499_v42, %v2509_v20  ;;  %v2528_v29 = vrot.slane %v2527_v59, 4  ;;  %v2537_v43 = vrot.slane %v2535_v31, 4  ;;  %v11687_v21 = vld [vmem:[%s13997_s1 + $0x238] sm:$0xff]  }
  0xc6   : > { %9676 = vmatprep.mubr.bf16.mxu1 %v8517_v49  ;;  %9753 = vmatpush3.bf16.msra.mxu1 %v10372_v40  ;;  %v2518_v54 = vrot.slane %v2517_v53, 4  ;;  %v8412_v40 = vld [vmem:[%s10572_s28 + $0xa8] sm:$0xf]  ;;  %v2538_v56 = vshll.u32 %v8409_v61, 16  ;;  %v3099_v1 = vsel %vm10965_vm5, %v3097_v6, %v3098_v13  ;;  %v2548_v5 = vshrl.u32 %v11653_v24, 16 }
  0xc7   : > { %9754 = vmatprep.subr.bf16.mxu1 %v10373_v26  ;;  %9704 = vmatprep.subr.bf16.mxu0 %v10368_v58  ;;  %v3092_v0 = vsel %vm10965_vm5, %v3090_v2, %v3091_v23  ;;  %v2533_v36 = vsel %vm10613_vm2, %v2528_v29, %v2532_v63  ;;  %v2554_v48 = vshll.u32 %v11669_v39, 16  ;;  %v8520_v14 = vcombine.low %v3096_v30, %v3099_v1  ;;  %v11721_v20 = vld [vmem:[%s10572_s28 + $0xbc] sm:$0x1]  ;;  %v11727_v29 = vld [vmem:[%s10572_s28 + $0xc4] sm:$0xf] }
  0xc8   : > { %9625 = vmatmul.mubr.bf16.gmra.mxu0 %v11549_v60  ;;  %v2523_v28 = vsel %vm10613_vm2, %v2518_v54, %v2522_v33  ;;  %v8519_v49 = vcombine.low %v3089_v47, %v3092_v0  ;;  %v2544_v60 = vshll.u32 %v11653_v24, 16  ;;  %v2540_v4 = vrot.slane %v2538_v56, 5  ;;  %v8415_v33 = vld [vmem:[%s10572_s28 + $0xb4] sm:$0xf] }
  0xc9   : > { %9628 = vmatprep.mubr.bf16.mxu0 %v11593_v18  ;;  %9705 = vmatpush3.bf16.msra.mxu0 %v10368_v58  ;;  %v11692_v18 = vcombine.low %v2523_v28, %v2533_v36  ;;  %v2559_v32 = vshrl.u32 %v8412_v40, 16  ;;  %v2562_v10 = vshll.u32 %v8412_v40, 16  ;;  %v2568_v41 = vshll.u32 %v11682_v11, 16 }
  0xca   : > { %9755 = vmatpush3.bf16.msra.mxu1 %v10373_v26  ;;  %9706 = vmatprep.subr.bf16.mxu0 %v10371_v25  ;;  %v2546_v45 = vrot.slane %v2544_v60, 5  ;;  %v2556_v26 = vrot.slane %v2554_v48, 5  ;;  %v2541_v38 = vor.u32 %v2540_v4, %v2537_v43  ;;  %v2572_v19 = vshrl.u32 %v11682_v11, 16  ;;  %v8475_v43 = vld [vmem:[%s10572_s28 + $0xb4] sm:$0xe] }
  0xcb   : > { %v2561_v9 = vrot.slane %v2559_v32, 4  ;;  %v2578_v52 = vshll.u32 %v11699_v44, 16  ;;  %v2564_v34 = vrot.slane %v2562_v10, 5  ;;  %v2570_v3 = vrot.slane %v2568_v41, 5  ;;  %v8476_v41 = vld [vmem:[%s10572_s28 + $0xc0] sm:$0xe] }
  0xcc   : > { %v8489_v57 = vrot.slane %v8473_v7, 9  ;;  %v2542_v27 = vrot.slane %v2541_v38, 4  ;;  %v2574_v61 = vrot.slane %v2572_v19, 4  ;;  %v3102_v46 = vrot.slane %v11653_v24, 5  ;;  %v8416_v24 = vld [vmem:[%s10572_s28 + $0xb8] sm:$0xf] }
  0xcd   : > { %9677 = vmatmul.mubr.bf16.gmra.mxu1 %v8518_v62  ;;  %v2550_v62 = vrot.slane %v2548_v5, 4  ;;  %9707 = vmatpush3.bf16.msra.mxu0 %v10371_v25  ;;  %v2580_v58 = vrot.slane %v2578_v52, 5  ;;  %v2565_v63 = vor.u32 %v2564_v34, %v2561_v9  ;;  %v3105_v16 = vrot.slane %v11669_v39, 5 }
  0xce   : > { %9680 = vmatprep.mubr.bf16.mxu1 %v8519_v49  ;;  %9788 = vmatprep.subr.bf16.mxu0 %v11687_v21  ;;  %v8490_v17 = vrot.slane %v8474_v15, 9  ;;  %v2547_v53 = vsel %vm10613_vm2, %v2542_v27, %v2546_v45  ;;  %v2575_v23 = vor.u32 %v2574_v61, %v2570_v3  ;;  %v3103_v55 = vsel %vm10965_vm5, %v8489_v57, %v3102_v46  ;;  %v11734_v49 = vld [vmem:[%s10572_s28 + $0xc8] sm:$0x1] }
  0xcf   : > { %v2551_v12 = vor.u32 %v2550_v62, %v2546_v45  ;;  %v3104_v42 = vrot.slane %v3102_v46, 4  ;;  %v2566_v59 = vrot.slane %v2565_v63, 4  ;;  %v3109_v47 = vrot.slane %v11682_v11, 5 }
  0xd0   : > { %9629 = vmatmul.mubr.bf16.gmra.mxu0 %v11620_v35  ;;  %v3112_v2 = vrot.slane %v11699_v44, 5  ;;  %v2576_v22 = vrot.slane %v2575_v23, 4  ;;  %v2583_v25 = vshrl.u32 %v8415_v33, 16  ;;  %v2586_v40 = vshll.u32 %v8415_v33, 16 }
  0xd1   : > { %v2552_v8 = vrot.slane %v2551_v12, 4  ;;  %9632 = vmatprep.mubr.bf16.mxu0 %v8447_v51  ;;  %v3106_v13 = vsel %vm10965_vm5, %v3104_v42, %v3105_v16  ;;  %v8418_v51 = vld [vmem:[%s10572_s28 + $0xc0] sm:$0xf]  ;;  %v2571_v0 = vsel %vm10613_vm2, %v2566_v59, %v2570_v3  ;;  %v3110_v31 = vsel %vm10965_vm5, %v8490_v17, %v3109_v47  ;;  %v8606_v17 = vld [vmem:[%s10572_s28 + $0x1c] sm:$0xf] }
  0xd2   : > { %v8521_v39 = vcombine.low %v3103_v55, %v3106_v13  ;;  %v3111_v28 = vrot.slane %v3109_v47, 4  ;;  %v2581_v30 = vsel %vm10613_vm2, %v2576_v22, %v2580_v58  ;;  %v2585_v6 = vrot.slane %v2583_v25, 4  ;;  %v8605_v58 = vld [vmem:[%s10572_s28 + $0x18] sm:$0xf] }
  0xd3   : > { %v2557_v35 = vsel %vm10613_vm2, %v2552_v8, %v2556_v26  ;;  %v2592_v36 = vshll.u32 %v8416_v24, 16  ;;  %v8450_v56 = vcombine.low %v2571_v0, %v2581_v30  ;;  %v2596_v11 = vshrl.u32 %v8416_v24, 16 }
  0xd4   : > { %v8449_v54 = vcombine.low %v2547_v53, %v2557_v35  ;;  %v3113_v60 = vsel %vm10965_vm5, %v3111_v28, %v3112_v2  ;;  %v2602_v1 = vshll.u32 %v11721_v20, 16  ;;  %v2588_v48 = vrot.slane %v2586_v40, 5  ;;  %v8607_v53 = vld [vmem:[%s10572_s28 + $0x20] sm:$0x1]  ;;  %v8608_v35 = vld [vmem:[%s10572_s28 + $0x24] sm:$0xf] }
  0xd5   : > { %9681 = vmatmul.mubr.bf16.gmra.mxu1 %v8520_v14  ;;  %v8522_v5 = vcombine.low %v3110_v31, %v3113_v60  ;;  %v2594_v44 = vrot.slane %v2592_v36, 5  ;;  %v2607_v7 = vshrl.u32 %v8418_v51, 16  ;;  %v2598_v14 = vrot.slane %v2596_v11, 4 }
  0xd6   : > { %9684 = vmatprep.mubr.bf16.mxu1 %v8521_v39  ;;  %v2604_v4 = vrot.slane %v2602_v1, 5  ;;  %v2610_v45 = vshll.u32 %v8418_v51, 16  ;;  %v2616_v32 = vshll.u32 %v11727_v29, 16  ;;  %v2589_v15 = vor.u32 %v2588_v48, %v2585_v6  ;;  %v11774_v6 = vld [vmem:[%s10572_s28 + $0x2c] sm:$0x1]  ;;  %v10374_v48 = vld [vmem:[%s10572_s28 + $0x18] sm:$0xff]  }
  0xd7   : > { %v2609_v62 = vrot.slane %v2607_v7, 4  ;;  %v2620_v26 = vshrl.u32 %v11727_v29, 16  ;;  %v2626_v10 = vshll.u32 %v11734_v49, 16  ;;  %v2599_v38 = vor.u32 %v2598_v14, %v2594_v44 }
  0xd8   : > { %9633 = vmatmul.mubr.bf16.gmra.mxu0 %v11692_v18  ;;  %v2612_v9 = vrot.slane %v2610_v45, 5  ;;  %v2618_v19 = vrot.slane %v2616_v32, 5  ;;  %v8491_v18 = vrot.slane %v8475_v43, 9  ;;  %v2590_v52 = vrot.slane %v2589_v15, 4  ;;  %v8611_v45 = vld [vmem:[%s10572_s28 + $0x30] sm:$0xf] }
  0xd9   : > { %9636 = vmatprep.mubr.bf16.mxu0 %v8449_v54  ;;  %v2622_v12 = vrot.slane %v2620_v26, 4  ;;  %v2628_v34 = vrot.slane %v2626_v10, 5  ;;  %v3116_v3 = vrot.slane %v8416_v24, 5  ;;  %v2600_v57 = vrot.slane %v2599_v38, 4  ;;  %v11763_v54 = vld [vmem:[%s10572_s28 + $0x28] sm:$0xf] }
  0xda   : > { %v2613_v33 = vor.u32 %v2612_v9, %v2609_v62  ;;  %v3119_v27 = vrot.slane %v11721_v20, 5  ;;  %v8492_v61 = vrot.slane %v8476_v41, 9  ;;  %v2595_v46 = vsel %vm10613_vm2, %v2590_v52, %v2594_v44  ;;  %v8612_v10 = vld [vmem:[%s10572_s28 + $0x34] sm:$0xf] }
  0xdb   : > { %v2623_v8 = vor.u32 %v2622_v12, %v2618_v19  ;;  %v3117_v63 = vsel %vm10965_vm5, %v8491_v18, %v3116_v3  ;;  %v3118_v16 = vrot.slane %v3116_v3, 4  ;;  %v2605_v23 = vsel %vm10613_vm2, %v2600_v57, %v2604_v4  ;;  %v8614_v3 = vld [vmem:[%s10572_s28 + $0x3c] sm:$0xf] }
  0xdc   : > { %v2614_v55 = vrot.slane %v2613_v33, 4  ;;  %v3123_v42 = vrot.slane %v11727_v29, 5  ;;  %v3126_v24 = vrot.slane %v11734_v49, 5  ;;  %v8451_v59 = vcombine.low %v2595_v46, %v2605_v23 }
  0xdd   : > { %9685 = vmatmul.mubr.bf16.gmra.mxu1 %v8522_v5  ;;  %v2624_v47 = vrot.slane %v2623_v8, 4  ;;  %v3120_v2 = vsel %vm10965_vm5, %v3118_v16, %v3119_v27  ;;  %v3886_v20 = vshrl.u32 %v8605_v58, 16  ;;  %v3889_v39 = vshll.u32 %v8605_v58, 16 }
  0xde   : > { %v2619_v22 = vsel %vm10613_vm2, %v2614_v55, %v2618_v19  ;;  %v8523_v13 = vcombine.low %v3117_v63, %v3120_v2  ;;  %v3124_v25 = vsel %vm10965_vm5, %v8492_v61, %v3123_v42  ;;  %v3125_v51 = vrot.slane %v3123_v42, 4  ;;  %v8613_v19 = vld [vmem:[%s10572_s28 + $0x38] sm:$0x1] }
  0xdf   : > { %v2629_v29 = vsel %vm10613_vm2, %v2624_v47, %v2628_v34  ;;  %v3888_v0 = vrot.slane %v3886_v20, 4  ;;  %v3895_v31 = vshll.u32 %v8606_v17, 16  ;;  %v3899_v49 = vshrl.u32 %v8606_v17, 16 }
  0xe0   : > { %9637 = vmatmul.mubr.bf16.gmra.mxu0 %v8450_v56  ;;  %9688 = vmatprep.mubr.bf16.mxu1 %v8523_v13  ;;  %v3127_v28 = vsel %vm10965_vm5, %v3125_v51, %v3126_v24  ;;  %v3905_v30 = vshll.u32 %v8607_v53, 16  ;;  %v3891_v36 = vrot.slane %v3889_v39, 5  ;;  %v3910_v56 = vshrl.u32 %v8608_v35, 16  ;;  %v8615_v13 = vld [vmem:[%s10572_s28 + $0x40] sm:$0xf]  ;;  %v10379_v39 = vld [vmem:[%s13997_s1 + $0x230] sm:$0xff]  }
  0xe1   : > { %9640 = vmatprep.mubr.bf16.mxu0 %v8451_v59  ;;  %v8524_v40 = vcombine.low %v3124_v25, %v3127_v28  ;;  %v3897_v43 = vrot.slane %v3895_v31, 5  ;;  %v8452_v60 = vcombine.low %v2619_v22, %v2629_v29  ;;  %v3901_v11 = vrot.slane %v3899_v49, 4  ;;  %v11803_v31 = vld [vmem:[%s10572_s28 + $0x44] sm:$0x1] }
  0xe2   : > { %v3913_v1 = vshll.u32 %v8608_v35, 16  ;;  %v3919_v5 = vshll.u32 %v11763_v54, 16  ;;  %v3892_v44 = vor.u32 %v3891_v36, %v3888_v0  ;;  %v3912_v7 = vrot.slane %v3910_v56, 4  ;;  %v10375_v35 = vld [vmem:[%s10572_s28 + $0x24] sm:$0xff]   ;;  %v10377_v0 = vld [vmem:[%s10572_s28 + $0x30] sm:$0xff]  }
  0xe3   : > { %v3923_v14 = vshrl.u32 %v11763_v54, 16  ;;  %v3929_v4 = vshll.u32 %v11774_v6, 16  ;;  %v3902_v32 = vor.u32 %v3901_v11, %v3897_v43  ;;  %v3907_v15 = vrot.slane %v3905_v30, 5 }
  0xe4   : > { %v3915_v62 = vrot.slane %v3913_v1, 5  ;;  %v3921_v26 = vrot.slane %v3919_v5, 5  ;;  %v3893_v41 = vrot.slane %v3892_v44, 4  ;;  %v3934_v12 = vshrl.u32 %v8611_v45, 16 }
  0xe5   : > { %9689 = vmatmul.mubr.bf16.gmra.mxu1 %v8524_v40  ;;  %v3925_v38 = vrot.slane %v3923_v14, 4  ;;  %v3931_v9 = vrot.slane %v3929_v4, 5  ;;  %v3903_v18 = vrot.slane %v3902_v32, 4  ;;  %v3937_v34 = vshll.u32 %v8611_v45, 16 }
  0xe6   : > { %v3916_v52 = vor.u32 %v3915_v62, %v3912_v7  ;;  %v3898_v33 = vsel %vm10613_vm2, %v3893_v41, %v3897_v43  ;;  %v3943_v61 = vshll.u32 %v8612_v10, 16  ;;  %v3947_v58 = vshrl.u32 %v8612_v10, 16  ;;  %v8618_v7 = vld [vmem:[%s10572_s28 + $0x4c] sm:$0xf]  ;;  %v8619_v62 = vld [vmem:[%s10572_s28 + $0x50] sm:$0x1] }
  0xe7   : > { %v3926_v27 = vor.u32 %v3925_v38, %v3921_v26  ;;  %v3908_v8 = vsel %vm10613_vm2, %v3903_v18, %v3907_v15  ;;  %v3936_v16 = vrot.slane %v3934_v12, 4  ;;  %v3939_v17 = vrot.slane %v3937_v34, 5  ;;  %v10382_v12 = vld [vmem:[%s13997_s1 + $0x228] sm:$0xff]  }
  0xe8   : > { %9641 = vmatmul.mubr.bf16.gmra.mxu0 %v8452_v60  ;;  %v3917_v63 = vrot.slane %v3916_v52, 4  ;;  %v8669_v23 = vcombine.low %v3898_v33, %v3908_v8  ;;  %v3945_v24 = vrot.slane %v3943_v61, 5  ;;  %v3949_v20 = vrot.slane %v3947_v58, 4  ;;  %v8617_v60 = vld [vmem:[%s10572_s28 + $0x48] sm:$0xf]  ;;  %v10378_v58 = vld [vmem:[%s10572_s28 + $0x3c] sm:$0xff]  }
  0xe9   : > { %9708 = vmatprep.mubr.bf16.mxu0 %v10374_v48  ;;  %v3927_v42 = vrot.slane %v3926_v27, 4  ;;  %v3940_v2 = vor.u32 %v3939_v17, %v3936_v16  ;;  %v3953_v22 = vshll.u32 %v8613_v19, 16  ;;  %v3958_v28 = vshrl.u32 %v8614_v3, 16  ;;  %v8620_v61 = vld [vmem:[%s10572_s28 + $0x54] sm:$0xf] }
  0xea   : > { %v3922_v47 = vsel %vm10613_vm2, %v3917_v63, %v3921_v26  ;;  %9756 = vmatprep.mubr.bf16.mxu1 %v8669_v23  ;;  %v3961_v49 = vshll.u32 %v8614_v3, 16  ;;  %v3950_v43 = vor.u32 %v3949_v20, %v3945_v24  ;;  %v3967_v44 = vshll.u32 %v8615_v13, 16 }
  0xeb   : > { %v3932_v51 = vsel %vm10613_vm2, %v3927_v42, %v3931_v9  ;;  %v3941_v36 = vrot.slane %v3940_v2, 4  ;;  %v3955_v56 = vrot.slane %v3953_v22, 5  ;;  %v3960_v5 = vrot.slane %v3958_v28, 4  ;;  %v10385_v2 = vld [vmem:[%s13997_s1 + $0x220] sm:$0xff]  }
  0xec   : > { %v9422_v57 = vpop.f32.mrf.mxu0  ;;  %v8670_v30 = vcombine.low %v3922_v47, %v3932_v51  ;;  %v3963_v48 = vrot.slane %v3961_v49, 5  ;;  %v3951_v45 = vrot.slane %v3950_v43, 4  ;;  %v3971_v32 = vshrl.u32 %v8615_v13, 16  ;;  %v11831_v47 = vld [vmem:[%s10572_s28 + $0x58] sm:$0xf] }
  0xed   : > { %v9470_v46 = vpop.f32.mrf.mxu1  ;;  %v3946_v4 = vsel %vm10613_vm2, %v3941_v36, %v3945_v24  ;;  %v3977_v15 = vshll.u32 %v11803_v31, 16  ;;  %v3969_v38 = vrot.slane %v3967_v44, 5  ;;  %v3985_v27 = vshll.u32 %v8617_v60, 16  ;;  %v10380_v24 = vld [vmem:[%s10572_s28 + $0x48] sm:$0xff]   ;;  %v8623_v36 = vld [vmem:[%s10572_s28 + $0x60] sm:$0xf] }
  0xee   : > { %v11788_v53 = vadd.f32 %v9470_v46, %v9422_v57  ;;  %v894_v55 = vpop.f32.mrf.mxu0  ;;  %9757 = vmatmul.mubr.bf16.vlgmr.msra.gmra.mxu1 %v8670_v30  ;;  %v3964_v41 = vor.u32 %v3963_v48, %v3960_v5  ;;  %v3956_v19 = vsel %vm10613_vm2, %v3951_v45, %v3955_v56  ;;  %v3973_v18 = vrot.slane %v3971_v32, 4 }
  0xef   : > { %v1199_v59 = vpop.f32.mrf.mxu1  ;;  %v3979_v52 = vrot.slane %v3977_v15, 5  ;;  %v8671_v3 = vcombine.low %v3946_v4, %v3956_v19  ;;  %v3991_v16 = vshll.u32 %v8618_v7, 16  ;;  %v3995_v17 = vshrl.u32 %v8618_v7, 16  ;;  %v10381_v19 = vld [vmem:[%s10572_s28 + $0x54] sm:$0xff]  }
  0xf0   : > { %v11794_v25 = vadd.f32 %v1199_v59, %v894_v55  ;;  %v9423_v29 = vpop.f32.mrf.mxu0  ;;  %9709 = vmatmul.mubr.bf16.vlgmr.msra.gmra.mxu0 %v10375_v35  ;;  %v3965_v33 = vrot.slane %v3964_v41, 4  ;;  %v3974_v8 = vor.u32 %v3973_v18, %v3969_v38  ;;  %v3987_v35 = vrot.slane %v3985_v27, 5  ;;  %v10388_v41 = vld [vmem:[%s13997_s1 + $0x218] sm:$0xff]  }
  0xf1   : > { %v9471_v40 = vpop.f32.mrf.mxu1  ;;  %9789 = vmatpush3.bf16.msra.mxu0 %v11687_v21  ;;  %9712 = vmatprep.mubr.bf16.mxu0 %v10377_v0  ;;  %v3982_v21 = vshrl.u32 %v8617_v60, 16  ;;  %v4001_v59 = vshll.u32 %v8619_v62, 16  ;;  %v3993_v13 = vrot.slane %v3991_v16, 5  ;;  %v3997_v51 = vrot.slane %v3995_v17, 4 }
  0xf2   : > { %v11806_v11 = vadd.f32 %v9471_v40, %v9423_v29  ;;  %v897_v1 = vpop.f32.mrf.mxu0  ;;  %9790 = vmatprep.subr.bf16.mxu0 %v10379_v39  ;;  %9760 = vmatprep.mubr.bf16.mxu1 %v8671_v3  ;;  %v3970_v55 = vsel %vm10613_vm2, %v3965_v33, %v3969_v38  ;;  %v3975_v20 = vrot.slane %v3974_v8, 4  ;;  %v11837_v29 = vld [vmem:[%s10572_s28 + $0x5c] sm:$0x1]  ;;  %v4006_v0 = vshrl.u32 %v8620_v61, 16 }
  0xf3   : > { %v1202_v14 = vpop.f32.mrf.mxu1  ;;  %v3984_v63 = vrot.slane %v3982_v21, 4  ;;  %v4003_v30 = vrot.slane %v4001_v59, 5  ;;  %v4009_v40 = vshll.u32 %v8620_v61, 16  ;;  %v3998_v60 = vor.u32 %v3997_v51, %v3993_v13  ;;  %v10383_v61 = vld [vmem:[%s10572_s28 + $0x60] sm:$0xff]   ;;  %v10391_v51 = vld [vmem:[%s13997_s1 + $0x210] sm:$0xff]  }
  0xf4   : > { %v11814_v26 = vadd.f32 %v1202_v14, %v897_v1  ;;  %v9426_v10 = vpop.f32.mrf.mxu0  ;;  %v3980_v43 = vsel %vm10613_vm2, %v3975_v20, %v3979_v52  ;;  %v4008_v1 = vrot.slane %v4006_v0, 4  ;;  %v4015_v5 = vshll.u32 %v11831_v47, 16 }
  0xf5   : > { %v9474_v9 = vpop.f32.mrf.mxu1  ;;  %9791 = vmatpush3.bf16.msra.mxu0 %v10379_v39  ;;  %v3988_v49 = vor.u32 %v3987_v35, %v3984_v63  ;;  %v8672_v48 = vcombine.low %v3970_v55, %v3980_v43  ;;  %v4011_v14 = vrot.slane %v4009_v40, 5  ;;  %v3999_v32 = vrot.slane %v3998_v60, 4  ;;  %v8626_v55 = vld [vmem:[%s10572_s28 + $0x6c] sm:$0xf] }
  0xf6   : > { %v11821_v34 = vadd.f32 %v9474_v9, %v9426_v10  ;;  %v910_v57 = vpop.f32.mrf.mxu0  ;;  %9792 = vmatprep.subr.bf16.mxu0 %v10382_v12  ;;  %v4017_v15 = vrot.slane %v4015_v5, 5  ;;  %v4019_v62 = vshrl.u32 %v11831_v47, 16  ;;  %v4025_v10 = vshll.u32 %v11837_v29, 16 }
  0xf7   : > { %v1215_v46 = vpop.f32.mrf.mxu1  ;;  %v3989_v7 = vrot.slane %v3988_v49, 4  ;;  %9761 = vmatmul.mubr.bf16.gmra.mxu1 %v8672_v48  ;;  %v4012_v52 = vor.u32 %v4011_v14, %v4008_v1  ;;  %v4004_v21 = vsel %vm10613_vm2, %v3999_v32, %v4003_v30  ;;  %v4033_v17 = vshll.u32 %v8623_v36, 16  ;;  %v11884_v30 = vld [vmem:[%s10572_s28 + $0x74] sm:$0x1] }
  0xf8   : > { %v11825_v23 = vadd.f32 %v1215_v46, %v910_v57  ;;  %v9427_v42 = vpop.f32.mrf.mxu0  ;;  %9713 = vmatmul.mubr.bf16.gmra.mxu0 %v10378_v58  ;;  %v4021_v33 = vrot.slane %v4019_v62, 4  ;;  %v4027_v27 = vrot.slane %v4025_v10, 5  ;;  %v11865_v58 = vld [vmem:[%s10572_s28 + $0x68] sm:$0x1]  ;;  %v4030_v46 = vshrl.u32 %v8623_v36, 16 }
  0xf9   : > { %v9475_v22 = vpop.f32.mrf.mxu1  ;;  %9716 = vmatprep.mubr.bf16.mxu0 %v10380_v24  ;;  %9793 = vmatpush3.bf16.msra.mxu0 %v10382_v12  ;;  %v3994_v18 = vsel %vm10613_vm2, %v3989_v7, %v3993_v13  ;;  %v11859_v12 = vld [vmem:[%s10572_s28 + $0x64] sm:$0xf]  ;;  %v4013_v16 = vrot.slane %v4012_v52, 4  ;;  %v4049_v49 = vshll.u32 %v11865_v58, 16  ;;  %v4054_v1 = vshrl.u32 %v8626_v55, 16  ;;  %v10394_v10 = vld [vmem:[%s13997_s1 + $0x208] sm:$0xff]  }
  0xfa   : > { %v11839_v39 = vadd.f32 %v9475_v22, %v9427_v42  ;;  %v913_v28 = vpop.f32.mrf.mxu0  ;;  %9794 = vmatprep.subr.bf16.mxu0 %v10385_v2  ;;  %v8673_v8 = vcombine.low %v3994_v18, %v4004_v21  ;;  %v11871_v42 = vld [vmem:[%s10572_s28 + $0x70] sm:$0xf]  ;;  %v4022_v24 = vor.u32 %v4021_v33, %v4017_v15  ;;  %v4032_v20 = vrot.slane %v4030_v46, 4  ;;  %v8629_v21 = vld [vmem:[%s10572_s28 + $0x78] sm:$0xf] }
  0xfb   : > { %v1218_v56 = vpop.f32.mrf.mxu1  ;;  %v4039_v22 = vshll.u32 %v11859_v12, 16  ;;  %v4043_v13 = vshrl.u32 %v11859_v12, 16  ;;  %v4051_v7 = vrot.slane %v4049_v49, 5  ;;  %v4057_v14 = vshll.u32 %v8626_v55, 16  ;;  %v10384_v33 = vld [vmem:[%s10572_s28 + $0x6c] sm:$0xff]  }
  0xfc   : > { %v11845_v44 = vadd.f32 %v1218_v56, %v913_v28  ;;  %v9430_v4 = vpop.f32.mrf.mxu0  ;;  %9764 = vmatprep.mubr.bf16.mxu1 %v8673_v8  ;;  %v4035_v28 = vrot.slane %v4033_v17, 5  ;;  %v4023_v40 = vrot.slane %v4022_v24, 4  ;;  %v4063_v62 = vshll.u32 %v11871_v42, 16 }
  0xfd   : > { %v9478_v45 = vpop.f32.mrf.mxu1  ;;  %9795 = vmatpush3.bf16.msra.mxu0 %v10385_v2  ;;  %v4018_v2 = vsel %vm10613_vm2, %v4013_v16, %v4017_v15  ;;  %v4041_v56 = vrot.slane %v4039_v22, 5  ;;  %v4045_v60 = vrot.slane %v4043_v13, 4  ;;  %v4056_v15 = vrot.slane %v4054_v1, 4  ;;  %v8632_v1 = vld [vmem:[%s10572_s28 + $0x84] sm:$0xf] }
  0xfe   : > { %v11853_v9 = vadd.f32 %v9478_v45, %v9430_v4  ;;  %v926_v3 = vpop.f32.mrf.mxu0  ;;  %9796 = vmatprep.subr.bf16.mxu0 %v10388_v41  ;;  %v4036_v48 = vor.u32 %v4035_v28, %v4032_v20  ;;  %v4028_v4 = vsel %vm10613_vm2, %v4023_v40, %v4027_v27  ;;  %v4059_v52 = vrot.slane %v4057_v14, 5  ;;  %v11910_v28 = vld [vmem:[%s10572_s28 + $0x80] sm:$0x1] }
  0xff   : > { %v1231_v57 = vpop.f32.mrf.mxu1  ;;  %v4046_v32 = vor.u32 %v4045_v60, %v4041_v56  ;;  %v4065_v46 = vrot.slane %v4063_v62, 5  ;;  %v4073_v8 = vshll.u32 %v11884_v30, 16  ;;  %v4078_v49 = vshrl.u32 %v8629_v21, 16 }
 0x100   : > { %v11867_v63 = vadd.f32 %v1231_v57, %v926_v3  ;;  %v9431_v35 = vpop.f32.mrf.mxu0  ;;  %9717 = vmatmul.mubr.bf16.gmra.mxu0 %v10381_v19  ;;  %v8674_v19 = vcombine.low %v4018_v2, %v4028_v4  ;;  %v4037_v18 = vrot.slane %v4036_v48, 4  ;;  %v4060_v55 = vor.u32 %v4059_v52, %v4056_v15 }
 0x101   : > { %v9479_v59 = vpop.f32.mrf.mxu1  ;;  %9720 = vmatprep.mubr.bf16.mxu0 %v10383_v61  ;;  %9797 = vmatpush3.bf16.msra.mxu0 %v10388_v41  ;;  %v4067_v41 = vshrl.u32 %v11871_v42, 16  ;;  %v4047_v27 = vrot.slane %v4046_v32, 4  ;;  %v4075_v13 = vrot.slane %v4073_v8, 5  ;;  %v4081_v40 = vshll.u32 %v8629_v21, 16 }
 0x102   : > { %v11880_v0 = vadd.f32 %v9479_v59, %v9431_v35  ;;  %v929_v36 = vpop.f32.mrf.mxu0  ;;  %9798 = vmatprep.subr.bf16.mxu0 %v10391_v51  ;;  %9765 = vmatmul.mubr.bf16.gmra.mxu1 %v8674_v19  ;;  %v4042_v17 = vsel %vm10613_vm2, %v4037_v18, %v4041_v56  ;;  %v10386_v35 = vld [vmem:[%s10572_s28 + $0x78] sm:$0xff]   ;;  %v4061_v56 = vrot.slane %v4060_v55, 4  ;;  %v4080_v14 = vrot.slane %v4078_v49, 4  ;;  %v11933_v55 = vld [vmem:[%s10572_s28 + $0x8c] sm:$0x1] }
 0x103   : > { %v1234_v43 = vpop.f32.mrf.mxu1  ;;  %v4069_v24 = vrot.slane %v4067_v41, 4  ;;  %v11905_v59 = vld [vmem:[%s10572_s28 + $0x7c] sm:$0xf]  ;;  %v4052_v20 = vsel %vm10613_vm2, %v4047_v27, %v4051_v7  ;;  %v4083_v4 = vrot.slane %v4081_v40, 5  ;;  %v4097_v18 = vshll.u32 %v11910_v28, 16 }
 0x104   : > { %v11886_v5 = vadd.f32 %v1234_v43, %v929_v36  ;;  %v9434_v57 = vpop.f32.mrf.mxu0  ;;  %v8675_v36 = vcombine.low %v4042_v17, %v4052_v20  ;;  %v4091_v32 = vshrl.u32 %v11905_v59, 16  ;;  %v4066_v15 = vsel %vm10613_vm2, %v4061_v56, %v4065_v46  ;;  %v11926_v27 = vld [vmem:[%s10572_s28 + $0x88] sm:$0xf] }
 0x105   : > { %v9482_v45 = vpop.f32.mrf.mxu1  ;;  %9799 = vmatpush3.bf16.msra.mxu0 %v10391_v51  ;;  %v4070_v60 = vor.u32 %v4069_v24, %v4065_v46  ;;  %v10397_v51 = vld [vmem:[%s13997_s1 + $0x200] sm:$0xff]   ;;  %v4084_v21 = vor.u32 %v4083_v4, %v4080_v14  ;;  %v4099_v17 = vrot.slane %v4097_v18, 5  ;;  %v4105_v24 = vshll.u32 %v8632_v1, 16 }
 0x106   : > { %v11899_v16 = vadd.f32 %v9482_v45, %v9434_v57  ;;  %v942_v22 = vpop.f32.mrf.mxu0  ;;  %9800 = vmatprep.subr.bf16.mxu0 %v10394_v10  ;;  %v4087_v45 = vshll.u32 %v11905_v59, 16  ;;  %9768 = vmatprep.mubr.bf16.mxu1 %v8675_v36 }
 0x107   : > { %v1247_v61 = vpop.f32.mrf.mxu1  ;;  %v4071_v62 = vrot.slane %v4070_v60, 4  ;;  %v4085_v49 = vrot.slane %v4084_v21, 4  ;;  %v4111_v60 = vshll.u32 %v11926_v27, 16 }
 0x108   : > { %v11912_v43 = vadd.f32 %v1247_v61, %v942_v22  ;;  %9721 = vmatmul.mubr.bf16.gmra.mxu0 %v10384_v33  ;;  %v9435_v48 = vpop.f32.mrf.mxu0  ;;  %v4089_v57 = vrot.slane %v4087_v45, 5  ;;  %v4093_v33 = vrot.slane %v4091_v32, 4  ;;  %v4102_v61 = vshrl.u32 %v8632_v1, 16  ;;  %v10389_v1 = vld [vmem:[%s10572_s28 + $0x90] sm:$0xff]  }
 0x109   : > { %v9483_v2 = vpop.f32.mrf.mxu1  ;;  %9724 = vmatprep.mubr.bf16.mxu0 %v10386_v35  ;;  %9801 = vmatpush3.bf16.msra.mxu0 %v10394_v10  ;;  %v4076_v46 = vsel %vm10613_vm2, %v4071_v62, %v4075_v13  ;;  %v8635_v35 = vld [vmem:[%s10572_s28 + $0x90] sm:$0xf]  ;;  %v4107_v13 = vrot.slane %v4105_v24, 5  ;;  %v4121_v45 = vshll.u32 %v11933_v55, 16 }
 0x10a   : > { %14016 = vst [vmem:[#allocation3_spill] sm:$0xff] %v11912_v43  ;;  %v11922_v19 = vadd.f32 %v9483_v2, %v9435_v48  ;;  %v945_v52 = vpop.f32.mrf.mxu0  ;;  %9802 = vmatprep.subr.bf16.mxu0 %v10397_v51  ;;  %v8676_v20 = vcombine.low %v4066_v15, %v4076_v46  ;;  %v10387_v2 = vld [vmem:[%s10572_s28 + $0x84] sm:$0xff]   ;;  %v4094_v40 = vor.u32 %v4093_v33, %v4089_v57  ;;  %v4104_v10 = vrot.slane %v4102_v61, 4  ;;  %v11946_v15 = vld [vmem:[%s10572_s28 + $0x94] sm:$0xf] }
 0x10b   : > { %v1250_v7 = vpop.f32.mrf.mxu1  ;;  %v4115_v48 = vshrl.u32 %v11926_v27, 16  ;;  %v4126_v62 = vshrl.u32 %v8635_v35, 16  ;;  %v11951_v33 = vld [vmem:[%s10572_s28 + $0x98] sm:$0x1]  ;;  %v8638_v61 = vld [vmem:[%s10572_s28 + $0x9c] sm:$0xf] }
 0x10c   : > { %14017 = vst [vmem:[#allocation4_spill] sm:$0xff] %v11922_v19  ;;  %v11930_v8 = vadd.f32 %v1250_v7, %v945_v52  ;;  %v9438_v22 = vpop.f32.mrf.mxu0  ;;  %9769 = vmatmul.mubr.bf16.gmra.mxu1 %v8676_v20  ;;  %v4090_v7 = vsel %vm10613_vm2, %v4085_v49, %v4089_v57  ;;  %v4095_v14 = vrot.slane %v4094_v40, 4  ;;  %v4108_v52 = vor.u32 %v4107_v13, %v4104_v10  ;;  %v12019_v19 = vld [vmem:[%s10572_s28 + $0xc4] sm:$0xf] }
 0x10d   : > { %v9486_v41 = vpop.f32.mrf.mxu1  ;;  %9803 = vmatpush3.bf16.msra.mxu0 %v10397_v51  ;;  %v4117_v21 = vrot.slane %v4115_v48, 4  ;;  %v4123_v46 = vrot.slane %v4121_v45, 5  ;;  %v4129_v49 = vshll.u32 %v8635_v35, 16  ;;  %v11959_v51 = vld [vmem:[%s10572_s28 + $0xa0] sm:$0xf]  ;;  %v4135_v48 = vshll.u32 %v11946_v15, 16 }
 0x10e   : > { %14018 = vst [vmem:[#allocation5_spill] sm:$0xff] %v11930_v8  ;;  %v11937_v56 = vadd.f32 %v9486_v41, %v9438_v22  ;;  %v958_v4 = vpop.f32.mrf.mxu0  ;;  %v4113_v41 = vrot.slane %v4111_v60, 5  ;;  %v4100_v57 = vsel %vm10613_vm2, %v4095_v14, %v4099_v17  ;;  %v4128_v22 = vrot.slane %v4126_v62, 4  ;;  %v10390_v62 = vld [vmem:[%s10572_s28 + $0x9c] sm:$0xff]   ;;  %14032 = vst [vmem:[#allocation19_spill] sm:$0xff] %v12019_v19 }
 0x10f   : > { %v1263_v36 = vpop.f32.mrf.mxu1  ;;  %v8677_v40 = vcombine.low %v4090_v7, %v4100_v57  ;;  %v4131_v60 = vrot.slane %v4129_v49, 5  ;;  %v4139_v14 = vshrl.u32 %v11946_v15, 16  ;;  %v4145_v35 = vshll.u32 %v11951_v33, 16 }
 0x110   : > { %14019 = vst [vmem:[#allocation6_spill] sm:$0xff] %v11937_v56  ;;  %v11948_v18 = vadd.f32 %v1263_v36, %v958_v4  ;;  %9725 = vmatmul.mubr.bf16.gmra.mxu0 %v10387_v2  ;;  %v9439_v24 = vpop.f32.mrf.mxu0  ;;  %v4109_v36 = vrot.slane %v4108_v52, 4  ;;  %v4118_v10 = vor.u32 %v4117_v21, %v4113_v41  ;;  %v11969_v4 = vld [vmem:[%s10572_s28 + $0xa4] sm:$0x1]  ;;  %v4137_v21 = vrot.slane %v4135_v48, 5 }
 0x111   : > { %v9487_v32 = vpop.f32.mrf.mxu1  ;;  %9728 = vmatprep.mubr.bf16.mxu0 %v10389_v1  ;;  %14024 = vst [vmem:[#allocation11_spill] sm:$0xff] %v11969_v4  ;;  %9772 = vmatprep.mubr.bf16.mxu1 %v8677_v40  ;;  %v4150_v1 = vshrl.u32 %v8638_v61, 16  ;;  %v4132_v52 = vor.u32 %v4131_v60, %v4128_v22  ;;  %v4141_v57 = vrot.slane %v4139_v14, 4 }
 0x112   : > { %14020 = vst [vmem:[#allocation7_spill] sm:$0xff] %v11948_v18  ;;  %v11961_v13 = vadd.f32 %v9487_v32, %v9439_v24  ;;  %v11963_v2 = vpop.f32.mrf.mxu0  ;;  %v4114_v7 = vsel %vm10613_vm2, %v4109_v36, %v4113_v41  ;;  %v4119_v45 = vrot.slane %v4118_v10, 4  ;;  %v8641_v32 = vld [vmem:[%s10572_s28 + $0xa8] sm:$0xf]  ;;  %v4147_v24 = vrot.slane %v4145_v35, 5 }
 0x113   : > { %v11956_v20 = vpop.f32.mrf.mxu1  ;;  %14023 = vst [vmem:[#allocation10_spill] sm:$0xff] %v11963_v2  ;;  %v4152_v40 = vrot.slane %v4150_v1, 4  ;;  %v4159_v2 = vshll.u32 %v11959_v51, 16  ;;  %v10392_v41 = vld [vmem:[%s10572_s28 + $0xa8] sm:$0xff]   ;;  %v4133_v22 = vrot.slane %v4132_v52, 4  ;;  %v4142_v60 = vor.u32 %v4141_v57, %v4137_v21 }
 0x114   : > { %14021 = vst [vmem:[#allocation8_spill] sm:$0xff] %v11956_v20  ;;  %14022 = vst [vmem:[#allocation9_spill] sm:$0xff] %v11961_v13  ;;  %v4124_v3 = vsel %vm10613_vm2, %v4119_v45, %v4123_v46  ;;  %v4153_v20 = vshll.u32 %v8638_v61, 16  ;;  %v11980_v36 = vld [vmem:[%s10572_s28 + $0xac] sm:$0xf]  ;;  %v4163_v46 = vshrl.u32 %v11959_v51, 16 }
 0x115   : > { %v9490_v17 = vpop.f32.mrf.mxu1  ;;  %v8678_v10 = vcombine.low %v4114_v7, %v4124_v3  ;;  %v4161_v18 = vrot.slane %v4159_v2, 5  ;;  %v4169_v45 = vshll.u32 %v11969_v4, 16  ;;  %v11987_v61 = vld [vmem:[%s10572_s28 + $0xb0] sm:$0x1]  ;;  %v4143_v3 = vrot.slane %v4142_v60, 4 }
 0x116   : > { %v9442_v38 = vpop.f32.mrf.mxu0  ;;  %v4155_v35 = vrot.slane %v4153_v20, 5  ;;  %14026 = vst [vmem:[#allocation13_spill] sm:$0xff] %v11987_v61  ;;  %v4174_v20 = vshrl.u32 %v8641_v32, 16  ;;  %v8644_v2 = vld [vmem:[%s10572_s28 + $0xb4] sm:$0xf]  ;;  %v4165_v52 = vrot.slane %v4163_v46, 4 }
 0x117   : > { %v1279_v49 = vpop.f32.mrf.mxu1  ;;  %v11982_v13 = vadd.f32 %v9490_v17, %v9442_v38  ;;  %9773 = vmatmul.mubr.bf16.gmra.mxu1 %v8678_v10  ;;  %v4138_v38 = vsel %vm10613_vm2, %v4133_v22, %v4137_v21  ;;  %v4171_v57 = vrot.slane %v4169_v45, 5  ;;  %v4177_v56 = vshll.u32 %v8641_v32, 16  ;;  %v11997_v10 = vld [vmem:[%s10572_s28 + $0xb8] sm:$0xf] }
 0x118   : > { %v974_v14 = vpop.f32.mrf.mxu0  ;;  %9729 = vmatmul.mubr.bf16.gmra.mxu0 %v10390_v62  ;;  %v4156_v1 = vor.u32 %v4155_v35, %v4152_v40  ;;  %v4148_v62 = vsel %vm10613_vm2, %v4143_v3, %v4147_v24  ;;  %v10393_v22 = vld [vmem:[%s10572_s28 + $0xb4] sm:$0xff]   ;;  %v4176_v60 = vrot.slane %v4174_v20, 4  ;;  %v4166_v46 = vor.u32 %v4165_v52, %v4161_v18  ;;  %v12012_v3 = vld [vmem:[%s10572_s28 + $0xbc] sm:$0x1] }
 0x119   : > { %14025 = vst [vmem:[#allocation12_spill] sm:$0xff] %v11982_v13  ;;  %v9491_v48 = vpop.f32.mrf.mxu1  ;;  %v11991_v17 = vadd.f32 %v1279_v49, %v974_v14  ;;  %9732 = vmatprep.mubr.bf16.mxu0 %v10392_v41  ;;  %v4183_v14 = vshll.u32 %v11980_v36, 16  ;;  %v8679_v40 = vcombine.low %v4138_v38, %v4148_v62  ;;  %v4179_v32 = vrot.slane %v4177_v56, 5  ;;  %v10395_v41 = vld [vmem:[%s10572_s28 + $0xc0] sm:$0xff]   ;;  %14031 = vst [vmem:[#allocation18_spill] sm:$0xff] %v12012_v3 }
 0x11a   : > { %v9443_v13 = vpop.f32.mrf.mxu0  ;;  %v4157_v35 = vrot.slane %v4156_v1, 4  ;;  %v4193_v24 = vshll.u32 %v11987_v61, 16  ;;  %v4167_v20 = vrot.slane %v4166_v46, 4  ;;  %v4198_v52 = vshrl.u32 %v8644_v2, 16  ;;  %v8647_v56 = vld [vmem:[%s10572_s28 + $0xc0] sm:$0xf] }
 0x11b   : > { %14027 = vst [vmem:[#allocation14_spill] sm:$0xff] %v11991_v17  ;;  %v11993_v7 = vpop.f32.mrf.mxu1  ;;  %v12001_v21 = vadd.f32 %v9491_v48, %v9443_v13  ;;  %v4185_v17 = vrot.slane %v4183_v14, 5  ;;  %v4187_v13 = vshrl.u32 %v11980_v36, 16  ;;  %9776 = vmatprep.mubr.bf16.mxu1 %v8679_v40  ;;  %v4180_v1 = vor.u32 %v4179_v32, %v4176_v60 }
 0x11c   : > { %14028 = vst [vmem:[#allocation15_spill] sm:$0xff] %v11993_v7  ;;  %v12005_v45 = vpop.f32.mrf.mxu0  ;;  %v4162_v38 = vsel %vm10613_vm2, %v4157_v35, %v4161_v18  ;;  %v4195_v7 = vrot.slane %v4193_v24, 5  ;;  %v4201_v14 = vshll.u32 %v8644_v2, 16  ;;  %v4172_v61 = vsel %vm10613_vm2, %v4167_v20, %v4171_v57 }
 0x11d   : > { %14029 = vst [vmem:[#allocation16_spill] sm:$0xff] %v12001_v21  ;;  %v9494_v49 = vpop.f32.mrf.mxu1  ;;  %14030 = vst [vmem:[#allocation17_spill] sm:$0xff] %v12005_v45  ;;  %v4189_v45 = vrot.slane %v4187_v13, 4  ;;  %v4207_v21 = vshll.u32 %v11997_v10, 16  ;;  %v4181_v18 = vrot.slane %v4180_v1, 4  ;;  %v4200_v35 = vrot.slane %v4198_v52, 4 }
 0x11e   : > { %v8680_v60 = vcombine.low %v4162_v38, %v4172_v61  ;;  %v4203_v13 = vrot.slane %v4201_v14, 5  ;;  %v4211_v57 = vshrl.u32 %v11997_v10, 16  ;;  %v12034_v61 = vld [vmem:[%s10572_s28 + $0xc8] sm:$0x1]  ;;  %v4222_v20 = vshrl.u32 %v8647_v56, 16 }
 0x11f   : > { %v1295_v48 = vpop.f32.mrf.mxu1  ;;  %v4190_v46 = vor.u32 %v4189_v45, %v4185_v17  ;;  %v4209_v2 = vrot.slane %v4207_v21, 5  ;;  %v4186_v4 = vsel %vm10613_vm2, %v4181_v18, %v4185_v17  ;;  %14036 = vst [vmem:[#allocation23_spill] sm:$0xff] %v12034_v61  ;;  %v4225_v1 = vshll.u32 %v8647_v56, 16  ;;  %v8650_v52 = vld [vmem:[%s10572_s28 + $0xcc] sm:$0xf] }
 0x120   : > { %v9446_v62 = vpop.f32.mrf.mxu0  ;;  %9733 = vmatmul.mubr.bf16.gmra.mxu0 %v10393_v22  ;;  %9777 = vmatmul.mubr.bf16.gmra.mxu1 %v8680_v60  ;;  %v4204_v45 = vor.u32 %v4203_v13, %v4200_v35  ;;  %v4213_v17 = vrot.slane %v4211_v57, 4  ;;  %v12041_v14 = vld [vmem:[%s10572_s28 + $0xd0] sm:$0xf] }
 0x121   : > { %v9495_v8 = vpop.f32.mrf.mxu1  ;;  %v12023_v40 = vadd.f32 %v9494_v49, %v9446_v62  ;;  %v4217_v49 = vshll.u32 %v12012_v3, 16  ;;  %9736 = vmatprep.mubr.bf16.mxu0 %v10395_v41  ;;  %v4191_v22 = vrot.slane %v4190_v46, 4  ;;  %v4231_v62 = vshll.u32 %v12019_v19, 16  ;;  %14038 = vst [vmem:[#allocation25_spill] sm:$0xff] %v12041_v14  ;;  %v10396_v35 = vld [vmem:[%s10572_s28 + $0xcc] sm:$0xff]  }
 0x122   : > { %v990_v32 = vpop.f32.mrf.mxu0  ;;  %v4205_v18 = vrot.slane %v4204_v45, 4  ;;  %v4224_v46 = vrot.slane %v4222_v20, 4  ;;  %v4214_v57 = vor.u32 %v4213_v17, %v4209_v2 }
 0x123   : > { %14033 = vst [vmem:[#allocation20_spill] sm:$0xff] %v12023_v40  ;;  %v12025_v24 = vpop.f32.mrf.mxu1  ;;  %v12029_v43 = vadd.f32 %v1295_v48, %v990_v32  ;;  %v4196_v41 = vsel %vm10613_vm2, %v4191_v22, %v4195_v7  ;;  %v4227_v32 = vrot.slane %v4225_v1, 5  ;;  %v4241_v7 = vshll.u32 %v12034_v61, 16  ;;  %v12053_v22 = vld [vmem:[%s10572_s28 + $0xd4] sm:$0x1] }
 0x124   : > { %14034 = vst [vmem:[#allocation21_spill] sm:$0xff] %v12025_v24  ;;  %v9447_v21 = vpop.f32.mrf.mxu0  ;;  %v8681_v56 = vcombine.low %v4186_v4, %v4196_v41  ;;  %v4210_v24 = vsel %vm10613_vm2, %v4205_v18, %v4209_v2  ;;  %v4215_v20 = vrot.slane %v4214_v57, 4  ;;  %v4246_v1 = vshrl.u32 %v8650_v52, 16  ;;  %v8694_v40 = vld [vmem:[%s10572_s28 + $0x24] sm:$0xe] }
 0x125   : > { %14035 = vst [vmem:[#allocation22_spill] sm:$0xff] %v12029_v43  ;;  %v9498_v38 = vpop.f32.mrf.mxu1  ;;  %v12037_v48 = vadd.f32 %v9495_v8, %v9447_v21  ;;  %v4219_v8 = vrot.slane %v4217_v49, 5  ;;  %v4233_v21 = vrot.slane %v4231_v62, 5  ;;  %v4235_v43 = vshrl.u32 %v12019_v19, 16  ;;  %v8693_v49 = vld [vmem:[%s10572_s28 + $0x18] sm:$0xe] }
 0x126   : > { %v12045_v60 = vpop.f32.mrf.mxu0  ;;  %9780 = vmatprep.mubr.bf16.mxu1 %v8681_v56  ;;  %v4255_v4 = vshll.u32 %v12041_v14, 16  ;;  %v4243_v41 = vrot.slane %v4241_v7, 5  ;;  %v4259_v18 = vshrl.u32 %v12041_v14, 16  ;;  %v4248_v57 = vrot.slane %v4246_v1, 4  ;;  %v10470_v1 = vld [vmem:[%s10572_s28 + $0x1c] sm:$0xf] }
 0x127   : > { %14037 = vst [vmem:[#allocation24_spill] sm:$0xff] %v12037_v48  ;;  %14039 = vst [vmem:[#allocation26_spill] sm:$0xff] %v12045_v60  ;;  %v1311_v13 = vpop.f32.mrf.mxu1  ;;  %v4228_v48 = vor.u32 %v4227_v32, %v4224_v46  ;;  %v4249_v60 = vshll.u32 %v8650_v52, 16  ;;  %v4237_v2 = vrot.slane %v4235_v43, 4  ;;  %v4220_v32 = vsel %vm10613_vm2, %v4215_v20, %v4219_v8  ;;  %v8695_v8 = vld [vmem:[%s10572_s28 + $0x30] sm:$0xe] }
 0x128   : > { %v9450_v17 = vpop.f32.mrf.mxu0  ;;  %9737 = vmatmul.mubr.bf16.gmra.mxu0 %v10396_v35  ;;  %v8682_v61 = vcombine.low %v4210_v24, %v4220_v32  ;;  %v4257_v7 = vrot.slane %v4255_v4, 5  ;;  %v4261_v3 = vrot.slane %v4259_v18, 4  ;;  %v8709_v24 = vrot.slane %v8693_v49, 9  ;;  %v8696_v18 = vld [vmem:[%s10572_s28 + $0x3c] sm:$0xe] }
 0x129   : > { %v9499_v45 = vpop.f32.mrf.mxu1  ;;  %v4229_v62 = vrot.slane %v4228_v48, 4  ;;  %v12062_v56 = vadd.f32 %v9498_v38, %v9450_v17  ;;  %v4251_v52 = vrot.slane %v4249_v60, 5  ;;  %v4238_v43 = vor.u32 %v4237_v2, %v4233_v21 }
 0x12a   : > { %v1006_v35 = vpop.f32.mrf.mxu0  ;;  %v4265_v38 = vshll.u32 %v12053_v22, 16  ;;  %9781 = vmatmul.mubr.bf16.gmra.mxu1 %v8682_v61  ;;  %v4657_v17 = vrot.slane %v10470_v1, 5  ;;  %v4262_v2 = vor.u32 %v4261_v3, %v4257_v7 }
 0x12b   : > { %v12058_v46 = vpop.f32.mrf.mxu1  ;;  %v4234_v48 = vsel %vm10613_vm2, %v4229_v62, %v4233_v21  ;;  %v4252_v19 = vor.u32 %v4251_v52, %v4248_v57  ;;  %v4239_v60 = vrot.slane %v4238_v43, 4  ;;  %v10471_v62 = vld [vmem:[%s10572_s28 + $0x20] sm:$0x1]  ;;  %v8710_v43 = vrot.slane %v8694_v40, 9 }
 0x12c   : > { %14040 = vst [vmem:[#allocation27_spill] sm:$0xff] %v12058_v46  ;;  %v12067_v46 = vadd.f32 %v1311_v13, %v1006_v35  ;;  %v9451_v20 = vpop.f32.mrf.mxu0  ;;  %v4660_v32 = vrot.slane %v10471_v62, 5  ;;  %v4267_v13 = vrot.slane %v4265_v38, 5  ;;  %v4658_v61 = vsel %vm10965_vm5, %v8709_v24, %v4657_v17  ;;  %v8697_v38 = vld [vmem:[%s10572_s28 + $0x48] sm:$0xe] }
 0x12d   : > { %v9566_v14 = vpop.f32.mrf.mxu1  ;;  %v4253_v4 = vrot.slane %v4252_v19, 4  ;;  %v12073_v35 = vadd.f32 %v9499_v45, %v9451_v20  ;;  %v4244_v57 = vsel %vm10613_vm2, %v4239_v60, %v4243_v41  ;;  %v4659_v49 = vrot.slane %v4657_v17, 4 }
 0x12e   : > { %v12078_v52 = vpop.f32.mrf.mxu0  ;;  %v8683_v19 = vcombine.low %v4234_v48, %v4244_v57  ;;  %v4263_v45 = vrot.slane %v4262_v2, 4  ;;  %v14042_v20 = vrot.slane %v11763_v54, 5  ;;  %v8711_v62 = vrot.slane %v8695_v8, 9  ;;  %v8698_v57 = vld [vmem:[%s10572_s28 + $0x54] sm:$0xe] }
 0x12f   : > { %v2039_v21 = vpop.f32.mrf.mxu1  ;;  %14041 = vst [vmem:[#allocation28_spill] sm:$0xff] %v12078_v52  ;;  %v4258_v3 = vsel %vm10613_vm2, %v4253_v4, %v4257_v7  ;;  %v4661_v41 = vsel %vm10965_vm5, %v4659_v49, %v4660_v32  ;;  %v10472_v2 = vld [vmem:[%s10572_s28 + $0x34] sm:$0xf] }
 0x130   : > { %v9518_v60 = vpop.f32.mrf.mxu0  ;;  %v4665_v40 = vsel %vm10965_vm5, %v8710_v43, %v14042_v20  ;;  %v14043_v24 = vmov %v14042_v20  ;;  %9784 = vmatprep.mubr.bf16.mxu1 %v8683_v19  ;;  %v4268_v7 = vsel %vm10613_vm2, %v4263_v45, %v4267_v13  ;;  %v8741_v4 = vcombine.low %v4658_v61, %v4661_v41  ;;  %v10473_v20 = vld [vmem:[%s10572_s28 + $0x38] sm:$0x1]  ;;  %v10474_v45 = vld [vmem:[%s10572_s28 + $0x40] sm:$0xf] }
 0x131   : > { %v9567_v1 = vpop.f32.mrf.mxu1  ;;  %v4666_v17 = vrot.slane %v14043_v24, 4  ;;  %v1781_v32 = vadd.f32 %v9518_v60, %v11788_v53  ;;  %v4671_v49 = vrot.slane %v10472_v2, 5  ;;  %v8684_v52 = vcombine.low %v4258_v3, %v4268_v7  ;;  %v8699_v2 = vld [vmem:[%s10572_s28 + $0x60] sm:$0xe] }
 0x132   : > { %v14045_v43 = vrot.slane %v11774_v6, 5  ;;  %v1652_v8 = vpop.f32.mrf.mxu0  ;;  %v4674_v24 = vrot.slane %v10473_v20, 5  ;;  %v8712_v19 = vrot.slane %v8696_v18, 9  ;;  %9804 = vmatprep.mubr.bf16.mxu0 %v8741_v4  ;;  %v4678_v41 = vrot.slane %v10474_v45, 5  ;;  %v10475_v18 = vld [vmem:[%s10572_s28 + $0x4c] sm:$0xf] }
 0x133   : > { %v12094_v48 = vpop.f32.mrf.mxu1  ;;  %v1779_v53 = vadd.f32 %v1652_v8, %v11794_v25  ;;  %v12107_v13 = vadd.f32 %v9566_v14, %v1781_v32  ;;  %v4672_v61 = vsel %vm10965_vm5, %v8711_v62, %v4671_v49  ;;  %9785 = vmatmul.mubr.bf16.gmra.mxu1 %v8684_v52  ;;  %v4673_v3 = vrot.slane %v4671_v49, 4  ;;  %v10476_v25 = vld [vmem:[%s10572_s28 + $0x50] sm:$0x1] }
 0x134   : > { %14044 = vst [vmem:[#allocation29_spill] sm:$0xff] %v12094_v48  ;;  %v4668_v54 = vsel %vm10965_vm5, %v4666_v17, %v14045_v43  ;;  %v9519_v6 = vpop.f32.mrf.mxu0  ;;  %v8713_v17 = vrot.slane %v8697_v38, 9  ;;  %v4685_v7 = vrot.slane %v10475_v18, 5  ;;  %v4688_v14 = vrot.slane %v10476_v25, 5 }
 0x135   : > { %v9570_v48 = vpop.f32.mrf.mxu1  ;;  %v8742_v37 = vcombine.low %v4665_v40, %v4668_v54  ;;  %v1782_v40 = vadd.f32 %v9519_v6, %v11806_v11  ;;  %v12114_v4 = vadd.f32 %v2039_v21, %v1779_v53  ;;  %v8714_v32 = vrot.slane %v8698_v57, 9 }
 0x136   : > { %v1655_v62 = vpop.f32.mrf.mxu0  ;;  %v4675_v52 = vsel %vm10965_vm5, %v4673_v3, %v4674_v24  ;;  %v4679_v49 = vsel %vm10965_vm5, %v8712_v19, %v4678_v41  ;;  %v4680_v38 = vrot.slane %v4678_v41, 4  ;;  %v4686_v54 = vsel %vm10965_vm5, %v8713_v17, %v4685_v7  ;;  %v8700_v3 = vld [vmem:[%s10572_s28 + $0x6c] sm:$0xe] }
 0x137   : > { %v2055_v60 = vpop.f32.mrf.mxu1  ;;  %9805 = vmatmul.mubr.bf16.vlgmr.msra.gmra.mxu0 %v8742_v37  ;;  %v12125_v11 = vadd.f32 %v1655_v62, %v11814_v26  ;;  %v12127_v21 = vadd.f32 %v9567_v1, %v1782_v40  ;;  %v8743_v57 = vcombine.low %v4672_v61, %v4675_v52  ;;  %v4687_v8 = vrot.slane %v4685_v7, 4 }
 0x138   : > { %v9522_v20 = vpop.f32.mrf.mxu0  ;;  %v14046_v37 = vrot.slane %v11803_v31, 5  ;;  %v4692_v19 = vrot.slane %v11831_v47, 5  ;;  %v4699_v6 = vrot.slane %v11859_v12, 5  ;;  %v8715_v7 = vrot.slane %v8699_v2, 9 }
 0x139   : > { %v9571_v43 = vpop.f32.mrf.mxu1  ;;  %9808 = vmatprep.mubr.bf16.mxu0 %v8743_v57  ;;  %v1785_v26 = vadd.f32 %v9522_v20, %v11821_v34  ;;  %v4689_v61 = vsel %vm10965_vm5, %v4687_v8, %v4688_v14  ;;  %v4702_v34 = vrot.slane %v11865_v58, 5  ;;  %v4709_v25 = vrot.slane %v11884_v30, 5 }
 0x13a   : > { %v4682_v24 = vsel %vm10965_vm5, %v4680_v38, %v14046_v37  ;;  %v1668_v45 = vpop.f32.mrf.mxu0  ;;  %v8745_v41 = vcombine.low %v4686_v54, %v4689_v61  ;;  %v4693_v31 = vsel %vm10965_vm5, %v8714_v32, %v4692_v19  ;;  %v4694_v17 = vrot.slane %v4692_v19, 4  ;;  %v8701_v54 = vld [vmem:[%s10572_s28 + $0x78] sm:$0xe] }
 0x13b   : > { %v12133_v53 = vpop.f32.mrf.mxu1  ;;  %v8744_v1 = vcombine.low %v4679_v49, %v4682_v24  ;;  %v1783_v47 = vadd.f32 %v1668_v45, %v11825_v23  ;;  %v12144_v12 = vadd.f32 %v9570_v48, %v1785_v26  ;;  %v4701_v40 = vrot.slane %v4699_v6, 4 }
 0x13c   : > { %v9523_v62 = vpop.f32.mrf.mxu0  ;;  %v14047_v14 = vrot.slane %v11837_v29, 5  ;;  %v8716_v49 = vrot.slane %v8700_v3, 9  ;;  %v4706_v38 = vrot.slane %v11871_v42, 5  ;;  %v4700_v29 = vsel %vm10965_vm5, %v8715_v7, %v4699_v6 }
 0x13d   : > { %v9574_v18 = vpop.f32.mrf.mxu1  ;;  %v1786_v23 = vadd.f32 %v9523_v62, %v11839_v39  ;;  %v12154_v48 = vadd.f32 %v2055_v60, %v1783_v47  ;;  %v4703_v60 = vsel %vm10965_vm5, %v4701_v40, %v4702_v34  ;;  %v4713_v20 = vrot.slane %v11905_v59, 5 }
 0x13e   : > { %v4696_v52 = vsel %vm10965_vm5, %v4694_v17, %v14047_v14  ;;  %v1671_v58 = vpop.f32.mrf.mxu0  ;;  %v12161_v57 = vsel %vm10965_vm5, %v8716_v49, %v4706_v38  ;;  %v4708_v8 = vrot.slane %v4706_v38, 4  ;;  %v8717_v61 = vrot.slane %v8701_v54, 9  ;;  %v12192_v14 = vld [vmem:[%s10572_s28 + $0x9c] sm:$0xe]  ;;  %v12202_v38 = vld [vmem:[%s10572_s28 + $0xa8] sm:$0xe] }
 0x13f   : > { %v2071_v32 = vpop.f32.mrf.mxu1  ;;  %9809 = vmatmul.mubr.bf16.gmra.mxu0 %v8744_v1  ;;  %v8746_v2 = vcombine.low %v4693_v31, %v4696_v52  ;;  %v12164_v42 = vadd.f32 %v1671_v58, %v11845_v44  ;;  %v12166_v39 = vadd.f32 %v9571_v43, %v1786_v23  ;;  %v8702_v44 = vld [vmem:[%s10572_s28 + $0x84] sm:$0xe]  ;;  %v8747_v43 = vcombine.low %v4700_v29, %v4703_v60  ;;  %v12209_v58 = vld [vmem:[%s10572_s28 + $0xb4] sm:$0xe] }
 0x140   : > { %9812 = vmatprep.mubr.bf16.mxu0 %v8745_v41  ;;  %v9526_v37 = vpop.f32.mrf.mxu0  ;;  %v4710_v19 = vsel %vm10965_vm5, %v4708_v8, %v4709_v25  ;;  %v4716_v45 = vrot.slane %v11910_v28, 5  ;;  %v4715_v31 = vrot.slane %v4713_v20, 4  ;;  %v4720_v17 = vrot.slane %v11926_v27, 5 }
 0x141   : > { %v9575_v30 = vpop.f32.mrf.mxu1  ;;  %v1789_v6 = vadd.f32 %v9526_v37, %v11853_v9  ;;  %v8748_v3 = vcombine.low %v12161_v57, %v4710_v19  ;;  %v8703_v9 = vld [vmem:[%s10572_s28 + $0x90] sm:$0xe]  ;;  %v4723_v62 = vrot.slane %v11933_v55, 5  ;;  %v4727_v27 = vrot.slane %v11946_v15, 5 }
 0x142   : > { %v1684_v26 = vpop.f32.mrf.mxu0  ;;  %v4722_v49 = vrot.slane %v4720_v17, 4  ;;  %v8719_v55 = vrot.slane %v8703_v9, 9  ;;  %v4734_v15 = vrot.slane %v11959_v51, 5  ;;  %v4730_v8 = vrot.slane %v11951_v33, 5 }
 0x143   : > { %v12171_v24 = vpop.f32.mrf.mxu1  ;;  %v1787_v59 = vadd.f32 %v1684_v26, %v11867_v63  ;;  %v12180_v41 = vadd.f32 %v9574_v18, %v1789_v6  ;;  %v4714_v63 = vsel %vm10965_vm5, %v8717_v61, %v4713_v20  ;;  %v8718_v18 = vrot.slane %v8702_v44, 9  ;;  %v14048_v20 = vld [vmem:[#allocation3_spill] sm:$0xff]  ;;  %v12218_v44 = vld [vmem:[%s10572_s28 + $0xc0] sm:$0xe] }
 0x144   : > { %v9527_v7 = vpop.f32.mrf.mxu0  ;;  %v4729_v57 = vrot.slane %v4727_v27, 4  ;;  %v4741_v60 = vrot.slane %v11980_v36, 5  ;;  %v8720_v6 = vrot.slane %v12192_v14, 9  ;;  %v14049_v61 = vld [vmem:[#allocation11_spill] sm:$0xff]  ;;  %v8721_v33 = vrot.slane %v12202_v38, 9  ;;  %v10398_v36 = vld [vmem:[%s14000_s4 + $0x78] sm:$0xff]  }
 0x145   : > { %v9578_v1 = vpop.f32.mrf.mxu1  ;;  %v1790_v40 = vadd.f32 %v9527_v7, %v11880_v0  ;;  %v12185_v34 = vadd.f32 %v2071_v32, %v1787_v59  ;;  %v4717_v32 = vsel %vm10965_vm5, %v4715_v31, %v4716_v45  ;;  %v4737_v45 = vrot.slane %v14049_v61, 5  ;;  %9836 = vmatprep.subr.bf16.mxu1 %v10398_v36 }
 0x146   : > { %v1687_v25 = vpop.f32.mrf.mxu0  ;;  %v4724_v7 = vsel %vm10965_vm5, %v4722_v49, %v4723_v62  ;;  %v4748_v62 = vrot.slane %v11997_v10, 5  ;;  %9837 = vmatpush3.bf16.msra.mxu1 %v10398_v36  ;;  %v14057_v36 = vld [vmem:[#allocation9_spill] sm:$0xff] }
 0x147   : > { %v2087_v47 = vpop.f32.mrf.mxu1  ;;  %9813 = vmatmul.mubr.bf16.gmra.mxu0 %v8746_v2  ;;  %v12195_v52 = vadd.f32 %v1687_v25, %v11886_v5  ;;  %v12197_v0 = vadd.f32 %v9575_v30, %v1790_v40  ;;  %v8749_v30 = vcombine.low %v4714_v63, %v4717_v32  ;;  %v4731_v25 = vsel %vm10965_vm5, %v4729_v57, %v4730_v8  ;;  %v14055_v57 = vld [vmem:[#allocation6_spill] sm:$0xff] }
 0x148   : > { %9816 = vmatprep.mubr.bf16.mxu0 %v8747_v43  ;;  %v9530_v23 = vpop.f32.mrf.mxu0  ;;  %v4736_v43 = vrot.slane %v4734_v15, 4  ;;  %v4743_v63 = vrot.slane %v4741_v60, 4 }
 0x149   : > { %v9579_v28 = vpop.f32.mrf.mxu1  ;;  %v1793_v54 = vadd.f32 %v9530_v23, %v11899_v16  ;;  %v4721_v16 = vsel %vm10965_vm5, %v8718_v18, %v4720_v17  ;;  %v4728_v17 = vsel %vm10965_vm5, %v8719_v55, %v4727_v27  ;;  %v14051_v18 = vld [vmem:[#allocation13_spill] sm:$0xff]  ;;  %v14053_v27 = vld [vmem:[#allocation18_spill] sm:$0xff] }
 0x14a   : > { %v1700_v5 = vpop.f32.mrf.mxu0  ;;  %v4744_v14 = vrot.slane %v14051_v18, 5  ;;  %v4751_v49 = vrot.slane %v14053_v27, 5  ;;  %v8750_v8 = vcombine.low %v4721_v16, %v4724_v7  ;;  %v4735_v7 = vsel %vm10965_vm5, %v8720_v6, %v4734_v15 }
 0x14b   : > { %v12204_v2 = vpop.f32.mrf.mxu1  ;;  %v1791_v37 = vadd.f32 %v1700_v5, %v14048_v20  ;;  %v12214_v19 = vadd.f32 %v9578_v1, %v1793_v54  ;;  %v14050_v1 = vld [vmem:[#allocation4_spill] sm:$0xff]  ;;  %v8723_v54 = vrot.slane %v12218_v44, 9  ;;  %v14054_v5 = vld [vmem:[#allocation19_spill] sm:$0xff]  ;;  %v4750_v44 = vrot.slane %v4748_v62, 4 }
 0x14c   : > { %v9531_v51 = vpop.f32.mrf.mxu0  ;;  %v4745_v27 = vsel %vm10965_vm5, %v4743_v63, %v4744_v14 }
 0x14d   : > { %v9582_v29 = vpop.f32.mrf.mxu1  ;;  %v1794_v59 = vadd.f32 %v9531_v51, %v14050_v1  ;;  %v12228_v31 = vadd.f32 %v2087_v47, %v1791_v37  ;;  %v14052_v47 = vld [vmem:[#allocation5_spill] sm:$0xff]  ;;  %v8751_v37 = vcombine.low %v4728_v17, %v4731_v25 }
 0x14e   : > { %v1703_v9 = vpop.f32.mrf.mxu0 }
 0x14f   : > { %v2103_v26 = vpop.f32.mrf.mxu1  ;;  %9817 = vmatmul.mubr.bf16.gmra.mxu0 %v8748_v3  ;;  %v8722_v3 = vrot.slane %v12209_v58, 9  ;;  %v12239_v32 = vadd.f32 %v1703_v9, %v14052_v47  ;;  %v12241_v38 = vadd.f32 %v9579_v28, %v1794_v59  ;;  %v14056_v28 = vld [vmem:[#allocation7_spill] sm:$0xff] }
 0x150   : > { %9820 = vmatprep.mubr.bf16.mxu0 %v8749_v30  ;;  %v9534_v23 = vpop.f32.mrf.mxu0  ;;  %v4755_v30 = vrot.slane %v14054_v5, 5  ;;  %v10399_v47 = vld [vmem:[%s14000_s4 + $0x70] sm:$0xff]  }
 0x151   : > { %v9583_v40 = vpop.f32.mrf.mxu1  ;;  %v1797_v58 = vadd.f32 %v9534_v23, %v14055_v57  ;;  %9838 = vmatprep.subr.bf16.mxu1 %v10399_v47  ;;  %v14058_v57 = vld [vmem:[#allocation12_spill] sm:$0xff] }
 0x152   : > { %v1716_v20 = vpop.f32.mrf.mxu0  ;;  %9839 = vmatpush3.bf16.msra.mxu1 %v10399_v47 }
 0x153   : > { %v12245_v55 = vpop.f32.mrf.mxu1  ;;  %v1795_v61 = vadd.f32 %v1716_v20, %v14056_v28  ;;  %v12251_v1 = vadd.f32 %v9582_v29, %v1797_v58  ;;  %v4738_v29 = vsel %vm10965_vm5, %v4736_v43, %v4737_v45  ;;  %v14059_v45 = vld [vmem:[#allocation14_spill] sm:$0xff]  ;;  %v14061_v28 = vld [vmem:[#allocation16_spill] sm:$0xff] }
 0x154   : > { %v9535_v10 = vpop.f32.mrf.mxu0  ;;  %v8752_v15 = vcombine.low %v4735_v7, %v4738_v29  ;;  %v14062_v7 = vld [vmem:[#allocation25_spill] sm:$0xff] }
 0x155   : > { %v9586_v51 = vpop.f32.mrf.mxu1  ;;  %v1798_v9 = vadd.f32 %v9535_v10, %v14057_v36  ;;  %v12254_v18 = vadd.f32 %v2103_v26, %v1795_v61  ;;  %v4742_v26 = vsel %vm10965_vm5, %v8721_v33, %v4741_v60  ;;  %v14060_v60 = vld [vmem:[#allocation23_spill] sm:$0xff]  ;;  %v4762_v29 = vrot.slane %v14062_v7, 5 }
 0x156   : > { %v12259_v16 = vpop.f32.mrf.mxu0  ;;  %v4758_v33 = vrot.slane %v14060_v60, 5 }
 0x157   : > { %v2119_v59 = vpop.f32.mrf.mxu1  ;;  %9821 = vmatmul.mubr.bf16.gmra.mxu0 %v8750_v8  ;;  %v12265_v25 = vadd.f32 %v9583_v40, %v1798_v9  ;;  %v8753_v8 = vcombine.low %v4742_v26, %v4745_v27  ;;  %v4749_v9 = vsel %vm10965_vm5, %v8722_v3, %v4748_v62  ;;  %v4756_v27 = vsel %vm10965_vm5, %v8723_v54, %v4755_v30 }
 0x158   : > { %9824 = vmatprep.mubr.bf16.mxu0 %v8751_v37  ;;  %v9538_v23 = vpop.f32.mrf.mxu0  ;;  %v4757_v37 = vrot.slane %v4755_v30, 4  ;;  %v4765_v54 = vrot.slane %v12053_v22, 5 }
 0x159   : > { %v9587_v17 = vpop.f32.mrf.mxu1  ;;  %v1801_v58 = vadd.f32 %v9538_v23, %v14058_v57  ;;  %v8708_v23 = vld [vmem:[%s10572_s28 + $0xcc] sm:$0xe] }
 0x15a   : > { %v1732_v6 = vpop.f32.mrf.mxu0  ;;  %v10400_v57 = vld [vmem:[%s14000_s4 + $0x68] sm:$0xff]  }
 0x15b   : > { %v12271_v5 = vpop.f32.mrf.mxu1  ;;  %v1799_v40 = vadd.f32 %v1732_v6, %v14059_v45  ;;  %v12275_v20 = vadd.f32 %v9586_v51, %v1801_v58  ;;  %v4752_v51 = vsel %vm10965_vm5, %v4750_v44, %v4751_v49  ;;  %v14063_v49 = vld [vmem:[#allocation20_spill] sm:$0xff]  ;;  %9840 = vmatprep.subr.bf16.mxu1 %v10400_v57  ;;  %v8724_v6 = vrot.slane %v8708_v23, 9  ;;  %v14064_v45 = vld [vmem:[#allocation22_spill] sm:$0xff] }
 0x15c   : > { %v9539_v63 = vpop.f32.mrf.mxu0  ;;  %v8754_v58 = vcombine.low %v4749_v9, %v4752_v51  ;;  %9841 = vmatpush3.bf16.msra.mxu1 %v10400_v57 }
 0x15d   : > { %v9590_v43 = vpop.f32.mrf.mxu1  ;;  %v1802_v61 = vadd.f32 %v9539_v63, %v14061_v28  ;;  %v12279_v10 = vadd.f32 %v2119_v59, %v1799_v40  ;;  %v4759_v59 = vsel %vm10965_vm5, %v4757_v37, %v4758_v33  ;;  %v14065_v63 = vld [vmem:[#allocation24_spill] sm:$0xff]  ;;  %v4763_v51 = vsel %vm10965_vm5, %v8724_v6, %v4762_v29 }
 0x15e   : > { %v12281_v36 = vpop.f32.mrf.mxu0 }
 0x15f   : > { %v2135_v14 = vpop.f32.mrf.mxu1  ;;  %9825 = vmatmul.mubr.bf16.gmra.mxu0 %v8752_v15  ;;  %v12288_v26 = vadd.f32 %v9587_v17, %v1802_v61  ;;  %v8755_v15 = vcombine.low %v4756_v27, %v4759_v59 }
 0x160   : > { %9828 = vmatprep.mubr.bf16.mxu0 %v8753_v8  ;;  %v9542_v3 = vpop.f32.mrf.mxu0  ;;  %v4764_v8 = vrot.slane %v4762_v29, 4 }
 0x161   : > { %v9591_v47 = vpop.f32.mrf.mxu1  ;;  %v1805_v44 = vadd.f32 %v9542_v3, %v14063_v49 }
 0x162   : > { %v1748_v17 = vpop.f32.mrf.mxu0  ;;  %v4766_v22 = vsel %vm10965_vm5, %v4764_v8, %v4765_v54 }
 0x163   : > { %v12298_v62 = vpop.f32.mrf.mxu1  ;;  %v1803_v40 = vadd.f32 %v1748_v17, %v14064_v45  ;;  %v12303_v37 = vadd.f32 %v9590_v43, %v1805_v44  ;;  %v8756_v57 = vcombine.low %v4763_v51, %v4766_v22 }
 0x164   : > { %v9543_v60 = vpop.f32.mrf.mxu0 }
 0x165   : > { %v9594_v30 = vpop.f32.mrf.mxu1  ;;  %v1806_v28 = vadd.f32 %v9543_v60, %v14065_v63  ;;  %v12306_v61 = vadd.f32 %v2135_v14, %v1803_v40  ;;  %v10401_v14 = vld [vmem:[%s14000_s4 + $0x60] sm:$0xff]   ;;  %v10402_v60 = vld [vmem:[%s14000_s4 + $0x58] sm:$0xff]  }
 0x166   : > { %v12308_v9 = vpop.f32.mrf.mxu0  ;;  %9842 = vmatprep.subr.bf16.mxu1 %v10401_v14 }
 0x167   : > { %v2151_v33 = vpop.f32.mrf.mxu1  ;;  %9829 = vmatmul.mubr.bf16.gmra.mxu0 %v8754_v58  ;;  %v12314_v27 = vadd.f32 %v9591_v47, %v1806_v28  ;;  %9843 = vmatpush3.bf16.msra.mxu1 %v10401_v14  ;;  %v10404_v28 = vld [vmem:[%s14000_s4 + $0x30] sm:$0xff]  }
 0x168   : > { %9832 = vmatprep.mubr.bf16.mxu0 %v8755_v15  ;;  %v9546_v43 = vpop.f32.mrf.mxu0  ;;  %9844 = vmatprep.subr.bf16.mxu1 %v10402_v60 }
 0x169   : > { %v9595_v7 = vpop.f32.mrf.mxu1  ;;  %v1809_v23 = vadd.f32 %v9546_v43, %v12062_v56 }
 0x16a   : > { %v1764_v3 = vpop.f32.mrf.mxu0 }
 0x16b   : > { %v12316_v59 = vpop.f32.mrf.mxu1  ;;  %v1807_v29 = vadd.f32 %v1764_v3, %v12067_v46  ;;  %v12325_v50 = vadd.f32 %v9594_v30, %v1809_v23  ;;  %v10403_v30 = vld [vmem:[%s14000_s4 + $0x38] sm:$0xff]   ;;  %9845 = vmatpush3.bf16.msra.mxu1 %v10402_v60 }
 0x16c   : > { %v9547_v47 = vpop.f32.mrf.mxu0  ;;  %9884 = vmatprep.subr.bf16.mxu0 %v10403_v30 }
 0x16d   : > { %v12322_v49 = vpop.f32.mrf.mxu1  ;;  %v1810_v56 = vadd.f32 %v9547_v47, %v12073_v35  ;;  %v12330_v58 = vadd.f32 %v2151_v33, %v1807_v29  ;;  %9885 = vmatpush3.bf16.msra.mxu0 %v10403_v30 }
 0x16e   : > { %v12332_v17 = vpop.f32.mrf.mxu0  ;;  %9886 = vmatprep.subr.bf16.mxu0 %v10404_v28 }
 0x16f   : > { %v12327_v44 = vpop.f32.mrf.mxu1  ;;  %9833 = vmatmul.mubr.bf16.gmra.mxu0 %v8756_v57  ;;  %v12336_v6 = vadd.f32 %v9595_v7, %v1810_v56 }
 0x170   : > { %v9614_v8 = vpop.f32.mrf.mxu0 }
 0x171   : > { %v12334_v15 = vpop.f32.mrf.mxu1  ;;  %v12341_v54 = vadd.f32 %v9614_v8, %v12107_v13  ;;  %9887 = vmatpush3.bf16.msra.mxu0 %v10404_v28  ;;  %v10409_v28 = vld [vmem:[%s14000_s4 + $0x18] sm:$0xff]  }
 0x172   : > { %v2793_v45 = vpop.f32.mrf.mxu0 }
 0x173   : > { %v12338_v46 = vpop.f32.mrf.mxu1  ;;  %v12349_v40 = vadd.f32 %v2793_v45, %v12114_v4 }
 0x174   : > { %v9615_v33 = vpop.f32.mrf.mxu0 }
 0x175   : > { %v12346_v35 = vpop.f32.mrf.mxu1  ;;  %v12357_v13 = vadd.f32 %v9615_v33, %v12127_v21  ;;  %v10406_v21 = vld [vmem:[%s14000_s4 + $0x28] sm:$0xff]  }
 0x176   : > { %v12362_v51 = vpop.f32.mrf.mxu0  ;;  %9888 = vmatprep.subr.bf16.mxu0 %v10406_v21  ;;  %v10408_v33 = vld [vmem:[%s14000_s4 + $0x48] sm:$0xff]  }
 0x177   : > { %v12354_v63 = vpop.f32.mrf.mxu1  ;;  %9889 = vmatpush3.bf16.msra.mxu0 %v10406_v21 }
 0x178   : > { %v9618_v22 = vpop.f32.mrf.mxu0 }
 0x179   : > { %v12364_v4 = vpop.f32.mrf.mxu1  ;;  %v12369_v43 = vadd.f32 %v9618_v22, %v12144_v12  ;;  %v10486_v12 = vmov 0.0  }
 0x17a   : > { %v2809_v23 = vpop.f32.mrf.mxu0  ;;  %5205 = vst [vmem:[#allocation2 + $0x30] sm:$0xff] %v10486_v12  ;;  %5206 = vst [vmem:[#allocation2 + $0x38] sm:$0xff] %v10486_v12 }
 0x17b   : > { %v12366_v7 = vpop.f32.mrf.mxu1  ;;  %v12377_v14 = vadd.f32 %v2809_v23, %v12154_v48  ;;  %5199 = vst [vmem:[#allocation2] sm:$0xff] %v10486_v12  ;;  %5200 = vst [vmem:[#allocation2 + $0x8] sm:$0xff] %v10486_v12  ;;  %v10405_v48 = vld [vmem:[%s14000_s4 + $0x50] sm:$0xff]  }
 0x17c   : > { %v9619_v3 = vpop.f32.mrf.mxu0  ;;  %5201 = vst [vmem:[#allocation2 + $0x10] sm:$0x3] %v10486_v12  ;;  %5202 = vst [vmem:[#allocation2 + $0x18] sm:$0xff] %v10486_v12  ;;  %9846 = vmatprep.subr.bf16.mxu1 %v10405_v48 }
 0x17d   : > { %v12374_v57 = vpop.f32.mrf.mxu1  ;;  %v12382_v47 = vadd.f32 %v9619_v3, %v12166_v39  ;;  %5203 = vst [vmem:[#allocation2 + $0x20] sm:$0xff] %v10486_v12  ;;  %5204 = vst [vmem:[#allocation2 + $0x28] sm:$0x3] %v10486_v12  ;;  %v10407_v39 = vld [vmem:[%s14000_s4 + $0x20] sm:$0xff]   ;;  %9847 = vmatpush3.bf16.msra.mxu1 %v10405_v48  ;;  %v10410_v48 = vld [vmem:[%s14000_s4 + $0x10] sm:$0xff]  }
 0x17e   : > { %5207 = vst [vmem:[#allocation2 + $0x40] sm:$0x3] %v10486_v12  ;;  %5208 = vst [vmem:[#allocation2 + $0x48] sm:$0xff] %v10486_v12  ;;  %v12390_v56 = vpop.f32.mrf.mxu0  ;;  %9890 = vmatprep.subr.bf16.mxu0 %v10407_v39  ;;  %9848 = vmatprep.subr.bf16.mxu1 %v10408_v33 }
 0x17f   : > { %v12379_v29 = vpop.f32.mrf.mxu1  ;;  %5209 = vst [vmem:[#allocation2 + $0x50] sm:$0xff] %v10486_v12  ;;  %5210 = vst [vmem:[#allocation2 + $0x58] sm:$0x3] %v10486_v12  ;;  %9891 = vmatpush3.bf16.msra.mxu0 %v10407_v39  ;;  %v10411_v39 = vld [vmem:[%s14000_s4 + $0x40] sm:$0xff]  }
 0x180   : > { %5211 = vst [vmem:[#allocation2 + $0x60] sm:$0xff] %v10486_v12  ;;  %5212 = vst [vmem:[#allocation2 + $0x68] sm:$0xff] %v10486_v12  ;;  %v9622_v30 = vpop.f32.mrf.mxu0  ;;  %9892 = vmatprep.subr.bf16.mxu0 %v10409_v28 }
 0x181   : > { %5213 = vst [vmem:[#allocation2 + $0x70] sm:$0x3] %v10486_v12  ;;  %5214 = vst [vmem:[#allocation2 + $0x78] sm:$0xff] %v10486_v12  ;;  %v12392_v8 = vpop.f32.mrf.mxu1  ;;  %v12397_v60 = vadd.f32 %v9622_v30, %v12180_v41  ;;  %9849 = vmatpush3.bf16.msra.mxu1 %v10408_v33 }
 0x182   : > { %5215 = vst [vmem:[#allocation2 + $0x80] sm:$0xff] %v10486_v12  ;;  %5216 = vst [vmem:[#allocation2 + $0x88] sm:$0x3] %v10486_v12  ;;  %v2825_v22 = vpop.f32.mrf.mxu0  ;;  %9850 = vmatprep.subr.bf16.mxu1 %v10411_v39 }
 0x183   : > { %5217 = vst [vmem:[#allocation2 + $0x90] sm:$0xff] %v10486_v12  ;;  %5218 = vst [vmem:[#allocation2 + $0x98] sm:$0xff] %v10486_v12  ;;  %v12394_v45 = vpop.f32.mrf.mxu1  ;;  %v12408_v23 = vadd.f32 %v2825_v22, %v12185_v34  ;;  %9893 = vmatpush3.bf16.msra.mxu0 %v10409_v28  ;;  %v5350_v22 = vld [vmem:[#allocation2 + $0x1] sm:$0xff]  ;;  %v5351_v33 = vld [vmem:[#allocation2 + $0x9] sm:$0xff] }
 0x184   : > { %5219 = vst [vmem:[#allocation2 + $0xa0] sm:$0x3] %v10486_v12  ;;  %5220 = vst [vmem:[#allocation2 + $0xa8] sm:$0xff] %v10486_v12  ;;  %v9623_v3 = vpop.f32.mrf.mxu0  ;;  %9894 = vmatprep.subr.bf16.mxu0 %v10410_v48 }
 0x185   : > { %5221 = vst [vmem:[#allocation2 + $0xb0] sm:$0xff] %v10486_v12  ;;  %5222 = vst [vmem:[#allocation2 + $0xb8] sm:$0x3] %v10486_v12  ;;  %v12405_v21 = vpop.f32.mrf.mxu1  ;;  %v12413_v41 = vadd.f32 %v9623_v3, %v12197_v0  ;;  %9851 = vmatpush3.bf16.msra.mxu1 %v10411_v39  ;;  %v5382_v0 = vpack.c.bf16 %v5351_v33, %v5350_v22 }
 0x186   : > { %5223 = vst [vmem:[#allocation2 + $0xc0] sm:$0xff] %v10486_v12  ;;  %5224 = vst [vmem:[#allocation2 + $0xc8] sm:$0xff] %v10486_v12  ;;  %v12421_v34 = vpop.f32.mrf.mxu0 }
 0x187   : > { %5225 = vst [vmem:[#allocation2 + $0xd0] sm:$0x3] %v10486_v12  ;;  %5226 = vst [vmem:[#allocation2 + $0xd8] sm:$0xff] %v10486_v12  ;;  %9895 = vmatpush3.bf16.msra.mxu0 %v10410_v48  ;;  %9852 = vmatprep.mubr.bf16.mxu1 %v5382_v0 }
 0x188   : > { %5227 = vst [vmem:[#allocation2 + $0xe0] sm:$0xff] %v10486_v12  ;;  %5228 = vst [vmem:[#allocation2 + $0xe8] sm:$0x3] %v10486_v12  ;;  %v9626_v28 = vpop.f32.mrf.mxu0 }
 0x189   : > { %5229 = vst [vmem:[#allocation2 + $0xf0] sm:$0xff] %v10486_v12  ;;  %5230 = vst [vmem:[#allocation2 + $0xf8] sm:$0xff] %v10486_v12  ;;  %v12428_v3 = vadd.f32 %v9626_v28, %v12214_v19  ;;  %v10413_v19 = vld [vmem:[%s14000_s4] sm:$0xff]  }
 0x18a   : > { %5231 = vst [vmem:[#allocation2 + $0x100] sm:$0x3] %v10486_v12  ;;  %5232 = vst [vmem:[#allocation2 + $0x108] sm:$0xff] %v10486_v12 }
 0x18b   : > { %5233 = vst [vmem:[#allocation2 + $0x110] sm:$0xff] %v10486_v12  ;;  %5234 = vst [vmem:[#allocation2 + $0x118] sm:$0x3] %v10486_v12 }
 0x18c   : > { %5235 = vst [vmem:[#allocation2 + $0x120] sm:$0xff] %v10486_v12  ;;  %5236 = vst [vmem:[#allocation2 + $0x128] sm:$0xff] %v10486_v12 }
 0x18d   : > { %5237 = vst [vmem:[#allocation2 + $0x130] sm:$0x3] %v10486_v12  ;;  %5238 = vst [vmem:[#allocation2 + $0x138] sm:$0xff] %v10486_v12 }
 0x18e   : > { %5239 = vst [vmem:[#allocation2 + $0x140] sm:$0xff] %v10486_v12  ;;  %5240 = vst [vmem:[#allocation2 + $0x148] sm:$0x3] %v10486_v12 }
 0x18f   : > { %5241 = vst [vmem:[#allocation2 + $0x150] sm:$0xff] %v10486_v12  ;;  %5242 = vst [vmem:[#allocation2 + $0x158] sm:$0xff] %v10486_v12 }
 0x190   : > { %5243 = vst [vmem:[#allocation2 + $0x160] sm:$0x3] %v10486_v12  ;;  %5244 = vst [vmem:[#allocation2 + $0x168] sm:$0xff] %v10486_v12 }
 0x191   : > { %5245 = vst [vmem:[#allocation2 + $0x170] sm:$0xff] %v10486_v12  ;;  %5246 = vst [vmem:[#allocation2 + $0x178] sm:$0x3] %v10486_v12 }
 0x192   : > { %5247 = vst [vmem:[#allocation2 + $0x180] sm:$0xff] %v10486_v12  ;;  %5248 = vst [vmem:[#allocation2 + $0x188] sm:$0xff] %v10486_v12 }
 0x193   : > { %5249 = vst [vmem:[#allocation2 + $0x190] sm:$0x3] %v10486_v12  ;;  %5250 = vst [vmem:[#allocation2 + $0x198] sm:$0xff] %v10486_v12 }
 0x194   : > { %5251 = vst [vmem:[#allocation2 + $0x1a0] sm:$0xff] %v10486_v12  ;;  %5252 = vst [vmem:[#allocation2 + $0x1a8] sm:$0x3] %v10486_v12  ;;  %v12410_v12 = vpop.f32.mrf.mxu1 }
 0x195   : > { %14066 = vst [vmem:[#allocation3_spill] sm:$0xff] %v12392_v8  ;;  %14067 = vst [vmem:[#allocation11_spill] sm:$0xff] %v12394_v45  ;;  %v2841_v45 = vpop.f32.mrf.mxu0 }
 0x196   : > { %14068 = vst [vmem:[#allocation4_spill] sm:$0xff] %v12405_v21  ;;  %14069 = vst [vmem:[#allocation13_spill] sm:$0xff] %v12410_v12  ;;  %v12423_v30 = vpop.f32.mrf.mxu1  ;;  %v10412_v21 = vld [vmem:[%s14000_s4 + $0x8] sm:$0xff]  }
 0x197   : > { %14070 = vst [vmem:[#allocation5_spill] sm:$0xff] %v12413_v41  ;;  %14071 = vst [vmem:[#allocation18_spill] sm:$0xff] %v12423_v30  ;;  %v12436_v30 = vadd.f32 %v2841_v45, %v12228_v31  ;;  %9896 = vmatprep.subr.bf16.mxu0 %v10412_v21  ;;  %v9627_v41 = vpop.f32.mrf.mxu0 }
 0x198   : > { %v12425_v12 = vpop.f32.mrf.mxu1  ;;  %9897 = vmatpush3.bf16.msra.mxu0 %v10412_v21  ;;  %v12441_v48 = vadd.f32 %v9627_v41, %v12241_v38  ;;  %v10487_v38 = vmov 0.0|0.0  }
 0x199   : > { %14072 = vst [vmem:[#allocation19_spill] sm:$0xff] %v12425_v12  ;;  %v12446_v39 = vpop.f32.mrf.mxu0  ;;  %9898 = vmatprep.subr.bf16.mxu0 %v10413_v19  ;;  %9900 = vmatprep.mubr.bf16.mxu0 %v10487_v38 }
 0x19a   : > { %v12433_v8 = vpop.f32.mrf.mxu1  ;;  %14075 = vst [vmem:[#allocation9_spill] sm:$0xff] %v12441_v48 }
 0x19b   : > { %14073 = vst [vmem:[#allocation6_spill] sm:$0xff] %v12433_v8  ;;  %v9630_v33 = vpop.f32.mrf.mxu0 }
 0x19c   : > { %v12438_v12 = vpop.f32.mrf.mxu1  ;;  %9899 = vmatpush3.bf16.msra.mxu0 %v10413_v19  ;;  %v12453_v45 = vadd.f32 %v9630_v33, %v12251_v1  ;;  %v12472_v1 = vld [vmem:[%s14000_s4 + $0xb8] sm:$0xff]  }
 0x19d   : > { %14074 = vst [vmem:[#allocation7_spill] sm:$0xff] %v12438_v12  ;;  %v2857_v21 = vpop.f32.mrf.mxu0  ;;  %14085 = vst [vmem:[#allocation31_spill] sm:$0xff] %v12472_v1  ;;  %9932 = vmatprep.subr.bf16.mxu1 %v12472_v1 }
 0x19e   : > { %v12448_v22 = vpop.f32.mrf.mxu1  ;;  %14078 = vst [vmem:[#allocation23_spill] sm:$0xff] %v12453_v45  ;;  %v12458_v41 = vadd.f32 %v2857_v21, %v12254_v18  ;;  %v14149_v45 = vld [vmem:[#allocation26_spill] sm:$0xff] }
 0x19f   : > { %14076 = vst [vmem:[#allocation12_spill] sm:$0xff] %v12448_v22  ;;  %v9631_v0 = vpop.f32.mrf.mxu0 }
 0x1a0   : > { %v12450_v31 = vpop.f32.mrf.mxu1  ;;  %14080 = vst [vmem:[#allocation25_spill] sm:$0xff] %v12458_v41  ;;  %v12463_v22 = vadd.f32 %v9631_v0, %v12265_v25 }
 0x1a1   : > { %14077 = vst [vmem:[#allocation14_spill] sm:$0xff] %v12450_v31  ;;  %v12465_v8 = vpop.f32.mrf.mxu0 }
 0x1a2   : > { %v12455_v28 = vpop.f32.mrf.mxu1  ;;  %14082 = vst [vmem:[#allocation22_spill] sm:$0xff] %v12463_v22  ;;  %14083 = vst [vmem:[#allocation24_spill] sm:$0xff] %v12465_v8  ;;  %v14148_v8 = vld [vmem:[#allocation15_spill] sm:$0xff] }
 0x1a3   : > { %14079 = vst [vmem:[#allocation16_spill] sm:$0xff] %v12455_v28  ;;  %v9634_v33 = vpop.f32.mrf.mxu0 }
 0x1a4   : > { %v12460_v12 = vpop.f32.mrf.mxu1  ;;  %v12478_v18 = vadd.f32 %v9634_v33, %v12275_v20 }
 0x1a5   : > { %14081 = vst [vmem:[#allocation20_spill] sm:$0xff] %v12460_v12  ;;  %v2873_v21 = vpop.f32.mrf.mxu0 }
 0x1a6   : > { %v12467_v19 = vpop.f32.mrf.mxu1  ;;  %14087 = vst [vmem:[#allocation33_spill] sm:$0xff] %v12478_v18  ;;  %v12483_v0 = vadd.f32 %v2873_v21, %v12279_v10 }
 0x1a7   : > { %14084 = vst [vmem:[#allocation30_spill] sm:$0xff] %v12467_v19  ;;  %v9635_v19 = vpop.f32.mrf.mxu0 }
 0x1a8   : > { %v12474_v38 = vpop.f32.mrf.mxu1  ;;  %14089 = vst [vmem:[#allocation35_spill] sm:$0xff] %v12483_v0  ;;  %v12488_v28 = vadd.f32 %v9635_v19, %v12288_v26 }
 0x1a9   : > { %14086 = vst [vmem:[#allocation32_spill] sm:$0xff] %v12474_v38  ;;  %v12490_v31 = vpop.f32.mrf.mxu0 }
 0x1aa   : > { %v12480_v25 = vpop.f32.mrf.mxu1  ;;  %14091 = vst [vmem:[#allocation37_spill] sm:$0xff] %v12488_v28  ;;  %14092 = vst [vmem:[#allocation38_spill] sm:$0xff] %v12490_v31 }
 0x1ab   : > { %14088 = vst [vmem:[#allocation34_spill] sm:$0xff] %v12480_v25  ;;  %v9638_v1 = vpop.f32.mrf.mxu0 }
 0x1ac   : > { %v12485_v12 = vpop.f32.mrf.mxu1  ;;  %v12495_v20 = vadd.f32 %v9638_v1, %v12303_v37 }
 0x1ad   : > { %14090 = vst [vmem:[#allocation36_spill] sm:$0xff] %v12485_v12  ;;  %v2889_v25 = vpop.f32.mrf.mxu0 }
 0x1ae   : > { %v12492_v38 = vpop.f32.mrf.mxu1  ;;  %14094 = vst [vmem:[#allocation40_spill] sm:$0xff] %v12495_v20  ;;  %v12500_v10 = vadd.f32 %v2889_v25, %v12306_v61 }
 0x1af   : > { %14093 = vst [vmem:[#allocation39_spill] sm:$0xff] %v12492_v38  ;;  %v9639_v21 = vpop.f32.mrf.mxu0 }
 0x1b0   : > { %v12497_v33 = vpop.f32.mrf.mxu1  ;;  %14096 = vst [vmem:[#allocation42_spill] sm:$0xff] %v12500_v10  ;;  %v12503_v12 = vadd.f32 %v9639_v21, %v12314_v27 }
 0x1b1   : > { %14095 = vst [vmem:[#allocation41_spill] sm:$0xff] %v12497_v33  ;;  %v12507_v19 = vpop.f32.mrf.mxu0 }
 0x1b2   : > { %14097 = vst [vmem:[#allocation43_spill] sm:$0xff] %v12503_v12  ;;  %v12505_v26 = vpop.f32.mrf.mxu1  ;;  %14099 = vst [vmem:[#allocation45_spill] sm:$0xff] %v12507_v19 }
 0x1b3   : > { %14098 = vst [vmem:[#allocation44_spill] sm:$0xff] %v12505_v26  ;;  %v9642_v38 = vpop.f32.mrf.mxu0 }
 0x1b4   : > { %v12509_v28 = vpop.f32.mrf.mxu1  ;;  %v12512_v37 = vadd.f32 %v9642_v38, %v12325_v50  ;;  %v12529_v50 = vld [vmem:[%s14000_s4 + $0xf8] sm:$0xff]  }
 0x1b5   : > { %14100 = vst [vmem:[#allocation46_spill] sm:$0xff] %v12509_v28  ;;  %v2905_v1 = vpop.f32.mrf.mxu0  ;;  %14107 = vst [vmem:[#allocation53_spill] sm:$0xff] %v12529_v50  ;;  %9980 = vmatprep.subr.bf16.mxu0 %v12529_v50 }
 0x1b6   : > { %14101 = vst [vmem:[#allocation47_spill] sm:$0xff] %v12512_v37  ;;  %v12514_v33 = vpop.f32.mrf.mxu1  ;;  %v12517_v61 = vadd.f32 %v2905_v1, %v12330_v58 }
 0x1b7   : > { %14102 = vst [vmem:[#allocation48_spill] sm:$0xff] %v12514_v33  ;;  %v9643_v25 = vpop.f32.mrf.mxu0 }
 0x1b8   : > { %14103 = vst [vmem:[#allocation49_spill] sm:$0xff] %v12517_v61  ;;  %v12520_v27 = vadd.f32 %v9643_v25, %v12336_v6  ;;  %v12524_v26 = vpop.f32.mrf.mxu1 }
 0x1b9   : > { %v12522_v21 = vpop.f32.mrf.mxu0  ;;  %14106 = vst [vmem:[#allocation52_spill] sm:$0xff] %v12524_v26 }
 0x1ba   : > { %14104 = vst [vmem:[#allocation50_spill] sm:$0xff] %v12520_v27  ;;  %14105 = vst [vmem:[#allocation51_spill] sm:$0xff] %v12522_v21  ;;  %v12533_v33 = vpop.f32.mrf.mxu1 }
 0x1bb   : > { %v9710_v12 = vpop.f32.mrf.mxu0 }
 0x1bc   : > { %v12538_v6 = vpop.f32.mrf.mxu1 }
 0x1bd   : > { %v12531_v38 = vpop.f32.mrf.mxu0 }
 0x1be   : > { %v12544_v26 = vpop.f32.mrf.mxu1 }
 0x1bf   : > { %v12536_v58 = vpop.f32.mrf.mxu0 }
 0x1c0   : > { %v12550_v61 = vpop.f32.mrf.mxu1 }
 0x1c1   : > { %v12540_v1 = vpop.f32.mrf.mxu0  ;;  %14110 = vst [vmem:[#allocation56_spill] sm:$0xff] %v12550_v61 }
 0x1c2   : > { %v12556_v50 = vpop.f32.mrf.mxu1 }
 0x1c3   : > { %v12542_v25 = vpop.f32.mrf.mxu0  ;;  %14113 = vst [vmem:[#allocation59_spill] sm:$0xff] %v12556_v50 }
 0x1c4   : > { %v12562_v20 = vpop.f32.mrf.mxu1 }
 0x1c5   : > { %v12546_v27 = vpop.f32.mrf.mxu0  ;;  %14116 = vst [vmem:[#allocation62_spill] sm:$0xff] %v12562_v20 }
 0x1c6   : > { %14108 = vst [vmem:[#allocation54_spill] sm:$0xff] %v12546_v27  ;;  %v12568_v18 = vpop.f32.mrf.mxu1  ;;  %v14152_v27 = vld [vmem:[#allocation27_spill] sm:$0xff] }
 0x1c7   : > { %v12548_v28 = vpop.f32.mrf.mxu0  ;;  %14119 = vst [vmem:[#allocation65_spill] sm:$0xff] %v12568_v18 }
 0x1c8   : > { %14109 = vst [vmem:[#allocation55_spill] sm:$0xff] %v12548_v28 }
 0x1c9   : > { %v12552_v21 = vpop.f32.mrf.mxu0 }
 0x1ca   : > { %14111 = vst [vmem:[#allocation57_spill] sm:$0xff] %v12552_v21  ;;  %v12574_v21 = vpop.f32.mrf.mxu1 }
 0x1cb   : > { %v12554_v37 = vpop.f32.mrf.mxu0  ;;  %14122 = vst [vmem:[#allocation68_spill] sm:$0xff] %v12574_v21 }
 0x1cc   : > { %14112 = vst [vmem:[#allocation58_spill] sm:$0xff] %v12554_v37 }
 0x1cd   : > { %v12558_v19 = vpop.f32.mrf.mxu0 }
 0x1ce   : > { %14114 = vst [vmem:[#allocation60_spill] sm:$0xff] %v12558_v19  ;;  %v12580_v19 = vpop.f32.mrf.mxu1 }
 0x1cf   : > { %v12560_v10 = vpop.f32.mrf.mxu0  ;;  %14125 = vst [vmem:[#allocation71_spill] sm:$0xff] %v12580_v19 }
 0x1d0   : > { %14115 = vst [vmem:[#allocation61_spill] sm:$0xff] %v12560_v10 }
 0x1d1   : > { %v12564_v31 = vpop.f32.mrf.mxu0 }
 0x1d2   : > { %14117 = vst [vmem:[#allocation63_spill] sm:$0xff] %v12564_v31  ;;  %v12586_v31 = vpop.f32.mrf.mxu1 }
 0x1d3   : > { %v12566_v0 = vpop.f32.mrf.mxu0  ;;  %14128 = vst [vmem:[#allocation74_spill] sm:$0xff] %v12586_v31 }
 0x1d4   : > { %14118 = vst [vmem:[#allocation64_spill] sm:$0xff] %v12566_v0 }
 0x1d5   : > { %v12570_v22 = vpop.f32.mrf.mxu0 }
 0x1d6   : > { %14120 = vst [vmem:[#allocation66_spill] sm:$0xff] %v12570_v22  ;;  %v12592_v22 = vpop.f32.mrf.mxu1 }
 0x1d7   : > { %v12572_v41 = vpop.f32.mrf.mxu0  ;;  %14131 = vst [vmem:[#allocation77_spill] sm:$0xff] %v12592_v22 }
 0x1d8   : > { %14121 = vst [vmem:[#allocation67_spill] sm:$0xff] %v12572_v41 }
 0x1d9   : > { %v12576_v37 = vpop.f32.mrf.mxu0 }
 0x1da   : > { %14123 = vst [vmem:[#allocation69_spill] sm:$0xff] %v12576_v37  ;;  %v12598_v37 = vpop.f32.mrf.mxu1 }
 0x1db   : > { %v12578_v28 = vpop.f32.mrf.mxu0  ;;  %14134 = vst [vmem:[#allocation80_spill] sm:$0xff] %v12598_v37  ;;  %v14145_v37 = vld [vmem:[#allocation10_spill] sm:$0xff] }
 0x1dc   : > { %14124 = vst [vmem:[#allocation70_spill] sm:$0xff] %v12578_v28 }
 0x1dd   : > { %v12582_v10 = vpop.f32.mrf.mxu0 }
 0x1de   : > { %14126 = vst [vmem:[#allocation72_spill] sm:$0xff] %v12582_v10  ;;  %v12604_v10 = vpop.f32.mrf.mxu1 }
 0x1df   : > { %v12584_v20 = vpop.f32.mrf.mxu0  ;;  %14137 = vst [vmem:[#allocation83_spill] sm:$0xff] %v12604_v10 }
 0x1e0   : > { %14127 = vst [vmem:[#allocation73_spill] sm:$0xff] %v12584_v20 }
 0x1e1   : > { %v12588_v0 = vpop.f32.mrf.mxu0 }
 0x1e2   : > { %14129 = vst [vmem:[#allocation75_spill] sm:$0xff] %v12588_v0  ;;  %v12610_v0 = vpop.f32.mrf.mxu1 }
 0x1e3   : > { %v12590_v18 = vpop.f32.mrf.mxu0  ;;  %14140 = vst [vmem:[#allocation86_spill] sm:$0xff] %v12610_v0 }
 0x1e4   : > { %14130 = vst [vmem:[#allocation76_spill] sm:$0xff] %v12590_v18 }
 0x1e5   : > { %v12594_v41 = vpop.f32.mrf.mxu0 }
 0x1e6   : > { %14132 = vst [vmem:[#allocation78_spill] sm:$0xff] %v12594_v41  ;;  %v12616_v41 = vpop.f32.mrf.mxu1 }
 0x1e7   : > { %v12596_v21 = vpop.f32.mrf.mxu0  ;;  %14143 = vst [vmem:[#allocation89_spill] sm:$0xff] %v12616_v41 }
 0x1e8   : > { %14133 = vst [vmem:[#allocation79_spill] sm:$0xff] %v12596_v21 }
 0x1e9   : > { %v12600_v28 = vpop.f32.mrf.mxu0 }
 0x1ea   : > { %14135 = vst [vmem:[#allocation81_spill] sm:$0xff] %v12600_v28  ;;  %v14146_v28 = vld [vmem:[#allocation8_spill] sm:$0xff] }
 0x1eb   : > { %v12602_v19 = vpop.f32.mrf.mxu0  ;;  %v1267_v50 = vadd.f32 %v14146_v28, %v14145_v37  ;;  %v12635_v28 = vpop.f32.mrf.mxu1 }
 0x1ec   : > { %14136 = vst [vmem:[#allocation82_spill] sm:$0xff] %v12602_v19  ;;  %v14147_v19 = vld [vmem:[#allocation17_spill] sm:$0xff] }
 0x1ed   : > { %v12606_v20 = vpop.f32.mrf.mxu0  ;;  %v1283_v10 = vadd.f32 %v14148_v8, %v14147_v19  ;;  %v1796_v41 = vadd.f32 %v12259_v16, %v1267_v50  ;;  %v2171_v8 = vadd.f32 %v12133_v53, %v12164_v42  ;;  %v3418_v19 = vadd.f32 %v12327_v44, %v12349_v40  ;;  %v12656_v44 = vpop.f32.mrf.mxu1  ;;  %v14161_v50 = vld [vmem:[#allocation19_spill] sm:$0xff] }
 0x1ee   : > { %14138 = vst [vmem:[#allocation84_spill] sm:$0xff] %v12606_v20  ;;  %v14150_v20 = vld [vmem:[#allocation21_spill] sm:$0xff]  ;;  %v2179_v53 = vadd.f32 %v12204_v2, %v12239_v32 }
 0x1ef   : > { %v12608_v31 = vpop.f32.mrf.mxu0  ;;  %v1299_v61 = vadd.f32 %v14150_v20, %v14149_v45  ;;  %v1800_v45 = vadd.f32 %v12281_v36, %v1283_v10  ;;  %v2183_v42 = vadd.f32 %v12245_v55, %v1796_v41  ;;  %v3421_v36 = vadd.f32 %v12334_v15, %v12357_v13  ;;  %v14158_v10 = vld [vmem:[#allocation13_spill] sm:$0xff] }
 0x1f0   : > { %14139 = vst [vmem:[#allocation85_spill] sm:$0xff] %v12608_v31  ;;  %v14151_v31 = vld [vmem:[#allocation28_spill] sm:$0xff]  ;;  %v3424_v55 = vadd.f32 %v12346_v35, %v12369_v43  ;;  %v2933_v13 = vadd.f32 %v12446_v39, %v2179_v53  ;;  %v3428_v35 = vadd.f32 %v12374_v57, %v12397_v60  ;;  %v12701_v57 = vld [vmem:[%s13999_s3] ss:$0 sm:$0xff]  ;;  %v12711_v37 = vadd.f32 %v14158_v10, %v12436_v30  ;;  %v14168_v53 = vld [vmem:[#allocation55_spill] sm:$0xff] }
 0x1f1   : > { %v12612_v18 = vpop.f32.mrf.mxu0  ;;  %v1315_v0 = vadd.f32 %v14152_v27, %v14151_v31  ;;  %v1804_v20 = vadd.f32 %v12308_v9, %v1299_v61  ;;  %v3805_v9 = vadd.f32 %v12531_v38, %v3418_v19  ;;  %v3808_v40 = vadd.f32 %v12536_v58, %v3421_v36  ;;  %v14159_v61 = vld [vmem:[#allocation9_spill] sm:$0xff]  ;;  %v14160_v27 = vld [vmem:[#allocation18_spill] sm:$0xff] }
 0x1f2   : > { %14141 = vst [vmem:[#allocation87_spill] sm:$0xff] %v12612_v18  ;;  %v3811_v41 = vadd.f32 %v12542_v25, %v3424_v55  ;;  %v12718_v38 = vadd.f32 %v14161_v50, %v2933_v13  ;;  %v14162_v58 = vld [vmem:[#allocation54_spill] sm:$0xff]  ;;  %v14176_v10 = vld [vmem:[#allocation33_spill] sm:$0xff] }
 0x1f3   : > { %v12614_v22 = vpop.f32.mrf.mxu0  ;;  %v1808_v31 = vadd.f32 %v12332_v17, %v1315_v0  ;;  %v12659_v17 = vadd.f32 %v12271_v5, %v1800_v45  ;;  %v3422_v5 = vadd.f32 %v12354_v63, %v12377_v14  ;;  %v4559_v43 = vadd.f32 %v12538_v6, %v3805_v9  ;;  %v12688_v14 = vpop.f32.mrf.mxu1  ;;  %v14178_v50 = vld [vmem:[#allocation65_spill] sm:$0xff] }
 0x1f4   : > { %14142 = vst [vmem:[#allocation88_spill] sm:$0xff] %v12614_v22  ;;  %v14153_v22 = vld [vmem:[#allocation29_spill] sm:$0xff] }
 0x1f5   : > { %v12618_v21 = vpop.f32.mrf.mxu0  ;;  %v2167_v18 = vadd.f32 %v14153_v22, %v12125_v11  ;;  %v3809_v6 = vadd.f32 %v14162_v58, %v3422_v5  ;;  %v14170_v5 = vld [vmem:[#allocation7_spill] sm:$0xff] }
 0x1f6   : > { %14144 = vst [vmem:[#allocation90_spill] sm:$0xff] %v12618_v21  ;;  %v3420_v21 = vadd.f32 %v12322_v49, %v12341_v54  ;;  %v2175_v49 = vadd.f32 %v12171_v24, %v12195_v52  ;;  %v2925_v54 = vadd.f32 %v12390_v56, %v2171_v8  ;;  %v12662_v24 = vadd.f32 %v12298_v62, %v1804_v20  ;;  %v14155_v56 = vld [vmem:[#allocation3_spill] sm:$0xff] }
 0x1f7   : > { %v12628_v48 = vpop.f32.mrf.mxu0  ;;  %v2921_v11 = vadd.f32 %v12362_v51, %v2167_v18  ;;  %v12665_v52 = vadd.f32 %v12316_v59, %v1808_v31  ;;  %v3425_v62 = vadd.f32 %v12364_v4, %v12382_v47  ;;  %v14154_v47 = vld [vmem:[#allocation5_spill] sm:$0xff]  ;;  %v14157_v18 = vld [vmem:[#allocation4_spill] sm:$0xff]  ;;  %v14164_v20 = vld [vmem:[#allocation23_spill] sm:$0xff] }
 0x1f8   : > { %v3807_v16 = vadd.f32 %v9710_v12, %v3420_v21  ;;  %v2929_v2 = vadd.f32 %v12421_v34, %v2175_v49  ;;  %v3423_v59 = vadd.f32 %v12366_v7, %v2925_v54  ;;  %v3426_v7 = vadd.f32 %v12379_v29, %v12408_v23  ;;  %v14156_v34 = vld [vmem:[#allocation11_spill] sm:$0xff]  ;;  %v14165_v31 = vld [vmem:[#allocation6_spill] sm:$0xff] }
 0x1f9   : > { %v12648_v22 = vpop.f32.mrf.mxu0  ;;  %v3419_v32 = vadd.f32 %v12338_v46, %v2921_v11  ;;  %v12682_v46 = vld [vmem:[%s13998_s2] ss:$0 sm:$0xff]  ;;  %v3429_v12 = vadd.f32 %v14155_v56, %v14154_v47  ;;  %v12705_v0 = vadd.f32 %v14157_v18, %v12428_v3  ;;  %v4562_v29 = vadd.f32 %v12544_v26, %v3808_v40  ;;  %v12722_v26 = vpop.f32.mrf.mxu1  ;;  %v14166_v11 = vld [vmem:[#allocation24_spill] sm:$0xff]  ;;  %v14167_v49 = vld [vmem:[#allocation59_spill] sm:$0xff] }
 0x1fa   : > { %v4561_v15 = vadd.f32 %v12533_v33, %v3807_v16  ;;  %v12695_v39 = vadd.f32 %v14156_v34, %v2929_v2  ;;  %v12715_v21 = vadd.f32 %v14160_v27, %v14159_v61  ;;  %v12728_v19 = vadd.f32 %v14165_v31, %v14164_v20  ;;  %v14169_v40 = vld [vmem:[#allocation25_spill] sm:$0xff]  ;;  %v14177_v61 = vld [vmem:[#allocation16_spill] sm:$0xff] }
 0x1fb   : > { %v9806_v51 = vpop.f32.mrf.mxu0  ;;  %v3806_v63 = vadd.f32 %v12540_v1, %v3419_v32  ;;  %v14163_v1 = vld [vmem:[#allocation56_spill] sm:$0xff]  ;;  %v2937_v16 = vadd.f32 %v14166_v11, %v2183_v42  ;;  %v4565_v54 = vadd.f32 %v14167_v49, %v3811_v41  ;;  %v3812_v36 = vadd.f32 %v14168_v53, %v3425_v62  ;;  %v14173_v42 = vld [vmem:[#allocation62_spill] sm:$0xff]  ;;  %v14174_v47 = vld [vmem:[#allocation57_spill] sm:$0xff]  ;;  %v12745_v34 = vpop.f32.mrf.mxu1 }
 0x1fc   : > { %v5059_v4 = vadd.f32 %v9806_v51, %v4561_v15  ;;  %v12737_v13 = vadd.f32 %v14170_v5, %v14169_v40  ;;  %v14171_v51 = vld [vmem:[#allocation22_spill] sm:$0xff]  ;;  %v3810_v56 = vadd.f32 %v14174_v47, %v3423_v59  ;;  %v12754_v27 = vadd.f32 %v14177_v61, %v14176_v10  ;;  %v14181_v20 = vld [vmem:[#allocation20_spill] sm:$0xff]  ;;  %v14185_v5 = vld [vmem:[#allocation37_spill] sm:$0xff] }
 0x1fd   : > { %v4930_v60 = vpop.f32.mrf.mxu0  ;;  %v4560_v25 = vadd.f32 %v14163_v1, %v3806_v63  ;;  %v4566_v58 = vadd.f32 %v14178_v50, %v3812_v36  ;;  %v14179_v59 = vld [vmem:[#allocation58_spill] sm:$0xff]  ;;  %v14183_v49 = vld [vmem:[#allocation68_spill] sm:$0xff] }
 0x1fe   : > { %v5098_v23 = vmul.f32 %v12682_v46, %v5059_v4  ;;  %v5057_v33 = vadd.f32 %v4930_v60, %v4559_v43  ;;  %v14172_v43 = vld [vmem:[#allocation12_spill] sm:$0xff]  ;;  %v4563_v4 = vadd.f32 %v14173_v42, %v3809_v6  ;;  %v3815_v6 = vadd.f32 %v14179_v59, %v3428_v35  ;;  %v14182_v11 = vld [vmem:[#allocation38_spill] sm:$0xff]  ;;  %v14187_v42 = vld [vmem:[#allocation71_spill] sm:$0xff] }
 0x1ff   : > { %v9807_v3 = vpop.f32.mrf.mxu0  ;;  %v12741_v63 = vadd.f32 %v14172_v43, %v14171_v51  ;;  %v14184_v53 = vld [vmem:[#allocation60_spill] sm:$0xff]  ;;  %v14186_v51 = vld [vmem:[#allocation30_spill] sm:$0xff] }
 0x200   : > { %v5137_v8 = vadd.f32 %v12701_v57, %v5098_v23  ;;  %v5096_v45 = vmul.f32 %v12682_v46, %v5057_v33  ;;  %v5060_v30 = vadd.f32 %v9807_v3, %v4562_v29  ;;  %v14175_v23 = vld [vmem:[#allocation14_spill] sm:$0xff]  ;;  %v3813_v36 = vadd.f32 %v14184_v53, %v3426_v7  ;;  %v14197_v53 = vld [vmem:[#allocation64_spill] sm:$0xff] }
 0x201   : > { %v4933_v9 = vpop.f32.mrf.mxu0  ;;  %v12750_v33 = vadd.f32 %v14175_v23, %v2937_v16  ;;  %v2941_v16 = vadd.f32 %v14182_v11, %v12659_v17  ;;  %v12774_v43 = vadd.f32 %v14186_v51, %v14185_v5  ;;  %v4569_v17 = vadd.f32 %v14187_v42, %v3815_v6  ;;  %v14189_v23 = vld [vmem:[#allocation32_spill] sm:$0xff]  ;;  %v14190_v61 = vld [vmem:[#allocation74_spill] sm:$0xff]  ;;  %v14198_v5 = vld [vmem:[#allocation31_spill] sm:$0xff] }
 0x202   : > { %v5169_v2 = vmax.f32 %v5137_v8, 0.0  ;;  %v5135_v32 = vadd.f32 %v12701_v57, %v5096_v45  ;;  %v5099_v55 = vmul.f32 %v12682_v46, %v5060_v30  ;;  %v5058_v15 = vadd.f32 %v4933_v9, %v4560_v25  ;;  %v14180_v30 = vld [vmem:[#allocation35_spill] sm:$0xff]  ;;  %v12768_v9 = vpop.f32.mrf.mxu1  ;;  %v14199_v51 = vld [vmem:[#allocation45_spill] sm:$0xff] }
 0x203   : > { %v9810_v62 = vpop.f32.mrf.mxu0  ;;  %v12762_v31 = vadd.f32 %v14181_v20, %v14180_v30  ;;  %v12781_v10 = vadd.f32 %v14189_v23, %v2941_v16  ;;  %v4567_v50 = vadd.f32 %v14190_v61, %v3813_v36  ;;  %v14192_v30 = vld [vmem:[#allocation40_spill] sm:$0xff]  ;;  %v14193_v20 = vld [vmem:[#allocation34_spill] sm:$0xff]  ;;  %v3819_v36 = vadd.f32 %v14197_v53, %v12705_v0 }
 0x204   : > { %5256 = vst [vmem:[#allocation2 + $0x31] sm:$0xff] %v5169_v2  ;;  %v5167_v41 = vmax.f32 %v5135_v32, 0.0  ;;  %v5138_v60 = vadd.f32 %v12701_v57, %v5099_v55  ;;  %v5097_v18 = vmul.f32 %v12682_v46, %v5058_v15  ;;  %v5063_v29 = vadd.f32 %v9810_v62, %v4565_v54  ;;  %v14195_v16 = vld [vmem:[#allocation36_spill] sm:$0xff] }
 0x205   : > { %v4946_v3 = vpop.f32.mrf.mxu0  ;;  %v4564_v54 = vadd.f32 %v14183_v49, %v3810_v56  ;;  %v12795_v11 = vadd.f32 %v14193_v20, %v14192_v30  ;;  %v14196_v49 = vld [vmem:[#allocation77_spill] sm:$0xff]  ;;  %v2945_v42 = vadd.f32 %v14199_v51, %v12662_v24  ;;  %v14202_v0 = vld [vmem:[#allocation80_spill] sm:$0xff] }
 0x206   : > { %5254 = vst [vmem:[#allocation2 + $0x19] sm:$0xff] %v5167_v41  ;;  %v5170_v1 = vmax.f32 %v5138_v60, 0.0  ;;  %v5136_v25 = vadd.f32 %v12701_v57, %v5097_v18  ;;  %v5102_v8 = vmul.f32 %v12682_v46, %v5063_v29  ;;  %v5061_v45 = vadd.f32 %v4946_v3, %v4563_v4  ;;  %v14188_v4 = vld [vmem:[#allocation61_spill] sm:$0xff] }
 0x207   : > { %v9811_v35 = vpop.f32.mrf.mxu0  ;;  %v3816_v47 = vadd.f32 %v14188_v4, %v3429_v12  ;;  %v10415_v12 = vld [vmem:[%s14000_s4 + $0xb0] sm:$0xff]  }
 0x208   : > { %5257 = vst [vmem:[#allocation2 + $0x39] sm:$0xff] %v5170_v1  ;;  %v5168_v32 = vmax.f32 %v5136_v25, 0.0  ;;  %v5141_v55 = vadd.f32 %v12701_v57, %v5102_v8  ;;  %v5100_v15 = vmul.f32 %v12682_v46, %v5061_v45  ;;  %v5064_v40 = vadd.f32 %v9811_v35, %v4566_v58  ;;  %v14191_v58 = vld [vmem:[#allocation63_spill] sm:$0xff] }
 0x209   : > { %v4949_v56 = vpop.f32.mrf.mxu0  ;;  %v5384_v7 = vpack.c.bf16 %v5170_v1, %v5169_v2  ;;  %v3814_v59 = vadd.f32 %v14191_v58, %v12695_v39  ;;  %v12789_v2 = vpop.f32.mrf.mxu1  ;;  %v14194_v39 = vld [vmem:[#allocation42_spill] sm:$0xff]  ;;  %v14201_v4 = vld [vmem:[#allocation39_spill] sm:$0xff] }
 0x20a   : > { %5255 = vst [vmem:[#allocation2 + $0x21] sm:$0xff] %v5168_v32  ;;  %v5173_v62 = vmax.f32 %v5141_v55, 0.0  ;;  %v5139_v60 = vadd.f32 %v12701_v57, %v5100_v15  ;;  %v5103_v18 = vmul.f32 %v12682_v46, %v5064_v40  ;;  %v5062_v29 = vadd.f32 %v4949_v56, %v4564_v54 }
 0x20b   : > { %v9814_v6 = vpop.f32.mrf.mxu0  ;;  %v5383_v3 = vpack.c.bf16 %v5168_v32, %v5167_v41  ;;  %v12799_v41 = vadd.f32 %v14195_v16, %v14194_v39  ;;  %v4570_v54 = vadd.f32 %v14196_v49, %v3816_v47  ;;  %v4568_v56 = vadd.f32 %v14202_v0, %v3814_v59  ;;  %v12819_v23 = vpop.f32.mrf.mxu1  ;;  %v10420_v0 = vld [vmem:[%s14000_s4 + $0xf0] sm:$0xff]  }
 0x20c   : > { %5260 = vst [vmem:[#allocation2 + $0x61] sm:$0xff] %v5173_v62  ;;  %v5171_v1 = vmax.f32 %v5139_v60, 0.0  ;;  %v5142_v25 = vadd.f32 %v12701_v57, %v5103_v18  ;;  %v5101_v8 = vmul.f32 %v12682_v46, %v5062_v29  ;;  %v5067_v45 = vadd.f32 %v9814_v6, %v4569_v17  ;;  %v14200_v17 = vld [vmem:[#allocation43_spill] sm:$0xff]  ;;  %v14203_v60 = vld [vmem:[#allocation66_spill] sm:$0xff] }
 0x20d   : > { %v4962_v35 = vpop.f32.mrf.mxu0  ;;  %9853 = vmatmul.mubr.bf16.vlgmr.msra.gmra.mxu1 %v5383_v3  ;;  %v12811_v47 = vadd.f32 %v14201_v4, %v14200_v17  ;;  %v3817_v18 = vadd.f32 %v14203_v60, %v12711_v37  ;;  %v14204_v6 = vld [vmem:[#allocation83_spill] sm:$0xff]  ;;  %v14209_v60 = vld [vmem:[#allocation70_spill] sm:$0xff] }
 0x20e   : > { %5258 = vst [vmem:[#allocation2 + $0x49] sm:$0xff] %v5171_v1  ;;  %v5174_v32 = vmax.f32 %v5142_v25, 0.0  ;;  %v5140_v55 = vadd.f32 %v12701_v57, %v5101_v8  ;;  %v5106_v15 = vmul.f32 %v12682_v46, %v5067_v45  ;;  %v5065_v40 = vadd.f32 %v4962_v35, %v4567_v50  ;;  %9856 = vmatprep.mubr.bf16.mxu1 %v5384_v7  ;;  %v10416_v7 = vld [vmem:[%s14000_s4 + $0xa8] sm:$0xff]   ;;  %v14205_v37 = vld [vmem:[#allocation67_spill] sm:$0xff]  ;;  %v14206_v8 = vld [vmem:[#allocation69_spill] sm:$0xff] }
 0x20f   : > { %9933 = vmatpush3.bf16.msra.mxu1 %v14198_v5  ;;  %v9815_v29 = vpop.f32.mrf.mxu0  ;;  %v5291_v59 = vld [vmem:[#allocation2 + $0x38] sm:$0xff]  ;;  %v4573_v3 = vadd.f32 %v14204_v6, %v3819_v36  ;;  %v3820_v25 = vadd.f32 %v14205_v37, %v12715_v21  ;;  %v3818_v45 = vadd.f32 %v14206_v8, %v12718_v38  ;;  %v5290_v36 = vld [vmem:[#allocation2 + $0x30] sm:$0xff] }
 0x210   : > { %9934 = vmatprep.subr.bf16.mxu1 %v10415_v12  ;;  %5261 = vst [vmem:[#allocation2 + $0x69] sm:$0xff] %v5174_v32  ;;  %v5172_v61 = vmax.f32 %v5140_v55, 0.0  ;;  %v12822_v24 = vadd.f32 %v12701_v57, %v5106_v15  ;;  %v5104_v50 = vmul.f32 %v12682_v46, %v5065_v40  ;;  %v5068_v58 = vadd.f32 %v9815_v29, %v4570_v54  ;;  %v5288_v35 = vld [vmem:[#allocation2 + $0x18] sm:$0xff]  ;;  %v14207_v55 = vld [vmem:[#allocation86_spill] sm:$0xff] }
 0x211   : > { %v4965_v30 = vpop.f32.mrf.mxu0  ;;  %v5289_v20 = vld [vmem:[#allocation2 + $0x20] sm:$0xff]  ;;  %v5386_v39 = vpack.c.bf16 %v5174_v32, %v5173_v62  ;;  %v4571_v21 = vadd.f32 %v14207_v55, %v3817_v18  ;;  %v12838_v38 = vpack.c.bf16 %v5291_v59, %v5290_v36  ;;  %v12840_v32 = vpop.f32.mrf.mxu1  ;;  %v3823_v18 = vadd.f32 %v14209_v60, %v12728_v19  ;;  %v14210_v29 = vld [vmem:[#allocation72_spill] sm:$0xff] }
 0x212   : > { %5259 = vst [vmem:[#allocation2 + $0x51] sm:$0xff] %v5172_v61  ;;  %v5177_v16 = vmax.f32 %v12822_v24, 0.0  ;;  %v12832_v49 = vadd.f32 %v12701_v57, %v5104_v50  ;;  %v5107_v54 = vmul.f32 %v12682_v46, %v5068_v58  ;;  %v5066_v53 = vadd.f32 %v4965_v30, %v4568_v56  ;;  %v14213_v30 = vld [vmem:[#allocation53_spill] sm:$0xff] }
 0x213   : > { %9935 = vmatpush3.bf16.msra.mxu1 %v10415_v12  ;;  %v9818_v15 = vpop.f32.mrf.mxu0  ;;  %v12836_v40 = vpack.c.bf16 %v5289_v20, %v5288_v35  ;;  %v5385_v62 = vpack.c.bf16 %v5172_v61, %v5171_v1  ;;  %v10417_v12 = vld [vmem:[%s14000_s4 + $0xa0] sm:$0xff]   ;;  %v3821_v61 = vadd.f32 %v14210_v29, %v12737_v13  ;;  %v4572_v19 = vadd.f32 %v12635_v28, %v3818_v45  ;;  %v12867_v20 = vpop.f32.mrf.mxu1  ;;  %v10418_v28 = vld [vmem:[%s14000_s4 + $0x98] sm:$0xff]   ;;  %v14214_v35 = vld [vmem:[#allocation75_spill] sm:$0xff] }
 0x214   : > { %9936 = vmatprep.subr.bf16.mxu1 %v10416_v7  ;;  %5264 = vst [vmem:[#allocation2 + $0x91] sm:$0xff] %v5177_v16  ;;  %v5175_v5 = vmax.f32 %v12832_v49, 0.0  ;;  %v5146_v51 = vadd.f32 %v12701_v57, %v5107_v54  ;;  %v5105_v17 = vmul.f32 %v12682_v46, %v5066_v53  ;;  %v5071_v4 = vadd.f32 %v9818_v15, %v4573_v3  ;;  %v14208_v1 = vld [vmem:[#allocation89_spill] sm:$0xff] }
 0x215   : > { %v4574_v56 = vadd.f32 %v14208_v1, %v3820_v25  ;;  %9901 = vmatmul.mubr.bf16.vlgmr.msra.gmra.mxu0 %v12836_v40  ;;  %v4978_v24 = vpop.f32.mrf.mxu0  ;;  %9857 = vmatmul.mubr.bf16.gmra.mxu1 %v5385_v62  ;;  %v14211_v3 = vld [vmem:[#allocation41_spill] sm:$0xff]  ;;  %v4575_v45 = vadd.f32 %v12688_v14, %v3821_v61  ;;  %v3822_v36 = vadd.f32 %v14214_v35, %v12750_v33  ;;  %v5292_v1 = vld [vmem:[#allocation2 + $0x48] sm:$0xff] }
 0x216   : > { %5262 = vst [vmem:[#allocation2 + $0x79] sm:$0xff] %v5175_v5  ;;  %v5178_v50 = vmax.f32 %v5146_v51, 0.0  ;;  %v5144_v58 = vadd.f32 %v12701_v57, %v5105_v17  ;;  %v5110_v59 = vmul.f32 %v12682_v46, %v5071_v4  ;;  %v5069_v6 = vadd.f32 %v4978_v24, %v4571_v21  ;;  %9904 = vmatprep.mubr.bf16.mxu0 %v12838_v38  ;;  %v14212_v13 = vld [vmem:[#allocation73_spill] sm:$0xff] }
 0x217   : > { %9860 = vmatprep.mubr.bf16.mxu1 %v5386_v39  ;;  %v12861_v37 = vadd.f32 %v14211_v3, %v2945_v42  ;;  %v3824_v25 = vadd.f32 %v14212_v13, %v12741_v63  ;;  %v9819_v8 = vpop.f32.mrf.mxu0  ;;  %9937 = vmatpush3.bf16.msra.mxu1 %v10416_v7  ;;  %v5295_v53 = vld [vmem:[#allocation2 + $0x68] sm:$0xff]  ;;  %v4577_v7 = vadd.f32 %v12656_v44, %v3823_v18 }
 0x218   : > { %9981 = vmatpush3.bf16.msra.mxu0 %v14213_v30  ;;  %5265 = vst [vmem:[#allocation2 + $0x99] sm:$0xff] %v5178_v50  ;;  %v5176_v49 = vmax.f32 %v5144_v58, 0.0  ;;  %v12870_v54 = vadd.f32 %v12701_v57, %v5110_v59  ;;  %v5108_v39 = vmul.f32 %v12682_v46, %v5069_v6  ;;  %v5072_v42 = vadd.f32 %v9819_v8, %v4574_v56  ;;  %v10422_v63 = vld [vmem:[%s14000_s4 + $0xe8] sm:$0xff]   ;;  %v5294_v56 = vld [vmem:[#allocation2 + $0x60] sm:$0xff] }
 0x219   : > { %9938 = vmatprep.subr.bf16.mxu1 %v10417_v12  ;;  %9982 = vmatprep.subr.bf16.mxu0 %v10420_v0  ;;  %v4981_v55 = vpop.f32.mrf.mxu0  ;;  %v5293_v21 = vld [vmem:[#allocation2 + $0x50] sm:$0xff]  ;;  %v5388_v15 = vpack.c.bf16 %v5178_v50, %v5177_v16  ;;  %v12890_v14 = vpack.c.bf16 %v5295_v53, %v5294_v56  ;;  %v12892_v16 = vpop.f32.mrf.mxu1  ;;  %v14216_v59 = vld [vmem:[#allocation78_spill] sm:$0xff] }
 0x21a   : > { %5263 = vst [vmem:[#allocation2 + $0x81] sm:$0xff] %v5176_v49  ;;  %v5181_v62 = vmax.f32 %v12870_v54, 0.0  ;;  %v12885_v51 = vadd.f32 %v12701_v57, %v5108_v39  ;;  %v5111_v17 = vmul.f32 %v12682_v46, %v5072_v42  ;;  %v5070_v4 = vadd.f32 %v4981_v55, %v4572_v19  ;;  %v10421_v50 = vld [vmem:[%s14000_s4 + $0x90] sm:$0xff]  }
 0x21b   : > { %v9822_v44 = vpop.f32.mrf.mxu0  ;;  %v12888_v60 = vpack.c.bf16 %v5293_v21, %v5292_v1  ;;  %v5387_v33 = vpack.c.bf16 %v5176_v49, %v5175_v5  ;;  %9939 = vmatpush3.bf16.msra.mxu1 %v10417_v12  ;;  %v10423_v5 = vld [vmem:[%s14000_s4 + $0xe0] sm:$0xff]   ;;  %v4578_v12 = vadd.f32 %v12722_v26, %v3824_v25  ;;  %v3825_v6 = vadd.f32 %v14216_v59, %v12762_v31  ;;  %v14217_v26 = vld [vmem:[#allocation47_spill] sm:$0xff]  ;;  %v14218_v25 = vld [vmem:[#allocation44_spill] sm:$0xff]  ;;  %v12919_v42 = vpop.f32.mrf.mxu1 }
 0x21c   : > { %9983 = vmatpush3.bf16.msra.mxu0 %v10420_v0  ;;  %5268 = vst [vmem:[#allocation2 + $0xc1] sm:$0xff] %v5181_v62  ;;  %v5179_v18 = vmax.f32 %v12885_v51, 0.0  ;;  %v5150_v29 = vadd.f32 %v12701_v57, %v5111_v17  ;;  %v5109_v61 = vmul.f32 %v12682_v46, %v5070_v4  ;;  %v5075_v24 = vadd.f32 %v9822_v44, %v4577_v7  ;;  %v14215_v0 = vld [vmem:[#allocation76_spill] sm:$0xff]  ;;  %v14219_v49 = vld [vmem:[#allocation79_spill] sm:$0xff] }
 0x21d   : > { %9940 = vmatprep.subr.bf16.mxu1 %v10418_v28  ;;  %9984 = vmatprep.subr.bf16.mxu0 %v10422_v63  ;;  %v3827_v58 = vadd.f32 %v14215_v0, %v12754_v27  ;;  %v4994_v3 = vpop.f32.mrf.mxu0  ;;  %v12914_v27 = vadd.f32 %v14218_v25, %v14217_v26  ;;  %v4576_v31 = vadd.f32 %v12745_v34, %v3822_v36  ;;  %v10424_v34 = vld [vmem:[%s14000_s4 + $0x88] sm:$0xff]   ;;  %v14220_v36 = vld [vmem:[#allocation81_spill] sm:$0xff]  ;;  %v10426_v59 = vld [vmem:[%s14000_s4 + $0xd0] sm:$0xff]  }
 0x21e   : > { %9905 = vmatmul.mubr.bf16.gmra.mxu0 %v12888_v60  ;;  %9861 = vmatmul.mubr.bf16.gmra.mxu1 %v5387_v33  ;;  %5266 = vst [vmem:[#allocation2 + $0xa9] sm:$0xff] %v5179_v18  ;;  %v5182_v19 = vmax.f32 %v5150_v29, 0.0  ;;  %v5148_v13 = vadd.f32 %v12701_v57, %v5109_v61  ;;  %v5114_v8 = vmul.f32 %v12682_v46, %v5075_v24  ;;  %v5296_v33 = vld [vmem:[#allocation2 + $0x78] sm:$0xff]  ;;  %v5298_v29 = vld [vmem:[#allocation2 + $0x90] sm:$0xff] }
 0x21f   : > { %v5073_v30 = vadd.f32 %v4994_v3, %v4575_v45  ;;  %9908 = vmatprep.mubr.bf16.mxu0 %v12890_v14  ;;  %9864 = vmatprep.mubr.bf16.mxu1 %v5388_v15  ;;  %v3828_v54 = vadd.f32 %v14219_v49, %v12774_v43  ;;  %v9823_v39 = vpop.f32.mrf.mxu0  ;;  %v5299_v55 = vld [vmem:[#allocation2 + $0x98] sm:$0xff]  ;;  %v3826_v21 = vadd.f32 %v14220_v36, %v12781_v10 }
 0x220   : > { %9941 = vmatpush3.bf16.msra.mxu1 %v10418_v28  ;;  %9985 = vmatpush3.bf16.msra.mxu0 %v10422_v63  ;;  %5269 = vst [vmem:[#allocation2 + $0xc9] sm:$0xff] %v5182_v19  ;;  %v5180_v53 = vmax.f32 %v5148_v13, 0.0  ;;  %v12922_v7 = vadd.f32 %v12701_v57, %v5114_v8  ;;  %v5076_v35 = vadd.f32 %v9823_v39, %v4578_v12  ;;  %v10425_v43 = vld [vmem:[%s14000_s4 + $0xd8] sm:$0xff]  }
 0x221   : > { %v5112_v45 = vmul.f32 %v12682_v46, %v5073_v30  ;;  %9942 = vmatprep.subr.bf16.mxu1 %v10421_v50  ;;  %9986 = vmatprep.subr.bf16.mxu0 %v10423_v5  ;;  %v4581_v28 = vadd.f32 %v12768_v9, %v3827_v58  ;;  %v4579_v63 = vadd.f32 %v12789_v2, %v3825_v6  ;;  %v4997_v15 = vpop.f32.mrf.mxu0  ;;  %v5297_v51 = vld [vmem:[#allocation2 + $0x80] sm:$0xff]  ;;  %v14222_v3 = vld [vmem:[#allocation84_spill] sm:$0xff] }
 0x222   : > { %v5390_v17 = vpack.c.bf16 %v5182_v19, %v5181_v62  ;;  %5267 = vst [vmem:[#allocation2 + $0xb1] sm:$0xff] %v5180_v53  ;;  %v5185_v4 = vmax.f32 %v12922_v7, 0.0  ;;  %v5115_v56 = vmul.f32 %v12682_v46, %v5076_v35  ;;  %v5074_v44 = vadd.f32 %v4997_v15, %v4576_v31  ;;  %v12944_v62 = vpop.f32.mrf.mxu1 }
 0x223   : > { %v12937_v1 = vadd.f32 %v12701_v57, %v5112_v45  ;;  %v9826_v9 = vpop.f32.mrf.mxu0  ;;  %v12940_v61 = vpack.c.bf16 %v5297_v51, %v5296_v33  ;;  %v12942_v2 = vpack.c.bf16 %v5299_v55, %v5298_v29  ;;  %v5389_v10 = vpack.c.bf16 %v5180_v53, %v5179_v18  ;;  %v10427_v18 = vld [vmem:[%s14000_s4 + $0x80] sm:$0xff]  }
 0x224   : > { %9943 = vmatpush3.bf16.msra.mxu1 %v10421_v50  ;;  %9987 = vmatpush3.bf16.msra.mxu0 %v10423_v5  ;;  %5272 = vst [vmem:[#allocation2 + $0xf1] sm:$0xff] %v5185_v4  ;;  %v5154_v12 = vadd.f32 %v12701_v57, %v5115_v56  ;;  %v5113_v0 = vmul.f32 %v12682_v46, %v5074_v44  ;;  %v14221_v5 = vld [vmem:[#allocation82_spill] sm:$0xff]  ;;  %v12969_v39 = vpop.f32.mrf.mxu1  ;;  %v5302_v44 = vld [vmem:[#allocation2 + $0xc0] sm:$0xff] }
 0x225   : > { %v5183_v24 = vmax.f32 %v12937_v1, 0.0  ;;  %v5079_v58 = vadd.f32 %v9826_v9, %v4581_v28  ;;  %9944 = vmatprep.subr.bf16.mxu1 %v10424_v34  ;;  %9988 = vmatprep.subr.bf16.mxu0 %v10425_v43  ;;  %v4582_v50 = vadd.f32 %v12819_v23, %v3828_v54  ;;  %v3831_v6 = vadd.f32 %v14221_v5, %v12795_v11  ;;  %v5010_v13 = vpop.f32.mrf.mxu0  ;;  %v14223_v23 = vld [vmem:[#allocation51_spill] sm:$0xff]  ;;  %v5300_v56 = vld [vmem:[#allocation2 + $0xa8] sm:$0xff] }
 0x226   : > { %v3829_v19 = vadd.f32 %v14222_v3, %v12799_v41  ;;  %9909 = vmatmul.mubr.bf16.gmra.mxu0 %v12940_v61  ;;  %9865 = vmatmul.mubr.bf16.gmra.mxu1 %v5389_v10  ;;  %v5186_v8 = vmax.f32 %v5154_v12, 0.0  ;;  %v5152_v30 = vadd.f32 %v12701_v57, %v5113_v0  ;;  %v5077_v25 = vadd.f32 %v5010_v13, %v4579_v63  ;;  %v14224_v41 = vld [vmem:[#allocation85_spill] sm:$0xff] }
 0x227   : > { %5270 = vst [vmem:[#allocation2 + $0xd9] sm:$0xff] %v5183_v24  ;;  %v5118_v26 = vmul.f32 %v12682_v46, %v5079_v58  ;;  %9912 = vmatprep.mubr.bf16.mxu0 %v12942_v2  ;;  %9868 = vmatprep.mubr.bf16.mxu1 %v5390_v17  ;;  %v2949_v11 = vadd.f32 %v14223_v23, %v12665_v52  ;;  %v9827_v54 = vpop.f32.mrf.mxu0  ;;  %v5303_v55 = vld [vmem:[#allocation2 + $0xc8] sm:$0xff]  ;;  %v10429_v0 = vld [vmem:[%s14000_s4 + $0xc0] sm:$0xff]  }
 0x228   : > { %v4580_v31 = vadd.f32 %v12840_v32, %v3826_v21  ;;  %v3832_v49 = vadd.f32 %v14224_v41, %v12811_v47  ;;  %9945 = vmatpush3.bf16.msra.mxu1 %v10424_v34  ;;  %9989 = vmatpush3.bf16.msra.mxu0 %v10425_v43  ;;  %5273 = vst [vmem:[#allocation2 + $0xf9] sm:$0xff] %v5186_v8  ;;  %v5184_v53 = vmax.f32 %v5152_v30, 0.0  ;;  %v10428_v52 = vld [vmem:[%s14000_s4 + $0xc8] sm:$0xff]   ;;  %v12981_v47 = vld [vmem:[%s14000_s4 + $0x138] sm:$0xff]   ;;  %v14225_v43 = vld [vmem:[#allocation87_spill] sm:$0xff] }
 0x229   : > { %v12972_v7 = vadd.f32 %v12701_v57, %v5118_v26  ;;  %v5116_v45 = vmul.f32 %v12682_v46, %v5077_v25  ;;  %v5080_v35 = vadd.f32 %v9827_v54, %v4582_v50  ;;  %9990 = vmatprep.subr.bf16.mxu0 %v10426_v59  ;;  %9946 = vmatprep.subr.bf16.mxu1 %v10427_v18  ;;  %v5013_v63 = vpop.f32.mrf.mxu0  ;;  %v5301_v36 = vld [vmem:[#allocation2 + $0xb0] sm:$0xff]  ;;  %v14226_v58 = vld [vmem:[#allocation49_spill] sm:$0xff]  ;;  %v14228_v50 = vld [vmem:[#allocation88_spill] sm:$0xff] }
 0x22a   : > { %v4585_v32 = vadd.f32 %v12867_v20, %v3831_v6  ;;  %v4583_v34 = vadd.f32 %v12892_v16, %v3829_v19  ;;  %v3830_v28 = vadd.f32 %v14225_v43, %v12861_v37  ;;  %v5392_v21 = vpack.c.bf16 %v5186_v8, %v5185_v4  ;;  %5271 = vst [vmem:[#allocation2 + $0xe1] sm:$0xff] %v5184_v53  ;;  %v4544_v4 = vpop.f32.mrf.mxu1  ;;  %v14229_v30 = vld [vmem:[#allocation50_spill] sm:$0xff]  ;;  %v14230_v26 = vld [vmem:[#allocation48_spill] sm:$0xff] }
 0x22b   : > { %v5189_v15 = vmax.f32 %v12972_v7, 0.0  ;;  %v12989_v51 = vadd.f32 %v12701_v57, %v5116_v45  ;;  %v5119_v17 = vmul.f32 %v12682_v46, %v5080_v35  ;;  %v5078_v1 = vadd.f32 %v5013_v63, %v4580_v31  ;;  %v9830_v20 = vpop.f32.mrf.mxu0  ;;  %v14231_v25 = vld [vmem:[#allocation52_spill] sm:$0xff]  ;;  %v14232_v31 = vld [vmem:[#allocation90_spill] sm:$0xff] }
 0x22c   : > { %v12992_v33 = vpack.c.bf16 %v5301_v36, %v5300_v56  ;;  %v12994_v16 = vpack.c.bf16 %v5303_v55, %v5302_v44  ;;  %v5391_v37 = vpack.c.bf16 %v5184_v53, %v5183_v24  ;;  %9991 = vmatpush3.bf16.msra.mxu0 %v10426_v59  ;;  %9947 = vmatpush3.bf16.msra.mxu1 %v10427_v18  ;;  %v14227_v24 = vld [vmem:[#allocation46_spill] sm:$0xff]  ;;  %v9787_v54 = vpop.f32.mrf.mxu1 }
 0x22d   : > { %5276 = vst [vmem:[#allocation2 + $0x121] sm:$0xff] %v5189_v15  ;;  %v5187_v29 = vmax.f32 %v12989_v51, 0.0  ;;  %v5158_v9 = vadd.f32 %v12701_v57, %v5119_v17  ;;  %v5117_v10 = vmul.f32 %v12682_v46, %v5078_v1  ;;  %v5083_v12 = vadd.f32 %v9830_v20, %v4585_v32  ;;  %9992 = vmatprep.subr.bf16.mxu0 %v10428_v52  ;;  %v5026_v6 = vpop.f32.mrf.mxu0  ;;  %v5306_v1 = vld [vmem:[#allocation2 + $0xf0] sm:$0xff] }
 0x22e   : > { %10028 = vmatprep.subr.bf16.mxu1 %v12981_v47  ;;  %v3446_v59 = vadd.f32 %v14227_v24, %v14226_v58  ;;  %v4586_v18 = vadd.f32 %v12919_v42, %v3832_v49  ;;  %v3835_v5 = vadd.f32 %v14228_v50, %v12914_v27  ;;  %9913 = vmatmul.mubr.bf16.gmra.mxu0 %v12992_v33  ;;  %v5304_v17 = vld [vmem:[#allocation2 + $0xd8] sm:$0xff] }
 0x22f   : > { %9869 = vmatmul.mubr.bf16.gmra.mxu1 %v5391_v37  ;;  %5274 = vst [vmem:[#allocation2 + $0x109] sm:$0xff] %v5187_v29  ;;  %v5190_v3 = vmax.f32 %v5158_v9, 0.0  ;;  %v5156_v19 = vadd.f32 %v12701_v57, %v5117_v10  ;;  %v5122_v13 = vmul.f32 %v12682_v46, %v5083_v12  ;;  %v5081_v8 = vadd.f32 %v5026_v6, %v4583_v34  ;;  %v9831_v49 = vpop.f32.mrf.mxu0  ;;  %v5307_v55 = vld [vmem:[#allocation2 + $0xf8] sm:$0xff] }
 0x230   : > { %9916 = vmatprep.mubr.bf16.mxu0 %v12994_v16  ;;  %9872 = vmatprep.mubr.bf16.mxu1 %v5392_v21  ;;  %v3449_v42 = vadd.f32 %v14230_v26, %v14229_v30  ;;  %v3447_v23 = vadd.f32 %v14231_v25, %v2949_v11  ;;  %v4584_v27 = vadd.f32 %v12944_v62, %v3830_v28  ;;  %v13024_v11 = vld [vmem:[%s14000_s4 + $0x178] sm:$0xff]  }
 0x231   : > { %v3833_v41 = vadd.f32 %v14232_v31, %v3446_v59  ;;  %9993 = vmatpush3.bf16.msra.mxu0 %v10428_v52  ;;  %5277 = vst [vmem:[#allocation2 + $0x129] sm:$0xff] %v5190_v3  ;;  %v13017_v53 = vmax.f32 %v5156_v19, 0.0  ;;  %v5161_v7 = vadd.f32 %v12701_v57, %v5122_v13  ;;  %v5120_v45 = vmul.f32 %v12682_v46, %v5081_v8  ;;  %v5029_v34 = vpop.f32.mrf.mxu0  ;;  %v5305_v43 = vld [vmem:[#allocation2 + $0xe0] sm:$0xff] }
 0x232   : > { %v5084_v35 = vadd.f32 %v9831_v49, %v4586_v18  ;;  %9994 = vmatprep.subr.bf16.mxu0 %v10429_v0  ;;  %v4589_v62 = vadd.f32 %v12969_v39, %v3835_v5  ;;  %v3836_v52 = vadd.f32 %v12628_v48, %v3449_v42  ;;  %v3834_v32 = vadd.f32 %v12648_v22, %v3447_v23 }
 0x233   : > { %v5394_v28 = vpack.c.bf16 %v5190_v3, %v5189_v15  ;;  %5275 = vst [vmem:[#allocation2 + $0x111] sm:$0xff] %v13017_v53  ;;  %v5193_v63 = vmax.f32 %v5161_v7, 0.0  ;;  %v5159_v36 = vadd.f32 %v12701_v57, %v5120_v45  ;;  %v5082_v51 = vadd.f32 %v5029_v34, %v4584_v27  ;;  %v9834_v44 = vpop.f32.mrf.mxu0  ;;  %v4547_v15 = vpop.f32.mrf.mxu1 }
 0x234   : > { %v5123_v21 = vmul.f32 %v12682_v46, %v5084_v35  ;;  %v4587_v56 = vadd.f32 %v4544_v4, %v3833_v41  ;;  %v13032_v39 = vpack.c.bf16 %v5305_v43, %v5304_v17  ;;  %v13034_v48 = vpack.c.bf16 %v5307_v55, %v5306_v1  ;;  %v5310_v41 = vld [vmem:[#allocation2 + $0x120] sm:$0xff] }
 0x235   : > { %v5393_v22 = vpack.c.bf16 %v13017_v53, %v5187_v29  ;;  %9995 = vmatpush3.bf16.msra.mxu0 %v10429_v0  ;;  %5280 = vst [vmem:[#allocation2 + $0x151] sm:$0xff] %v5193_v63  ;;  %v5191_v20 = vmax.f32 %v5159_v36, 0.0  ;;  %v5121_v9 = vmul.f32 %v12682_v46, %v5082_v51  ;;  %v5087_v10 = vadd.f32 %v9834_v44, %v4589_v62  ;;  %v5042_v4 = vpop.f32.mrf.mxu0  ;;  %v5835_v17 = vld [vmem:[#allocation2 + $0x1a] sm:$0xff]  ;;  %v5836_v1 = vld [vmem:[#allocation2 + $0x22] sm:$0xff] }
 0x236   : > { %v5162_v37 = vadd.f32 %v12701_v57, %v5123_v21  ;;  %10076 = vmatprep.subr.bf16.mxu0 %v13024_v11  ;;  %v4590_v12 = vadd.f32 %v9787_v54, %v3836_v52  ;;  %9917 = vmatmul.mubr.bf16.gmra.mxu0 %v13032_v39  ;;  %v5085_v24 = vadd.f32 %v5042_v4, %v4587_v56  ;;  %v5308_v27 = vld [vmem:[#allocation2 + $0x108] sm:$0xff]  ;;  %v5837_v56 = vld [vmem:[#allocation2 + $0x32] sm:$0xff] }
 0x237   : > { %9873 = vmatmul.mubr.bf16.gmra.mxu1 %v5393_v22  ;;  %5278 = vst [vmem:[#allocation2 + $0x139] sm:$0xff] %v5191_v20  ;;  %v5160_v29 = vadd.f32 %v12701_v57, %v5121_v9  ;;  %v5126_v0 = vmul.f32 %v12682_v46, %v5087_v10  ;;  %9920 = vmatprep.mubr.bf16.mxu0 %v13034_v48  ;;  %v9835_v18 = vpop.f32.mrf.mxu0  ;;  %v5833_v52 = vld [vmem:[#allocation2 + $0x2] sm:$0xff]  ;;  %v10431_v10 = vld [vmem:[%s14000_s4 + $0x130] sm:$0xff]  }
 0x238   : > { %v13041_v58 = vmax.f32 %v5162_v37, 0.0  ;;  %9876 = vmatprep.mubr.bf16.mxu1 %v5394_v28  ;;  %v4588_v59 = vadd.f32 %v4547_v15, %v3834_v32  ;;  %v5124_v6 = vmul.f32 %v12682_v46, %v5085_v24  ;;  %v5088_v3 = vadd.f32 %v9835_v18, %v4590_v12  ;;  %v5311_v8 = vld [vmem:[#allocation2 + $0x128] sm:$0xff]  ;;  %v5838_v15 = vld [vmem:[#allocation2 + $0x3a] sm:$0xff]  ;;  %v5840_v4 = vld [vmem:[#allocation2 + $0x52] sm:$0xff] }
 0x239   : > { %v5192_v50 = vmax.f32 %v5160_v29, 0.0  ;;  %v5165_v5 = vadd.f32 %v12701_v57, %v5126_v0  ;;  %v5045_v19 = vpop.f32.mrf.mxu0  ;;  %v13060_v35 = vpack.c.bf16 %v5311_v8, %v5310_v41  ;;  %v5834_v32 = vld [vmem:[#allocation2 + $0xa] sm:$0xff]  ;;  %v13080_v37 = vpack.c.bf16 %v5836_v1, %v5835_v17  ;;  %v5841_v0 = vld [vmem:[#allocation2 + $0x62] sm:$0xff] }
 0x23a   : > { %5281 = vst [vmem:[#allocation2 + $0x159] sm:$0xff] %v13041_v58  ;;  %v5309_v13 = vld [vmem:[#allocation2 + $0x110] sm:$0xff]  ;;  %v5396_v30 = vpack.c.bf16 %v13041_v58, %v5193_v63  ;;  %v5163_v42 = vadd.f32 %v12701_v57, %v5124_v6  ;;  %v5127_v25 = vmul.f32 %v12682_v46, %v5088_v3  ;;  %v5086_v23 = vadd.f32 %v5045_v19, %v4588_v59  ;;  %v10432_v29 = vld [vmem:[%s14000_s4 + $0x128] sm:$0xff]   ;;  %v5846_v19 = vld [vmem:[#allocation2 + $0x9a] sm:$0xff] }
 0x23b   : > { %5279 = vst [vmem:[#allocation2 + $0x141] sm:$0xff] %v5192_v50  ;;  %v5197_v26 = vmax.f32 %v5165_v5, 0.0  ;;  %v13052_v31 = vpack.c.bf16 %v5309_v13, %v5308_v27  ;;  %v13054_v49 = vpack.c.bf16 %v5192_v50, %v5191_v20  ;;  %v5865_v21 = vpack.c.bf16 %v5834_v32, %v5833_v52  ;;  %v5839_v12 = vld [vmem:[#allocation2 + $0x4a] sm:$0xff]  ;;  %v10434_v50 = vld [vmem:[%s14000_s4 + $0x118] sm:$0xff]   ;;  %v5844_v6 = vld [vmem:[#allocation2 + $0x82] sm:$0xff] }
 0x23c   : > { %v5195_v54 = vmax.f32 %v5163_v42, 0.0  ;;  %v13057_v7 = vadd.f32 %v12701_v57, %v5127_v25  ;;  %v5125_v45 = vmul.f32 %v12682_v46, %v5086_v23  ;;  %v5314_v51 = vld [vmem:[#allocation2 + $0x150] sm:$0xff]  ;;  %v13082_v9 = vpack.c.bf16 %v5838_v15, %v5837_v56  ;;  %v5843_v5 = vld [vmem:[#allocation2 + $0x7a] sm:$0xff]  ;;  %v5849_v25 = vld [vmem:[#allocation2 + $0xc2] sm:$0xff] }
 0x23d   : > { %5284 = vst [vmem:[#allocation2 + $0x181] sm:$0xff] %v5197_v26  ;;  %v5842_v24 = vld [vmem:[#allocation2 + $0x6a] sm:$0xff]  ;;  %v13095_v59 = vpack.c.bf16 %v5840_v4, %v5839_v12  ;;  %v5845_v3 = vld [vmem:[#allocation2 + $0x92] sm:$0xff]  ;;  %v10439_v8 = vld [vmem:[%s14000_s4 + $0x160] sm:$0xff]  }
 0x23e   : > { %9921 = vmatmul.mubr.bf16.gmra.mxu0 %v13052_v31  ;;  %5282 = vst [vmem:[#allocation2 + $0x169] sm:$0xff] %v5195_v54  ;;  %v5198_v55 = vmax.f32 %v13057_v7, 0.0  ;;  %v5164_v62 = vadd.f32 %v12701_v57, %v5125_v45  ;;  %v5312_v34 = vld [vmem:[#allocation2 + $0x138] sm:$0xff]  ;;  %v13097_v18 = vpack.c.bf16 %v5842_v24, %v5841_v0  ;;  %v13118_v13 = vpack.c.bf16 %v5846_v19, %v5845_v3  ;;  %v5847_v26 = vld [vmem:[#allocation2 + $0xaa] sm:$0xff]  ;;  %v5852_v52 = vld [vmem:[#allocation2 + $0xe2] sm:$0xff] }
 0x23f   : > { %9877 = vmatmul.mubr.bf16.gmra.mxu1 %v13054_v49  ;;  %9924 = vmatprep.mubr.bf16.mxu0 %v13060_v35  ;;  %v5848_v42 = vld [vmem:[#allocation2 + $0xb2] sm:$0xff]  ;;  %v5850_v23 = vld [vmem:[#allocation2 + $0xca] sm:$0xff]  ;;  %v5857_v17 = vld [vmem:[#allocation2 + $0x122] sm:$0xff] }
 0x240   : > { %9880 = vmatprep.mubr.bf16.mxu1 %v5396_v30  ;;  %5285 = vst [vmem:[#allocation2 + $0x189] sm:$0xff] %v5198_v55  ;;  %v5196_v46 = vmax.f32 %v5164_v62, 0.0  ;;  %v10440_v30 = vld [vmem:[%s14000_s4 + $0x108] sm:$0xff]   ;;  %v13136_v27 = vpack.c.bf16 %v5848_v42, %v5847_v26  ;;  %v10442_v41 = vld [vmem:[%s14000_s4 + $0x150] sm:$0xff]   ;;  %v5851_v62 = vld [vmem:[#allocation2 + $0xda] sm:$0xff] }
 0x241   : > { %v5315_v28 = vld [vmem:[#allocation2 + $0x158] sm:$0xff]  ;;  %v10444_v45 = vld [vmem:[%s14000_s4 + $0x148] sm:$0xff]   ;;  %v10463_v7 = vld [vmem:[%s14000_s4 + $0x230] sm:$0xff]  }
 0x242   : > { %v5313_v43 = vld [vmem:[#allocation2 + $0x140] sm:$0xff]  ;;  %5283 = vst [vmem:[#allocation2 + $0x171] sm:$0xff] %v5196_v46  ;;  %v13071_v36 = vpack.c.bf16 %v5196_v46, %v5195_v54  ;;  %v13073_v57 = vpack.c.bf16 %v5315_v28, %v5314_v51  ;;  %v5853_v32 = vld [vmem:[#allocation2 + $0xf2] sm:$0xff]  ;;  %v5855_v28 = vld [vmem:[#allocation2 + $0x10a] sm:$0xff] }
 0x243   : > { %v13069_v63 = vpack.c.bf16 %v5313_v43, %v5312_v34  ;;  %v10443_v54 = vld [vmem:[%s14000_s4 + $0x100] sm:$0xff]   ;;  %v13156_v34 = vpack.c.bf16 %v5852_v52, %v5851_v62  ;;  %v10451_v51 = vld [vmem:[%s14000_s4 + $0x1f8] sm:$0xff]   ;;  %v5858_v1 = vld [vmem:[#allocation2 + $0x12a] sm:$0xff] }
 0x244   : > { %v5854_v46 = vld [vmem:[#allocation2 + $0xfa] sm:$0xff]  ;;  %v10448_v19 = vld [vmem:[%s14000_s4 + $0x1a8] sm:$0xff]   ;;  %v10453_v52 = vld [vmem:[%s14000_s4 + $0x190] sm:$0xff]  }
 0x245   : > { %v5316_v44 = vld [vmem:[#allocation2 + $0x168] sm:$0xff]  ;;  %v10445_v43 = vld [vmem:[%s14000_s4 + $0x140] sm:$0xff]  }
 0x246   : > { %9925 = vmatmul.mubr.bf16.gmra.mxu0 %v13069_v63  ;;  %v5862_v15 = vld [vmem:[#allocation2 + $0x15a] sm:$0xff] }
 0x247   : > { %9881 = vmatmul.mubr.bf16.gmra.mxu1 %v13071_v36  ;;  %9928 = vmatprep.mubr.bf16.mxu0 %v13073_v57  ;;  %v6446_v4 = vld [vmem:[#allocation2 + $0x21] sm:$0xff]  ;;  %v6445_v0 = vld [vmem:[#allocation2 + $0x19] sm:$0xff] }
 0x248   : > { %9948 = vmatprep.mubr.bf16.mxu1 %v5865_v21  ;;  %v5856_v21 = vld [vmem:[#allocation2 + $0x112] sm:$0xff]  ;;  %v6477_v24 = vpack.c.bf16 %v6446_v4, %v6445_v0  ;;  %v6468_v4 = vld [vmem:[#allocation2 + $0x129] sm:$0xff]  ;;  %v6467_v0 = vld [vmem:[#allocation2 + $0x121] sm:$0xff] }
 0x249   : > { %v5317_v22 = vld [vmem:[#allocation2 + $0x170] sm:$0xff]  ;;  %v13170_v56 = vpack.c.bf16 %v5856_v21, %v5855_v28  ;;  %v6453_v26 = vld [vmem:[#allocation2 + $0x79] sm:$0xff]  ;;  %v6459_v28 = vld [vmem:[#allocation2 + $0xc1] sm:$0xff] }
 0x24a   : > { %v13078_v20 = vpack.c.bf16 %v5317_v22, %v5316_v44  ;;  %v5860_v44 = vld [vmem:[#allocation2 + $0x142] sm:$0xff]  ;;  %v5861_v22 = vld [vmem:[#allocation2 + $0x152] sm:$0xff] }
 0x24b   : > { %v13180_v12 = vpack.c.bf16 %v5862_v15, %v5861_v22  ;;  %v10462_v22 = vld [vmem:[%s14000_s4 + $0x238] sm:$0xff]  }
 0x24c   : > { %v6463_v15 = vld [vmem:[#allocation2 + $0xf1] sm:$0xff] }
 0x24e   : > { %9929 = vmatmul.mubr.bf16.gmra.mxu0 %v13078_v20 }
 0x24f   : > { %9949 = vmatmul.mubr.bf16.vlgmr.msra.gmra.mxu1 %v13080_v37  ;;  %9996 = vmatprep.mubr.bf16.mxu0 %v12836_v40  ;;  %v10433_v40 = vld [vmem:[%s14000_s4 + $0x120] sm:$0xff]  }
 0x250   : > { %9952 = vmatprep.mubr.bf16.mxu1 %v13082_v9  ;;  %10029 = vmatpush3.bf16.msra.mxu1 %v12981_v47  ;;  %v10436_v47 = vld [vmem:[%s14000_s4 + $0x170] sm:$0xff]  }
 0x251   : > { %10030 = vmatprep.subr.bf16.mxu1 %v10431_v10 }
 0x254   : > { %10031 = vmatpush3.bf16.msra.mxu1 %v10431_v10 }
 0x255   : > { %10032 = vmatprep.subr.bf16.mxu1 %v10432_v29 }
 0x256   : > { %9997 = vmatmul.mubr.bf16.vlgmr.msra.gmra.mxu0 %v12838_v38  ;;  %v10438_v38 = vld [vmem:[%s14000_s4 + $0x168] sm:$0xff]  }
 0x257   : > { %9953 = vmatmul.mubr.bf16.gmra.mxu1 %v13095_v59  ;;  %10000 = vmatprep.mubr.bf16.mxu0 %v12888_v60  ;;  %v13116_v60 = vpack.c.bf16 %v5844_v6, %v5843_v5 }
 0x258   : > { %9956 = vmatprep.mubr.bf16.mxu1 %v13097_v18  ;;  %10033 = vmatpush3.bf16.msra.mxu1 %v10432_v29 }
 0x259   : > { %10077 = vmatpush3.bf16.msra.mxu0 %v13024_v11  ;;  %10034 = vmatprep.subr.bf16.mxu1 %v10433_v40  ;;  %v10437_v11 = vld [vmem:[%s14000_s4 + $0x110] sm:$0xff]  }
 0x25a   : > { %10078 = vmatprep.subr.bf16.mxu0 %v10436_v47 }
 0x25c   : > { %10035 = vmatpush3.bf16.msra.mxu1 %v10433_v40  ;;  %v6448_v40 = vld [vmem:[#allocation2 + $0x39] sm:$0xff] }
 0x25d   : > { %10079 = vmatpush3.bf16.msra.mxu0 %v10436_v47  ;;  %10036 = vmatprep.subr.bf16.mxu1 %v10434_v50  ;;  %v6450_v47 = vld [vmem:[#allocation2 + $0x51] sm:$0xff] }
 0x25e   : > { %10080 = vmatprep.subr.bf16.mxu0 %v10438_v38  ;;  %10001 = vmatmul.mubr.bf16.gmra.mxu0 %v12890_v14  ;;  %v10441_v14 = vld [vmem:[%s14000_s4 + $0x158] sm:$0xff]  }
 0x25f   : > { %9957 = vmatmul.mubr.bf16.gmra.mxu1 %v13116_v60  ;;  %10004 = vmatprep.mubr.bf16.mxu0 %v12940_v61  ;;  %v13138_v61 = vpack.c.bf16 %v5850_v23, %v5849_v25  ;;  %v6456_v25 = vld [vmem:[#allocation2 + $0x99] sm:$0xff] }
 0x260   : > { %9960 = vmatprep.mubr.bf16.mxu1 %v13118_v13  ;;  %10037 = vmatpush3.bf16.msra.mxu1 %v10434_v50  ;;  %v6447_v50 = vld [vmem:[#allocation2 + $0x31] sm:$0xff] }
 0x261   : > { %10081 = vmatpush3.bf16.msra.mxu0 %v10438_v38  ;;  %10038 = vmatprep.subr.bf16.mxu1 %v10437_v11  ;;  %v13193_v6 = vpack.c.bf16 %v6448_v40, %v6447_v50  ;;  %v6449_v38 = vld [vmem:[#allocation2 + $0x49] sm:$0xff]  ;;  %v10450_v23 = vld [vmem:[%s14000_s4 + $0x198] sm:$0xff]   ;;  %v7062_v50 = vld [vmem:[#allocation2 + $0x60] sm:$0xff] }
 0x262   : > { %10082 = vmatprep.subr.bf16.mxu0 %v10439_v8  ;;  %v13195_v3 = vpack.c.bf16 %v6450_v47, %v6449_v38  ;;  %v7063_v40 = vld [vmem:[#allocation2 + $0x68] sm:$0xff] }
 0x263   : > { %v7092_v38 = vpack.c.bf16 %v7063_v40, %v7062_v50  ;;  %v7074_v40 = vld [vmem:[#allocation2 + $0xf0] sm:$0xff]  ;;  %v10469_v50 = vld [vmem:[%s14000_s4 + $0x200] sm:$0xff]  }
 0x264   : > { %10039 = vmatpush3.bf16.msra.mxu1 %v10437_v11  ;;  %v6454_v11 = vld [vmem:[#allocation2 + $0x81] sm:$0xff] }
 0x265   : > { %10083 = vmatpush3.bf16.msra.mxu0 %v10439_v8  ;;  %10040 = vmatprep.subr.bf16.mxu1 %v10440_v30  ;;  %v6451_v8 = vld [vmem:[#allocation2 + $0x61] sm:$0xff]  ;;  %v13209_v42 = vpack.c.bf16 %v6454_v11, %v6453_v26  ;;  %v7064_v11 = vld [vmem:[#allocation2 + $0x78] sm:$0xff] }
 0x266   : > { %10084 = vmatprep.subr.bf16.mxu0 %v10441_v14  ;;  %10005 = vmatmul.mubr.bf16.gmra.mxu0 %v12942_v2  ;;  %v10446_v2 = vld [vmem:[%s14000_s4 + $0x1b8] sm:$0xff]  }
 0x267   : > { %9961 = vmatmul.mubr.bf16.gmra.mxu1 %v13136_v27  ;;  %10008 = vmatprep.mubr.bf16.mxu0 %v12992_v33  ;;  %v13158_v33 = vpack.c.bf16 %v5854_v46, %v5853_v32  ;;  %v6460_v32 = vld [vmem:[#allocation2 + $0xc9] sm:$0xff] }
 0x268   : > { %9964 = vmatprep.mubr.bf16.mxu1 %v13138_v61  ;;  %10041 = vmatpush3.bf16.msra.mxu1 %v10440_v30  ;;  %v10456_v46 = vld [vmem:[%s14000_s4 + $0x188] sm:$0xff]   ;;  %v13247_v21 = vpack.c.bf16 %v6460_v32, %v6459_v28 }
 0x269   : > { %10085 = vmatpush3.bf16.msra.mxu0 %v10441_v14  ;;  %10042 = vmatprep.subr.bf16.mxu1 %v10443_v54  ;;  %v10452_v14 = vld [vmem:[%s14000_s4 + $0x1f0] sm:$0xff]  }
 0x26a   : > { %10086 = vmatprep.subr.bf16.mxu0 %v10442_v41 }
 0x26c   : > { %10043 = vmatpush3.bf16.msra.mxu1 %v10443_v54  ;;  %v6455_v54 = vld [vmem:[#allocation2 + $0x91] sm:$0xff] }
 0x26d   : > { %10087 = vmatpush3.bf16.msra.mxu0 %v10442_v41  ;;  %10124 = vmatprep.subr.bf16.mxu1 %v10446_v2  ;;  %v10454_v41 = vld [vmem:[%s14000_s4 + $0x1e8] sm:$0xff]  }
 0x26e   : > { %10088 = vmatprep.subr.bf16.mxu0 %v10444_v45  ;;  %10009 = vmatmul.mubr.bf16.gmra.mxu0 %v12994_v16  ;;  %v13172_v16 = vpack.c.bf16 %v5858_v1, %v5857_v17  ;;  %v10458_v17 = vld [vmem:[%s14000_s4 + $0x1d0] sm:$0xff]   ;;  %v10459_v1 = vld [vmem:[%s14000_s4 + $0x180] sm:$0xff]  }
 0x26f   : > { %9965 = vmatmul.mubr.bf16.gmra.mxu1 %v13156_v34  ;;  %10012 = vmatprep.mubr.bf16.mxu0 %v13032_v39  ;;  %v5859_v39 = vld [vmem:[#allocation2 + $0x13a] sm:$0xff] }
 0x270   : > { %9968 = vmatprep.mubr.bf16.mxu1 %v13158_v33  ;;  %v13178_v10 = vpack.c.bf16 %v5860_v44, %v5859_v39  ;;  %v6464_v39 = vld [vmem:[#allocation2 + $0xf9] sm:$0xff]  ;;  %v10460_v44 = vld [vmem:[%s14000_s4 + $0x1c8] sm:$0xff]  }
 0x271   : > { %10089 = vmatpush3.bf16.msra.mxu0 %v10444_v45  ;;  %v13227_v45 = vpack.c.bf16 %v6456_v25, %v6455_v54 }
 0x272   : > { %10090 = vmatprep.subr.bf16.mxu0 %v10445_v43 }
 0x275   : > { %10091 = vmatpush3.bf16.msra.mxu0 %v10445_v43  ;;  %v10457_v43 = vld [vmem:[%s14000_s4 + $0x1d8] sm:$0xff]  }
 0x276   : > { %10172 = vmatprep.subr.bf16.mxu0 %v10451_v51  ;;  %10013 = vmatmul.mubr.bf16.gmra.mxu0 %v13034_v48  ;;  %v5863_v48 = vld [vmem:[#allocation2 + $0x16a] sm:$0xff] }
 0x277   : > { %9969 = vmatmul.mubr.bf16.gmra.mxu1 %v13170_v56  ;;  %10016 = vmatprep.mubr.bf16.mxu0 %v13052_v31  ;;  %v5864_v31 = vld [vmem:[#allocation2 + $0x172] sm:$0xff] }
 0x278   : > { %9972 = vmatprep.mubr.bf16.mxu1 %v13172_v16  ;;  %v13186_v29 = vpack.c.bf16 %v5864_v31, %v5863_v48  ;;  %v13269_v48 = vpack.c.bf16 %v6464_v39, %v6463_v15  ;;  %v10461_v31 = vld [vmem:[%s14000_s4 + $0x1c0] sm:$0xff]  }
 0x27e   : > { %10017 = vmatmul.mubr.bf16.gmra.mxu0 %v13060_v35  ;;  %v6170_v35 = vld [vmem:[#allocation2 + $0x188] sm:$0xff] }
 0x27f   : > { %9973 = vmatmul.mubr.bf16.gmra.mxu1 %v13178_v10  ;;  %10020 = vmatprep.mubr.bf16.mxu0 %v13069_v63  ;;  %v6169_v63 = vld [vmem:[#allocation2 + $0x180] sm:$0xff] }
 0x280   : > { %9976 = vmatprep.mubr.bf16.mxu1 %v13180_v12  ;;  %v13191_v5 = vpack.c.bf16 %v6170_v35, %v6169_v63 }
 0x286   : > { %10021 = vmatmul.mubr.bf16.gmra.mxu0 %v13073_v57  ;;  %v10447_v57 = vld [vmem:[%s14000_s4 + $0x1b0] sm:$0xff]  }
 0x287   : > { %9977 = vmatmul.mubr.bf16.gmra.mxu1 %v13186_v29  ;;  %10024 = vmatprep.mubr.bf16.mxu0 %v13078_v20  ;;  %v6452_v20 = vld [vmem:[#allocation2 + $0x69] sm:$0xff] }
 0x288   : > { %10044 = vmatprep.mubr.bf16.mxu1 %v6477_v24  ;;  %v13207_v30 = vpack.c.bf16 %v6452_v20, %v6451_v8  ;;  %v13279_v24 = vpack.c.bf16 %v6468_v4, %v6467_v0 }
 0x28e   : > { %10025 = vmatmul.mubr.bf16.gmra.mxu0 %v13191_v5 }
 0x28f   : > { %10045 = vmatmul.mubr.bf16.vlgmr.msra.gmra.mxu1 %v13193_v6  ;;  %10092 = vmatprep.mubr.bf16.mxu0 %v13080_v37  ;;  %v10449_v37 = vld [vmem:[%s14000_s4 + $0x1a0] sm:$0xff]  }
 0x290   : > { %10048 = vmatprep.mubr.bf16.mxu1 %v13195_v3  ;;  %10125 = vmatpush3.bf16.msra.mxu1 %v10446_v2  ;;  %v10455_v2 = vld [vmem:[%s14000_s4 + $0x1e0] sm:$0xff]  }
 0x291   : > { %10126 = vmatprep.subr.bf16.mxu1 %v10447_v57 }
 0x294   : > { %10127 = vmatpush3.bf16.msra.mxu1 %v10447_v57  ;;  %v10464_v57 = vld [vmem:[%s14000_s4 + $0x228] sm:$0xff]  }
 0x295   : > { %10128 = vmatprep.subr.bf16.mxu1 %v10448_v19 }
 0x296   : > { %10093 = vmatmul.mubr.bf16.vlgmr.msra.gmra.mxu0 %v13082_v9  ;;  %v6458_v9 = vld [vmem:[#allocation2 + $0xb1] sm:$0xff] }
 0x297   : > { %10049 = vmatmul.mubr.bf16.gmra.mxu1 %v13207_v30  ;;  %10096 = vmatprep.mubr.bf16.mxu0 %v13095_v59  ;;  %v6457_v59 = vld [vmem:[#allocation2 + $0xa9] sm:$0xff] }
 0x298   : > { %10052 = vmatprep.mubr.bf16.mxu1 %v13209_v42  ;;  %10129 = vmatpush3.bf16.msra.mxu1 %v10448_v19  ;;  %v13229_v62 = vpack.c.bf16 %v6458_v9, %v6457_v59  ;;  %v7067_v19 = vld [vmem:[#allocation2 + $0x98] sm:$0xff] }
 0x299   : > { %10173 = vmatpush3.bf16.msra.mxu0 %v10451_v51  ;;  %10130 = vmatprep.subr.bf16.mxu1 %v10449_v37 }
 0x29a   : > { %10174 = vmatprep.subr.bf16.mxu0 %v10452_v14 }
 0x29c   : > { %10131 = vmatpush3.bf16.msra.mxu1 %v10449_v37  ;;  %v7066_v37 = vld [vmem:[#allocation2 + $0x90] sm:$0xff] }
 0x29d   : > { %10175 = vmatpush3.bf16.msra.mxu0 %v10452_v14  ;;  %10132 = vmatprep.subr.bf16.mxu1 %v10450_v23  ;;  %v7094_v14 = vpack.c.bf16 %v7067_v19, %v7066_v37 }
 0x29e   : > { %10176 = vmatprep.subr.bf16.mxu0 %v10454_v41  ;;  %10097 = vmatmul.mubr.bf16.gmra.mxu0 %v13097_v18  ;;  %v6462_v18 = vld [vmem:[#allocation2 + $0xe1] sm:$0xff] }
 0x29f   : > { %10053 = vmatmul.mubr.bf16.gmra.mxu1 %v13227_v45  ;;  %10100 = vmatprep.mubr.bf16.mxu0 %v13116_v60  ;;  %v6461_v60 = vld [vmem:[#allocation2 + $0xd9] sm:$0xff] }
 0x2a0   : > { %10056 = vmatprep.mubr.bf16.mxu1 %v13229_v62  ;;  %10133 = vmatpush3.bf16.msra.mxu1 %v10450_v23  ;;  %v13249_v51 = vpack.c.bf16 %v6462_v18, %v6461_v60  ;;  %v7068_v18 = vld [vmem:[#allocation2 + $0xa8] sm:$0xff] }
 0x2a1   : > { %10177 = vmatpush3.bf16.msra.mxu0 %v10454_v41  ;;  %10134 = vmatprep.subr.bf16.mxu1 %v10453_v52 }
 0x2a2   : > { %10178 = vmatprep.subr.bf16.mxu0 %v10455_v2 }
 0x2a4   : > { %10135 = vmatpush3.bf16.msra.mxu1 %v10453_v52  ;;  %v7069_v52 = vld [vmem:[#allocation2 + $0xb0] sm:$0xff] }
 0x2a5   : > { %10179 = vmatpush3.bf16.msra.mxu0 %v10455_v2  ;;  %10136 = vmatprep.subr.bf16.mxu1 %v10456_v46  ;;  %v10466_v2 = vld [vmem:[%s14000_s4 + $0x218] sm:$0xff]   ;;  %v7095_v60 = vpack.c.bf16 %v7069_v52, %v7068_v18  ;;  %v7081_v18 = vld [vmem:[#allocation2 + $0x140] sm:$0xff] }
 0x2a6   : > { %10180 = vmatprep.subr.bf16.mxu0 %v10457_v43  ;;  %10101 = vmatmul.mubr.bf16.gmra.mxu0 %v13118_v13  ;;  %v13267_v13 = vld [vmem:[#allocation2 + $0x109] sm:$0xff] }
 0x2a7   : > { %10057 = vmatmul.mubr.bf16.gmra.mxu1 %v13247_v21  ;;  %10104 = vmatprep.mubr.bf16.mxu0 %v13136_v27  ;;  %v6487_v27 = vpack.c.bf16 %v13017_v53, %v13267_v13  ;;  %v13285_v53 = vld [vmem:[#allocation2 + $0x151] sm:$0xff] }
 0x2a8   : > { %10060 = vmatprep.mubr.bf16.mxu1 %v13249_v51  ;;  %10137 = vmatpush3.bf16.msra.mxu1 %v10456_v46  ;;  %v7071_v46 = vld [vmem:[#allocation2 + $0xc8] sm:$0xff] }
 0x2a9   : > { %10181 = vmatpush3.bf16.msra.mxu0 %v10457_v43  ;;  %10138 = vmatprep.subr.bf16.mxu1 %v10459_v1 }
 0x2aa   : > { %10182 = vmatprep.subr.bf16.mxu0 %v10458_v17 }
 0x2ac   : > { %10139 = vmatpush3.bf16.msra.mxu1 %v10459_v1 }
 0x2ad   : > { %10183 = vmatpush3.bf16.msra.mxu0 %v10458_v17  ;;  %10220 = vmatprep.subr.bf16.mxu1 %v10462_v22  ;;  %v7070_v17 = vld [vmem:[#allocation2 + $0xc0] sm:$0xff] }
 0x2ae   : > { %10184 = vmatprep.subr.bf16.mxu0 %v10460_v44  ;;  %10105 = vmatmul.mubr.bf16.gmra.mxu0 %v13138_v61  ;;  %v6490_v61 = vpack.c.bf16 %v13041_v58, %v13285_v53  ;;  %v6781_v58 = vld [vmem:[#allocation2 + $0x182] sm:$0xff]  ;;  %v7096_v39 = vpack.c.bf16 %v7071_v46, %v7070_v17  ;;  %v7383_v46 = vld [vmem:[#allocation2 + $0x111] sm:$0xff] }
 0x2af   : > { %10061 = vmatmul.mubr.bf16.gmra.mxu1 %v13269_v48  ;;  %10108 = vmatprep.mubr.bf16.mxu0 %v13156_v34  ;;  %v13292_v34 = vld [vmem:[#allocation2 + $0x181] sm:$0xff] }
 0x2b0   : > { %10064 = vmatprep.mubr.bf16.mxu1 %v6487_v27 }
 0x2b1   : > { %10185 = vmatpush3.bf16.msra.mxu0 %v10460_v44  ;;  %v10467_v44 = vld [vmem:[%s14000_s4 + $0x210] sm:$0xff]  }
 0x2b2   : > { %10186 = vmatprep.subr.bf16.mxu0 %v10461_v31 }
 0x2b5   : > { %10187 = vmatpush3.bf16.msra.mxu0 %v10461_v31 }
 0x2b6   : > { %10109 = vmatmul.mubr.bf16.gmra.mxu0 %v13158_v33  ;;  %v7059_v33 = vld [vmem:[#allocation2 + $0x38] sm:$0xff] }
 0x2b7   : > { %10065 = vmatmul.mubr.bf16.gmra.mxu1 %v13279_v24  ;;  %10112 = vmatprep.mubr.bf16.mxu0 %v13170_v56  ;;  %v6492_v56 = vpack.c.bf16 %v5198_v55, %v13292_v34 }
 0x2b8   : > { %10068 = vmatprep.mubr.bf16.mxu1 %v13054_v49  ;;  %v7058_v49 = vld [vmem:[#allocation2 + $0x30] sm:$0xff] }
 0x2b9   : > { %v7090_v35 = vpack.c.bf16 %v7059_v33, %v7058_v49  ;;  %v10468_v33 = vld [vmem:[%s14000_s4 + $0x208] sm:$0xff]   ;;  %v7075_v49 = vld [vmem:[#allocation2 + $0xf8] sm:$0xff] }
 0x2be   : > { %10113 = vmatmul.mubr.bf16.gmra.mxu0 %v13172_v16  ;;  %v6782_v16 = vld [vmem:[#allocation2 + $0x18a] sm:$0xff] }
 0x2bf   : > { %10069 = vmatmul.mubr.bf16.gmra.mxu1 %v6490_v61  ;;  %10116 = vmatprep.mubr.bf16.mxu0 %v13178_v10  ;;  %v7061_v10 = vld [vmem:[#allocation2 + $0x50] sm:$0xff]  ;;  %v13299_v47 = vpack.c.bf16 %v6782_v16, %v6781_v58  ;;  %v7073_v61 = vld [vmem:[#allocation2 + $0xe0] sm:$0xff]  ;;  %v7072_v58 = vld [vmem:[#allocation2 + $0xd8] sm:$0xff] }
 0x2c0   : > { %10072 = vmatprep.mubr.bf16.mxu1 %v13071_v36  ;;  %v7060_v36 = vld [vmem:[#allocation2 + $0x48] sm:$0xff] }
 0x2c1   : > { %v7091_v63 = vpack.c.bf16 %v7061_v10, %v7060_v36  ;;  %v7097_v10 = vpack.c.bf16 %v7073_v61, %v7072_v58 }
 0x2c6   : > { %10117 = vmatmul.mubr.bf16.gmra.mxu0 %v13180_v12 }
 0x2c7   : > { %10073 = vmatmul.mubr.bf16.gmra.mxu1 %v6492_v56  ;;  %10120 = vmatprep.mubr.bf16.mxu0 %v13186_v29  ;;  %v7065_v29 = vld [vmem:[#allocation2 + $0x80] sm:$0xff] }
 0x2c8   : > { %10140 = vmatprep.mubr.bf16.mxu1 %v7090_v35  ;;  %v7093_v26 = vpack.c.bf16 %v7065_v29, %v7064_v11 }
 0x2cd   : > { %v9854_v55 = vpop.f32.mrf.mxu1 }
 0x2ce   : > { %10121 = vmatmul.mubr.bf16.gmra.mxu0 %v13299_v47 }
 0x2cf   : > { %10141 = vmatmul.mubr.bf16.vlgmr.msra.gmra.mxu1 %v7091_v63  ;;  %10188 = vmatprep.mubr.bf16.mxu0 %v13193_v6  ;;  %v5497_v12 = vpop.f32.mrf.mxu1  ;;  %v10465_v6 = vld [vmem:[%s14000_s4 + $0x220] sm:$0xff]   ;;  %v7098_v63 = vpack.c.bf16 %v7075_v49, %v7074_v40 }
 0x2d0   : > { %10144 = vmatprep.mubr.bf16.mxu1 %v7092_v38  ;;  %10221 = vmatpush3.bf16.msra.mxu1 %v10462_v22 }
 0x2d1   : > { %10222 = vmatprep.subr.bf16.mxu1 %v10463_v7  ;;  %v9855_v20 = vpop.f32.mrf.mxu1 }
 0x2d3   : > { %v5500_v8 = vpop.f32.mrf.mxu1 }
 0x2d4   : > { %10223 = vmatpush3.bf16.msra.mxu1 %v10463_v7 }
 0x2d5   : > { %10224 = vmatprep.subr.bf16.mxu1 %v10464_v57  ;;  %v9902_v25 = vpop.f32.mrf.mxu0  ;;  %v9858_v23 = vpop.f32.mrf.mxu1 }
 0x2d6   : > { %10189 = vmatmul.mubr.bf16.vlgmr.msra.gmra.mxu0 %v13195_v3  ;;  %v13313_v41 = vadd.f32 %v9902_v25, %v9854_v55  ;;  %v7078_v25 = vld [vmem:[#allocation2 + $0x120] sm:$0xff] }
 0x2d7   : > { %10145 = vmatmul.mubr.bf16.gmra.mxu1 %v7093_v26  ;;  %10192 = vmatprep.mubr.bf16.mxu0 %v13207_v30  ;;  %v5706_v9 = vpop.f32.mrf.mxu0  ;;  %v5513_v54 = vpop.f32.mrf.mxu1 }
 0x2d8   : > { %10148 = vmatprep.mubr.bf16.mxu1 %v7094_v14  ;;  %10225 = vmatpush3.bf16.msra.mxu1 %v10464_v57  ;;  %v13316_v59 = vadd.f32 %v5706_v9, %v5497_v12 }
 0x2d9   : > { %10226 = vmatprep.subr.bf16.mxu1 %v10465_v6  ;;  %v9903_v32 = vpop.f32.mrf.mxu0  ;;  %v9859_v3 = vpop.f32.mrf.mxu1 }
 0x2da   : > { %v13321_v43 = vadd.f32 %v9903_v32, %v9855_v20  ;;  %v7077_v20 = vld [vmem:[#allocation2 + $0x110] sm:$0xff] }
 0x2db   : > { %v5709_v28 = vpop.f32.mrf.mxu0  ;;  %v5516_v30 = vpop.f32.mrf.mxu1 }
 0x2dc   : > { %10227 = vmatpush3.bf16.msra.mxu1 %v10465_v6  ;;  %v13323_v1 = vadd.f32 %v5709_v28, %v5500_v8  ;;  %v7079_v8 = vld [vmem:[#allocation2 + $0x128] sm:$0xff] }
 0x2dd   : > { %10228 = vmatprep.subr.bf16.mxu1 %v10466_v2 }
 0x2de   : > { %v9906_v22 = vpop.f32.mrf.mxu0  ;;  %10193 = vmatmul.mubr.bf16.gmra.mxu0 %v13209_v42  ;;  %v9862_v15 = vpop.f32.mrf.mxu1 }
 0x2df   : > { %10149 = vmatmul.mubr.bf16.gmra.mxu1 %v7095_v60  ;;  %v13329_v27 = vadd.f32 %v9906_v22, %v9858_v23  ;;  %10196 = vmatprep.mubr.bf16.mxu0 %v13227_v45  ;;  %v7100_v23 = vpack.c.bf16 %v7079_v8, %v7078_v25  ;;  %v7083_v60 = vld [vmem:[#allocation2 + $0x158] sm:$0xff] }
 0x2e0   : > { %10152 = vmatprep.mubr.bf16.mxu1 %v7096_v39  ;;  %v5722_v31 = vpop.f32.mrf.mxu0  ;;  %v5529_v4 = vpop.f32.mrf.mxu1  ;;  %10229 = vmatpush3.bf16.msra.mxu1 %v10466_v2  ;;  %v7080_v39 = vld [vmem:[#allocation2 + $0x138] sm:$0xff] }
 0x2e1   : > { %v13332_v0 = vadd.f32 %v5722_v31, %v5513_v54  ;;  %10230 = vmatprep.subr.bf16.mxu1 %v10467_v44  ;;  %v7082_v31 = vld [vmem:[#allocation2 + $0x150] sm:$0xff] }
 0x2e2   : > { %v9907_v56 = vpop.f32.mrf.mxu0  ;;  %v9863_v42 = vpop.f32.mrf.mxu1  ;;  %v7391_v25 = vld [vmem:[#allocation2 + $0x171] sm:$0xff] }
 0x2e3   : > { %v13337_v35 = vadd.f32 %v9907_v56, %v9859_v3 }
 0x2e4   : > { %v5725_v16 = vpop.f32.mrf.mxu0  ;;  %v5532_v45 = vpop.f32.mrf.mxu1  ;;  %10231 = vmatpush3.bf16.msra.mxu1 %v10467_v44  ;;  %v7405_v44 = vpack.c.bf16 %v7383_v46, %v13267_v13  ;;  %v7387_v13 = vld [vmem:[#allocation2 + $0x141] sm:$0xff] }
 0x2e5   : > { %v13339_v36 = vadd.f32 %v5725_v16, %v5516_v30  ;;  %10232 = vmatprep.subr.bf16.mxu1 %v10468_v33  ;;  %v7085_v16 = vld [vmem:[#allocation2 + $0x170] sm:$0xff]  ;;  %v7671_v46 = vld [vmem:[#allocation2 + $0x3a] sm:$0xff] }
 0x2e6   : > { %v9910_v38 = vpop.f32.mrf.mxu0  ;;  %10197 = vmatmul.mubr.bf16.gmra.mxu0 %v13229_v62  ;;  %v9866_v7 = vpop.f32.mrf.mxu1  ;;  %v7076_v62 = vld [vmem:[#allocation2 + $0x108] sm:$0xff] }
 0x2e7   : > { %10153 = vmatmul.mubr.bf16.gmra.mxu1 %v7097_v10  ;;  %v13345_v55 = vadd.f32 %v9910_v38, %v9862_v15  ;;  %10200 = vmatprep.mubr.bf16.mxu0 %v13247_v21  ;;  %v7099_v6 = vpack.c.bf16 %v7077_v20, %v7076_v62  ;;  %v7101_v15 = vpack.c.bf16 %v7081_v18, %v7080_v39  ;;  %v7389_v10 = vld [vmem:[#allocation2 + $0x159] sm:$0xff]  ;;  %v7084_v38 = vld [vmem:[#allocation2 + $0x168] sm:$0xff] }
 0x2e8   : > { %10156 = vmatprep.mubr.bf16.mxu1 %v7098_v63  ;;  %v5738_v12 = vpop.f32.mrf.mxu0  ;;  %v5545_v29 = vpop.f32.mrf.mxu1  ;;  %10233 = vmatpush3.bf16.msra.mxu1 %v10468_v33  ;;  %v7103_v20 = vpack.c.bf16 %v7085_v16, %v7084_v38  ;;  %v7673_v16 = vld [vmem:[#allocation2 + $0x52] sm:$0xff] }
 0x2e9   : > { %v13348_v57 = vadd.f32 %v5738_v12, %v5529_v4  ;;  %10234 = vmatprep.subr.bf16.mxu1 %v10469_v50  ;;  %v7102_v4 = vpack.c.bf16 %v7083_v60, %v7082_v31 }
 0x2ea   : > { %v9911_v19 = vpop.f32.mrf.mxu0  ;;  %v9867_v11 = vpop.f32.mrf.mxu1 }
 0x2eb   : > { %v13350_v26 = vadd.f32 %v9911_v19, %v9863_v42 }
 0x2ec   : > { %v5741_v37 = vpop.f32.mrf.mxu0  ;;  %v5548_v14 = vpop.f32.mrf.mxu1  ;;  %10235 = vmatpush3.bf16.msra.mxu1 %v10469_v50  ;;  %v7386_v50 = vld [vmem:[#allocation2 + $0x139] sm:$0xff] }
 0x2ed   : > { %v13352_v21 = vadd.f32 %v5741_v37, %v5532_v45  ;;  %v7407_v12 = vpack.c.bf16 %v7387_v13, %v7386_v50  ;;  %v7672_v13 = vld [vmem:[#allocation2 + $0x4a] sm:$0xff] }
 0x2ee   : > { %v9914_v9 = vpop.f32.mrf.mxu0  ;;  %10201 = vmatmul.mubr.bf16.gmra.mxu0 %v13249_v51  ;;  %v7675_v50 = vld [vmem:[#allocation2 + $0x6a] sm:$0xff] }
 0x2ef   : > { %v9870_v54 = vpop.f32.mrf.mxu1  ;;  %10157 = vmatmul.mubr.bf16.gmra.mxu1 %v7099_v6  ;;  %v13355_v52 = vadd.f32 %v9914_v9, %v9866_v7  ;;  %10204 = vmatprep.mubr.bf16.mxu0 %v13269_v48  ;;  %v7393_v9 = vld [vmem:[#allocation2 + $0x189] sm:$0xff] }
 0x2f0   : > { %10160 = vmatprep.mubr.bf16.mxu1 %v7100_v23  ;;  %v5754_v2 = vpop.f32.mrf.mxu0 }
 0x2f1   : > { %v5561_v32 = vpop.f32.mrf.mxu1  ;;  %v13358_v3 = vadd.f32 %v5754_v2, %v5545_v29  ;;  %v10477_v2 = vld [vmem:[#allocation2] sm:$0xff] }
 0x2f2   : > { %v9915_v28 = vpop.f32.mrf.mxu0 }
 0x2f3   : > { %v9871_v30 = vpop.f32.mrf.mxu1  ;;  %v13360_v17 = vadd.f32 %v9915_v28, %v9867_v11  ;;  %v7390_v28 = vld [vmem:[#allocation2 + $0x169] sm:$0xff] }
 0x2f4   : > { %v5757_v51 = vpop.f32.mrf.mxu0  ;;  %v7409_v60 = vpack.c.bf16 %v7391_v25, %v7390_v28  ;;  %v7678_v28 = vld [vmem:[#allocation2 + $0x92] sm:$0xff] }
 0x2f5   : > { %v5564_v22 = vpop.f32.mrf.mxu1  ;;  %v13363_v48 = vadd.f32 %v5757_v51, %v5548_v14 }
 0x2f6   : > { %v9918_v61 = vpop.f32.mrf.mxu0  ;;  %10205 = vmatmul.mubr.bf16.gmra.mxu0 %v7405_v44 }
 0x2f7   : > { %v9874_v33 = vpop.f32.mrf.mxu1  ;;  %10161 = vmatmul.mubr.bf16.gmra.mxu1 %v7101_v15  ;;  %v13365_v56 = vadd.f32 %v9918_v61, %v9870_v54  ;;  %10208 = vmatprep.mubr.bf16.mxu0 %v13279_v24  ;;  %v7408_v24 = vpack.c.bf16 %v7389_v10, %v13285_v53  ;;  %v7670_v53 = vld [vmem:[#allocation2 + $0x32] sm:$0xff]  ;;  %v7395_v61 = vld [vmem:[#allocation2 + $0x1a1] sm:$0xff] }
 0x2f8   : > { %10164 = vmatprep.mubr.bf16.mxu1 %v7102_v4  ;;  %v5770_v42 = vpop.f32.mrf.mxu0  ;;  %v7702_v44 = vpack.c.bf16 %v7671_v46, %v7670_v53  ;;  %v7394_v4 = vld [vmem:[#allocation2 + $0x199] sm:$0xff] }
 0x2f9   : > { %v5577_v49 = vpop.f32.mrf.mxu1  ;;  %v13368_v58 = vadd.f32 %v5770_v42, %v5561_v32  ;;  %v7105_v32 = vpack.c.bf16 %v10477_v2, %v10477_v2  ;;  %v7411_v10 = vpack.c.bf16 %v7395_v61, %v7394_v4  ;;  %v7676_v2 = vld [vmem:[#allocation2 + $0x7a] sm:$0xff] }
 0x2fa   : > { %v9919_v45 = vpop.f32.mrf.mxu0 }
 0x2fb   : > { %v9875_v40 = vpop.f32.mrf.mxu1  ;;  %v13370_v63 = vadd.f32 %v9919_v45, %v9871_v30 }
 0x2fc   : > { %v5773_v7 = vpop.f32.mrf.mxu0 }
 0x2fd   : > { %v5580_v29 = vpop.f32.mrf.mxu1  ;;  %v13372_v19 = vadd.f32 %v5773_v7, %v5564_v22 }
 0x2fe   : > { %v9922_v11 = vpop.f32.mrf.mxu0  ;;  %10209 = vmatmul.mubr.bf16.gmra.mxu0 %v7407_v12 }
 0x2ff   : > { %v9878_v8 = vpop.f32.mrf.mxu1  ;;  %10165 = vmatmul.mubr.bf16.gmra.mxu1 %v7103_v20  ;;  %v13375_v62 = vadd.f32 %v9922_v11, %v9874_v33  ;;  %10212 = vmatprep.mubr.bf16.mxu0 %v7408_v24 }
 0x300   : > { %10168 = vmatprep.mubr.bf16.mxu1 %v13191_v5  ;;  %v5786_v37 = vpop.f32.mrf.mxu0  ;;  %v7410_v5 = vpack.c.bf16 %v7393_v9, %v13292_v34 }
 0x301   : > { %v5593_v14 = vpop.f32.mrf.mxu1  ;;  %v13378_v6 = vadd.f32 %v5786_v37, %v5577_v49 }
 0x302   : > { %v9923_v23 = vpop.f32.mrf.mxu0 }
 0x303   : > { %v9879_v54 = vpop.f32.mrf.mxu1  ;;  %v13380_v18 = vadd.f32 %v9923_v23, %v9875_v40  ;;  %v7674_v40 = vld [vmem:[#allocation2 + $0x62] sm:$0xff] }
 0x304   : > { %v5789_v30 = vpop.f32.mrf.mxu0  ;;  %v7704_v24 = vpack.c.bf16 %v7675_v50, %v7674_v40 }
 0x305   : > { %v5596_v39 = vpop.f32.mrf.mxu1  ;;  %v13382_v51 = vadd.f32 %v5789_v30, %v5580_v29  ;;  %v7703_v29 = vpack.c.bf16 %v7673_v16, %v7672_v13  ;;  %v7679_v30 = vld [vmem:[#allocation2 + $0x9a] sm:$0xff] }
 0x306   : > { %v9926_v22 = vpop.f32.mrf.mxu0  ;;  %10213 = vmatmul.mubr.bf16.gmra.mxu0 %v7409_v60  ;;  %v7706_v4 = vpack.c.bf16 %v7679_v30, %v7678_v28  ;;  %v7684_v28 = vld [vmem:[#allocation2 + $0xda] sm:$0xff]  ;;  %v7685_v30 = vld [vmem:[#allocation2 + $0xe2] sm:$0xff] }
 0x307   : > { %v9882_v15 = vpop.f32.mrf.mxu1  ;;  %10169 = vmatmul.mubr.bf16.gmra.mxu1 %v7105_v32  ;;  %v13385_v31 = vadd.f32 %v9926_v22, %v9878_v8  ;;  %10216 = vmatprep.mubr.bf16.mxu0 %v7410_v5  ;;  %v7677_v32 = vld [vmem:[#allocation2 + $0x82] sm:$0xff] }
 0x308   : > { %10236 = vmatprep.mubr.bf16.mxu1 %v7702_v44  ;;  %v5802_v33 = vpop.f32.mrf.mxu0 }
 0x309   : > { %v5609_v42 = vpop.f32.mrf.mxu1  ;;  %v13387_v49 = vadd.f32 %v5802_v33, %v5593_v14 }
 0x30a   : > { %v9927_v45 = vpop.f32.mrf.mxu0 }
 0x30b   : > { %v9883_v34 = vpop.f32.mrf.mxu1  ;;  %v13389_v38 = vadd.f32 %v9927_v45, %v9879_v54 }
 0x30c   : > { %v5805_v7 = vpop.f32.mrf.mxu0 }
 0x30d   : > { %v5612_v12 = vpop.f32.mrf.mxu1  ;;  %v13391_v20 = vadd.f32 %v5805_v7, %v5596_v39  ;;  %v7683_v7 = vld [vmem:[#allocation2 + $0xca] sm:$0xff] }
 0x30e   : > { %v9930_v11 = vpop.f32.mrf.mxu0  ;;  %10217 = vmatmul.mubr.bf16.gmra.mxu0 %v7411_v10  ;;  %v7680_v10 = vld [vmem:[#allocation2 + $0xaa] sm:$0xff] }
 0x30f   : > { %v9950_v8 = vpop.f32.mrf.mxu1  ;;  %10237 = vmatmul.mubr.bf16.vlgmr.msra.gmra.mxu1 %v7703_v29  ;;  %v13393_v37 = vadd.f32 %v9930_v11, %v9882_v15 }
 0x310   : > { %v6109_v14 = vadd.f32 %v9950_v8, %v13313_v41  ;;  %10240 = vmatprep.mubr.bf16.mxu1 %v7704_v24  ;;  %v5818_v25 = vpop.f32.mrf.mxu0  ;;  %v7705_v41 = vpack.c.bf16 %v7677_v32, %v7676_v2 }
 0x311   : > { %v5980_v23 = vpop.f32.mrf.mxu1  ;;  %v13396_v9 = vadd.f32 %v5818_v25, %v5609_v42 }
 0x312   : > { %v6107_v54 = vadd.f32 %v5980_v23, %v13316_v59  ;;  %v9931_v53 = vpop.f32.mrf.mxu0 }
 0x313   : > { %v9951_v46 = vpop.f32.mrf.mxu1  ;;  %v13399_v60 = vadd.f32 %v9931_v53, %v9883_v34  ;;  %v7681_v34 = vld [vmem:[#allocation2 + $0xb2] sm:$0xff] }
 0x314   : > { %v6110_v39 = vadd.f32 %v9951_v46, %v13321_v43  ;;  %v5821_v5 = vpop.f32.mrf.mxu0 }
 0x315   : > { %v5983_v44 = vpop.f32.mrf.mxu1  ;;  %v13402_v22 = vadd.f32 %v5821_v5, %v5612_v12 }
 0x316   : > { %v6108_v15 = vadd.f32 %v5983_v44, %v13323_v1  ;;  %v9998_v61 = vpop.f32.mrf.mxu0  ;;  %v7682_v1 = vld [vmem:[#allocation2 + $0xc2] sm:$0xff]  ;;  %v7687_v44 = vld [vmem:[#allocation2 + $0xfa] sm:$0xff] }
 0x317   : > { %v9954_v59 = vpop.f32.mrf.mxu1  ;;  %10241 = vmatmul.mubr.bf16.gmra.mxu1 %v7705_v41  ;;  %v13405_v33 = vadd.f32 %v9998_v61, %v6109_v14  ;;  %v7708_v25 = vpack.c.bf16 %v7683_v7, %v7682_v1  ;;  %v7688_v1 = vld [vmem:[#allocation2 + $0x10a] sm:$0xff]  ;;  %v7689_v7 = vld [vmem:[#allocation2 + $0x112] sm:$0xff] }
 0x318   : > { %v6113_v42 = vadd.f32 %v9954_v59, %v13329_v27  ;;  %10244 = vmatprep.mubr.bf16.mxu1 %v7706_v4  ;;  %v6286_v13 = vpop.f32.mrf.mxu0  ;;  %v7707_v27 = vpack.c.bf16 %v7681_v34, %v7680_v10 }
 0x319   : > { %v5996_v16 = vpop.f32.mrf.mxu1  ;;  %v13408_v45 = vadd.f32 %v6286_v13, %v6107_v54 }
 0x31a   : > { %v6111_v43 = vadd.f32 %v5996_v16, %v13332_v0  ;;  %v9999_v40 = vpop.f32.mrf.mxu0 }
 0x31b   : > { %v9955_v50 = vpop.f32.mrf.mxu1  ;;  %v13411_v12 = vadd.f32 %v9999_v40, %v6110_v39 }
 0x31c   : > { %v6114_v29 = vadd.f32 %v9955_v50, %v13337_v35  ;;  %v6289_v24 = vpop.f32.mrf.mxu0 }
 0x31d   : > { %v5999_v11 = vpop.f32.mrf.mxu1  ;;  %v13414_v8 = vadd.f32 %v6289_v24, %v6108_v15 }
 0x31e   : > { %v6112_v14 = vadd.f32 %v5999_v11, %v13339_v36  ;;  %v10002_v23 = vpop.f32.mrf.mxu0  ;;  %v7686_v36 = vld [vmem:[#allocation2 + $0xf2] sm:$0xff]  ;;  %v7691_v11 = vld [vmem:[#allocation2 + $0x12a] sm:$0xff] }
 0x31f   : > { %v9958_v0 = vpop.f32.mrf.mxu1  ;;  %10245 = vmatmul.mubr.bf16.gmra.mxu1 %v7707_v27  ;;  %v13417_v54 = vadd.f32 %v10002_v23, %v6113_v42  ;;  %v7710_v13 = vpack.c.bf16 %v7687_v44, %v7686_v36  ;;  %v7692_v36 = vld [vmem:[#allocation2 + $0x13a] sm:$0xff]  ;;  %v7693_v44 = vld [vmem:[#allocation2 + $0x142] sm:$0xff] }
 0x320   : > { %v6117_v2 = vadd.f32 %v9958_v0, %v13345_v55  ;;  %10248 = vmatprep.mubr.bf16.mxu1 %v7708_v25  ;;  %v6302_v32 = vpop.f32.mrf.mxu0  ;;  %v7709_v55 = vpack.c.bf16 %v7685_v30, %v7684_v28 }
 0x321   : > { %v6012_v53 = vpop.f32.mrf.mxu1  ;;  %v13420_v46 = vadd.f32 %v6302_v32, %v6111_v43 }
 0x322   : > { %v6115_v35 = vadd.f32 %v6012_v53, %v13348_v57  ;;  %v10003_v39 = vpop.f32.mrf.mxu0 }
 0x323   : > { %v9959_v5 = vpop.f32.mrf.mxu1  ;;  %v13423_v41 = vadd.f32 %v10003_v39, %v6114_v29 }
 0x324   : > { %v6118_v15 = vadd.f32 %v9959_v5, %v13350_v26  ;;  %v6305_v4 = vpop.f32.mrf.mxu0 }
 0x325   : > { %v6015_v61 = vpop.f32.mrf.mxu1  ;;  %v13426_v59 = vadd.f32 %v6305_v4, %v6112_v14 }
 0x326   : > { %v6116_v42 = vadd.f32 %v6015_v61, %v13352_v21  ;;  %v10006_v16 = vpop.f32.mrf.mxu0  ;;  %v7690_v21 = vld [vmem:[#allocation2 + $0x122] sm:$0xff]  ;;  %v7695_v61 = vld [vmem:[#allocation2 + $0x15a] sm:$0xff] }
 0x327   : > { %v9962_v57 = vpop.f32.mrf.mxu1  ;;  %10249 = vmatmul.mubr.bf16.gmra.mxu1 %v7709_v55  ;;  %v13429_v43 = vadd.f32 %v10006_v16, %v6117_v2  ;;  %v7712_v32 = vpack.c.bf16 %v7691_v11, %v7690_v21  ;;  %v7696_v21 = vld [vmem:[#allocation2 + $0x16a] sm:$0xff]  ;;  %v7697_v11 = vld [vmem:[#allocation2 + $0x172] sm:$0xff] }
 0x328   : > { %v6121_v10 = vadd.f32 %v9962_v57, %v13355_v52  ;;  %10252 = vmatprep.mubr.bf16.mxu1 %v7710_v13  ;;  %v6318_v34 = vpop.f32.mrf.mxu0  ;;  %v7711_v52 = vpack.c.bf16 %v7689_v7, %v7688_v1 }
 0x329   : > { %v6028_v40 = vpop.f32.mrf.mxu1  ;;  %v13432_v50 = vadd.f32 %v6318_v34, %v6115_v35 }
 0x32a   : > { %v6119_v26 = vadd.f32 %v6028_v40, %v13358_v3  ;;  %v10007_v29 = vpop.f32.mrf.mxu0 }
 0x32b   : > { %v9963_v24 = vpop.f32.mrf.mxu1  ;;  %v13435_v27 = vadd.f32 %v10007_v29, %v6118_v15 }
 0x32c   : > { %v6122_v14 = vadd.f32 %v9963_v24, %v13360_v17  ;;  %v6321_v25 = vpop.f32.mrf.mxu0 }
 0x32d   : > { %v6031_v23 = vpop.f32.mrf.mxu1  ;;  %v13438_v0 = vadd.f32 %v6321_v25, %v6116_v42 }
 0x32e   : > { %v6120_v2 = vadd.f32 %v6031_v23, %v13363_v48  ;;  %v10010_v53 = vpop.f32.mrf.mxu0  ;;  %v7694_v48 = vld [vmem:[#allocation2 + $0x152] sm:$0xff] }
 0x32f   : > { %v9966_v3 = vpop.f32.mrf.mxu1  ;;  %10253 = vmatmul.mubr.bf16.gmra.mxu1 %v7711_v52  ;;  %v13441_v35 = vadd.f32 %v10010_v53, %v6121_v10  ;;  %v7714_v34 = vpack.c.bf16 %v7695_v61, %v7694_v48 }
 0x330   : > { %v6125_v28 = vadd.f32 %v9966_v3, %v13365_v56  ;;  %10256 = vmatprep.mubr.bf16.mxu1 %v7712_v32  ;;  %v6334_v30 = vpop.f32.mrf.mxu0  ;;  %v7713_v56 = vpack.c.bf16 %v7693_v44, %v7692_v36  ;;  %v7715_v32 = vpack.c.bf16 %v7697_v11, %v7696_v21 }
 0x331   : > { %v6044_v39 = vpop.f32.mrf.mxu1  ;;  %v13444_v5 = vadd.f32 %v6334_v30, %v6119_v26 }
 0x332   : > { %v6123_v17 = vadd.f32 %v6044_v39, %v13368_v58  ;;  %v10011_v15 = vpop.f32.mrf.mxu0  ;;  %v7700_v39 = vld [vmem:[#allocation2 + $0x19a] sm:$0xff] }
 0x333   : > { %v9967_v4 = vpop.f32.mrf.mxu1  ;;  %v13447_v55 = vadd.f32 %v10011_v15, %v6122_v14 }
 0x334   : > { %v6126_v42 = vadd.f32 %v9967_v4, %v13370_v63  ;;  %v6337_v13 = vpop.f32.mrf.mxu0 }
 0x335   : > { %v6047_v16 = vpop.f32.mrf.mxu1  ;;  %v13450_v57 = vadd.f32 %v6337_v13, %v6120_v2 }
 0x336   : > { %v6124_v10 = vadd.f32 %v6047_v16, %v13372_v19  ;;  %v10014_v40 = vpop.f32.mrf.mxu0 }
 0x337   : > { %v9970_v58 = vpop.f32.mrf.mxu1  ;;  %10257 = vmatmul.mubr.bf16.gmra.mxu1 %v7713_v56  ;;  %v13453_v26 = vadd.f32 %v10014_v40, %v6125_v28 }
 0x338   : > { %v6129_v1 = vadd.f32 %v9970_v58, %v13375_v62  ;;  %10260 = vmatprep.mubr.bf16.mxu1 %v7714_v34  ;;  %v6350_v7 = vpop.f32.mrf.mxu0 }
 0x339   : > { %v6060_v29 = vpop.f32.mrf.mxu1  ;;  %v13456_v24 = vadd.f32 %v6350_v7, %v6123_v17  ;;  %v7701_v17 = vld [vmem:[#allocation2 + $0x1a2] sm:$0xff] }
 0x33a   : > { %v6127_v63 = vadd.f32 %v6060_v29, %v13378_v6  ;;  %v10015_v14 = vpop.f32.mrf.mxu0 }
 0x33b   : > { %v9971_v25 = vpop.f32.mrf.mxu1  ;;  %v13459_v19 = vadd.f32 %v10015_v14, %v6126_v42 }
 0x33c   : > { %v6130_v23 = vadd.f32 %v9971_v25, %v13380_v18  ;;  %v6353_v52 = vpop.f32.mrf.mxu0 }
 0x33d   : > { %v6063_v2 = vpop.f32.mrf.mxu1  ;;  %v13462_v53 = vadd.f32 %v6353_v52, %v6124_v10 }
 0x33e   : > { %v6128_v62 = vadd.f32 %v6063_v2, %v13382_v51  ;;  %v10018_v3 = vpop.f32.mrf.mxu0  ;;  %v7717_v51 = vpack.c.bf16 %v7701_v17, %v7700_v39 }
 0x33f   : > { %v9974_v28 = vpop.f32.mrf.mxu1  ;;  %10261 = vmatmul.mubr.bf16.gmra.mxu1 %v7715_v32  ;;  %v13465_v30 = vadd.f32 %v10018_v3, %v6129_v1 }
 0x340   : > { %v6133_v6 = vadd.f32 %v9974_v28, %v13385_v31  ;;  %10264 = vmatprep.mubr.bf16.mxu1 %v13299_v47  ;;  %v6366_v36 = vpop.f32.mrf.mxu0 }
 0x341   : > { %v6076_v18 = vpop.f32.mrf.mxu1  ;;  %v13469_v44 = vadd.f32 %v6366_v36, %v6127_v63 }
 0x342   : > { %v6131_v15 = vadd.f32 %v6076_v18, %v13387_v49  ;;  %v10019_v4 = vpop.f32.mrf.mxu0 }
 0x343   : > { %v9975_v48 = vpop.f32.mrf.mxu1  ;;  %v13472_v61 = vadd.f32 %v10019_v4, %v6130_v23 }
 0x344   : > { %v6134_v42 = vadd.f32 %v9975_v48, %v13389_v38  ;;  %v6369_v13 = vpop.f32.mrf.mxu0 }
 0x345   : > { %v6079_v16 = vpop.f32.mrf.mxu1  ;;  %v13475_v31 = vadd.f32 %v6369_v13, %v6128_v62 }
 0x346   : > { %v6132_v47 = vadd.f32 %v6079_v16, %v13391_v20  ;;  %v10022_v56 = vpop.f32.mrf.mxu0 }
 0x347   : > { %v9978_v10 = vpop.f32.mrf.mxu1  ;;  %10265 = vmatmul.mubr.bf16.gmra.mxu1 %v7717_v51  ;;  %v13478_v34 = vadd.f32 %v10022_v56, %v6133_v6 }
 0x348   : > { %v6137_v49 = vadd.f32 %v9978_v10, %v13393_v37  ;;  %v6382_v40 = vpop.f32.mrf.mxu0 }
 0x349   : > { %v6092_v58 = vpop.f32.mrf.mxu1  ;;  %v13481_v1 = vadd.f32 %v6382_v40, %v6131_v15 }
 0x34a   : > { %v6135_v7 = vadd.f32 %v6092_v58, %v13396_v9  ;;  %v10023_v38 = vpop.f32.mrf.mxu0 }
 0x34b   : > { %v9979_v29 = vpop.f32.mrf.mxu1  ;;  %v13484_v63 = vadd.f32 %v10023_v38, %v6134_v42 }
 0x34c   : > { %v6138_v21 = vadd.f32 %v9979_v29, %v13399_v60  ;;  %v6385_v20 = vpop.f32.mrf.mxu0 }
 0x34d   : > { %v6095_v11 = vpop.f32.mrf.mxu1  ;;  %v13487_v14 = vadd.f32 %v6385_v20, %v6132_v47 }
 0x34e   : > { %v6136_v25 = vadd.f32 %v6095_v11, %v13402_v22  ;;  %v10026_v23 = vpop.f32.mrf.mxu0 }
 0x34f   : > { %v10046_v37 = vpop.f32.mrf.mxu1  ;;  %v13490_v52 = vadd.f32 %v10026_v23, %v6137_v49 }
 0x350   : > { %v13493_v2 = vadd.f32 %v10046_v37, %v13405_v33  ;;  %v6398_v9 = vpop.f32.mrf.mxu0 }
 0x351   : > { %v6592_v32 = vpop.f32.mrf.mxu1  ;;  %v13495_v62 = vadd.f32 %v6398_v9, %v6135_v7 }
 0x352   : > { %v13498_v3 = vadd.f32 %v6592_v32, %v13408_v45  ;;  %v10027_v60 = vpop.f32.mrf.mxu0 }
 0x353   : > { %v10047_v28 = vpop.f32.mrf.mxu1  ;;  %v13500_v6 = vadd.f32 %v10027_v60, %v6138_v21 }
 0x354   : > { %v13503_v22 = vadd.f32 %v10047_v28, %v13411_v12  ;;  %v6401_v39 = vpop.f32.mrf.mxu0 }
 0x355   : > { %v6595_v17 = vpop.f32.mrf.mxu1  ;;  %v13505_v36 = vadd.f32 %v6401_v39, %v6136_v25 }
 0x356   : > { %v13508_v33 = vadd.f32 %v6595_v17, %v13414_v8  ;;  %v13510_v18 = vpop.f32.mrf.mxu0 }
 0x357   : > { %v10050_v15 = vpop.f32.mrf.mxu1 }
 0x358   : > { %v13513_v45 = vadd.f32 %v10050_v15, %v13417_v54  ;;  %v13515_v4 = vpop.f32.mrf.mxu0 }
 0x359   : > { %v6608_v48 = vpop.f32.mrf.mxu1 }
 0x35a   : > { %v13518_v51 = vadd.f32 %v6608_v48, %v13420_v46  ;;  %v13520_v12 = vpop.f32.mrf.mxu0 }
 0x35b   : > { %v10051_v42 = vpop.f32.mrf.mxu1 }
 0x35c   : > { %v13523_v13 = vadd.f32 %v10051_v42, %v13423_v41  ;;  %v13525_v8 = vpop.f32.mrf.mxu0 }
 0x35d   : > { %v6611_v16 = vpop.f32.mrf.mxu1 }
 0x35e   : > { %v13528_v47 = vadd.f32 %v6611_v16, %v13426_v59  ;;  %v13530_v54 = vpop.f32.mrf.mxu0 }
 0x35f   : > { %v10054_v56 = vpop.f32.mrf.mxu1 }
 0x360   : > { %v13533_v10 = vadd.f32 %v10054_v56, %v13429_v43  ;;  %v13535_v46 = vpop.f32.mrf.mxu0 }
 0x361   : > { %v6624_v49 = vpop.f32.mrf.mxu1 }
 0x362   : > { %v13538_v40 = vadd.f32 %v6624_v49, %v13432_v50  ;;  %v13540_v41 = vpop.f32.mrf.mxu0 }
 0x363   : > { %v10055_v58 = vpop.f32.mrf.mxu1 }
 0x364   : > { %v13543_v7 = vadd.f32 %v10055_v58, %v13435_v27  ;;  %v13545_v59 = vpop.f32.mrf.mxu0 }
 0x365   : > { %v6627_v38 = vpop.f32.mrf.mxu1 }
 0x366   : > { %v13548_v29 = vadd.f32 %v6627_v38, %v13438_v0  ;;  %v13550_v43 = vpop.f32.mrf.mxu0 }
 0x367   : > { %v10058_v21 = vpop.f32.mrf.mxu1 }
 0x368   : > { %v13553_v20 = vadd.f32 %v10058_v21, %v13441_v35  ;;  %v13555_v50 = vpop.f32.mrf.mxu0 }
 0x369   : > { %v6640_v11 = vpop.f32.mrf.mxu1 }
 0x36a   : > { %v13558_v25 = vadd.f32 %v6640_v11, %v13444_v5  ;;  %v13560_v27 = vpop.f32.mrf.mxu0 }
 0x36b   : > { %v10059_v23 = vpop.f32.mrf.mxu1 }
 0x36c   : > { %v13563_v37 = vadd.f32 %v10059_v23, %v13447_v55  ;;  %v13565_v0 = vpop.f32.mrf.mxu0 }
 0x36d   : > { %v6643_v9 = vpop.f32.mrf.mxu1 }
 0x36e   : > { %14233 = vst [vmem:[#allocation10_spill] sm:$0xff] %v13563_v37  ;;  %v13568_v32 = vadd.f32 %v6643_v9, %v13450_v57  ;;  %v13570_v35 = vpop.f32.mrf.mxu0 }
 0x36f   : > { %v10062_v60 = vpop.f32.mrf.mxu1 }
 0x370   : > { %14234 = vst [vmem:[#allocation8_spill] sm:$0xff] %v13568_v32  ;;  %v13573_v28 = vadd.f32 %v10062_v60, %v13453_v26  ;;  %v13575_v5 = vpop.f32.mrf.mxu0 }
 0x371   : > { %v6656_v39 = vpop.f32.mrf.mxu1 }
 0x372   : > { %14235 = vst [vmem:[#allocation17_spill] sm:$0xff] %v13573_v28  ;;  %v13578_v17 = vadd.f32 %v6656_v39, %v13456_v24  ;;  %v13580_v55 = vpop.f32.mrf.mxu0 }
 0x373   : > { %14237 = vst [vmem:[#allocation26_spill] sm:$0xff] %v13580_v55  ;;  %v10063_v15 = vpop.f32.mrf.mxu1 }
 0x374   : > { %14236 = vst [vmem:[#allocation15_spill] sm:$0xff] %v13578_v17  ;;  %v13583_v48 = vadd.f32 %v10063_v15, %v13459_v19  ;;  %v13585_v57 = vpop.f32.mrf.mxu0 }
 0x375   : > { %14239 = vst [vmem:[#allocation28_spill] sm:$0xff] %v13585_v57  ;;  %v6659_v42 = vpop.f32.mrf.mxu1 }
 0x376   : > { %14238 = vst [vmem:[#allocation21_spill] sm:$0xff] %v13583_v48  ;;  %v13588_v16 = vadd.f32 %v6659_v42, %v13462_v53  ;;  %v13590_v26 = vpop.f32.mrf.mxu0 }
 0x377   : > { %14241 = vst [vmem:[#allocation29_spill] sm:$0xff] %v13590_v26  ;;  %v10066_v56 = vpop.f32.mrf.mxu1 }
 0x378   : > { %14240 = vst [vmem:[#allocation27_spill] sm:$0xff] %v13588_v16  ;;  %v13593_v49 = vadd.f32 %v10066_v56, %v13465_v30  ;;  %v13595_v24 = vpop.f32.mrf.mxu0 }
 0x379   : > { %14243 = vst [vmem:[#allocation3_spill] sm:$0xff] %v13595_v24  ;;  %v6672_v58 = vpop.f32.mrf.mxu1 }
 0x37a   : > { %14242 = vst [vmem:[#allocation5_spill] sm:$0xff] %v13593_v49  ;;  %v13598_v38 = vadd.f32 %v6672_v58, %v13469_v44  ;;  %v13600_v19 = vpop.f32.mrf.mxu0 }
 0x37b   : > { %14245 = vst [vmem:[#allocation4_spill] sm:$0xff] %v13600_v19  ;;  %v10067_v21 = vpop.f32.mrf.mxu1 }
 0x37c   : > { %14244 = vst [vmem:[#allocation11_spill] sm:$0xff] %v13598_v38  ;;  %v13603_v11 = vadd.f32 %v10067_v21, %v13472_v61  ;;  %v13605_v53 = vpop.f32.mrf.mxu0 }
 0x37d   : > { %14247 = vst [vmem:[#allocation9_spill] sm:$0xff] %v13605_v53  ;;  %v6675_v23 = vpop.f32.mrf.mxu1 }
 0x37e   : > { %14246 = vst [vmem:[#allocation13_spill] sm:$0xff] %v13603_v11  ;;  %v13608_v9 = vadd.f32 %v6675_v23, %v13475_v31  ;;  %v13610_v30 = vpop.f32.mrf.mxu0 }
 0x37f   : > { %14249 = vst [vmem:[#allocation19_spill] sm:$0xff] %v13610_v30  ;;  %v10070_v60 = vpop.f32.mrf.mxu1 }
 0x380   : > { %14248 = vst [vmem:[#allocation18_spill] sm:$0xff] %v13608_v9  ;;  %v13613_v39 = vadd.f32 %v10070_v60, %v13478_v34  ;;  %v13615_v44 = vpop.f32.mrf.mxu0 }
 0x381   : > { %14251 = vst [vmem:[#allocation56_spill] sm:$0xff] %v13615_v44  ;;  %v6688_v15 = vpop.f32.mrf.mxu1 }
 0x382   : > { %14250 = vst [vmem:[#allocation54_spill] sm:$0xff] %v13613_v39  ;;  %v13618_v42 = vadd.f32 %v6688_v15, %v13481_v1  ;;  %v13620_v61 = vpop.f32.mrf.mxu0 }
 0x383   : > { %14253 = vst [vmem:[#allocation6_spill] sm:$0xff] %v13620_v61  ;;  %v10071_v56 = vpop.f32.mrf.mxu1 }
 0x384   : > { %14252 = vst [vmem:[#allocation23_spill] sm:$0xff] %v13618_v42  ;;  %v13623_v58 = vadd.f32 %v10071_v56, %v13484_v63  ;;  %v13625_v31 = vpop.f32.mrf.mxu0 }
 0x385   : > { %14255 = vst [vmem:[#allocation59_spill] sm:$0xff] %v13625_v31  ;;  %v6691_v21 = vpop.f32.mrf.mxu1 }
 0x386   : > { %14254 = vst [vmem:[#allocation24_spill] sm:$0xff] %v13623_v58  ;;  %v13628_v23 = vadd.f32 %v6691_v21, %v13487_v14  ;;  %v13630_v34 = vpop.f32.mrf.mxu0 }
 0x387   : > { %14257 = vst [vmem:[#allocation25_spill] sm:$0xff] %v13630_v34  ;;  %v10074_v60 = vpop.f32.mrf.mxu1 }
 0x388   : > { %14256 = vst [vmem:[#allocation55_spill] sm:$0xff] %v13628_v23  ;;  %v13633_v39 = vadd.f32 %v10074_v60, %v13490_v52  ;;  %v13635_v1 = vpop.f32.mrf.mxu0 }
 0x389   : > { %14259 = vst [vmem:[#allocation22_spill] sm:$0xff] %v13635_v1  ;;  %v6704_v15 = vpop.f32.mrf.mxu1 }
 0x38a   : > { %14258 = vst [vmem:[#allocation7_spill] sm:$0xff] %v13633_v39  ;;  %v13638_v42 = vadd.f32 %v6704_v15, %v13495_v62  ;;  %v13640_v63 = vpop.f32.mrf.mxu0 }
 0x38b   : > { %14261 = vst [vmem:[#allocation62_spill] sm:$0xff] %v13640_v63  ;;  %v10075_v56 = vpop.f32.mrf.mxu1 }
 0x38c   : > { %14260 = vst [vmem:[#allocation12_spill] sm:$0xff] %v13638_v42  ;;  %v13643_v58 = vadd.f32 %v10075_v56, %v13500_v6  ;;  %v13645_v14 = vpop.f32.mrf.mxu0 }
 0x38d   : > { %14263 = vst [vmem:[#allocation14_spill] sm:$0xff] %v13645_v14  ;;  %v6707_v21 = vpop.f32.mrf.mxu1 }
 0x38e   : > { %14262 = vst [vmem:[#allocation57_spill] sm:$0xff] %v13643_v58  ;;  %v13648_v23 = vadd.f32 %v6707_v21, %v13505_v36  ;;  %v13650_v52 = vpop.f32.mrf.mxu0 }
 0x38f   : > { %14265 = vst [vmem:[#allocation16_spill] sm:$0xff] %v13650_v52  ;;  %v10142_v60 = vpop.f32.mrf.mxu1 }
 0x390   : > { %14264 = vst [vmem:[#allocation33_spill] sm:$0xff] %v13648_v23  ;;  %v13652_v39 = vpop.f32.mrf.mxu0 }
 0x391   : > { %14266 = vst [vmem:[#allocation65_spill] sm:$0xff] %v13652_v39  ;;  %v7205_v1 = vpop.f32.mrf.mxu1 }
 0x392   : > { %v13654_v62 = vpop.f32.mrf.mxu0 }
 0x393   : > { %14267 = vst [vmem:[#allocation58_spill] sm:$0xff] %v13654_v62  ;;  %v10143_v15 = vpop.f32.mrf.mxu1 }
 0x394   : > { %v13656_v42 = vpop.f32.mrf.mxu0 }
 0x395   : > { %14268 = vst [vmem:[#allocation35_spill] sm:$0xff] %v13656_v42  ;;  %v13658_v63 = vpop.f32.mrf.mxu1 }
 0x396   : > { %v10190_v6 = vpop.f32.mrf.mxu0 }
 0x397   : > { %v13660_v56 = vpop.f32.mrf.mxu1 }
 0x398   : > { %v7511_v58 = vpop.f32.mrf.mxu0 }
 0x399   : > { %v13662_v14 = vpop.f32.mrf.mxu1 }
 0x39a   : > { %v10191_v36 = vpop.f32.mrf.mxu0 }
 0x39b   : > { %v13664_v21 = vpop.f32.mrf.mxu1 }
 0x39c   : > { %v13666_v23 = vpop.f32.mrf.mxu0 }
 0x39d   : > { %v13668_v39 = vpop.f32.mrf.mxu1 }
 0x39e   : > { %v13670_v52 = vpop.f32.mrf.mxu0 }
 0x39f   : > { %v13672_v62 = vpop.f32.mrf.mxu1 }
 0x3a0   : > { %v13674_v42 = vpop.f32.mrf.mxu0 }
 0x3a1   : > { %v13676_v34 = vpop.f32.mrf.mxu1 }
 0x3a2   : > { %v13680_v9 = vpop.f32.mrf.mxu0 }
 0x3a3   : > { %v13678_v31 = vpop.f32.mrf.mxu1 }
 0x3a4   : > { %v13686_v44 = vpop.f32.mrf.mxu0 }
 0x3a5   : > { %v13682_v61 = vpop.f32.mrf.mxu1 }
 0x3a6   : > { %v13692_v49 = vpop.f32.mrf.mxu0 }
 0x3a7   : > { %v13684_v11 = vpop.f32.mrf.mxu1 }
 0x3a8   : > { %v13698_v19 = vpop.f32.mrf.mxu0 }
 0x3a9   : > { %v13688_v38 = vpop.f32.mrf.mxu1 }
 0x3aa   : > { %14269 = vst [vmem:[#allocation20_spill] sm:$0xff] %v13688_v38  ;;  %v13704_v17 = vpop.f32.mrf.mxu0 }
 0x3ab   : > { %v13690_v30 = vpop.f32.mrf.mxu1 }
 0x3ac   : > { %14270 = vst [vmem:[#allocation38_spill] sm:$0xff] %v13690_v30  ;;  %v13710_v57 = vpop.f32.mrf.mxu0 }
 0x3ad   : > { %v13694_v53 = vpop.f32.mrf.mxu1 }
 0x3ae   : > { %14271 = vst [vmem:[#allocation68_spill] sm:$0xff] %v13694_v53  ;;  %v13716_v53 = vpop.f32.mrf.mxu0 }
 0x3af   : > { %v13696_v16 = vpop.f32.mrf.mxu1 }
 0x3b0   : > { %14272 = vst [vmem:[#allocation60_spill] sm:$0xff] %v13696_v16 }
 0x3b1   : > { %v13700_v48 = vpop.f32.mrf.mxu1 }
 0x3b2   : > { %14273 = vst [vmem:[#allocation37_spill] sm:$0xff] %v13700_v48  ;;  %v13722_v48 = vpop.f32.mrf.mxu0 }
 0x3b3   : > { %v13702_v24 = vpop.f32.mrf.mxu1  ;;  %14281 = vst [vmem:[#allocation34_spill] sm:$0xff] %v13722_v48 }
 0x3b4   : > { %14274 = vst [vmem:[#allocation30_spill] sm:$0xff] %v13702_v24 }
 0x3b5   : > { %v13706_v26 = vpop.f32.mrf.mxu1 }
 0x3b6   : > { %14275 = vst [vmem:[#allocation71_spill] sm:$0xff] %v13706_v26  ;;  %v13728_v26 = vpop.f32.mrf.mxu0 }
 0x3b7   : > { %v13708_v28 = vpop.f32.mrf.mxu1  ;;  %14284 = vst [vmem:[#allocation77_spill] sm:$0xff] %v13728_v26 }
 0x3b8   : > { %14276 = vst [vmem:[#allocation61_spill] sm:$0xff] %v13708_v28 }
 0x3b9   : > { %v13712_v30 = vpop.f32.mrf.mxu1 }
 0x3ba   : > { %14277 = vst [vmem:[#allocation32_spill] sm:$0xff] %v13712_v30  ;;  %v13734_v30 = vpop.f32.mrf.mxu0 }
 0x3bb   : > { %v13714_v32 = vpop.f32.mrf.mxu1  ;;  %14287 = vst [vmem:[#allocation45_spill] sm:$0xff] %v13734_v30 }
 0x3bc   : > { %14278 = vst [vmem:[#allocation74_spill] sm:$0xff] %v13714_v32 }
 0x3bd   : > { %v13718_v16 = vpop.f32.mrf.mxu1 }
 0x3be   : > { %14279 = vst [vmem:[#allocation63_spill] sm:$0xff] %v13718_v16  ;;  %v7027_v16 = vadd.f32 %v13510_v18, %v13493_v2  ;;  %v13753_v2 = vld [vmem:[%s14001_s5] ss:$0 sm:$0xff] }
 0x3bf   : > { %v13720_v38 = vpop.f32.mrf.mxu1 }
 0x3c0   : > { %14280 = vst [vmem:[#allocation40_spill] sm:$0xff] %v13720_v38  ;;  %v7334_v48 = vadd.f32 %v10142_v60, %v7027_v16  ;;  %v7026_v16 = vadd.f32 %v13525_v8, %v13508_v33 }
 0x3c1   : > { %v13724_v24 = vpop.f32.mrf.mxu1 }
 0x3c2   : > { %14282 = vst [vmem:[#allocation42_spill] sm:$0xff] %v13724_v24  ;;  %v7025_v24 = vadd.f32 %v13515_v4, %v13498_v3 }
 0x3c3   : > { %v13726_v55 = vpop.f32.mrf.mxu1 }
 0x3c4   : > { %14283 = vst [vmem:[#allocation36_spill] sm:$0xff] %v13726_v55  ;;  %v13744_v55 = vpop.f32.mrf.mxu0  ;;  %v7332_v30 = vadd.f32 %v7205_v1, %v7025_v24 }
 0x3c5   : > { %v13730_v28 = vpop.f32.mrf.mxu1 }
 0x3c6   : > { %14285 = vst [vmem:[#allocation64_spill] sm:$0xff] %v13730_v28  ;;  %v7640_v28 = vadd.f32 %v10190_v6, %v7334_v48  ;;  %v7638_v18 = vadd.f32 %v7511_v58, %v7332_v30  ;;  %v13755_v3 = vpop.f32.mrf.mxu0  ;;  %v7031_v48 = vadd.f32 %v13530_v54, %v13513_v45  ;;  %v7032_v54 = vadd.f32 %v13540_v41, %v13523_v13 }
 0x3c7   : > { %v13732_v37 = vpop.f32.mrf.mxu1  ;;  %v7030_v13 = vadd.f32 %v13545_v59, %v13528_v47 }
 0x3c8   : > { %14286 = vst [vmem:[#allocation31_spill] sm:$0xff] %v13732_v37  ;;  %v7028_v37 = vadd.f32 %v13520_v12, %v13503_v22  ;;  %v13762_v22 = vld [vmem:[%s14002_s6] ss:$0 sm:$0xff]  ;;  %v7338_v8 = vadd.f32 %v13660_v56, %v7031_v48  ;;  %v13772_v58 = vpop.f32.mrf.mxu0  ;;  %v7339_v41 = vadd.f32 %v13664_v21, %v7032_v54 }
 0x3c9   : > { %v13736_v32 = vpop.f32.mrf.mxu1  ;;  %v7337_v48 = vadd.f32 %v13668_v39, %v7030_v13 }
 0x3ca   : > { %14288 = vst [vmem:[#allocation43_spill] sm:$0xff] %v13736_v32  ;;  %v7645_v21 = vadd.f32 %v13680_v9, %v7339_v41 }
 0x3cb   : > { %v13740_v38 = vpop.f32.mrf.mxu1 }
 0x3cc   : > { %14289 = vst [vmem:[#allocation39_spill] sm:$0xff] %v13740_v38  ;;  %v7335_v38 = vadd.f32 %v10143_v15, %v7028_v37 }
 0x3cd   : > { %v13746_v26 = vpop.f32.mrf.mxu1 }
 0x3ce   : > { %v7641_v24 = vadd.f32 %v10191_v36, %v7335_v38 }
 0x3cf   : > { %v10238_v32 = vpop.f32.mrf.mxu1 }
 0x3d0   : > { %v7946_v4 = vadd.f32 %v10238_v32, %v7640_v28  ;;  %v7029_v32 = vadd.f32 %v13535_v46, %v13518_v51  ;;  %v7333_v28 = vadd.f32 %v13658_v63, %v7026_v16  ;;  %v7644_v46 = vadd.f32 %v13670_v52, %v7338_v8 }
 0x3d1   : > { %v7817_v12 = vpop.f32.mrf.mxu1 }
 0x3d2   : > { %v7985_v30 = vmul.f32 %v13753_v2, %v7946_v4  ;;  %v7944_v37 = vadd.f32 %v7817_v12, %v7638_v18  ;;  %v7639_v38 = vadd.f32 %v13666_v23, %v7333_v28  ;;  %v7336_v15 = vadd.f32 %v13662_v14, %v7029_v32  ;;  %v13792_v18 = vpop.f32.mrf.mxu0 }
 0x3d3   : > { %v10239_v33 = vpop.f32.mrf.mxu1  ;;  %v7035_v12 = vadd.f32 %v13550_v43, %v13533_v10  ;;  %v7643_v43 = vadd.f32 %v13686_v44, %v7337_v48  ;;  %v14291_v48 = vld [vmem:[#allocation26_spill] sm:$0xff] }
 0x3d4   : > { %v8024_v1 = vadd.f32 %v13762_v22, %v7985_v30  ;;  %v7983_v60 = vmul.f32 %v13753_v2, %v7944_v37  ;;  %v7947_v45 = vadd.f32 %v10239_v33, %v7641_v24  ;;  %v7642_v36 = vadd.f32 %v13674_v42, %v7336_v15  ;;  %v13808_v39 = vpop.f32.mrf.mxu0 }
 0x3d5   : > { %v7820_v51 = vpop.f32.mrf.mxu1  ;;  %v7033_v37 = vadd.f32 %v13555_v50, %v13538_v40  ;;  %v7342_v32 = vadd.f32 %v13672_v62, %v7035_v12  ;;  %v7036_v40 = vadd.f32 %v13560_v27, %v13543_v7  ;;  %v7034_v15 = vadd.f32 %v13565_v0, %v13548_v29  ;;  %v14290_v12 = vld [vmem:[#allocation10_spill] sm:$0xff] }
 0x3d6   : > { %v8056_v63 = vmax.f32 %v8024_v1, 0.0  ;;  %v8022_v6 = vadd.f32 %v13762_v22, %v7983_v60  ;;  %v7986_v56 = vmul.f32 %v13753_v2, %v7947_v45  ;;  %v7945_v23 = vadd.f32 %v7820_v51, %v7639_v38 }
 0x3d7   : > { %v10242_v14 = vpop.f32.mrf.mxu1  ;;  %v7648_v50 = vadd.f32 %v13692_v49, %v7342_v32  ;;  %v7340_v62 = vadd.f32 %v13676_v34, %v7033_v37  ;;  %v7343_v7 = vadd.f32 %v13678_v31, %v7036_v40  ;;  %v13824_v49 = vpop.f32.mrf.mxu0  ;;  %v7341_v0 = vadd.f32 %v13682_v61, %v7034_v15  ;;  %v14294_v37 = vld [vmem:[#allocation28_spill] sm:$0xff] }
 0x3d8   : > { %8088 = vst [vmem:[%s13783_s16 + $0x10] sm:$0xff] %v8056_v63  ;;  %v8054_v4 = vmax.f32 %v8022_v6, 0.0  ;;  %v8025_v52 = vadd.f32 %v13762_v22, %v7986_v56  ;;  %v7950_v16 = vadd.f32 %v10242_v14, %v7644_v46  ;;  %v7984_v47 = vmul.f32 %v13753_v2, %v7945_v23 }
 0x3d9   : > { %v7833_v59 = vpop.f32.mrf.mxu1  ;;  %v7646_v51 = vadd.f32 %v13698_v19, %v7340_v62  ;;  %v7039_v56 = vadd.f32 %v13570_v35, %v13553_v20  ;;  %v7649_v29 = vadd.f32 %v13704_v17, %v7343_v7  ;;  %v7037_v14 = vadd.f32 %v13575_v5, %v13558_v25  ;;  %v13840_v17 = vpop.f32.mrf.mxu0  ;;  %v14292_v5 = vld [vmem:[#allocation20_spill] sm:$0xff] }
 0x3da   : > { %8086 = vst [vmem:[%s13783_s16] sm:$0xff] %v8054_v4  ;;  %v8057_v42 = vmax.f32 %v8025_v52, 0.0  ;;  %v7989_v24 = vmul.f32 %v13753_v2, %v7950_v16  ;;  %v7948_v30 = vadd.f32 %v7833_v59, %v7642_v36  ;;  %v8023_v28 = vadd.f32 %v13762_v22, %v7984_v47 }
 0x3db   : > { %v10243_v10 = vpop.f32.mrf.mxu1  ;;  %v7647_v36 = vadd.f32 %v13710_v57, %v7341_v0  ;;  %v7346_v20 = vadd.f32 %v13684_v11, %v7039_v56  ;;  %v7040_v47 = vadd.f32 %v14291_v48, %v14290_v12  ;;  %v7344_v57 = vadd.f32 %v14292_v5, %v7037_v14 }
 0x3dc   : > { %8089 = vst [vmem:[%s13783_s16 + $0x18] sm:$0xff] %v8057_v42  ;;  %v8028_v9 = vadd.f32 %v13762_v22, %v7989_v24  ;;  %v7987_v33 = vmul.f32 %v13753_v2, %v7948_v30  ;;  %v7951_v8 = vadd.f32 %v10243_v10, %v7645_v21  ;;  %v8055_v1 = vmax.f32 %v8023_v28, 0.0  ;;  %v14293_v30 = vld [vmem:[#allocation8_spill] sm:$0xff]  ;;  %v14295_v28 = vld [vmem:[#allocation34_spill] sm:$0xff] }
 0x3dd   : > { %v7836_v60 = vpop.f32.mrf.mxu1  ;;  %v7652_v25 = vadd.f32 %v13716_v53, %v7346_v20  ;;  %v7038_v32 = vadd.f32 %v14294_v37, %v14293_v30  ;;  %v7650_v10 = vadd.f32 %v14295_v28, %v7344_v57  ;;  %v13856_v53 = vpop.f32.mrf.mxu0 }
 0x3de   : > { %v8060_v44 = vmax.f32 %v8028_v9, 0.0  ;;  %v8026_v45 = vadd.f32 %v13762_v22, %v7987_v33  ;;  %v7990_v54 = vmul.f32 %v13753_v2, %v7951_v8  ;;  %v7949_v38 = vadd.f32 %v7836_v60, %v7643_v43  ;;  %8087 = vst [vmem:[%s13783_s16 + $0x8] sm:$0xff] %v8055_v1  ;;  %v14296_v43 = vld [vmem:[#allocation38_spill] sm:$0xff]  ;;  %v14297_v1 = vld [vmem:[#allocation17_spill] sm:$0xff] }
 0x3df   : > { %v10246_v27 = vpop.f32.mrf.mxu1  ;;  %v7347_v9 = vadd.f32 %v14296_v43, %v7040_v47  ;;  %v14298_v60 = vld [vmem:[#allocation29_spill] sm:$0xff] }
 0x3e0   : > { %8092 = vst [vmem:[%s13783_s16 + $0x30] sm:$0xff] %v8060_v44  ;;  %v8058_v34 = vmax.f32 %v8026_v45, 0.0  ;;  %v8029_v46 = vadd.f32 %v13762_v22, %v7990_v54  ;;  %v7988_v63 = vmul.f32 %v13753_v2, %v7949_v38  ;;  %v7954_v6 = vadd.f32 %v10246_v27, %v7648_v50  ;;  %v14299_v45 = vld [vmem:[#allocation77_spill] sm:$0xff]  ;;  %v14300_v38 = vld [vmem:[#allocation68_spill] sm:$0xff] }
 0x3e1   : > { %v7849_v19 = vpop.f32.mrf.mxu1  ;;  %v7043_v44 = vadd.f32 %v14298_v60, %v14297_v1  ;;  %v7653_v54 = vadd.f32 %v14299_v45, %v7347_v9  ;;  %v7345_v15 = vadd.f32 %v14300_v38, %v7038_v32  ;;  %v14311_v9 = vld [vmem:[#allocation5_spill] sm:$0xff]  ;;  %v14315_v38 = vld [vmem:[#allocation56_spill] sm:$0xff] }
 0x3e2   : > { %8090 = vst [vmem:[%s13783_s16 + $0x20] sm:$0xff] %v8058_v34  ;;  %v8061_v31 = vmax.f32 %v8029_v46, 0.0  ;;  %v8027_v13 = vadd.f32 %v13762_v22, %v7988_v63  ;;  %v7993_v41 = vmul.f32 %v13753_v2, %v7954_v6  ;;  %v7952_v23 = vadd.f32 %v7849_v19, %v7646_v51  ;;  %v14301_v63 = vld [vmem:[#allocation15_spill] sm:$0xff]  ;;  %v14304_v19 = vld [vmem:[#allocation60_spill] sm:$0xff] }
 0x3e3   : > { %v10247_v35 = vpop.f32.mrf.mxu1  ;;  %v14302_v6 = vld [vmem:[#allocation3_spill] sm:$0xff] }
 0x3e4   : > { %8093 = vst [vmem:[%s13783_s16 + $0x38] sm:$0xff] %v8061_v31  ;;  %v8059_v61 = vmax.f32 %v8027_v13, 0.0  ;;  %v8032_v4 = vadd.f32 %v13762_v22, %v7993_v41  ;;  %v7991_v52 = vmul.f32 %v13753_v2, %v7952_v23  ;;  %v7955_v16 = vadd.f32 %v10247_v35, %v7649_v29  ;;  %v14303_v29 = vld [vmem:[#allocation45_spill] sm:$0xff]  ;;  %v13872_v41 = vpop.f32.mrf.mxu0 }
 0x3e5   : > { %v7852_v59 = vpop.f32.mrf.mxu1  ;;  %v7041_v56 = vadd.f32 %v14302_v6, %v14301_v63  ;;  %v7651_v0 = vadd.f32 %v14303_v29, %v7345_v15  ;;  %v7350_v31 = vadd.f32 %v14304_v19, %v7043_v44  ;;  %v14305_v35 = vld [vmem:[#allocation21_spill] sm:$0xff] }
 0x3e6   : > { %8091 = vst [vmem:[%s13783_s16 + $0x28] sm:$0xff] %v8059_v61  ;;  %v8064_v11 = vmax.f32 %v8032_v4, 0.0  ;;  %v8030_v21 = vadd.f32 %v13762_v22, %v7991_v52  ;;  %v7994_v42 = vmul.f32 %v13753_v2, %v7955_v16  ;;  %v7953_v24 = vadd.f32 %v7852_v59, %v7647_v36  ;;  %v14306_v61 = vld [vmem:[#allocation4_spill] sm:$0xff]  ;;  %v14307_v16 = vld [vmem:[#allocation37_spill] sm:$0xff]  ;;  %v14308_v59 = vld [vmem:[#allocation27_spill] sm:$0xff] }
 0x3e7   : > { %v10250_v33 = vpop.f32.mrf.mxu1  ;;  %v7044_v4 = vadd.f32 %v14306_v61, %v14305_v35  ;;  %v7656_v52 = vadd.f32 %v13744_v55, %v7350_v31  ;;  %v7348_v12 = vadd.f32 %v14307_v16, %v7041_v56  ;;  %v13888_v55 = vpop.f32.mrf.mxu0  ;;  %v14317_v29 = vld [vmem:[#allocation13_spill] sm:$0xff]  ;;  %v14320_v61 = vld [vmem:[#allocation18_spill] sm:$0xff] }
 0x3e8   : > { %8096 = vst [vmem:[%s13783_s16 + $0x50] sm:$0xff] %v8064_v11  ;;  %v8062_v8 = vmax.f32 %v8030_v21, 0.0  ;;  %v8033_v40 = vadd.f32 %v13762_v22, %v7994_v42  ;;  %v7992_v50 = vmul.f32 %v13753_v2, %v7953_v24  ;;  %v7958_v62 = vadd.f32 %v10250_v33, %v7652_v25  ;;  %v14309_v11 = vld [vmem:[#allocation9_spill] sm:$0xff]  ;;  %v14310_v24 = vld [vmem:[#allocation30_spill] sm:$0xff]  ;;  %v14312_v33 = vld [vmem:[#allocation19_spill] sm:$0xff] }
 0x3e9   : > { %v7865_v51 = vpop.f32.mrf.mxu1  ;;  %v7042_v21 = vadd.f32 %v14309_v11, %v14308_v59  ;;  %v7654_v42 = vadd.f32 %v13755_v3, %v7348_v12  ;;  %v7351_v30 = vadd.f32 %v14310_v24, %v7044_v4  ;;  %v14321_v4 = vld [vmem:[#allocation59_spill] sm:$0xff]  ;;  %v14322_v12 = vld [vmem:[#allocation74_spill] sm:$0xff] }
 0x3ea   : > { %8094 = vst [vmem:[%s13783_s16 + $0x40] sm:$0xff] %v8062_v8  ;;  %v8065_v7 = vmax.f32 %v8033_v40, 0.0  ;;  %v8031_v27 = vadd.f32 %v13762_v22, %v7992_v50  ;;  %v7997_v34 = vmul.f32 %v13753_v2, %v7958_v62  ;;  %v7956_v46 = vadd.f32 %v7865_v51, %v7650_v10  ;;  %v14313_v50 = vld [vmem:[#allocation71_spill] sm:$0xff]  ;;  %v14323_v11 = vld [vmem:[#allocation54_spill] sm:$0xff] }
 0x3eb   : > { %v10251_v13 = vpop.f32.mrf.mxu1  ;;  %v7047_v8 = vadd.f32 %v14312_v33, %v14311_v9  ;;  %v7657_v40 = vadd.f32 %v13772_v58, %v7351_v30  ;;  %v7349_v3 = vadd.f32 %v14313_v50, %v7042_v21  ;;  %v13904_v58 = vpop.f32.mrf.mxu0  ;;  %v14324_v21 = vld [vmem:[#allocation25_spill] sm:$0xff]  ;;  %v14325_v30 = vld [vmem:[#allocation63_spill] sm:$0xff]  ;;  %v14327_v33 = vld [vmem:[#allocation22_spill] sm:$0xff] }
 0x3ec   : > { %8097 = vst [vmem:[%s13783_s16 + $0x58] sm:$0xff] %v8065_v7  ;;  %v8063_v23 = vmax.f32 %v8031_v27, 0.0  ;;  %v8036_v14 = vadd.f32 %v13762_v22, %v7997_v34  ;;  %v7995_v36 = vmul.f32 %v13753_v2, %v7956_v46  ;;  %v7959_v20 = vadd.f32 %v10251_v13, %v7653_v54  ;;  %v14314_v54 = vld [vmem:[#allocation11_spill] sm:$0xff]  ;;  %v14316_v7 = vld [vmem:[#allocation61_spill] sm:$0xff]  ;;  %v14319_v13 = vld [vmem:[#allocation32_spill] sm:$0xff] }
 0x3ed   : > { %v7868_v48 = vpop.f32.mrf.mxu1  ;;  %v7045_v15 = vadd.f32 %v14315_v38, %v14314_v54  ;;  %v7655_v51 = vadd.f32 %v13792_v18, %v7349_v3  ;;  %v7354_v27 = vadd.f32 %v14316_v7, %v7047_v8  ;;  %v14326_v9 = vld [vmem:[#allocation23_spill] sm:$0xff]  ;;  %v14328_v50 = vld [vmem:[#allocation40_spill] sm:$0xff]  ;;  %v14330_v38 = vld [vmem:[#allocation62_spill] sm:$0xff] }
 0x3ee   : > { %8095 = vst [vmem:[%s13783_s16 + $0x48] sm:$0xff] %v8063_v23  ;;  %v8068_v47 = vmax.f32 %v8036_v14, 0.0  ;;  %v8034_v25 = vadd.f32 %v13762_v22, %v7995_v36  ;;  %v7998_v5 = vmul.f32 %v13753_v2, %v7959_v20  ;;  %v7957_v57 = vadd.f32 %v7868_v48, %v7651_v0  ;;  %v14318_v0 = vld [vmem:[#allocation6_spill] sm:$0xff]  ;;  %v14329_v54 = vld [vmem:[#allocation24_spill] sm:$0xff] }
 0x3ef   : > { %v10254_v37 = vpop.f32.mrf.mxu1  ;;  %v7048_v19 = vadd.f32 %v14318_v0, %v14317_v29  ;;  %v7660_v31 = vadd.f32 %v13808_v39, %v7354_v27  ;;  %v7352_v18 = vadd.f32 %v14319_v13, %v7045_v15  ;;  %v7610_v39 = vpop.f32.mrf.mxu0  ;;  %v7049_v8 = vadd.f32 %v14327_v33, %v14326_v9  ;;  %v14331_v7 = vld [vmem:[#allocation42_spill] sm:$0xff]  ;;  %v14343_v33 = vld [vmem:[#allocation43_spill] sm:$0xff] }
 0x3f0   : > { %8100 = vst [vmem:[%s13783_s16 + $0x70] sm:$0xff] %v8068_v47  ;;  %v8066_v32 = vmax.f32 %v8034_v25, 0.0  ;;  %v8037_v28 = vadd.f32 %v13762_v22, %v7998_v5  ;;  %v7996_v10 = vmul.f32 %v13753_v2, %v7957_v57  ;;  %v7962_v43 = vadd.f32 %v10254_v37, %v7656_v52  ;;  %v14333_v29 = vld [vmem:[#allocation14_spill] sm:$0xff] }
 0x3f1   : > { %v7881_v62 = vpop.f32.mrf.mxu1  ;;  %v7046_v52 = vadd.f32 %v14321_v4, %v14320_v61  ;;  %v7658_v16 = vadd.f32 %v13824_v49, %v7352_v18  ;;  %v7355_v48 = vadd.f32 %v14322_v12, %v7048_v19  ;;  %v7052_v15 = vadd.f32 %v14330_v38, %v14329_v54  ;;  %v14336_v61 = vld [vmem:[#allocation16_spill] sm:$0xff]  ;;  %v14346_v54 = vld [vmem:[#allocation39_spill] sm:$0xff] }
 0x3f2   : > { %8098 = vst [vmem:[%s13783_s16 + $0x60] sm:$0xff] %v8066_v32  ;;  %v8069_v1 = vmax.f32 %v8037_v28, 0.0  ;;  %v8035_v60 = vadd.f32 %v13762_v22, %v7996_v10  ;;  %v8001_v44 = vmul.f32 %v13753_v2, %v7962_v43  ;;  %v7960_v45 = vadd.f32 %v7881_v62, %v7654_v42 }
 0x3f3   : > { %v10255_v34 = vpop.f32.mrf.mxu1  ;;  %v7051_v42 = vadd.f32 %v14324_v21, %v14323_v11  ;;  %v7661_v24 = vadd.f32 %v13840_v17, %v7355_v48  ;;  %v7353_v37 = vadd.f32 %v14325_v30, %v7046_v52  ;;  %v10218_v17 = vpop.f32.mrf.mxu0  ;;  %v7356_v27 = vadd.f32 %v14331_v7, %v7049_v8 }
 0x3f4   : > { %8101 = vst [vmem:[%s13783_s16 + $0x78] sm:$0xff] %v8069_v1  ;;  %v8067_v46 = vmax.f32 %v8035_v60, 0.0  ;;  %v8040_v63 = vadd.f32 %v13762_v22, %v8001_v44  ;;  %v7999_v6 = vmul.f32 %v13753_v2, %v7960_v45  ;;  %v7963_v56 = vadd.f32 %v10255_v34, %v7657_v40 }
 0x3f5   : > { %v7884_v23 = vpop.f32.mrf.mxu1  ;;  %v7659_v40 = vadd.f32 %v13856_v53, %v7353_v37  ;;  %v7358_v3 = vadd.f32 %v14328_v50, %v7051_v42  ;;  %v7662_v19 = vadd.f32 %v13888_v55, %v7356_v27  ;;  %v14340_v42 = vld [vmem:[#allocation31_spill] sm:$0xff] }
 0x3f6   : > { %8099 = vst [vmem:[%s13783_s16 + $0x68] sm:$0xff] %v8067_v46  ;;  %v8072_v14 = vmax.f32 %v8040_v63, 0.0  ;;  %v8038_v36 = vadd.f32 %v13762_v22, %v7999_v6  ;;  %v8002_v20 = vmul.f32 %v13753_v2, %v7963_v56  ;;  %v7961_v35 = vadd.f32 %v7884_v23, %v7655_v51  ;;  %v14332_v56 = vld [vmem:[#allocation55_spill] sm:$0xff] }
 0x3f7   : > { %v10258_v47 = vpop.f32.mrf.mxu1  ;;  %v7664_v51 = vadd.f32 %v13872_v41, %v7358_v3  ;;  %v7050_v0 = vadd.f32 %v14333_v29, %v14332_v56  ;;  %v7623_v41 = vpop.f32.mrf.mxu0 }
 0x3f8   : > { %8104 = vst [vmem:[%s13783_s16 + $0x90] sm:$0xff] %v8072_v14  ;;  %v8070_v25 = vmax.f32 %v8038_v36, 0.0  ;;  %v8041_v5 = vadd.f32 %v13762_v22, %v8002_v20  ;;  %v8000_v57 = vmul.f32 %v13753_v2, %v7961_v35  ;;  %v7966_v59 = vadd.f32 %v10258_v47, %v7660_v31  ;;  %v14334_v31 = vld [vmem:[#allocation36_spill] sm:$0xff]  ;;  %v14335_v35 = vld [vmem:[#allocation7_spill] sm:$0xff] }
 0x3f9   : > { %v7897_v49 = vpop.f32.mrf.mxu1  ;;  %v7359_v13 = vadd.f32 %v14334_v31, %v7052_v15  ;;  %v7055_v4 = vadd.f32 %v14336_v61, %v14335_v35  ;;  %v10219_v37 = vpop.f32.mrf.mxu0 }
 0x3fa   : > { %8102 = vst [vmem:[%s13783_s16 + $0x80] sm:$0xff] %v8070_v25  ;;  %v8073_v32 = vmax.f32 %v8041_v5, 0.0  ;;  %v8039_v28 = vadd.f32 %v13762_v22, %v8000_v57  ;;  %v8005_v10 = vmul.f32 %v13753_v2, %v7966_v59  ;;  %v7964_v43 = vadd.f32 %v7897_v49, %v7658_v16  ;;  %v14337_v16 = vld [vmem:[#allocation64_spill] sm:$0xff]  ;;  %v14339_v59 = vld [vmem:[#allocation65_spill] sm:$0xff] }
 0x3fb   : > { %v10259_v62 = vpop.f32.mrf.mxu1  ;;  %v7665_v52 = vadd.f32 %v13904_v58, %v7359_v13  ;;  %v7357_v12 = vadd.f32 %v14337_v16, %v7050_v0  ;;  %v14338_v57 = vld [vmem:[#allocation12_spill] sm:$0xff]  ;;  %v7626_v7 = vpop.f32.mrf.mxu0 }
 0x3fc   : > { %8105 = vst [vmem:[%s13783_s16 + $0x98] sm:$0xff] %v8073_v32  ;;  %v8071_v1 = vmax.f32 %v8039_v28, 0.0  ;;  %v8044_v60 = vadd.f32 %v13762_v22, %v8005_v10  ;;  %v8003_v44 = vmul.f32 %v13753_v2, %v7964_v43  ;;  %v7967_v45 = vadd.f32 %v10259_v62, %v7661_v24  ;;  %v14341_v10 = vld [vmem:[#allocation57_spill] sm:$0xff]  ;;  %v14342_v43 = vld [vmem:[#allocation58_spill] sm:$0xff] }
 0x3fd   : > { %v7900_v53 = vpop.f32.mrf.mxu1  ;;  %v7053_v11 = vadd.f32 %v14339_v59, %v14338_v57  ;;  %v7663_v21 = vadd.f32 %v7610_v39, %v7357_v12  ;;  %v7362_v24 = vadd.f32 %v14340_v42, %v7055_v4  ;;  %v7056_v9 = vadd.f32 %v14342_v43, %v14341_v10 }
 0x3fe   : > { %8103 = vst [vmem:[%s13783_s16 + $0x88] sm:$0xff] %v8071_v1  ;;  %v8076_v34 = vmax.f32 %v8044_v60, 0.0  ;;  %v8042_v46 = vadd.f32 %v13762_v22, %v8003_v44  ;;  %v8006_v63 = vmul.f32 %v13753_v2, %v7967_v45  ;;  %v7965_v6 = vadd.f32 %v7900_v53, %v7659_v40  ;;  %v14344_v60 = vld [vmem:[#allocation33_spill] sm:$0xff]  ;;  %v14345_v44 = vld [vmem:[#allocation35_spill] sm:$0xff] }
 0x3ff   : > { %v10262_v18 = vpop.f32.mrf.mxu1  ;;  %v7360_v8 = vadd.f32 %v14343_v33, %v7053_v11  ;;  %v7668_v40 = vadd.f32 %v10218_v17, %v7362_v24  ;;  %v7054_v45 = vadd.f32 %v14345_v44, %v14344_v60  ;;  %v7363_v38 = vadd.f32 %v14346_v54, %v7056_v9 }
 0x400   : > { %8108 = vst [vmem:[%s13783_s16 + $0xb0] sm:$0xff] %v8076_v34  ;;  %v8074_v23 = vmax.f32 %v8042_v46, 0.0  ;;  %v8045_v14 = vadd.f32 %v13762_v22, %v8006_v63  ;;  %v8004_v36 = vmul.f32 %v13753_v2, %v7965_v6  ;;  %v7970_v20 = vadd.f32 %v10262_v18, %v7664_v51 }
 0x401   : > { %v7913_v55 = vpop.f32.mrf.mxu1  ;;  %v7666_v15 = vadd.f32 %v7623_v41, %v7360_v8  ;;  %v7361_v46 = vadd.f32 %v13746_v26, %v7054_v45  ;;  %v7669_v63 = vadd.f32 %v10219_v37, %v7363_v38 }
 0x402   : > { %8106 = vst [vmem:[%s13783_s16 + $0xa0] sm:$0xff] %v8074_v23  ;;  %v8077_v48 = vmax.f32 %v8045_v14, 0.0  ;;  %v8043_v47 = vadd.f32 %v13762_v22, %v8004_v36  ;;  %v8009_v25 = vmul.f32 %v13753_v2, %v7970_v20  ;;  %v7968_v5 = vadd.f32 %v7913_v55, %v7662_v19 }
 0x403   : > { %v10263_v30 = vpop.f32.mrf.mxu1  ;;  %v7667_v31 = vadd.f32 %v7626_v7, %v7361_v46 }
 0x404   : > { %8109 = vst [vmem:[%s13783_s16 + $0xb8] sm:$0xff] %v8077_v48  ;;  %v8075_v58 = vmax.f32 %v8043_v47, 0.0  ;;  %v8048_v49 = vadd.f32 %v13762_v22, %v8009_v25  ;;  %v8007_v32 = vmul.f32 %v13753_v2, %v7968_v5  ;;  %v7971_v28 = vadd.f32 %v10263_v30, %v7665_v52 }
 0x405   : > { %v7916_v50 = vpop.f32.mrf.mxu1 }
 0x406   : > { %8107 = vst [vmem:[%s13783_s16 + $0xa8] sm:$0xff] %v8075_v58  ;;  %v8080_v39 = vmax.f32 %v8048_v49, 0.0  ;;  %v8046_v3 = vadd.f32 %v13762_v22, %v8007_v32  ;;  %v8010_v62 = vmul.f32 %v13753_v2, %v7971_v28  ;;  %v7969_v1 = vadd.f32 %v7916_v50, %v7663_v21 }
 0x407   : > { %v10266_v51 = vpop.f32.mrf.mxu1 }
 0x408   : > { %8112 = vst [vmem:[%s13783_s16 + $0xd0] sm:$0xff] %v8080_v39  ;;  %v8078_v17 = vmax.f32 %v8046_v3, 0.0  ;;  %v8049_v27 = vadd.f32 %v13762_v22, %v8010_v62  ;;  %v8008_v53 = vmul.f32 %v13753_v2, %v7969_v1  ;;  %v7974_v34 = vadd.f32 %v10266_v51, %v7668_v40 }
 0x409   : > { %v7929_v6 = vpop.f32.mrf.mxu1 }
 0x40a   : > { %8110 = vst [vmem:[%s13783_s16 + $0xc0] sm:$0xff] %v8078_v17  ;;  %v8081_v56 = vmax.f32 %v8049_v27, 0.0  ;;  %v8047_v29 = vadd.f32 %v13762_v22, %v8008_v53  ;;  %v8013_v0 = vmul.f32 %v13753_v2, %v7974_v34  ;;  %v7972_v19 = vadd.f32 %v7929_v6, %v7666_v15 }
 0x40b   : > { %v10267_v13 = vpop.f32.mrf.mxu1 }
 0x40c   : > { %8113 = vst [vmem:[%s13783_s16 + $0xd8] sm:$0xff] %v8081_v56  ;;  %v8079_v18 = vmax.f32 %v8047_v29, 0.0  ;;  %v8052_v41 = vadd.f32 %v13762_v22, %v8013_v0  ;;  %v8011_v26 = vmul.f32 %v13753_v2, %v7972_v19  ;;  %v7975_v23 = vadd.f32 %v10267_v13, %v7669_v63 }
 0x40d   : > { %v7932_v14 = vpop.f32.mrf.mxu1 }
 0x40e   : > { %8111 = vst [vmem:[%s13783_s16 + $0xc8] sm:$0xff] %v8079_v18  ;;  %v8084_v36 = vmax.f32 %v8052_v41, 0.0  ;;  %v8050_v20 = vadd.f32 %v13762_v22, %v8011_v26  ;;  %v8014_v35 = vmul.f32 %v13753_v2, %v7975_v23  ;;  %v7973_v61 = vadd.f32 %v7932_v14, %v7667_v31 }
 0x410   : > { %8116 = vst [vmem:[%s13783_s16 + $0xf0] sm:$0xff] %v8084_v36  ;;  %v8082_v4 = vmax.f32 %v8050_v20, 0.0  ;;  %v8053_v52 = vadd.f32 %v13762_v22, %v8014_v35  ;;  %v8012_v16 = vmul.f32 %v13753_v2, %v7973_v61 }
 0x412   : > { %8114 = vst [vmem:[%s13783_s16 + $0xe0] sm:$0xff] %v8082_v4  ;;  %v8085_v12 = vmax.f32 %v8053_v52, 0.0  ;;  %v8051_v55 = vadd.f32 %v13762_v22, %v8012_v16 }
 0x414   : > { %8117 = vst [vmem:[%s13783_s16 + $0xf8] sm:$0xff] %v8085_v12  ;;  %v8083_v48 = vmax.f32 %v8051_v55, 0.0 }
 0x416   : > { %8115 = vst [vmem:[%s13783_s16 + $0xe8] sm:$0xff] %v8083_v48 }
 0x417 PF: > { %s17_s24 = sadd.s32 1, %s10484_s24  }
 0x418   : > { %p14_p4 = scmp.ge.s32.totalorder %s17_s24, 4  }
 0x41a   :  { %16 = sbr.rel (!%p14_p4) target bundleno = 1 (0x1), region = 98 }

</bundles_post_ra>
